<compile_context>
chip_gen: v5e
topology: v5e:2x2
jax: 0.10.0
libtpu: 0.0.40
codegen_flags: <defaults>
</compile_context>

<pallas_src>
import functools

import numpy as np
import jax
import jax.numpy as jnp
from jax import lax
from jax.experimental import pallas as pl
from jax.experimental.pallas import tpu as pltpu

# ----------------------------- configuration --------------------------------
# ResidualCouplingBlock(channels=8, hidden_channels=32, kernel_size=5,
#                       dilation_rate=1, n_layers=4, n_flows=4, gin_channels=0)
CHANNELS = 8
HIDDEN = 32
KERNEL_SIZE = 5
DILATION_RATE = 1
N_LAYERS = 4
N_FLOWS = 4
HALF = CHANNELS // 2
B = 2
T = 16
ROWS = B * T


def _conv_shift_matrices(batch, t, kernel_size, dilation_rate, n_layers):
    """Constant 0/1 matrices S (K*ROWS, ROWS): (S @ h)[k*ROWS + i] = h[i + o_k]
    if that source row is inside the same batch segment and inside [0, T)
    (conv zero padding), else 0.  One matrix per unique dilation."""
    rows = batch * t
    mats, dil_to_idx, layer_idx = [], {}, []
    for i in range(n_layers):
        d = dilation_rate ** i
        if d not in dil_to_idx:
            blocks = []
            for k in range(kernel_size):
                o = (k - (kernel_size - 1) // 2) * d
                s = np.zeros((rows, rows), np.float32)
                for dst in range(rows):
                    src = dst + o
                    if 0 <= src < rows and (src // t) == (dst // t):
                        s[dst, src] = 1.0
                blocks.append(s)
            dil_to_idx[d] = len(mats)
            mats.append(np.concatenate(blocks, axis=0))      # (K*rows, rows)
        layer_idx.append(dil_to_idx[d])
    return np.stack(mats), tuple(layer_idx)


SHIFT_MATS_NP, LAYER_SHIFT_IDX = _conv_shift_matrices(
    B, T, KERNEL_SIZE, DILATION_RATE, N_LAYERS)


# ------------------------------ Pallas kernel -------------------------------
def _block_kernel(x_ref, mask_ref, shift_ref,
                  pre_w_ref, pre_b_ref, in_w_ref, in_b_ref,
                  rs_w_ref, rs_b_ref, rs_w_last_ref, rs_b_last_ref,
                  post_w_ref, post_b_ref,
                  out_ref, *,
                  n_flows, n_layers, hidden, half_ch, kernel_size,
                  layer_shift_idx, rows):
    bf16 = jnp.bfloat16

    mask = mask_ref[...]                                     # (ROWS, 1)
    # Hoisted mask broadcasts (reused for every "* mask").
    mask_h = jnp.broadcast_to(mask, (rows, hidden))
    mask_half = jnp.broadcast_to(mask, (rows, half_ch))

    x = x_ref[...]
    x0 = x[:, :half_ch]                                      # physical half "A"
    x1 = x[:, half_ch:]                                      # physical half "B"

    def mxu(a, w):                                           # bf16 MXU, f32 acc
        return jnp.dot(a.astype(bf16), w, preferred_element_type=jnp.float32)

    for f in range(n_flows):                  # flows unrolled; x stays in vregs
        # --- pre 1x1 conv (depth-4): VPU broadcast-madd, not an MXU push.
        #     (Flip already folded into pre_w's rows for odd flows.)
        h = jnp.broadcast_to(pre_b_ref[f], (rows, hidden))
        for c in range(half_ch):
            h = h + x0[:, c:c + 1] * pre_w_ref[f, c:c + 1, :]
        h = h * mask_h                                        # (ROWS, H)

        # ---- WN stack ----
        output = jnp.zeros((rows, hidden), jnp.float32)
        for i in range(n_layers):
            # Dilated-conv taps via one MXU matmul against a constant shift
            # matrix (padding + batch isolation folded in), then ALIGNED row
            # slices + one lane concat -> (ROWS, K*H).  No VMEM bounce, no
            # unaligned sublane reads.
            s_mat = shift_ref[layer_shift_idx[i]]             # (K*ROWS, ROWS) bf16
            shifted = jnp.dot(s_mat, h.astype(bf16),
                              preferred_element_type=jnp.float32)  # (K*ROWS, H)
            taps = jnp.concatenate(
                [shifted[k * rows:(k + 1) * rows, :] for k in range(kernel_size)],
                axis=-1)                                      # (ROWS, K*H)
            x_in = mxu(taps, in_w_ref[f, i]) + in_b_ref[f, i]  # (ROWS, 2H)
            # fused_add_tanh_sigmoid_multiply with g=None (f32 on VPU/EUP).
            acts = jnp.tanh(x_in[:, :hidden]) * jax.nn.sigmoid(x_in[:, hidden:])
            if i < n_layers - 1:
                res_skip = mxu(acts, rs_w_ref[f, i]) + rs_b_ref[f, i]  # (ROWS, 2H)
                h = (h + res_skip[:, :hidden]) * mask_h
                output = output + res_skip[:, hidden:]
            else:                              # last layer: H-wide res_skip only
                output = output + mxu(acts, rs_w_last_ref[f]) + rs_b_last_ref[f]
        output = output * mask_h

        # --- post 1x1 conv (mean_only -> logs == 0); Flip folded into columns.
        m = (mxu(output, post_w_ref[f]) + post_b_ref[f]) * mask_half
        x1_new = m + x1 * mask_half
        # Channel Flip between flows == swap of the physical halves (the
        # within-half reversal lives in the next flow's folded weights).
        x0, x1 = x1_new, x0

    # Single full-width store (no two masked half-width stores).
    out_ref[...] = jnp.concatenate([x0, x1], axis=-1)


def residual_coupling_block_pallas(x_flat, mask_flat, kp):
    rows, c = x_flat.shape
    kernel = functools.partial(
        _block_kernel, n_flows=N_FLOWS, n_layers=N_LAYERS, hidden=HIDDEN,
        half_ch=HALF, kernel_size=KERNEL_SIZE,
        layer_shift_idx=LAYER_SHIFT_IDX, rows=rows)

    weight_order = ('shift_mats', 'pre_w', 'pre_b', 'in_w', 'in_b',
                    'rs_w', 'rs_b', 'rs_w_last', 'rs_b_last',
                    'post_w', 'post_b')
    weights = [kp[k] for k in weight_order]

    vmem = pl.BlockSpec(memory_space=pltpu.MemorySpace.VMEM)
    n_inputs = 2 + len(weights)

    return pl.pallas_call(
        kernel,
        out_shape=jax.ShapeDtypeStruct((rows, c), jnp.float32),
        in_specs=[vmem] * n_inputs,
        out_specs=vmem,
        input_output_aliases={0: 0},
    )(x_flat, mask_flat, *weights)


@jax.jit
def residual_coupling_block_forward(x_bct, mask_b1t, kp):
    """PyTorch layout I/O: x (B, C, T), x_mask (B, 1, T) -> (B, C, T)."""
    b, c, t = x_bct.shape
    x_flat = jnp.transpose(x_bct, (0, 2, 1)).reshape(b * t, c)      # (B*T, C)
    mask_flat = jnp.transpose(mask_b1t, (0, 2, 1)).reshape(b * t, 1)
    out_flat = residual_coupling_block_pallas(x_flat, mask_flat, kp)
    out = out_flat.reshape(b, t, c)
    if N_FLOWS % 2 == 1:
        # Odd flow count: physical halves are reversed-within-half relative to
        # the logical output; undo here (N_FLOWS=4 -> static no-op).
        out = jnp.concatenate([jnp.flip(out[..., :HALF], -1),
                               jnp.flip(out[..., HALF:], -1)], axis=-1)
    return jnp.transpose(out, (0, 2, 1))


# --------------------------- pure-JAX reference ------------------------------
def _conv1d_ref(x, w, bias, dilation=1, padding=0):
    # x: (B, Cin, T), w: (Cout, Cin, K)  -- mirrors torch.nn.Conv1d
    out = lax.conv_general_dilated(
        x, w, window_strides=(1,), padding=[(padding, padding)],
        rhs_dilation=(dilation,), dimension_numbers=('NCH', 'OIH', 'NCH'),
        precision=lax.Precision.HIGHEST)
    return out + bias[None, :, None]


def _wn_ref(x, x_mask, p):
    output = jnp.zeros_like(x)
    for i in range(N_LAYERS):
        dil = DILATION_RATE ** i
        pad = (KERNEL_SIZE * dil - dil) // 2
        x_in = _conv1d_ref(x, p['in_w'][i], p['in_b'][i], dilation=dil, padding=pad)
        acts = jnp.tanh(x_in[:, :HIDDEN, :]) * jax.nn.sigmoid(x_in[:, HIDDEN:, :])
        rs = _conv1d_ref(acts, p['rs_w'][i], p['rs_b'][i])
        if i < N_LAYERS - 1:
            x = (x + rs[:, :HIDDEN, :]) * x_mask
            output = output + rs[:, HIDDEN:, :]
        else:
            output = output + rs
    return output * x_mask


def _coupling_layer_ref(x, x_mask, p):
    x0, x1 = x[:, :HALF, :], x[:, HALF:, :]
    h = _conv1d_ref(x0, p['pre_w'], p['pre_b']) * x_mask
    h = _wn_ref(h, x_mask, p)
    m = _conv1d_ref(h, p['post_w'], p['post_b']) * x_mask
    x1 = m + x1 * x_mask  # mean_only: logs == 0
    return jnp.concatenate([x0, x1], axis=1)


def block_ref(x, x_mask, params):  # PyTorch (B, C, T) layout
    for f in range(N_FLOWS):
        x = _coupling_layer_ref(x, x_mask, params[f])
        x = jnp.flip(x, axis=1)
    return x


# ------------------------------ parameters ----------------------------------
def init_params(key):
    """Deterministic synthetic weights in PyTorch Conv1d layout."""
    params = []
    for _ in range(N_FLOWS):
        p = {}
        key, k1, k2 = jax.random.split(key, 3)
        p['pre_w'] = 0.1 * jax.random.normal(k1, (HIDDEN, HALF, 1), jnp.float32)
        p['pre_b'] = 0.1 * jax.random.normal(k2, (HIDDEN,), jnp.float32)
        p['in_w'], p['in_b'], p['rs_w'], p['rs_b'] = [], [], [], []
        for i in range(N_LAYERS):
            key, ka, kb, kc, kd = jax.random.split(key, 5)
            p['in_w'].append(0.1 * jax.random.normal(
                ka, (2 * HIDDEN, HIDDEN, KERNEL_SIZE), jnp.float32))
            p['in_b'].append(0.1 * jax.random.normal(kb, (2 * HIDDEN,), jnp.float32))
            rsc = 2 * HIDDEN if i < N_LAYERS - 1 else HIDDEN
            p['rs_w'].append(0.1 * jax.random.normal(kc, (rsc, HIDDEN, 1), jnp.float32))
            p['rs_b'].append(0.1 * jax.random.normal(kd, (rsc,), jnp.float32))
        key, k5, k6 = jax.random.split(key, 3)
        # NOTE: the PyTorch module zero-inits `post` (flow == identity at init);
        # small random values are used so the full compute path is exercised.
        p['post_w'] = 0.1 * jax.random.normal(k5, (HALF, HIDDEN, 1), jnp.float32)
        p['post_b'] = 0.1 * jax.random.normal(k6, (HALF,), jnp.float32)
        params.append(p)
    return params


def to_kernel_params(params):
    """PyTorch conv layout -> stacked channels-last matmul layout.

    The inter-flow Flip is folded in here: the kernel keeps un-flipped
    "physical" halves and swaps them after every flow, so flow f sees the
    logical halves reversed-within-half iff f is odd; that reversal is
    absorbed into pre_w's input rows and post_w/post_b's output channels.
    MXU weights are stored bf16; VPU weights and biases stay f32.
    """
    stk = {k: [] for k in ('pre_w', 'pre_b', 'in_w', 'in_b', 'rs_w', 'rs_b',
                           'rs_w_last', 'rs_b_last', 'post_w', 'post_b')}
    for f, p in enumerate(params):
        rev = (f % 2 == 1)

        pw = p['pre_w'][:, :, 0].T                          # (HALF, H), rows=in-ch
        if rev:
            pw = pw[::-1, :]
        stk['pre_w'].append(pw)
        stk['pre_b'].append(p['pre_b'][None, :])            # (1, H)

        iw = jnp.stack([jnp.transpose(w, (2, 1, 0)) for w in p['in_w']])  # (L,K,H,2H)
        stk['in_w'].append(iw.reshape(N_LAYERS, KERNEL_SIZE * HIDDEN, 2 * HIDDEN))
        stk['in_b'].append(jnp.stack(p['in_b'])[:, None, :])              # (L,1,2H)

        stk['rs_w'].append(jnp.stack(
            [p['rs_w'][i][:, :, 0].T for i in range(N_LAYERS - 1)]))      # (L-1,H,2H)
        stk['rs_b'].append(jnp.stack(
            [p['rs_b'][i] for i in range(N_LAYERS - 1)])[:, None, :])     # (L-1,1,2H)
        stk['rs_w_last'].append(p['rs_w'][N_LAYERS - 1][:, :, 0].T)       # (H, H)
        stk['rs_b_last'].append(p['rs_b'][N_LAYERS - 1][None, :])         # (1, H)

        qw = p['post_w'][:, :, 0].T                         # (H, HALF), cols=out-ch
        qb = p['post_b']
        if rev:
            qw = qw[:, ::-1]
            qb = qb[::-1]
        stk['post_w'].append(qw)
        stk['post_b'].append(qb[None, :])

    out = {k: jnp.stack(v) for k, v in stk.items()}
    for k in ('in_w', 'rs_w', 'rs_w_last', 'post_w'):       # MXU operands -> bf16
        out[k] = out[k].astype(jnp.bfloat16)
    out['shift_mats'] = jnp.asarray(SHIFT_MATS_NP, jnp.bfloat16)
    return out


# --------------------------------- main --------------------------------------
if __name__ == "__main__":
    key = jax.random.PRNGKey(0)
    key, kx = jax.random.split(key)

    # PyTorch-convention inputs: x (B, C, T), x_mask (B, 1, T).
    x_pt = jax.random.normal(kx, (B, CHANNELS, T), jnp.float32)
    lengths = jnp.array([T, 11], jnp.int32)
    mask_pt = (jnp.arange(T)[None, :] < lengths[:, None]).astype(jnp.float32)[:, None, :]

    params = init_params(key)
    kparams = to_kernel_params(params)

    out_pallas = jax.block_until_ready(
        residual_coupling_block_forward(x_pt, mask_pt, kparams))

    out_ref = block_ref(x_pt, mask_pt, params)
    max_err = float(jnp.max(jnp.abs(out_pallas - out_ref)))
    # Kernel matmuls run with bf16 operands / f32 accumulation per perf
    # guidance; reference runs at f32 HIGHEST -> allow bf16-class differences.
    assert jnp.allclose(out_pallas, out_ref, atol=2e-2, rtol=2e-2), max_err

    print("KERNEL_OK")
</pallas_src>

<mosaic_0001>
module attributes {stable_mosaic.version = 11 : i64} {
  func.func @_block_kernel(%arg0: memref<32x8xf32, #tpu.memory_space<vmem>>, %arg1: memref<32x1xf32, #tpu.memory_space<vmem>>, %arg2: memref<1x160x32xbf16, #tpu.memory_space<vmem>>, %arg3: memref<4x4x32xf32, #tpu.memory_space<vmem>>, %arg4: memref<4x1x32xf32, #tpu.memory_space<vmem>>, %arg5: memref<4x4x160x64xbf16, #tpu.memory_space<vmem>>, %arg6: memref<4x4x1x64xf32, #tpu.memory_space<vmem>>, %arg7: memref<4x3x32x64xbf16, #tpu.memory_space<vmem>>, %arg8: memref<4x3x1x64xf32, #tpu.memory_space<vmem>>, %arg9: memref<4x32x32xbf16, #tpu.memory_space<vmem>>, %arg10: memref<4x1x32xf32, #tpu.memory_space<vmem>>, %arg11: memref<4x32x4xbf16, #tpu.memory_space<vmem>>, %arg12: memref<4x1x4xf32, #tpu.memory_space<vmem>>, %arg13: memref<32x8xf32, #tpu.memory_space<vmem>>) attributes {dimension_semantics = [], scalar_prefetch = 0 : i64, scratch_operands = 0 : i64, tpu.core_type = #tpu.core_type<tc>} {
    %c0 = arith.constant 0 : index
    %c0_0 = arith.constant 0 : index
    %0 = vector.load %arg1[%c0, %c0_0] : memref<32x1xf32, #tpu.memory_space<vmem>>, vector<32x1xf32>
    %1 = vector.shape_cast %0 : vector<32x1xf32> to vector<32x1xf32>
    %2 = vector.broadcast %1 : vector<32x1xf32> to vector<32x32xf32>
    %3 = vector.shape_cast %0 : vector<32x1xf32> to vector<32x1xf32>
    %4 = vector.broadcast %3 : vector<32x1xf32> to vector<32x4xf32>
    %c0_1 = arith.constant 0 : index
    %c0_2 = arith.constant 0 : index
    %5 = vector.load %arg0[%c0_1, %c0_2] : memref<32x8xf32, #tpu.memory_space<vmem>>, vector<32x8xf32>
    %6 = vector.extract_strided_slice %5 {offsets = [0, 0], sizes = [32, 4], strides = [1, 1]} : vector<32x8xf32> to vector<32x4xf32>
    %7 = vector.extract_strided_slice %5 {offsets = [0, 4], sizes = [32, 4], strides = [1, 1]} : vector<32x8xf32> to vector<32x4xf32>
    %c0_3 = arith.constant 0 : index
    %c0_4 = arith.constant 0 : index
    %c0_5 = arith.constant 0 : index
    %8 = vector.load %arg4[%c0_3, %c0_4, %c0_5] : memref<4x1x32xf32, #tpu.memory_space<vmem>>, vector<1x1x32xf32>
    %9 = vector.shape_cast %8 : vector<1x1x32xf32> to vector<1x32xf32>
    %10 = vector.shape_cast %9 : vector<1x32xf32> to vector<1x32xf32>
    %11 = vector.broadcast %10 : vector<1x32xf32> to vector<32x32xf32>
    %12 = vector.extract_strided_slice %6 {offsets = [0, 0], sizes = [32, 1], strides = [1, 1]} : vector<32x4xf32> to vector<32x1xf32>
    %c0_6 = arith.constant 0 : index
    %c0_7 = arith.constant 0 : index
    %c0_8 = arith.constant 0 : index
    %13 = vector.load %arg3[%c0_6, %c0_7, %c0_8] : memref<4x4x32xf32, #tpu.memory_space<vmem>>, vector<1x1x32xf32>
    %14 = vector.shape_cast %13 : vector<1x1x32xf32> to vector<1x32xf32>
    %15 = vector.broadcast %12 : vector<32x1xf32> to vector<32x32xf32>
    %16 = vector.broadcast %14 : vector<1x32xf32> to vector<32x32xf32>
    %17 = arith.mulf %15, %16 : vector<32x32xf32>
    %18 = arith.addf %11, %17 : vector<32x32xf32>
    %19 = vector.extract_strided_slice %6 {offsets = [0, 1], sizes = [32, 1], strides = [1, 1]} : vector<32x4xf32> to vector<32x1xf32>
    %c0_9 = arith.constant 0 : index
    %c1 = arith.constant 1 : index
    %c0_10 = arith.constant 0 : index
    %20 = vector.load %arg3[%c0_9, %c1, %c0_10] : memref<4x4x32xf32, #tpu.memory_space<vmem>>, vector<1x1x32xf32>
    %21 = vector.shape_cast %20 : vector<1x1x32xf32> to vector<1x32xf32>
    %22 = vector.broadcast %19 : vector<32x1xf32> to vector<32x32xf32>
    %23 = vector.broadcast %21 : vector<1x32xf32> to vector<32x32xf32>
    %24 = arith.mulf %22, %23 : vector<32x32xf32>
    %25 = arith.addf %18, %24 : vector<32x32xf32>
    %26 = vector.extract_strided_slice %6 {offsets = [0, 2], sizes = [32, 1], strides = [1, 1]} : vector<32x4xf32> to vector<32x1xf32>
    %c0_11 = arith.constant 0 : index
    %c2 = arith.constant 2 : index
    %c0_12 = arith.constant 0 : index
    %27 = vector.load %arg3[%c0_11, %c2, %c0_12] : memref<4x4x32xf32, #tpu.memory_space<vmem>>, vector<1x1x32xf32>
    %28 = vector.shape_cast %27 : vector<1x1x32xf32> to vector<1x32xf32>
    %29 = vector.broadcast %26 : vector<32x1xf32> to vector<32x32xf32>
    %30 = vector.broadcast %28 : vector<1x32xf32> to vector<32x32xf32>
    %31 = arith.mulf %29, %30 : vector<32x32xf32>
    %32 = arith.addf %25, %31 : vector<32x32xf32>
    %33 = vector.extract_strided_slice %6 {offsets = [0, 3], sizes = [32, 1], strides = [1, 1]} : vector<32x4xf32> to vector<32x1xf32>
    %c0_13 = arith.constant 0 : index
    %c3 = arith.constant 3 : index
    %c0_14 = arith.constant 0 : index
    %34 = vector.load %arg3[%c0_13, %c3, %c0_14] : memref<4x4x32xf32, #tpu.memory_space<vmem>>, vector<1x1x32xf32>
    %35 = vector.shape_cast %34 : vector<1x1x32xf32> to vector<1x32xf32>
    %36 = vector.broadcast %33 : vector<32x1xf32> to vector<32x32xf32>
    %37 = vector.broadcast %35 : vector<1x32xf32> to vector<32x32xf32>
    %38 = arith.mulf %36, %37 : vector<32x32xf32>
    %39 = arith.addf %32, %38 : vector<32x32xf32>
    %40 = arith.mulf %39, %2 : vector<32x32xf32>
    %cst = arith.constant 0.000000e+00 : f32
    %41 = vector.broadcast %cst : f32 to vector<32x32xf32>
    %c0_15 = arith.constant 0 : index
    %c0_16 = arith.constant 0 : index
    %c0_17 = arith.constant 0 : index
    %42 = vector.load %arg2[%c0_15, %c0_16, %c0_17] : memref<1x160x32xbf16, #tpu.memory_space<vmem>>, vector<1x160x32xbf16>
    %43 = vector.shape_cast %42 : vector<1x160x32xbf16> to vector<160x32xbf16>
    %44 = arith.truncf %40 : vector<32x32xf32> to vector<32x32xbf16>
    %cst_18 = arith.constant dense<0.000000e+00> : vector<160x32xf32>
    %45 = tpu.matmul %43, %44, %cst_18 {dimension_numbers = #tpu.dot_dimension_numbers<[1], [0], [0], [1], [0, 0, 1, 1], [], []>} : vector<160x32xbf16>, vector<32x32xbf16>, vector<160x32xf32> -> vector<160x32xf32>
    %46 = vector.extract_strided_slice %45 {offsets = [0, 0], sizes = [32, 32], strides = [1, 1]} : vector<160x32xf32> to vector<32x32xf32>
    %47 = vector.extract_strided_slice %45 {offsets = [32, 0], sizes = [32, 32], strides = [1, 1]} : vector<160x32xf32> to vector<32x32xf32>
    %48 = vector.extract_strided_slice %45 {offsets = [64, 0], sizes = [32, 32], strides = [1, 1]} : vector<160x32xf32> to vector<32x32xf32>
    %49 = vector.extract_strided_slice %45 {offsets = [96, 0], sizes = [32, 32], strides = [1, 1]} : vector<160x32xf32> to vector<32x32xf32>
    %50 = vector.extract_strided_slice %45 {offsets = [128, 0], sizes = [32, 32], strides = [1, 1]} : vector<160x32xf32> to vector<32x32xf32>
    %51 = tpu.concatenate %46, %47, %48, %49, %50 in 1 : vector<32x32xf32>, vector<32x32xf32>, vector<32x32xf32>, vector<32x32xf32>, vector<32x32xf32> -> vector<32x160xf32>
    %c0_19 = arith.constant 0 : index
    %c0_20 = arith.constant 0 : index
    %c0_21 = arith.constant 0 : index
    %c0_22 = arith.constant 0 : index
    %52 = vector.load %arg5[%c0_19, %c0_20, %c0_21, %c0_22] : memref<4x4x160x64xbf16, #tpu.memory_space<vmem>>, vector<1x1x160x64xbf16>
    %53 = vector.shape_cast %52 : vector<1x1x160x64xbf16> to vector<160x64xbf16>
    %54 = arith.truncf %51 : vector<32x160xf32> to vector<32x160xbf16>
    %cst_23 = arith.constant dense<0.000000e+00> : vector<32x64xf32>
    %55 = tpu.matmul %54, %53, %cst_23 {dimension_numbers = #tpu.dot_dimension_numbers<[1], [0], [0], [1], [0, 0, 1, 1], [], []>} : vector<32x160xbf16>, vector<160x64xbf16>, vector<32x64xf32> -> vector<32x64xf32>
    %c0_24 = arith.constant 0 : index
    %c0_25 = arith.constant 0 : index
    %c0_26 = arith.constant 0 : index
    %c0_27 = arith.constant 0 : index
    %56 = vector.load %arg6[%c0_24, %c0_25, %c0_26, %c0_27] : memref<4x4x1x64xf32, #tpu.memory_space<vmem>>, vector<1x1x1x64xf32>
    %57 = vector.shape_cast %56 : vector<1x1x1x64xf32> to vector<1x64xf32>
    %58 = vector.broadcast %57 : vector<1x64xf32> to vector<32x64xf32>
    %59 = arith.addf %55, %58 : vector<32x64xf32>
    %60 = vector.extract_strided_slice %59 {offsets = [0, 0], sizes = [32, 32], strides = [1, 1]} : vector<32x64xf32> to vector<32x32xf32>
    %61 = math.tanh %60 : vector<32x32xf32>
    %62 = vector.extract_strided_slice %59 {offsets = [0, 32], sizes = [32, 32], strides = [1, 1]} : vector<32x64xf32> to vector<32x32xf32>
    %63 = arith.negf %62 : vector<32x32xf32>
    %64 = math.exp %63 : vector<32x32xf32>
    %cst_28 = arith.constant 1.000000e+00 : f32
    %65 = vector.broadcast %cst_28 : f32 to vector<32x32xf32>
    %66 = arith.addf %65, %64 : vector<32x32xf32>
    %67 = arith.divf %65, %66 : vector<32x32xf32>
    %68 = arith.mulf %61, %67 : vector<32x32xf32>
    %c0_29 = arith.constant 0 : index
    %c0_30 = arith.constant 0 : index
    %c0_31 = arith.constant 0 : index
    %c0_32 = arith.constant 0 : index
    %69 = vector.load %arg7[%c0_29, %c0_30, %c0_31, %c0_32] : memref<4x3x32x64xbf16, #tpu.memory_space<vmem>>, vector<1x1x32x64xbf16>
    %70 = vector.shape_cast %69 : vector<1x1x32x64xbf16> to vector<32x64xbf16>
    %71 = arith.truncf %68 : vector<32x32xf32> to vector<32x32xbf16>
    %cst_33 = arith.constant dense<0.000000e+00> : vector<32x64xf32>
    %72 = tpu.matmul %71, %70, %cst_33 {dimension_numbers = #tpu.dot_dimension_numbers<[1], [0], [0], [1], [0, 0, 1, 1], [], []>} : vector<32x32xbf16>, vector<32x64xbf16>, vector<32x64xf32> -> vector<32x64xf32>
    %c0_34 = arith.constant 0 : index
    %c0_35 = arith.constant 0 : index
    %c0_36 = arith.constant 0 : index
    %c0_37 = arith.constant 0 : index
    %73 = vector.load %arg8[%c0_34, %c0_35, %c0_36, %c0_37] : memref<4x3x1x64xf32, #tpu.memory_space<vmem>>, vector<1x1x1x64xf32>
    %74 = vector.shape_cast %73 : vector<1x1x1x64xf32> to vector<1x64xf32>
    %75 = vector.broadcast %74 : vector<1x64xf32> to vector<32x64xf32>
    %76 = arith.addf %72, %75 : vector<32x64xf32>
    %77 = vector.extract_strided_slice %76 {offsets = [0, 0], sizes = [32, 32], strides = [1, 1]} : vector<32x64xf32> to vector<32x32xf32>
    %78 = arith.addf %40, %77 : vector<32x32xf32>
    %79 = arith.mulf %78, %2 : vector<32x32xf32>
    %80 = vector.extract_strided_slice %76 {offsets = [0, 32], sizes = [32, 32], strides = [1, 1]} : vector<32x64xf32> to vector<32x32xf32>
    %81 = arith.addf %41, %80 : vector<32x32xf32>
    %c0_38 = arith.constant 0 : index
    %c0_39 = arith.constant 0 : index
    %c0_40 = arith.constant 0 : index
    %82 = vector.load %arg2[%c0_38, %c0_39, %c0_40] : memref<1x160x32xbf16, #tpu.memory_space<vmem>>, vector<1x160x32xbf16>
    %83 = vector.shape_cast %82 : vector<1x160x32xbf16> to vector<160x32xbf16>
    %84 = arith.truncf %79 : vector<32x32xf32> to vector<32x32xbf16>
    %cst_41 = arith.constant dense<0.000000e+00> : vector<160x32xf32>
    %85 = tpu.matmul %83, %84, %cst_41 {dimension_numbers = #tpu.dot_dimension_numbers<[1], [0], [0], [1], [0, 0, 1, 1], [], []>} : vector<160x32xbf16>, vector<32x32xbf16>, vector<160x32xf32> -> vector<160x32xf32>
    %86 = vector.extract_strided_slice %85 {offsets = [0, 0], sizes = [32, 32], strides = [1, 1]} : vector<160x32xf32> to vector<32x32xf32>
    %87 = vector.extract_strided_slice %85 {offsets = [32, 0], sizes = [32, 32], strides = [1, 1]} : vector<160x32xf32> to vector<32x32xf32>
    %88 = vector.extract_strided_slice %85 {offsets = [64, 0], sizes = [32, 32], strides = [1, 1]} : vector<160x32xf32> to vector<32x32xf32>
    %89 = vector.extract_strided_slice %85 {offsets = [96, 0], sizes = [32, 32], strides = [1, 1]} : vector<160x32xf32> to vector<32x32xf32>
    %90 = vector.extract_strided_slice %85 {offsets = [128, 0], sizes = [32, 32], strides = [1, 1]} : vector<160x32xf32> to vector<32x32xf32>
    %91 = tpu.concatenate %86, %87, %88, %89, %90 in 1 : vector<32x32xf32>, vector<32x32xf32>, vector<32x32xf32>, vector<32x32xf32>, vector<32x32xf32> -> vector<32x160xf32>
    %c0_42 = arith.constant 0 : index
    %c1_43 = arith.constant 1 : index
    %c0_44 = arith.constant 0 : index
    %c0_45 = arith.constant 0 : index
    %92 = vector.load %arg5[%c0_42, %c1_43, %c0_44, %c0_45] : memref<4x4x160x64xbf16, #tpu.memory_space<vmem>>, vector<1x1x160x64xbf16>
    %93 = vector.shape_cast %92 : vector<1x1x160x64xbf16> to vector<160x64xbf16>
    %94 = arith.truncf %91 : vector<32x160xf32> to vector<32x160xbf16>
    %cst_46 = arith.constant dense<0.000000e+00> : vector<32x64xf32>
    %95 = tpu.matmul %94, %93, %cst_46 {dimension_numbers = #tpu.dot_dimension_numbers<[1], [0], [0], [1], [0, 0, 1, 1], [], []>} : vector<32x160xbf16>, vector<160x64xbf16>, vector<32x64xf32> -> vector<32x64xf32>
    %c0_47 = arith.constant 0 : index
    %c1_48 = arith.constant 1 : index
    %c0_49 = arith.constant 0 : index
    %c0_50 = arith.constant 0 : index
    %96 = vector.load %arg6[%c0_47, %c1_48, %c0_49, %c0_50] : memref<4x4x1x64xf32, #tpu.memory_space<vmem>>, vector<1x1x1x64xf32>
    %97 = vector.shape_cast %96 : vector<1x1x1x64xf32> to vector<1x64xf32>
    %98 = vector.broadcast %97 : vector<1x64xf32> to vector<32x64xf32>
    %99 = arith.addf %95, %98 : vector<32x64xf32>
    %100 = vector.extract_strided_slice %99 {offsets = [0, 0], sizes = [32, 32], strides = [1, 1]} : vector<32x64xf32> to vector<32x32xf32>
    %101 = math.tanh %100 : vector<32x32xf32>
    %102 = vector.extract_strided_slice %99 {offsets = [0, 32], sizes = [32, 32], strides = [1, 1]} : vector<32x64xf32> to vector<32x32xf32>
    %103 = arith.negf %102 : vector<32x32xf32>
    %104 = math.exp %103 : vector<32x32xf32>
    %cst_51 = arith.constant 1.000000e+00 : f32
    %105 = vector.broadcast %cst_51 : f32 to vector<32x32xf32>
    %106 = arith.addf %105, %104 : vector<32x32xf32>
    %107 = arith.divf %105, %106 : vector<32x32xf32>
    %108 = arith.mulf %101, %107 : vector<32x32xf32>
    %c0_52 = arith.constant 0 : index
    %c1_53 = arith.constant 1 : index
    %c0_54 = arith.constant 0 : index
    %c0_55 = arith.constant 0 : index
    %109 = vector.load %arg7[%c0_52, %c1_53, %c0_54, %c0_55] : memref<4x3x32x64xbf16, #tpu.memory_space<vmem>>, vector<1x1x32x64xbf16>
    %110 = vector.shape_cast %109 : vector<1x1x32x64xbf16> to vector<32x64xbf16>
    %111 = arith.truncf %108 : vector<32x32xf32> to vector<32x32xbf16>
    %cst_56 = arith.constant dense<0.000000e+00> : vector<32x64xf32>
    %112 = tpu.matmul %111, %110, %cst_56 {dimension_numbers = #tpu.dot_dimension_numbers<[1], [0], [0], [1], [0, 0, 1, 1], [], []>} : vector<32x32xbf16>, vector<32x64xbf16>, vector<32x64xf32> -> vector<32x64xf32>
    %c0_57 = arith.constant 0 : index
    %c1_58 = arith.constant 1 : index
    %c0_59 = arith.constant 0 : index
    %c0_60 = arith.constant 0 : index
    %113 = vector.load %arg8[%c0_57, %c1_58, %c0_59, %c0_60] : memref<4x3x1x64xf32, #tpu.memory_space<vmem>>, vector<1x1x1x64xf32>
    %114 = vector.shape_cast %113 : vector<1x1x1x64xf32> to vector<1x64xf32>
    %115 = vector.broadcast %114 : vector<1x64xf32> to vector<32x64xf32>
    %116 = arith.addf %112, %115 : vector<32x64xf32>
    %117 = vector.extract_strided_slice %116 {offsets = [0, 0], sizes = [32, 32], strides = [1, 1]} : vector<32x64xf32> to vector<32x32xf32>
    %118 = arith.addf %79, %117 : vector<32x32xf32>
    %119 = arith.mulf %118, %2 : vector<32x32xf32>
    %120 = vector.extract_strided_slice %116 {offsets = [0, 32], sizes = [32, 32], strides = [1, 1]} : vector<32x64xf32> to vector<32x32xf32>
    %121 = arith.addf %81, %120 : vector<32x32xf32>
    %c0_61 = arith.constant 0 : index
    %c0_62 = arith.constant 0 : index
    %c0_63 = arith.constant 0 : index
    %122 = vector.load %arg2[%c0_61, %c0_62, %c0_63] : memref<1x160x32xbf16, #tpu.memory_space<vmem>>, vector<1x160x32xbf16>
    %123 = vector.shape_cast %122 : vector<1x160x32xbf16> to vector<160x32xbf16>
    %124 = arith.truncf %119 : vector<32x32xf32> to vector<32x32xbf16>
    %cst_64 = arith.constant dense<0.000000e+00> : vector<160x32xf32>
    %125 = tpu.matmul %123, %124, %cst_64 {dimension_numbers = #tpu.dot_dimension_numbers<[1], [0], [0], [1], [0, 0, 1, 1], [], []>} : vector<160x32xbf16>, vector<32x32xbf16>, vector<160x32xf32> -> vector<160x32xf32>
    %126 = vector.extract_strided_slice %125 {offsets = [0, 0], sizes = [32, 32], strides = [1, 1]} : vector<160x32xf32> to vector<32x32xf32>
    %127 = vector.extract_strided_slice %125 {offsets = [32, 0], sizes = [32, 32], strides = [1, 1]} : vector<160x32xf32> to vector<32x32xf32>
    %128 = vector.extract_strided_slice %125 {offsets = [64, 0], sizes = [32, 32], strides = [1, 1]} : vector<160x32xf32> to vector<32x32xf32>
    %129 = vector.extract_strided_slice %125 {offsets = [96, 0], sizes = [32, 32], strides = [1, 1]} : vector<160x32xf32> to vector<32x32xf32>
    %130 = vector.extract_strided_slice %125 {offsets = [128, 0], sizes = [32, 32], strides = [1, 1]} : vector<160x32xf32> to vector<32x32xf32>
    %131 = tpu.concatenate %126, %127, %128, %129, %130 in 1 : vector<32x32xf32>, vector<32x32xf32>, vector<32x32xf32>, vector<32x32xf32>, vector<32x32xf32> -> vector<32x160xf32>
    %c0_65 = arith.constant 0 : index
    %c2_66 = arith.constant 2 : index
    %c0_67 = arith.constant 0 : index
    %c0_68 = arith.constant 0 : index
    %132 = vector.load %arg5[%c0_65, %c2_66, %c0_67, %c0_68] : memref<4x4x160x64xbf16, #tpu.memory_space<vmem>>, vector<1x1x160x64xbf16>
    %133 = vector.shape_cast %132 : vector<1x1x160x64xbf16> to vector<160x64xbf16>
    %134 = arith.truncf %131 : vector<32x160xf32> to vector<32x160xbf16>
    %cst_69 = arith.constant dense<0.000000e+00> : vector<32x64xf32>
    %135 = tpu.matmul %134, %133, %cst_69 {dimension_numbers = #tpu.dot_dimension_numbers<[1], [0], [0], [1], [0, 0, 1, 1], [], []>} : vector<32x160xbf16>, vector<160x64xbf16>, vector<32x64xf32> -> vector<32x64xf32>
    %c0_70 = arith.constant 0 : index
    %c2_71 = arith.constant 2 : index
    %c0_72 = arith.constant 0 : index
    %c0_73 = arith.constant 0 : index
    %136 = vector.load %arg6[%c0_70, %c2_71, %c0_72, %c0_73] : memref<4x4x1x64xf32, #tpu.memory_space<vmem>>, vector<1x1x1x64xf32>
    %137 = vector.shape_cast %136 : vector<1x1x1x64xf32> to vector<1x64xf32>
    %138 = vector.broadcast %137 : vector<1x64xf32> to vector<32x64xf32>
    %139 = arith.addf %135, %138 : vector<32x64xf32>
    %140 = vector.extract_strided_slice %139 {offsets = [0, 0], sizes = [32, 32], strides = [1, 1]} : vector<32x64xf32> to vector<32x32xf32>
    %141 = math.tanh %140 : vector<32x32xf32>
    %142 = vector.extract_strided_slice %139 {offsets = [0, 32], sizes = [32, 32], strides = [1, 1]} : vector<32x64xf32> to vector<32x32xf32>
    %143 = arith.negf %142 : vector<32x32xf32>
    %144 = math.exp %143 : vector<32x32xf32>
    %cst_74 = arith.constant 1.000000e+00 : f32
    %145 = vector.broadcast %cst_74 : f32 to vector<32x32xf32>
    %146 = arith.addf %145, %144 : vector<32x32xf32>
    %147 = arith.divf %145, %146 : vector<32x32xf32>
    %148 = arith.mulf %141, %147 : vector<32x32xf32>
    %c0_75 = arith.constant 0 : index
    %c2_76 = arith.constant 2 : index
    %c0_77 = arith.constant 0 : index
    %c0_78 = arith.constant 0 : index
    %149 = vector.load %arg7[%c0_75, %c2_76, %c0_77, %c0_78] : memref<4x3x32x64xbf16, #tpu.memory_space<vmem>>, vector<1x1x32x64xbf16>
    %150 = vector.shape_cast %149 : vector<1x1x32x64xbf16> to vector<32x64xbf16>
    %151 = arith.truncf %148 : vector<32x32xf32> to vector<32x32xbf16>
    %cst_79 = arith.constant dense<0.000000e+00> : vector<32x64xf32>
    %152 = tpu.matmul %151, %150, %cst_79 {dimension_numbers = #tpu.dot_dimension_numbers<[1], [0], [0], [1], [0, 0, 1, 1], [], []>} : vector<32x32xbf16>, vector<32x64xbf16>, vector<32x64xf32> -> vector<32x64xf32>
    %c0_80 = arith.constant 0 : index
    %c2_81 = arith.constant 2 : index
    %c0_82 = arith.constant 0 : index
    %c0_83 = arith.constant 0 : index
    %153 = vector.load %arg8[%c0_80, %c2_81, %c0_82, %c0_83] : memref<4x3x1x64xf32, #tpu.memory_space<vmem>>, vector<1x1x1x64xf32>
    %154 = vector.shape_cast %153 : vector<1x1x1x64xf32> to vector<1x64xf32>
    %155 = vector.broadcast %154 : vector<1x64xf32> to vector<32x64xf32>
    %156 = arith.addf %152, %155 : vector<32x64xf32>
    %157 = vector.extract_strided_slice %156 {offsets = [0, 0], sizes = [32, 32], strides = [1, 1]} : vector<32x64xf32> to vector<32x32xf32>
    %158 = arith.addf %119, %157 : vector<32x32xf32>
    %159 = arith.mulf %158, %2 : vector<32x32xf32>
    %160 = vector.extract_strided_slice %156 {offsets = [0, 32], sizes = [32, 32], strides = [1, 1]} : vector<32x64xf32> to vector<32x32xf32>
    %161 = arith.addf %121, %160 : vector<32x32xf32>
    %c0_84 = arith.constant 0 : index
    %c0_85 = arith.constant 0 : index
    %c0_86 = arith.constant 0 : index
    %162 = vector.load %arg2[%c0_84, %c0_85, %c0_86] : memref<1x160x32xbf16, #tpu.memory_space<vmem>>, vector<1x160x32xbf16>
    %163 = vector.shape_cast %162 : vector<1x160x32xbf16> to vector<160x32xbf16>
    %164 = arith.truncf %159 : vector<32x32xf32> to vector<32x32xbf16>
    %cst_87 = arith.constant dense<0.000000e+00> : vector<160x32xf32>
    %165 = tpu.matmul %163, %164, %cst_87 {dimension_numbers = #tpu.dot_dimension_numbers<[1], [0], [0], [1], [0, 0, 1, 1], [], []>} : vector<160x32xbf16>, vector<32x32xbf16>, vector<160x32xf32> -> vector<160x32xf32>
    %166 = vector.extract_strided_slice %165 {offsets = [0, 0], sizes = [32, 32], strides = [1, 1]} : vector<160x32xf32> to vector<32x32xf32>
    %167 = vector.extract_strided_slice %165 {offsets = [32, 0], sizes = [32, 32], strides = [1, 1]} : vector<160x32xf32> to vector<32x32xf32>
    %168 = vector.extract_strided_slice %165 {offsets = [64, 0], sizes = [32, 32], strides = [1, 1]} : vector<160x32xf32> to vector<32x32xf32>
    %169 = vector.extract_strided_slice %165 {offsets = [96, 0], sizes = [32, 32], strides = [1, 1]} : vector<160x32xf32> to vector<32x32xf32>
    %170 = vector.extract_strided_slice %165 {offsets = [128, 0], sizes = [32, 32], strides = [1, 1]} : vector<160x32xf32> to vector<32x32xf32>
    %171 = tpu.concatenate %166, %167, %168, %169, %170 in 1 : vector<32x32xf32>, vector<32x32xf32>, vector<32x32xf32>, vector<32x32xf32>, vector<32x32xf32> -> vector<32x160xf32>
    %c0_88 = arith.constant 0 : index
    %c3_89 = arith.constant 3 : index
    %c0_90 = arith.constant 0 : index
    %c0_91 = arith.constant 0 : index
    %172 = vector.load %arg5[%c0_88, %c3_89, %c0_90, %c0_91] : memref<4x4x160x64xbf16, #tpu.memory_space<vmem>>, vector<1x1x160x64xbf16>
    %173 = vector.shape_cast %172 : vector<1x1x160x64xbf16> to vector<160x64xbf16>
    %174 = arith.truncf %171 : vector<32x160xf32> to vector<32x160xbf16>
    %cst_92 = arith.constant dense<0.000000e+00> : vector<32x64xf32>
    %175 = tpu.matmul %174, %173, %cst_92 {dimension_numbers = #tpu.dot_dimension_numbers<[1], [0], [0], [1], [0, 0, 1, 1], [], []>} : vector<32x160xbf16>, vector<160x64xbf16>, vector<32x64xf32> -> vector<32x64xf32>
    %c0_93 = arith.constant 0 : index
    %c3_94 = arith.constant 3 : index
    %c0_95 = arith.constant 0 : index
    %c0_96 = arith.constant 0 : index
    %176 = vector.load %arg6[%c0_93, %c3_94, %c0_95, %c0_96] : memref<4x4x1x64xf32, #tpu.memory_space<vmem>>, vector<1x1x1x64xf32>
    %177 = vector.shape_cast %176 : vector<1x1x1x64xf32> to vector<1x64xf32>
    %178 = vector.broadcast %177 : vector<1x64xf32> to vector<32x64xf32>
    %179 = arith.addf %175, %178 : vector<32x64xf32>
    %180 = vector.extract_strided_slice %179 {offsets = [0, 0], sizes = [32, 32], strides = [1, 1]} : vector<32x64xf32> to vector<32x32xf32>
    %181 = math.tanh %180 : vector<32x32xf32>
    %182 = vector.extract_strided_slice %179 {offsets = [0, 32], sizes = [32, 32], strides = [1, 1]} : vector<32x64xf32> to vector<32x32xf32>
    %183 = arith.negf %182 : vector<32x32xf32>
    %184 = math.exp %183 : vector<32x32xf32>
    %cst_97 = arith.constant 1.000000e+00 : f32
    %185 = vector.broadcast %cst_97 : f32 to vector<32x32xf32>
    %186 = arith.addf %185, %184 : vector<32x32xf32>
    %187 = arith.divf %185, %186 : vector<32x32xf32>
    %188 = arith.mulf %181, %187 : vector<32x32xf32>
    %c0_98 = arith.constant 0 : index
    %c0_99 = arith.constant 0 : index
    %c0_100 = arith.constant 0 : index
    %189 = vector.load %arg9[%c0_98, %c0_99, %c0_100] : memref<4x32x32xbf16, #tpu.memory_space<vmem>>, vector<1x32x32xbf16>
    %190 = vector.shape_cast %189 : vector<1x32x32xbf16> to vector<32x32xbf16>
    %191 = arith.truncf %188 : vector<32x32xf32> to vector<32x32xbf16>
    %cst_101 = arith.constant dense<0.000000e+00> : vector<32x32xf32>
    %192 = tpu.matmul %191, %190, %cst_101 {dimension_numbers = #tpu.dot_dimension_numbers<[1], [0], [0], [1], [0, 0, 1, 1], [], []>} : vector<32x32xbf16>, vector<32x32xbf16>, vector<32x32xf32> -> vector<32x32xf32>
    %193 = arith.addf %161, %192 : vector<32x32xf32>
    %c0_102 = arith.constant 0 : index
    %c0_103 = arith.constant 0 : index
    %c0_104 = arith.constant 0 : index
    %194 = vector.load %arg10[%c0_102, %c0_103, %c0_104] : memref<4x1x32xf32, #tpu.memory_space<vmem>>, vector<1x1x32xf32>
    %195 = vector.shape_cast %194 : vector<1x1x32xf32> to vector<1x32xf32>
    %196 = vector.broadcast %195 : vector<1x32xf32> to vector<32x32xf32>
    %197 = arith.addf %193, %196 : vector<32x32xf32>
    %198 = arith.mulf %197, %2 : vector<32x32xf32>
    %c0_105 = arith.constant 0 : index
    %c0_106 = arith.constant 0 : index
    %c0_107 = arith.constant 0 : index
    %199 = vector.load %arg11[%c0_105, %c0_106, %c0_107] : memref<4x32x4xbf16, #tpu.memory_space<vmem>>, vector<1x32x4xbf16>
    %200 = vector.shape_cast %199 : vector<1x32x4xbf16> to vector<32x4xbf16>
    %201 = arith.truncf %198 : vector<32x32xf32> to vector<32x32xbf16>
    %cst_108 = arith.constant dense<0.000000e+00> : vector<32x4xf32>
    %202 = tpu.matmul %201, %200, %cst_108 {dimension_numbers = #tpu.dot_dimension_numbers<[1], [0], [0], [1], [0, 0, 1, 1], [], []>} : vector<32x32xbf16>, vector<32x4xbf16>, vector<32x4xf32> -> vector<32x4xf32>
    %c0_109 = arith.constant 0 : index
    %c0_110 = arith.constant 0 : index
    %c0_111 = arith.constant 0 : index
    %203 = vector.load %arg12[%c0_109, %c0_110, %c0_111] : memref<4x1x4xf32, #tpu.memory_space<vmem>>, vector<1x1x4xf32>
    %204 = vector.shape_cast %203 : vector<1x1x4xf32> to vector<1x4xf32>
    %205 = vector.broadcast %204 : vector<1x4xf32> to vector<32x4xf32>
    %206 = arith.addf %202, %205 : vector<32x4xf32>
    %207 = arith.mulf %206, %4 : vector<32x4xf32>
    %208 = arith.mulf %7, %4 : vector<32x4xf32>
    %209 = arith.addf %207, %208 : vector<32x4xf32>
    %c1_112 = arith.constant 1 : index
    %c0_113 = arith.constant 0 : index
    %c0_114 = arith.constant 0 : index
    %210 = vector.load %arg4[%c1_112, %c0_113, %c0_114] : memref<4x1x32xf32, #tpu.memory_space<vmem>>, vector<1x1x32xf32>
    %211 = vector.shape_cast %210 : vector<1x1x32xf32> to vector<1x32xf32>
    %212 = vector.shape_cast %211 : vector<1x32xf32> to vector<1x32xf32>
    %213 = vector.broadcast %212 : vector<1x32xf32> to vector<32x32xf32>
    %214 = vector.extract_strided_slice %209 {offsets = [0, 0], sizes = [32, 1], strides = [1, 1]} : vector<32x4xf32> to vector<32x1xf32>
    %c1_115 = arith.constant 1 : index
    %c0_116 = arith.constant 0 : index
    %c0_117 = arith.constant 0 : index
    %215 = vector.load %arg3[%c1_115, %c0_116, %c0_117] : memref<4x4x32xf32, #tpu.memory_space<vmem>>, vector<1x1x32xf32>
    %216 = vector.shape_cast %215 : vector<1x1x32xf32> to vector<1x32xf32>
    %217 = vector.broadcast %214 : vector<32x1xf32> to vector<32x32xf32>
    %218 = vector.broadcast %216 : vector<1x32xf32> to vector<32x32xf32>
    %219 = arith.mulf %217, %218 : vector<32x32xf32>
    %220 = arith.addf %213, %219 : vector<32x32xf32>
    %221 = vector.extract_strided_slice %209 {offsets = [0, 1], sizes = [32, 1], strides = [1, 1]} : vector<32x4xf32> to vector<32x1xf32>
    %c1_118 = arith.constant 1 : index
    %c1_119 = arith.constant 1 : index
    %c0_120 = arith.constant 0 : index
    %222 = vector.load %arg3[%c1_118, %c1_119, %c0_120] : memref<4x4x32xf32, #tpu.memory_space<vmem>>, vector<1x1x32xf32>
    %223 = vector.shape_cast %222 : vector<1x1x32xf32> to vector<1x32xf32>
    %224 = vector.broadcast %221 : vector<32x1xf32> to vector<32x32xf32>
    %225 = vector.broadcast %223 : vector<1x32xf32> to vector<32x32xf32>
    %226 = arith.mulf %224, %225 : vector<32x32xf32>
    %227 = arith.addf %220, %226 : vector<32x32xf32>
    %228 = vector.extract_strided_slice %209 {offsets = [0, 2], sizes = [32, 1], strides = [1, 1]} : vector<32x4xf32> to vector<32x1xf32>
    %c1_121 = arith.constant 1 : index
    %c2_122 = arith.constant 2 : index
    %c0_123 = arith.constant 0 : index
    %229 = vector.load %arg3[%c1_121, %c2_122, %c0_123] : memref<4x4x32xf32, #tpu.memory_space<vmem>>, vector<1x1x32xf32>
    %230 = vector.shape_cast %229 : vector<1x1x32xf32> to vector<1x32xf32>
    %231 = vector.broadcast %228 : vector<32x1xf32> to vector<32x32xf32>
    %232 = vector.broadcast %230 : vector<1x32xf32> to vector<32x32xf32>
    %233 = arith.mulf %231, %232 : vector<32x32xf32>
    %234 = arith.addf %227, %233 : vector<32x32xf32>
    %235 = vector.extract_strided_slice %209 {offsets = [0, 3], sizes = [32, 1], strides = [1, 1]} : vector<32x4xf32> to vector<32x1xf32>
    %c1_124 = arith.constant 1 : index
    %c3_125 = arith.constant 3 : index
    %c0_126 = arith.constant 0 : index
    %236 = vector.load %arg3[%c1_124, %c3_125, %c0_126] : memref<4x4x32xf32, #tpu.memory_space<vmem>>, vector<1x1x32xf32>
    %237 = vector.shape_cast %236 : vector<1x1x32xf32> to vector<1x32xf32>
    %238 = vector.broadcast %235 : vector<32x1xf32> to vector<32x32xf32>
    %239 = vector.broadcast %237 : vector<1x32xf32> to vector<32x32xf32>
    %240 = arith.mulf %238, %239 : vector<32x32xf32>
    %241 = arith.addf %234, %240 : vector<32x32xf32>
    %242 = arith.mulf %241, %2 : vector<32x32xf32>
    %cst_127 = arith.constant 0.000000e+00 : f32
    %243 = vector.broadcast %cst_127 : f32 to vector<32x32xf32>
    %c0_128 = arith.constant 0 : index
    %c0_129 = arith.constant 0 : index
    %c0_130 = arith.constant 0 : index
    %244 = vector.load %arg2[%c0_128, %c0_129, %c0_130] : memref<1x160x32xbf16, #tpu.memory_space<vmem>>, vector<1x160x32xbf16>
    %245 = vector.shape_cast %244 : vector<1x160x32xbf16> to vector<160x32xbf16>
    %246 = arith.truncf %242 : vector<32x32xf32> to vector<32x32xbf16>
    %cst_131 = arith.constant dense<0.000000e+00> : vector<160x32xf32>
    %247 = tpu.matmul %245, %246, %cst_131 {dimension_numbers = #tpu.dot_dimension_numbers<[1], [0], [0], [1], [0, 0, 1, 1], [], []>} : vector<160x32xbf16>, vector<32x32xbf16>, vector<160x32xf32> -> vector<160x32xf32>
    %248 = vector.extract_strided_slice %247 {offsets = [0, 0], sizes = [32, 32], strides = [1, 1]} : vector<160x32xf32> to vector<32x32xf32>
    %249 = vector.extract_strided_slice %247 {offsets = [32, 0], sizes = [32, 32], strides = [1, 1]} : vector<160x32xf32> to vector<32x32xf32>
    %250 = vector.extract_strided_slice %247 {offsets = [64, 0], sizes = [32, 32], strides = [1, 1]} : vector<160x32xf32> to vector<32x32xf32>
    %251 = vector.extract_strided_slice %247 {offsets = [96, 0], sizes = [32, 32], strides = [1, 1]} : vector<160x32xf32> to vector<32x32xf32>
    %252 = vector.extract_strided_slice %247 {offsets = [128, 0], sizes = [32, 32], strides = [1, 1]} : vector<160x32xf32> to vector<32x32xf32>
    %253 = tpu.concatenate %248, %249, %250, %251, %252 in 1 : vector<32x32xf32>, vector<32x32xf32>, vector<32x32xf32>, vector<32x32xf32>, vector<32x32xf32> -> vector<32x160xf32>
    %c1_132 = arith.constant 1 : index
    %c0_133 = arith.constant 0 : index
    %c0_134 = arith.constant 0 : index
    %c0_135 = arith.constant 0 : index
    %254 = vector.load %arg5[%c1_132, %c0_133, %c0_134, %c0_135] : memref<4x4x160x64xbf16, #tpu.memory_space<vmem>>, vector<1x1x160x64xbf16>
    %255 = vector.shape_cast %254 : vector<1x1x160x64xbf16> to vector<160x64xbf16>
    %256 = arith.truncf %253 : vector<32x160xf32> to vector<32x160xbf16>
    %cst_136 = arith.constant dense<0.000000e+00> : vector<32x64xf32>
    %257 = tpu.matmul %256, %255, %cst_136 {dimension_numbers = #tpu.dot_dimension_numbers<[1], [0], [0], [1], [0, 0, 1, 1], [], []>} : vector<32x160xbf16>, vector<160x64xbf16>, vector<32x64xf32> -> vector<32x64xf32>
    %c1_137 = arith.constant 1 : index
    %c0_138 = arith.constant 0 : index
    %c0_139 = arith.constant 0 : index
    %c0_140 = arith.constant 0 : index
    %258 = vector.load %arg6[%c1_137, %c0_138, %c0_139, %c0_140] : memref<4x4x1x64xf32, #tpu.memory_space<vmem>>, vector<1x1x1x64xf32>
    %259 = vector.shape_cast %258 : vector<1x1x1x64xf32> to vector<1x64xf32>
    %260 = vector.broadcast %259 : vector<1x64xf32> to vector<32x64xf32>
    %261 = arith.addf %257, %260 : vector<32x64xf32>
    %262 = vector.extract_strided_slice %261 {offsets = [0, 0], sizes = [32, 32], strides = [1, 1]} : vector<32x64xf32> to vector<32x32xf32>
    %263 = math.tanh %262 : vector<32x32xf32>
    %264 = vector.extract_strided_slice %261 {offsets = [0, 32], sizes = [32, 32], strides = [1, 1]} : vector<32x64xf32> to vector<32x32xf32>
    %265 = arith.negf %264 : vector<32x32xf32>
    %266 = math.exp %265 : vector<32x32xf32>
    %cst_141 = arith.constant 1.000000e+00 : f32
    %267 = vector.broadcast %cst_141 : f32 to vector<32x32xf32>
    %268 = arith.addf %267, %266 : vector<32x32xf32>
    %269 = arith.divf %267, %268 : vector<32x32xf32>
    %270 = arith.mulf %263, %269 : vector<32x32xf32>
    %c1_142 = arith.constant 1 : index
    %c0_143 = arith.constant 0 : index
    %c0_144 = arith.constant 0 : index
    %c0_145 = arith.constant 0 : index
    %271 = vector.load %arg7[%c1_142, %c0_143, %c0_144, %c0_145] : memref<4x3x32x64xbf16, #tpu.memory_space<vmem>>, vector<1x1x32x64xbf16>
    %272 = vector.shape_cast %271 : vector<1x1x32x64xbf16> to vector<32x64xbf16>
    %273 = arith.truncf %270 : vector<32x32xf32> to vector<32x32xbf16>
    %cst_146 = arith.constant dense<0.000000e+00> : vector<32x64xf32>
    %274 = tpu.matmul %273, %272, %cst_146 {dimension_numbers = #tpu.dot_dimension_numbers<[1], [0], [0], [1], [0, 0, 1, 1], [], []>} : vector<32x32xbf16>, vector<32x64xbf16>, vector<32x64xf32> -> vector<32x64xf32>
    %c1_147 = arith.constant 1 : index
    %c0_148 = arith.constant 0 : index
    %c0_149 = arith.constant 0 : index
    %c0_150 = arith.constant 0 : index
    %275 = vector.load %arg8[%c1_147, %c0_148, %c0_149, %c0_150] : memref<4x3x1x64xf32, #tpu.memory_space<vmem>>, vector<1x1x1x64xf32>
    %276 = vector.shape_cast %275 : vector<1x1x1x64xf32> to vector<1x64xf32>
    %277 = vector.broadcast %276 : vector<1x64xf32> to vector<32x64xf32>
    %278 = arith.addf %274, %277 : vector<32x64xf32>
    %279 = vector.extract_strided_slice %278 {offsets = [0, 0], sizes = [32, 32], strides = [1, 1]} : vector<32x64xf32> to vector<32x32xf32>
    %280 = arith.addf %242, %279 : vector<32x32xf32>
    %281 = arith.mulf %280, %2 : vector<32x32xf32>
    %282 = vector.extract_strided_slice %278 {offsets = [0, 32], sizes = [32, 32], strides = [1, 1]} : vector<32x64xf32> to vector<32x32xf32>
    %283 = arith.addf %243, %282 : vector<32x32xf32>
    %c0_151 = arith.constant 0 : index
    %c0_152 = arith.constant 0 : index
    %c0_153 = arith.constant 0 : index
    %284 = vector.load %arg2[%c0_151, %c0_152, %c0_153] : memref<1x160x32xbf16, #tpu.memory_space<vmem>>, vector<1x160x32xbf16>
    %285 = vector.shape_cast %284 : vector<1x160x32xbf16> to vector<160x32xbf16>
    %286 = arith.truncf %281 : vector<32x32xf32> to vector<32x32xbf16>
    %cst_154 = arith.constant dense<0.000000e+00> : vector<160x32xf32>
    %287 = tpu.matmul %285, %286, %cst_154 {dimension_numbers = #tpu.dot_dimension_numbers<[1], [0], [0], [1], [0, 0, 1, 1], [], []>} : vector<160x32xbf16>, vector<32x32xbf16>, vector<160x32xf32> -> vector<160x32xf32>
    %288 = vector.extract_strided_slice %287 {offsets = [0, 0], sizes = [32, 32], strides = [1, 1]} : vector<160x32xf32> to vector<32x32xf32>
    %289 = vector.extract_strided_slice %287 {offsets = [32, 0], sizes = [32, 32], strides = [1, 1]} : vector<160x32xf32> to vector<32x32xf32>
    %290 = vector.extract_strided_slice %287 {offsets = [64, 0], sizes = [32, 32], strides = [1, 1]} : vector<160x32xf32> to vector<32x32xf32>
    %291 = vector.extract_strided_slice %287 {offsets = [96, 0], sizes = [32, 32], strides = [1, 1]} : vector<160x32xf32> to vector<32x32xf32>
    %292 = vector.extract_strided_slice %287 {offsets = [128, 0], sizes = [32, 32], strides = [1, 1]} : vector<160x32xf32> to vector<32x32xf32>
    %293 = tpu.concatenate %288, %289, %290, %291, %292 in 1 : vector<32x32xf32>, vector<32x32xf32>, vector<32x32xf32>, vector<32x32xf32>, vector<32x32xf32> -> vector<32x160xf32>
    %c1_155 = arith.constant 1 : index
    %c1_156 = arith.constant 1 : index
    %c0_157 = arith.constant 0 : index
    %c0_158 = arith.constant 0 : index
    %294 = vector.load %arg5[%c1_155, %c1_156, %c0_157, %c0_158] : memref<4x4x160x64xbf16, #tpu.memory_space<vmem>>, vector<1x1x160x64xbf16>
    %295 = vector.shape_cast %294 : vector<1x1x160x64xbf16> to vector<160x64xbf16>
    %296 = arith.truncf %293 : vector<32x160xf32> to vector<32x160xbf16>
    %cst_159 = arith.constant dense<0.000000e+00> : vector<32x64xf32>
    %297 = tpu.matmul %296, %295, %cst_159 {dimension_numbers = #tpu.dot_dimension_numbers<[1], [0], [0], [1], [0, 0, 1, 1], [], []>} : vector<32x160xbf16>, vector<160x64xbf16>, vector<32x64xf32> -> vector<32x64xf32>
    %c1_160 = arith.constant 1 : index
    %c1_161 = arith.constant 1 : index
    %c0_162 = arith.constant 0 : index
    %c0_163 = arith.constant 0 : index
    %298 = vector.load %arg6[%c1_160, %c1_161, %c0_162, %c0_163] : memref<4x4x1x64xf32, #tpu.memory_space<vmem>>, vector<1x1x1x64xf32>
    %299 = vector.shape_cast %298 : vector<1x1x1x64xf32> to vector<1x64xf32>
    %300 = vector.broadcast %299 : vector<1x64xf32> to vector<32x64xf32>
    %301 = arith.addf %297, %300 : vector<32x64xf32>
    %302 = vector.extract_strided_slice %301 {offsets = [0, 0], sizes = [32, 32], strides = [1, 1]} : vector<32x64xf32> to vector<32x32xf32>
    %303 = math.tanh %302 : vector<32x32xf32>
    %304 = vector.extract_strided_slice %301 {offsets = [0, 32], sizes = [32, 32], strides = [1, 1]} : vector<32x64xf32> to vector<32x32xf32>
    %305 = arith.negf %304 : vector<32x32xf32>
    %306 = math.exp %305 : vector<32x32xf32>
    %cst_164 = arith.constant 1.000000e+00 : f32
    %307 = vector.broadcast %cst_164 : f32 to vector<32x32xf32>
    %308 = arith.addf %307, %306 : vector<32x32xf32>
    %309 = arith.divf %307, %308 : vector<32x32xf32>
    %310 = arith.mulf %303, %309 : vector<32x32xf32>
    %c1_165 = arith.constant 1 : index
    %c1_166 = arith.constant 1 : index
    %c0_167 = arith.constant 0 : index
    %c0_168 = arith.constant 0 : index
    %311 = vector.load %arg7[%c1_165, %c1_166, %c0_167, %c0_168] : memref<4x3x32x64xbf16, #tpu.memory_space<vmem>>, vector<1x1x32x64xbf16>
    %312 = vector.shape_cast %311 : vector<1x1x32x64xbf16> to vector<32x64xbf16>
    %313 = arith.truncf %310 : vector<32x32xf32> to vector<32x32xbf16>
    %cst_169 = arith.constant dense<0.000000e+00> : vector<32x64xf32>
    %314 = tpu.matmul %313, %312, %cst_169 {dimension_numbers = #tpu.dot_dimension_numbers<[1], [0], [0], [1], [0, 0, 1, 1], [], []>} : vector<32x32xbf16>, vector<32x64xbf16>, vector<32x64xf32> -> vector<32x64xf32>
    %c1_170 = arith.constant 1 : index
    %c1_171 = arith.constant 1 : index
    %c0_172 = arith.constant 0 : index
    %c0_173 = arith.constant 0 : index
    %315 = vector.load %arg8[%c1_170, %c1_171, %c0_172, %c0_173] : memref<4x3x1x64xf32, #tpu.memory_space<vmem>>, vector<1x1x1x64xf32>
    %316 = vector.shape_cast %315 : vector<1x1x1x64xf32> to vector<1x64xf32>
    %317 = vector.broadcast %316 : vector<1x64xf32> to vector<32x64xf32>
    %318 = arith.addf %314, %317 : vector<32x64xf32>
    %319 = vector.extract_strided_slice %318 {offsets = [0, 0], sizes = [32, 32], strides = [1, 1]} : vector<32x64xf32> to vector<32x32xf32>
    %320 = arith.addf %281, %319 : vector<32x32xf32>
    %321 = arith.mulf %320, %2 : vector<32x32xf32>
    %322 = vector.extract_strided_slice %318 {offsets = [0, 32], sizes = [32, 32], strides = [1, 1]} : vector<32x64xf32> to vector<32x32xf32>
    %323 = arith.addf %283, %322 : vector<32x32xf32>
    %c0_174 = arith.constant 0 : index
    %c0_175 = arith.constant 0 : index
    %c0_176 = arith.constant 0 : index
    %324 = vector.load %arg2[%c0_174, %c0_175, %c0_176] : memref<1x160x32xbf16, #tpu.memory_space<vmem>>, vector<1x160x32xbf16>
    %325 = vector.shape_cast %324 : vector<1x160x32xbf16> to vector<160x32xbf16>
    %326 = arith.truncf %321 : vector<32x32xf32> to vector<32x32xbf16>
    %cst_177 = arith.constant dense<0.000000e+00> : vector<160x32xf32>
    %327 = tpu.matmul %325, %326, %cst_177 {dimension_numbers = #tpu.dot_dimension_numbers<[1], [0], [0], [1], [0, 0, 1, 1], [], []>} : vector<160x32xbf16>, vector<32x32xbf16>, vector<160x32xf32> -> vector<160x32xf32>
    %328 = vector.extract_strided_slice %327 {offsets = [0, 0], sizes = [32, 32], strides = [1, 1]} : vector<160x32xf32> to vector<32x32xf32>
    %329 = vector.extract_strided_slice %327 {offsets = [32, 0], sizes = [32, 32], strides = [1, 1]} : vector<160x32xf32> to vector<32x32xf32>
    %330 = vector.extract_strided_slice %327 {offsets = [64, 0], sizes = [32, 32], strides = [1, 1]} : vector<160x32xf32> to vector<32x32xf32>
    %331 = vector.extract_strided_slice %327 {offsets = [96, 0], sizes = [32, 32], strides = [1, 1]} : vector<160x32xf32> to vector<32x32xf32>
    %332 = vector.extract_strided_slice %327 {offsets = [128, 0], sizes = [32, 32], strides = [1, 1]} : vector<160x32xf32> to vector<32x32xf32>
    %333 = tpu.concatenate %328, %329, %330, %331, %332 in 1 : vector<32x32xf32>, vector<32x32xf32>, vector<32x32xf32>, vector<32x32xf32>, vector<32x32xf32> -> vector<32x160xf32>
    %c1_178 = arith.constant 1 : index
    %c2_179 = arith.constant 2 : index
    %c0_180 = arith.constant 0 : index
    %c0_181 = arith.constant 0 : index
    %334 = vector.load %arg5[%c1_178, %c2_179, %c0_180, %c0_181] : memref<4x4x160x64xbf16, #tpu.memory_space<vmem>>, vector<1x1x160x64xbf16>
    %335 = vector.shape_cast %334 : vector<1x1x160x64xbf16> to vector<160x64xbf16>
    %336 = arith.truncf %333 : vector<32x160xf32> to vector<32x160xbf16>
    %cst_182 = arith.constant dense<0.000000e+00> : vector<32x64xf32>
    %337 = tpu.matmul %336, %335, %cst_182 {dimension_numbers = #tpu.dot_dimension_numbers<[1], [0], [0], [1], [0, 0, 1, 1], [], []>} : vector<32x160xbf16>, vector<160x64xbf16>, vector<32x64xf32> -> vector<32x64xf32>
    %c1_183 = arith.constant 1 : index
    %c2_184 = arith.constant 2 : index
    %c0_185 = arith.constant 0 : index
    %c0_186 = arith.constant 0 : index
    %338 = vector.load %arg6[%c1_183, %c2_184, %c0_185, %c0_186] : memref<4x4x1x64xf32, #tpu.memory_space<vmem>>, vector<1x1x1x64xf32>
    %339 = vector.shape_cast %338 : vector<1x1x1x64xf32> to vector<1x64xf32>
    %340 = vector.broadcast %339 : vector<1x64xf32> to vector<32x64xf32>
    %341 = arith.addf %337, %340 : vector<32x64xf32>
    %342 = vector.extract_strided_slice %341 {offsets = [0, 0], sizes = [32, 32], strides = [1, 1]} : vector<32x64xf32> to vector<32x32xf32>
    %343 = math.tanh %342 : vector<32x32xf32>
    %344 = vector.extract_strided_slice %341 {offsets = [0, 32], sizes = [32, 32], strides = [1, 1]} : vector<32x64xf32> to vector<32x32xf32>
    %345 = arith.negf %344 : vector<32x32xf32>
    %346 = math.exp %345 : vector<32x32xf32>
    %cst_187 = arith.constant 1.000000e+00 : f32
    %347 = vector.broadcast %cst_187 : f32 to vector<32x32xf32>
    %348 = arith.addf %347, %346 : vector<32x32xf32>
    %349 = arith.divf %347, %348 : vector<32x32xf32>
    %350 = arith.mulf %343, %349 : vector<32x32xf32>
    %c1_188 = arith.constant 1 : index
    %c2_189 = arith.constant 2 : index
    %c0_190 = arith.constant 0 : index
    %c0_191 = arith.constant 0 : index
    %351 = vector.load %arg7[%c1_188, %c2_189, %c0_190, %c0_191] : memref<4x3x32x64xbf16, #tpu.memory_space<vmem>>, vector<1x1x32x64xbf16>
    %352 = vector.shape_cast %351 : vector<1x1x32x64xbf16> to vector<32x64xbf16>
    %353 = arith.truncf %350 : vector<32x32xf32> to vector<32x32xbf16>
    %cst_192 = arith.constant dense<0.000000e+00> : vector<32x64xf32>
    %354 = tpu.matmul %353, %352, %cst_192 {dimension_numbers = #tpu.dot_dimension_numbers<[1], [0], [0], [1], [0, 0, 1, 1], [], []>} : vector<32x32xbf16>, vector<32x64xbf16>, vector<32x64xf32> -> vector<32x64xf32>
    %c1_193 = arith.constant 1 : index
    %c2_194 = arith.constant 2 : index
    %c0_195 = arith.constant 0 : index
    %c0_196 = arith.constant 0 : index
    %355 = vector.load %arg8[%c1_193, %c2_194, %c0_195, %c0_196] : memref<4x3x1x64xf32, #tpu.memory_space<vmem>>, vector<1x1x1x64xf32>
    %356 = vector.shape_cast %355 : vector<1x1x1x64xf32> to vector<1x64xf32>
    %357 = vector.broadcast %356 : vector<1x64xf32> to vector<32x64xf32>
    %358 = arith.addf %354, %357 : vector<32x64xf32>
    %359 = vector.extract_strided_slice %358 {offsets = [0, 0], sizes = [32, 32], strides = [1, 1]} : vector<32x64xf32> to vector<32x32xf32>
    %360 = arith.addf %321, %359 : vector<32x32xf32>
    %361 = arith.mulf %360, %2 : vector<32x32xf32>
    %362 = vector.extract_strided_slice %358 {offsets = [0, 32], sizes = [32, 32], strides = [1, 1]} : vector<32x64xf32> to vector<32x32xf32>
    %363 = arith.addf %323, %362 : vector<32x32xf32>
    %c0_197 = arith.constant 0 : index
    %c0_198 = arith.constant 0 : index
    %c0_199 = arith.constant 0 : index
    %364 = vector.load %arg2[%c0_197, %c0_198, %c0_199] : memref<1x160x32xbf16, #tpu.memory_space<vmem>>, vector<1x160x32xbf16>
    %365 = vector.shape_cast %364 : vector<1x160x32xbf16> to vector<160x32xbf16>
    %366 = arith.truncf %361 : vector<32x32xf32> to vector<32x32xbf16>
    %cst_200 = arith.constant dense<0.000000e+00> : vector<160x32xf32>
    %367 = tpu.matmul %365, %366, %cst_200 {dimension_numbers = #tpu.dot_dimension_numbers<[1], [0], [0], [1], [0, 0, 1, 1], [], []>} : vector<160x32xbf16>, vector<32x32xbf16>, vector<160x32xf32> -> vector<160x32xf32>
    %368 = vector.extract_strided_slice %367 {offsets = [0, 0], sizes = [32, 32], strides = [1, 1]} : vector<160x32xf32> to vector<32x32xf32>
    %369 = vector.extract_strided_slice %367 {offsets = [32, 0], sizes = [32, 32], strides = [1, 1]} : vector<160x32xf32> to vector<32x32xf32>
    %370 = vector.extract_strided_slice %367 {offsets = [64, 0], sizes = [32, 32], strides = [1, 1]} : vector<160x32xf32> to vector<32x32xf32>
    %371 = vector.extract_strided_slice %367 {offsets = [96, 0], sizes = [32, 32], strides = [1, 1]} : vector<160x32xf32> to vector<32x32xf32>
    %372 = vector.extract_strided_slice %367 {offsets = [128, 0], sizes = [32, 32], strides = [1, 1]} : vector<160x32xf32> to vector<32x32xf32>
    %373 = tpu.concatenate %368, %369, %370, %371, %372 in 1 : vector<32x32xf32>, vector<32x32xf32>, vector<32x32xf32>, vector<32x32xf32>, vector<32x32xf32> -> vector<32x160xf32>
    %c1_201 = arith.constant 1 : index
    %c3_202 = arith.constant 3 : index
    %c0_203 = arith.constant 0 : index
    %c0_204 = arith.constant 0 : index
    %374 = vector.load %arg5[%c1_201, %c3_202, %c0_203, %c0_204] : memref<4x4x160x64xbf16, #tpu.memory_space<vmem>>, vector<1x1x160x64xbf16>
    %375 = vector.shape_cast %374 : vector<1x1x160x64xbf16> to vector<160x64xbf16>
    %376 = arith.truncf %373 : vector<32x160xf32> to vector<32x160xbf16>
    %cst_205 = arith.constant dense<0.000000e+00> : vector<32x64xf32>
    %377 = tpu.matmul %376, %375, %cst_205 {dimension_numbers = #tpu.dot_dimension_numbers<[1], [0], [0], [1], [0, 0, 1, 1], [], []>} : vector<32x160xbf16>, vector<160x64xbf16>, vector<32x64xf32> -> vector<32x64xf32>
    %c1_206 = arith.constant 1 : index
    %c3_207 = arith.constant 3 : index
    %c0_208 = arith.constant 0 : index
    %c0_209 = arith.constant 0 : index
    %378 = vector.load %arg6[%c1_206, %c3_207, %c0_208, %c0_209] : memref<4x4x1x64xf32, #tpu.memory_space<vmem>>, vector<1x1x1x64xf32>
    %379 = vector.shape_cast %378 : vector<1x1x1x64xf32> to vector<1x64xf32>
    %380 = vector.broadcast %379 : vector<1x64xf32> to vector<32x64xf32>
    %381 = arith.addf %377, %380 : vector<32x64xf32>
    %382 = vector.extract_strided_slice %381 {offsets = [0, 0], sizes = [32, 32], strides = [1, 1]} : vector<32x64xf32> to vector<32x32xf32>
    %383 = math.tanh %382 : vector<32x32xf32>
    %384 = vector.extract_strided_slice %381 {offsets = [0, 32], sizes = [32, 32], strides = [1, 1]} : vector<32x64xf32> to vector<32x32xf32>
    %385 = arith.negf %384 : vector<32x32xf32>
    %386 = math.exp %385 : vector<32x32xf32>
    %cst_210 = arith.constant 1.000000e+00 : f32
    %387 = vector.broadcast %cst_210 : f32 to vector<32x32xf32>
    %388 = arith.addf %387, %386 : vector<32x32xf32>
    %389 = arith.divf %387, %388 : vector<32x32xf32>
    %390 = arith.mulf %383, %389 : vector<32x32xf32>
    %c1_211 = arith.constant 1 : index
    %c0_212 = arith.constant 0 : index
    %c0_213 = arith.constant 0 : index
    %391 = vector.load %arg9[%c1_211, %c0_212, %c0_213] : memref<4x32x32xbf16, #tpu.memory_space<vmem>>, vector<1x32x32xbf16>
    %392 = vector.shape_cast %391 : vector<1x32x32xbf16> to vector<32x32xbf16>
    %393 = arith.truncf %390 : vector<32x32xf32> to vector<32x32xbf16>
    %cst_214 = arith.constant dense<0.000000e+00> : vector<32x32xf32>
    %394 = tpu.matmul %393, %392, %cst_214 {dimension_numbers = #tpu.dot_dimension_numbers<[1], [0], [0], [1], [0, 0, 1, 1], [], []>} : vector<32x32xbf16>, vector<32x32xbf16>, vector<32x32xf32> -> vector<32x32xf32>
    %395 = arith.addf %363, %394 : vector<32x32xf32>
    %c1_215 = arith.constant 1 : index
    %c0_216 = arith.constant 0 : index
    %c0_217 = arith.constant 0 : index
    %396 = vector.load %arg10[%c1_215, %c0_216, %c0_217] : memref<4x1x32xf32, #tpu.memory_space<vmem>>, vector<1x1x32xf32>
    %397 = vector.shape_cast %396 : vector<1x1x32xf32> to vector<1x32xf32>
    %398 = vector.broadcast %397 : vector<1x32xf32> to vector<32x32xf32>
    %399 = arith.addf %395, %398 : vector<32x32xf32>
    %400 = arith.mulf %399, %2 : vector<32x32xf32>
    %c1_218 = arith.constant 1 : index
    %c0_219 = arith.constant 0 : index
    %c0_220 = arith.constant 0 : index
    %401 = vector.load %arg11[%c1_218, %c0_219, %c0_220] : memref<4x32x4xbf16, #tpu.memory_space<vmem>>, vector<1x32x4xbf16>
    %402 = vector.shape_cast %401 : vector<1x32x4xbf16> to vector<32x4xbf16>
    %403 = arith.truncf %400 : vector<32x32xf32> to vector<32x32xbf16>
    %cst_221 = arith.constant dense<0.000000e+00> : vector<32x4xf32>
    %404 = tpu.matmul %403, %402, %cst_221 {dimension_numbers = #tpu.dot_dimension_numbers<[1], [0], [0], [1], [0, 0, 1, 1], [], []>} : vector<32x32xbf16>, vector<32x4xbf16>, vector<32x4xf32> -> vector<32x4xf32>
    %c1_222 = arith.constant 1 : index
    %c0_223 = arith.constant 0 : index
    %c0_224 = arith.constant 0 : index
    %405 = vector.load %arg12[%c1_222, %c0_223, %c0_224] : memref<4x1x4xf32, #tpu.memory_space<vmem>>, vector<1x1x4xf32>
    %406 = vector.shape_cast %405 : vector<1x1x4xf32> to vector<1x4xf32>
    %407 = vector.broadcast %406 : vector<1x4xf32> to vector<32x4xf32>
    %408 = arith.addf %404, %407 : vector<32x4xf32>
    %409 = arith.mulf %408, %4 : vector<32x4xf32>
    %410 = arith.mulf %6, %4 : vector<32x4xf32>
    %411 = arith.addf %409, %410 : vector<32x4xf32>
    %c2_225 = arith.constant 2 : index
    %c0_226 = arith.constant 0 : index
    %c0_227 = arith.constant 0 : index
    %412 = vector.load %arg4[%c2_225, %c0_226, %c0_227] : memref<4x1x32xf32, #tpu.memory_space<vmem>>, vector<1x1x32xf32>
    %413 = vector.shape_cast %412 : vector<1x1x32xf32> to vector<1x32xf32>
    %414 = vector.shape_cast %413 : vector<1x32xf32> to vector<1x32xf32>
    %415 = vector.broadcast %414 : vector<1x32xf32> to vector<32x32xf32>
    %416 = vector.extract_strided_slice %411 {offsets = [0, 0], sizes = [32, 1], strides = [1, 1]} : vector<32x4xf32> to vector<32x1xf32>
    %c2_228 = arith.constant 2 : index
    %c0_229 = arith.constant 0 : index
    %c0_230 = arith.constant 0 : index
    %417 = vector.load %arg3[%c2_228, %c0_229, %c0_230] : memref<4x4x32xf32, #tpu.memory_space<vmem>>, vector<1x1x32xf32>
    %418 = vector.shape_cast %417 : vector<1x1x32xf32> to vector<1x32xf32>
    %419 = vector.broadcast %416 : vector<32x1xf32> to vector<32x32xf32>
    %420 = vector.broadcast %418 : vector<1x32xf32> to vector<32x32xf32>
    %421 = arith.mulf %419, %420 : vector<32x32xf32>
    %422 = arith.addf %415, %421 : vector<32x32xf32>
    %423 = vector.extract_strided_slice %411 {offsets = [0, 1], sizes = [32, 1], strides = [1, 1]} : vector<32x4xf32> to vector<32x1xf32>
    %c2_231 = arith.constant 2 : index
    %c1_232 = arith.constant 1 : index
    %c0_233 = arith.constant 0 : index
    %424 = vector.load %arg3[%c2_231, %c1_232, %c0_233] : memref<4x4x32xf32, #tpu.memory_space<vmem>>, vector<1x1x32xf32>
    %425 = vector.shape_cast %424 : vector<1x1x32xf32> to vector<1x32xf32>
    %426 = vector.broadcast %423 : vector<32x1xf32> to vector<32x32xf32>
    %427 = vector.broadcast %425 : vector<1x32xf32> to vector<32x32xf32>
    %428 = arith.mulf %426, %427 : vector<32x32xf32>
    %429 = arith.addf %422, %428 : vector<32x32xf32>
    %430 = vector.extract_strided_slice %411 {offsets = [0, 2], sizes = [32, 1], strides = [1, 1]} : vector<32x4xf32> to vector<32x1xf32>
    %c2_234 = arith.constant 2 : index
    %c2_235 = arith.constant 2 : index
    %c0_236 = arith.constant 0 : index
    %431 = vector.load %arg3[%c2_234, %c2_235, %c0_236] : memref<4x4x32xf32, #tpu.memory_space<vmem>>, vector<1x1x32xf32>
    %432 = vector.shape_cast %431 : vector<1x1x32xf32> to vector<1x32xf32>
    %433 = vector.broadcast %430 : vector<32x1xf32> to vector<32x32xf32>
    %434 = vector.broadcast %432 : vector<1x32xf32> to vector<32x32xf32>
    %435 = arith.mulf %433, %434 : vector<32x32xf32>
    %436 = arith.addf %429, %435 : vector<32x32xf32>
    %437 = vector.extract_strided_slice %411 {offsets = [0, 3], sizes = [32, 1], strides = [1, 1]} : vector<32x4xf32> to vector<32x1xf32>
    %c2_237 = arith.constant 2 : index
    %c3_238 = arith.constant 3 : index
    %c0_239 = arith.constant 0 : index
    %438 = vector.load %arg3[%c2_237, %c3_238, %c0_239] : memref<4x4x32xf32, #tpu.memory_space<vmem>>, vector<1x1x32xf32>
    %439 = vector.shape_cast %438 : vector<1x1x32xf32> to vector<1x32xf32>
    %440 = vector.broadcast %437 : vector<32x1xf32> to vector<32x32xf32>
    %441 = vector.broadcast %439 : vector<1x32xf32> to vector<32x32xf32>
    %442 = arith.mulf %440, %441 : vector<32x32xf32>
    %443 = arith.addf %436, %442 : vector<32x32xf32>
    %444 = arith.mulf %443, %2 : vector<32x32xf32>
    %cst_240 = arith.constant 0.000000e+00 : f32
    %445 = vector.broadcast %cst_240 : f32 to vector<32x32xf32>
    %c0_241 = arith.constant 0 : index
    %c0_242 = arith.constant 0 : index
    %c0_243 = arith.constant 0 : index
    %446 = vector.load %arg2[%c0_241, %c0_242, %c0_243] : memref<1x160x32xbf16, #tpu.memory_space<vmem>>, vector<1x160x32xbf16>
    %447 = vector.shape_cast %446 : vector<1x160x32xbf16> to vector<160x32xbf16>
    %448 = arith.truncf %444 : vector<32x32xf32> to vector<32x32xbf16>
    %cst_244 = arith.constant dense<0.000000e+00> : vector<160x32xf32>
    %449 = tpu.matmul %447, %448, %cst_244 {dimension_numbers = #tpu.dot_dimension_numbers<[1], [0], [0], [1], [0, 0, 1, 1], [], []>} : vector<160x32xbf16>, vector<32x32xbf16>, vector<160x32xf32> -> vector<160x32xf32>
    %450 = vector.extract_strided_slice %449 {offsets = [0, 0], sizes = [32, 32], strides = [1, 1]} : vector<160x32xf32> to vector<32x32xf32>
    %451 = vector.extract_strided_slice %449 {offsets = [32, 0], sizes = [32, 32], strides = [1, 1]} : vector<160x32xf32> to vector<32x32xf32>
    %452 = vector.extract_strided_slice %449 {offsets = [64, 0], sizes = [32, 32], strides = [1, 1]} : vector<160x32xf32> to vector<32x32xf32>
    %453 = vector.extract_strided_slice %449 {offsets = [96, 0], sizes = [32, 32], strides = [1, 1]} : vector<160x32xf32> to vector<32x32xf32>
    %454 = vector.extract_strided_slice %449 {offsets = [128, 0], sizes = [32, 32], strides = [1, 1]} : vector<160x32xf32> to vector<32x32xf32>
    %455 = tpu.concatenate %450, %451, %452, %453, %454 in 1 : vector<32x32xf32>, vector<32x32xf32>, vector<32x32xf32>, vector<32x32xf32>, vector<32x32xf32> -> vector<32x160xf32>
    %c2_245 = arith.constant 2 : index
    %c0_246 = arith.constant 0 : index
    %c0_247 = arith.constant 0 : index
    %c0_248 = arith.constant 0 : index
    %456 = vector.load %arg5[%c2_245, %c0_246, %c0_247, %c0_248] : memref<4x4x160x64xbf16, #tpu.memory_space<vmem>>, vector<1x1x160x64xbf16>
    %457 = vector.shape_cast %456 : vector<1x1x160x64xbf16> to vector<160x64xbf16>
    %458 = arith.truncf %455 : vector<32x160xf32> to vector<32x160xbf16>
    %cst_249 = arith.constant dense<0.000000e+00> : vector<32x64xf32>
    %459 = tpu.matmul %458, %457, %cst_249 {dimension_numbers = #tpu.dot_dimension_numbers<[1], [0], [0], [1], [0, 0, 1, 1], [], []>} : vector<32x160xbf16>, vector<160x64xbf16>, vector<32x64xf32> -> vector<32x64xf32>
    %c2_250 = arith.constant 2 : index
    %c0_251 = arith.constant 0 : index
    %c0_252 = arith.constant 0 : index
    %c0_253 = arith.constant 0 : index
    %460 = vector.load %arg6[%c2_250, %c0_251, %c0_252, %c0_253] : memref<4x4x1x64xf32, #tpu.memory_space<vmem>>, vector<1x1x1x64xf32>
    %461 = vector.shape_cast %460 : vector<1x1x1x64xf32> to vector<1x64xf32>
    %462 = vector.broadcast %461 : vector<1x64xf32> to vector<32x64xf32>
    %463 = arith.addf %459, %462 : vector<32x64xf32>
    %464 = vector.extract_strided_slice %463 {offsets = [0, 0], sizes = [32, 32], strides = [1, 1]} : vector<32x64xf32> to vector<32x32xf32>
    %465 = math.tanh %464 : vector<32x32xf32>
    %466 = vector.extract_strided_slice %463 {offsets = [0, 32], sizes = [32, 32], strides = [1, 1]} : vector<32x64xf32> to vector<32x32xf32>
    %467 = arith.negf %466 : vector<32x32xf32>
    %468 = math.exp %467 : vector<32x32xf32>
    %cst_254 = arith.constant 1.000000e+00 : f32
    %469 = vector.broadcast %cst_254 : f32 to vector<32x32xf32>
    %470 = arith.addf %469, %468 : vector<32x32xf32>
    %471 = arith.divf %469, %470 : vector<32x32xf32>
    %472 = arith.mulf %465, %471 : vector<32x32xf32>
    %c2_255 = arith.constant 2 : index
    %c0_256 = arith.constant 0 : index
    %c0_257 = arith.constant 0 : index
    %c0_258 = arith.constant 0 : index
    %473 = vector.load %arg7[%c2_255, %c0_256, %c0_257, %c0_258] : memref<4x3x32x64xbf16, #tpu.memory_space<vmem>>, vector<1x1x32x64xbf16>
    %474 = vector.shape_cast %473 : vector<1x1x32x64xbf16> to vector<32x64xbf16>
    %475 = arith.truncf %472 : vector<32x32xf32> to vector<32x32xbf16>
    %cst_259 = arith.constant dense<0.000000e+00> : vector<32x64xf32>
    %476 = tpu.matmul %475, %474, %cst_259 {dimension_numbers = #tpu.dot_dimension_numbers<[1], [0], [0], [1], [0, 0, 1, 1], [], []>} : vector<32x32xbf16>, vector<32x64xbf16>, vector<32x64xf32> -> vector<32x64xf32>
    %c2_260 = arith.constant 2 : index
    %c0_261 = arith.constant 0 : index
    %c0_262 = arith.constant 0 : index
    %c0_263 = arith.constant 0 : index
    %477 = vector.load %arg8[%c2_260, %c0_261, %c0_262, %c0_263] : memref<4x3x1x64xf32, #tpu.memory_space<vmem>>, vector<1x1x1x64xf32>
    %478 = vector.shape_cast %477 : vector<1x1x1x64xf32> to vector<1x64xf32>
    %479 = vector.broadcast %478 : vector<1x64xf32> to vector<32x64xf32>
    %480 = arith.addf %476, %479 : vector<32x64xf32>
    %481 = vector.extract_strided_slice %480 {offsets = [0, 0], sizes = [32, 32], strides = [1, 1]} : vector<32x64xf32> to vector<32x32xf32>
    %482 = arith.addf %444, %481 : vector<32x32xf32>
    %483 = arith.mulf %482, %2 : vector<32x32xf32>
    %484 = vector.extract_strided_slice %480 {offsets = [0, 32], sizes = [32, 32], strides = [1, 1]} : vector<32x64xf32> to vector<32x32xf32>
    %485 = arith.addf %445, %484 : vector<32x32xf32>
    %c0_264 = arith.constant 0 : index
    %c0_265 = arith.constant 0 : index
    %c0_266 = arith.constant 0 : index
    %486 = vector.load %arg2[%c0_264, %c0_265, %c0_266] : memref<1x160x32xbf16, #tpu.memory_space<vmem>>, vector<1x160x32xbf16>
    %487 = vector.shape_cast %486 : vector<1x160x32xbf16> to vector<160x32xbf16>
    %488 = arith.truncf %483 : vector<32x32xf32> to vector<32x32xbf16>
    %cst_267 = arith.constant dense<0.000000e+00> : vector<160x32xf32>
    %489 = tpu.matmul %487, %488, %cst_267 {dimension_numbers = #tpu.dot_dimension_numbers<[1], [0], [0], [1], [0, 0, 1, 1], [], []>} : vector<160x32xbf16>, vector<32x32xbf16>, vector<160x32xf32> -> vector<160x32xf32>
    %490 = vector.extract_strided_slice %489 {offsets = [0, 0], sizes = [32, 32], strides = [1, 1]} : vector<160x32xf32> to vector<32x32xf32>
    %491 = vector.extract_strided_slice %489 {offsets = [32, 0], sizes = [32, 32], strides = [1, 1]} : vector<160x32xf32> to vector<32x32xf32>
    %492 = vector.extract_strided_slice %489 {offsets = [64, 0], sizes = [32, 32], strides = [1, 1]} : vector<160x32xf32> to vector<32x32xf32>
    %493 = vector.extract_strided_slice %489 {offsets = [96, 0], sizes = [32, 32], strides = [1, 1]} : vector<160x32xf32> to vector<32x32xf32>
    %494 = vector.extract_strided_slice %489 {offsets = [128, 0], sizes = [32, 32], strides = [1, 1]} : vector<160x32xf32> to vector<32x32xf32>
    %495 = tpu.concatenate %490, %491, %492, %493, %494 in 1 : vector<32x32xf32>, vector<32x32xf32>, vector<32x32xf32>, vector<32x32xf32>, vector<32x32xf32> -> vector<32x160xf32>
    %c2_268 = arith.constant 2 : index
    %c1_269 = arith.constant 1 : index
    %c0_270 = arith.constant 0 : index
    %c0_271 = arith.constant 0 : index
    %496 = vector.load %arg5[%c2_268, %c1_269, %c0_270, %c0_271] : memref<4x4x160x64xbf16, #tpu.memory_space<vmem>>, vector<1x1x160x64xbf16>
    %497 = vector.shape_cast %496 : vector<1x1x160x64xbf16> to vector<160x64xbf16>
    %498 = arith.truncf %495 : vector<32x160xf32> to vector<32x160xbf16>
    %cst_272 = arith.constant dense<0.000000e+00> : vector<32x64xf32>
    %499 = tpu.matmul %498, %497, %cst_272 {dimension_numbers = #tpu.dot_dimension_numbers<[1], [0], [0], [1], [0, 0, 1, 1], [], []>} : vector<32x160xbf16>, vector<160x64xbf16>, vector<32x64xf32> -> vector<32x64xf32>
    %c2_273 = arith.constant 2 : index
    %c1_274 = arith.constant 1 : index
    %c0_275 = arith.constant 0 : index
    %c0_276 = arith.constant 0 : index
    %500 = vector.load %arg6[%c2_273, %c1_274, %c0_275, %c0_276] : memref<4x4x1x64xf32, #tpu.memory_space<vmem>>, vector<1x1x1x64xf32>
    %501 = vector.shape_cast %500 : vector<1x1x1x64xf32> to vector<1x64xf32>
    %502 = vector.broadcast %501 : vector<1x64xf32> to vector<32x64xf32>
    %503 = arith.addf %499, %502 : vector<32x64xf32>
    %504 = vector.extract_strided_slice %503 {offsets = [0, 0], sizes = [32, 32], strides = [1, 1]} : vector<32x64xf32> to vector<32x32xf32>
    %505 = math.tanh %504 : vector<32x32xf32>
    %506 = vector.extract_strided_slice %503 {offsets = [0, 32], sizes = [32, 32], strides = [1, 1]} : vector<32x64xf32> to vector<32x32xf32>
    %507 = arith.negf %506 : vector<32x32xf32>
    %508 = math.exp %507 : vector<32x32xf32>
    %cst_277 = arith.constant 1.000000e+00 : f32
    %509 = vector.broadcast %cst_277 : f32 to vector<32x32xf32>
    %510 = arith.addf %509, %508 : vector<32x32xf32>
    %511 = arith.divf %509, %510 : vector<32x32xf32>
    %512 = arith.mulf %505, %511 : vector<32x32xf32>
    %c2_278 = arith.constant 2 : index
    %c1_279 = arith.constant 1 : index
    %c0_280 = arith.constant 0 : index
    %c0_281 = arith.constant 0 : index
    %513 = vector.load %arg7[%c2_278, %c1_279, %c0_280, %c0_281] : memref<4x3x32x64xbf16, #tpu.memory_space<vmem>>, vector<1x1x32x64xbf16>
    %514 = vector.shape_cast %513 : vector<1x1x32x64xbf16> to vector<32x64xbf16>
    %515 = arith.truncf %512 : vector<32x32xf32> to vector<32x32xbf16>
    %cst_282 = arith.constant dense<0.000000e+00> : vector<32x64xf32>
    %516 = tpu.matmul %515, %514, %cst_282 {dimension_numbers = #tpu.dot_dimension_numbers<[1], [0], [0], [1], [0, 0, 1, 1], [], []>} : vector<32x32xbf16>, vector<32x64xbf16>, vector<32x64xf32> -> vector<32x64xf32>
    %c2_283 = arith.constant 2 : index
    %c1_284 = arith.constant 1 : index
    %c0_285 = arith.constant 0 : index
    %c0_286 = arith.constant 0 : index
    %517 = vector.load %arg8[%c2_283, %c1_284, %c0_285, %c0_286] : memref<4x3x1x64xf32, #tpu.memory_space<vmem>>, vector<1x1x1x64xf32>
    %518 = vector.shape_cast %517 : vector<1x1x1x64xf32> to vector<1x64xf32>
    %519 = vector.broadcast %518 : vector<1x64xf32> to vector<32x64xf32>
    %520 = arith.addf %516, %519 : vector<32x64xf32>
    %521 = vector.extract_strided_slice %520 {offsets = [0, 0], sizes = [32, 32], strides = [1, 1]} : vector<32x64xf32> to vector<32x32xf32>
    %522 = arith.addf %483, %521 : vector<32x32xf32>
    %523 = arith.mulf %522, %2 : vector<32x32xf32>
    %524 = vector.extract_strided_slice %520 {offsets = [0, 32], sizes = [32, 32], strides = [1, 1]} : vector<32x64xf32> to vector<32x32xf32>
    %525 = arith.addf %485, %524 : vector<32x32xf32>
    %c0_287 = arith.constant 0 : index
    %c0_288 = arith.constant 0 : index
    %c0_289 = arith.constant 0 : index
    %526 = vector.load %arg2[%c0_287, %c0_288, %c0_289] : memref<1x160x32xbf16, #tpu.memory_space<vmem>>, vector<1x160x32xbf16>
    %527 = vector.shape_cast %526 : vector<1x160x32xbf16> to vector<160x32xbf16>
    %528 = arith.truncf %523 : vector<32x32xf32> to vector<32x32xbf16>
    %cst_290 = arith.constant dense<0.000000e+00> : vector<160x32xf32>
    %529 = tpu.matmul %527, %528, %cst_290 {dimension_numbers = #tpu.dot_dimension_numbers<[1], [0], [0], [1], [0, 0, 1, 1], [], []>} : vector<160x32xbf16>, vector<32x32xbf16>, vector<160x32xf32> -> vector<160x32xf32>
    %530 = vector.extract_strided_slice %529 {offsets = [0, 0], sizes = [32, 32], strides = [1, 1]} : vector<160x32xf32> to vector<32x32xf32>
    %531 = vector.extract_strided_slice %529 {offsets = [32, 0], sizes = [32, 32], strides = [1, 1]} : vector<160x32xf32> to vector<32x32xf32>
    %532 = vector.extract_strided_slice %529 {offsets = [64, 0], sizes = [32, 32], strides = [1, 1]} : vector<160x32xf32> to vector<32x32xf32>
    %533 = vector.extract_strided_slice %529 {offsets = [96, 0], sizes = [32, 32], strides = [1, 1]} : vector<160x32xf32> to vector<32x32xf32>
    %534 = vector.extract_strided_slice %529 {offsets = [128, 0], sizes = [32, 32], strides = [1, 1]} : vector<160x32xf32> to vector<32x32xf32>
    %535 = tpu.concatenate %530, %531, %532, %533, %534 in 1 : vector<32x32xf32>, vector<32x32xf32>, vector<32x32xf32>, vector<32x32xf32>, vector<32x32xf32> -> vector<32x160xf32>
    %c2_291 = arith.constant 2 : index
    %c2_292 = arith.constant 2 : index
    %c0_293 = arith.constant 0 : index
    %c0_294 = arith.constant 0 : index
    %536 = vector.load %arg5[%c2_291, %c2_292, %c0_293, %c0_294] : memref<4x4x160x64xbf16, #tpu.memory_space<vmem>>, vector<1x1x160x64xbf16>
    %537 = vector.shape_cast %536 : vector<1x1x160x64xbf16> to vector<160x64xbf16>
    %538 = arith.truncf %535 : vector<32x160xf32> to vector<32x160xbf16>
    %cst_295 = arith.constant dense<0.000000e+00> : vector<32x64xf32>
    %539 = tpu.matmul %538, %537, %cst_295 {dimension_numbers = #tpu.dot_dimension_numbers<[1], [0], [0], [1], [0, 0, 1, 1], [], []>} : vector<32x160xbf16>, vector<160x64xbf16>, vector<32x64xf32> -> vector<32x64xf32>
    %c2_296 = arith.constant 2 : index
    %c2_297 = arith.constant 2 : index
    %c0_298 = arith.constant 0 : index
    %c0_299 = arith.constant 0 : index
    %540 = vector.load %arg6[%c2_296, %c2_297, %c0_298, %c0_299] : memref<4x4x1x64xf32, #tpu.memory_space<vmem>>, vector<1x1x1x64xf32>
    %541 = vector.shape_cast %540 : vector<1x1x1x64xf32> to vector<1x64xf32>
    %542 = vector.broadcast %541 : vector<1x64xf32> to vector<32x64xf32>
    %543 = arith.addf %539, %542 : vector<32x64xf32>
    %544 = vector.extract_strided_slice %543 {offsets = [0, 0], sizes = [32, 32], strides = [1, 1]} : vector<32x64xf32> to vector<32x32xf32>
    %545 = math.tanh %544 : vector<32x32xf32>
    %546 = vector.extract_strided_slice %543 {offsets = [0, 32], sizes = [32, 32], strides = [1, 1]} : vector<32x64xf32> to vector<32x32xf32>
    %547 = arith.negf %546 : vector<32x32xf32>
    %548 = math.exp %547 : vector<32x32xf32>
    %cst_300 = arith.constant 1.000000e+00 : f32
    %549 = vector.broadcast %cst_300 : f32 to vector<32x32xf32>
    %550 = arith.addf %549, %548 : vector<32x32xf32>
    %551 = arith.divf %549, %550 : vector<32x32xf32>
    %552 = arith.mulf %545, %551 : vector<32x32xf32>
    %c2_301 = arith.constant 2 : index
    %c2_302 = arith.constant 2 : index
    %c0_303 = arith.constant 0 : index
    %c0_304 = arith.constant 0 : index
    %553 = vector.load %arg7[%c2_301, %c2_302, %c0_303, %c0_304] : memref<4x3x32x64xbf16, #tpu.memory_space<vmem>>, vector<1x1x32x64xbf16>
    %554 = vector.shape_cast %553 : vector<1x1x32x64xbf16> to vector<32x64xbf16>
    %555 = arith.truncf %552 : vector<32x32xf32> to vector<32x32xbf16>
    %cst_305 = arith.constant dense<0.000000e+00> : vector<32x64xf32>
    %556 = tpu.matmul %555, %554, %cst_305 {dimension_numbers = #tpu.dot_dimension_numbers<[1], [0], [0], [1], [0, 0, 1, 1], [], []>} : vector<32x32xbf16>, vector<32x64xbf16>, vector<32x64xf32> -> vector<32x64xf32>
    %c2_306 = arith.constant 2 : index
    %c2_307 = arith.constant 2 : index
    %c0_308 = arith.constant 0 : index
    %c0_309 = arith.constant 0 : index
    %557 = vector.load %arg8[%c2_306, %c2_307, %c0_308, %c0_309] : memref<4x3x1x64xf32, #tpu.memory_space<vmem>>, vector<1x1x1x64xf32>
    %558 = vector.shape_cast %557 : vector<1x1x1x64xf32> to vector<1x64xf32>
    %559 = vector.broadcast %558 : vector<1x64xf32> to vector<32x64xf32>
    %560 = arith.addf %556, %559 : vector<32x64xf32>
    %561 = vector.extract_strided_slice %560 {offsets = [0, 0], sizes = [32, 32], strides = [1, 1]} : vector<32x64xf32> to vector<32x32xf32>
    %562 = arith.addf %523, %561 : vector<32x32xf32>
    %563 = arith.mulf %562, %2 : vector<32x32xf32>
    %564 = vector.extract_strided_slice %560 {offsets = [0, 32], sizes = [32, 32], strides = [1, 1]} : vector<32x64xf32> to vector<32x32xf32>
    %565 = arith.addf %525, %564 : vector<32x32xf32>
    %c0_310 = arith.constant 0 : index
    %c0_311 = arith.constant 0 : index
    %c0_312 = arith.constant 0 : index
    %566 = vector.load %arg2[%c0_310, %c0_311, %c0_312] : memref<1x160x32xbf16, #tpu.memory_space<vmem>>, vector<1x160x32xbf16>
    %567 = vector.shape_cast %566 : vector<1x160x32xbf16> to vector<160x32xbf16>
    %568 = arith.truncf %563 : vector<32x32xf32> to vector<32x32xbf16>
    %cst_313 = arith.constant dense<0.000000e+00> : vector<160x32xf32>
    %569 = tpu.matmul %567, %568, %cst_313 {dimension_numbers = #tpu.dot_dimension_numbers<[1], [0], [0], [1], [0, 0, 1, 1], [], []>} : vector<160x32xbf16>, vector<32x32xbf16>, vector<160x32xf32> -> vector<160x32xf32>
    %570 = vector.extract_strided_slice %569 {offsets = [0, 0], sizes = [32, 32], strides = [1, 1]} : vector<160x32xf32> to vector<32x32xf32>
    %571 = vector.extract_strided_slice %569 {offsets = [32, 0], sizes = [32, 32], strides = [1, 1]} : vector<160x32xf32> to vector<32x32xf32>
    %572 = vector.extract_strided_slice %569 {offsets = [64, 0], sizes = [32, 32], strides = [1, 1]} : vector<160x32xf32> to vector<32x32xf32>
    %573 = vector.extract_strided_slice %569 {offsets = [96, 0], sizes = [32, 32], strides = [1, 1]} : vector<160x32xf32> to vector<32x32xf32>
    %574 = vector.extract_strided_slice %569 {offsets = [128, 0], sizes = [32, 32], strides = [1, 1]} : vector<160x32xf32> to vector<32x32xf32>
    %575 = tpu.concatenate %570, %571, %572, %573, %574 in 1 : vector<32x32xf32>, vector<32x32xf32>, vector<32x32xf32>, vector<32x32xf32>, vector<32x32xf32> -> vector<32x160xf32>
    %c2_314 = arith.constant 2 : index
    %c3_315 = arith.constant 3 : index
    %c0_316 = arith.constant 0 : index
    %c0_317 = arith.constant 0 : index
    %576 = vector.load %arg5[%c2_314, %c3_315, %c0_316, %c0_317] : memref<4x4x160x64xbf16, #tpu.memory_space<vmem>>, vector<1x1x160x64xbf16>
    %577 = vector.shape_cast %576 : vector<1x1x160x64xbf16> to vector<160x64xbf16>
    %578 = arith.truncf %575 : vector<32x160xf32> to vector<32x160xbf16>
    %cst_318 = arith.constant dense<0.000000e+00> : vector<32x64xf32>
    %579 = tpu.matmul %578, %577, %cst_318 {dimension_numbers = #tpu.dot_dimension_numbers<[1], [0], [0], [1], [0, 0, 1, 1], [], []>} : vector<32x160xbf16>, vector<160x64xbf16>, vector<32x64xf32> -> vector<32x64xf32>
    %c2_319 = arith.constant 2 : index
    %c3_320 = arith.constant 3 : index
    %c0_321 = arith.constant 0 : index
    %c0_322 = arith.constant 0 : index
    %580 = vector.load %arg6[%c2_319, %c3_320, %c0_321, %c0_322] : memref<4x4x1x64xf32, #tpu.memory_space<vmem>>, vector<1x1x1x64xf32>
    %581 = vector.shape_cast %580 : vector<1x1x1x64xf32> to vector<1x64xf32>
    %582 = vector.broadcast %581 : vector<1x64xf32> to vector<32x64xf32>
    %583 = arith.addf %579, %582 : vector<32x64xf32>
    %584 = vector.extract_strided_slice %583 {offsets = [0, 0], sizes = [32, 32], strides = [1, 1]} : vector<32x64xf32> to vector<32x32xf32>
    %585 = math.tanh %584 : vector<32x32xf32>
    %586 = vector.extract_strided_slice %583 {offsets = [0, 32], sizes = [32, 32], strides = [1, 1]} : vector<32x64xf32> to vector<32x32xf32>
    %587 = arith.negf %586 : vector<32x32xf32>
    %588 = math.exp %587 : vector<32x32xf32>
    %cst_323 = arith.constant 1.000000e+00 : f32
    %589 = vector.broadcast %cst_323 : f32 to vector<32x32xf32>
    %590 = arith.addf %589, %588 : vector<32x32xf32>
    %591 = arith.divf %589, %590 : vector<32x32xf32>
    %592 = arith.mulf %585, %591 : vector<32x32xf32>
    %c2_324 = arith.constant 2 : index
    %c0_325 = arith.constant 0 : index
    %c0_326 = arith.constant 0 : index
    %593 = vector.load %arg9[%c2_324, %c0_325, %c0_326] : memref<4x32x32xbf16, #tpu.memory_space<vmem>>, vector<1x32x32xbf16>
    %594 = vector.shape_cast %593 : vector<1x32x32xbf16> to vector<32x32xbf16>
    %595 = arith.truncf %592 : vector<32x32xf32> to vector<32x32xbf16>
    %cst_327 = arith.constant dense<0.000000e+00> : vector<32x32xf32>
    %596 = tpu.matmul %595, %594, %cst_327 {dimension_numbers = #tpu.dot_dimension_numbers<[1], [0], [0], [1], [0, 0, 1, 1], [], []>} : vector<32x32xbf16>, vector<32x32xbf16>, vector<32x32xf32> -> vector<32x32xf32>
    %597 = arith.addf %565, %596 : vector<32x32xf32>
    %c2_328 = arith.constant 2 : index
    %c0_329 = arith.constant 0 : index
    %c0_330 = arith.constant 0 : index
    %598 = vector.load %arg10[%c2_328, %c0_329, %c0_330] : memref<4x1x32xf32, #tpu.memory_space<vmem>>, vector<1x1x32xf32>
    %599 = vector.shape_cast %598 : vector<1x1x32xf32> to vector<1x32xf32>
    %600 = vector.broadcast %599 : vector<1x32xf32> to vector<32x32xf32>
    %601 = arith.addf %597, %600 : vector<32x32xf32>
    %602 = arith.mulf %601, %2 : vector<32x32xf32>
    %c2_331 = arith.constant 2 : index
    %c0_332 = arith.constant 0 : index
    %c0_333 = arith.constant 0 : index
    %603 = vector.load %arg11[%c2_331, %c0_332, %c0_333] : memref<4x32x4xbf16, #tpu.memory_space<vmem>>, vector<1x32x4xbf16>
    %604 = vector.shape_cast %603 : vector<1x32x4xbf16> to vector<32x4xbf16>
    %605 = arith.truncf %602 : vector<32x32xf32> to vector<32x32xbf16>
    %cst_334 = arith.constant dense<0.000000e+00> : vector<32x4xf32>
    %606 = tpu.matmul %605, %604, %cst_334 {dimension_numbers = #tpu.dot_dimension_numbers<[1], [0], [0], [1], [0, 0, 1, 1], [], []>} : vector<32x32xbf16>, vector<32x4xbf16>, vector<32x4xf32> -> vector<32x4xf32>
    %c2_335 = arith.constant 2 : index
    %c0_336 = arith.constant 0 : index
    %c0_337 = arith.constant 0 : index
    %607 = vector.load %arg12[%c2_335, %c0_336, %c0_337] : memref<4x1x4xf32, #tpu.memory_space<vmem>>, vector<1x1x4xf32>
    %608 = vector.shape_cast %607 : vector<1x1x4xf32> to vector<1x4xf32>
    %609 = vector.broadcast %608 : vector<1x4xf32> to vector<32x4xf32>
    %610 = arith.addf %606, %609 : vector<32x4xf32>
    %611 = arith.mulf %610, %4 : vector<32x4xf32>
    %612 = arith.mulf %209, %4 : vector<32x4xf32>
    %613 = arith.addf %611, %612 : vector<32x4xf32>
    %c3_338 = arith.constant 3 : index
    %c0_339 = arith.constant 0 : index
    %c0_340 = arith.constant 0 : index
    %614 = vector.load %arg4[%c3_338, %c0_339, %c0_340] : memref<4x1x32xf32, #tpu.memory_space<vmem>>, vector<1x1x32xf32>
    %615 = vector.shape_cast %614 : vector<1x1x32xf32> to vector<1x32xf32>
    %616 = vector.shape_cast %615 : vector<1x32xf32> to vector<1x32xf32>
    %617 = vector.broadcast %616 : vector<1x32xf32> to vector<32x32xf32>
    %618 = vector.extract_strided_slice %613 {offsets = [0, 0], sizes = [32, 1], strides = [1, 1]} : vector<32x4xf32> to vector<32x1xf32>
    %c3_341 = arith.constant 3 : index
    %c0_342 = arith.constant 0 : index
    %c0_343 = arith.constant 0 : index
    %619 = vector.load %arg3[%c3_341, %c0_342, %c0_343] : memref<4x4x32xf32, #tpu.memory_space<vmem>>, vector<1x1x32xf32>
    %620 = vector.shape_cast %619 : vector<1x1x32xf32> to vector<1x32xf32>
    %621 = vector.broadcast %618 : vector<32x1xf32> to vector<32x32xf32>
    %622 = vector.broadcast %620 : vector<1x32xf32> to vector<32x32xf32>
    %623 = arith.mulf %621, %622 : vector<32x32xf32>
    %624 = arith.addf %617, %623 : vector<32x32xf32>
    %625 = vector.extract_strided_slice %613 {offsets = [0, 1], sizes = [32, 1], strides = [1, 1]} : vector<32x4xf32> to vector<32x1xf32>
    %c3_344 = arith.constant 3 : index
    %c1_345 = arith.constant 1 : index
    %c0_346 = arith.constant 0 : index
    %626 = vector.load %arg3[%c3_344, %c1_345, %c0_346] : memref<4x4x32xf32, #tpu.memory_space<vmem>>, vector<1x1x32xf32>
    %627 = vector.shape_cast %626 : vector<1x1x32xf32> to vector<1x32xf32>
    %628 = vector.broadcast %625 : vector<32x1xf32> to vector<32x32xf32>
    %629 = vector.broadcast %627 : vector<1x32xf32> to vector<32x32xf32>
    %630 = arith.mulf %628, %629 : vector<32x32xf32>
    %631 = arith.addf %624, %630 : vector<32x32xf32>
    %632 = vector.extract_strided_slice %613 {offsets = [0, 2], sizes = [32, 1], strides = [1, 1]} : vector<32x4xf32> to vector<32x1xf32>
    %c3_347 = arith.constant 3 : index
    %c2_348 = arith.constant 2 : index
    %c0_349 = arith.constant 0 : index
    %633 = vector.load %arg3[%c3_347, %c2_348, %c0_349] : memref<4x4x32xf32, #tpu.memory_space<vmem>>, vector<1x1x32xf32>
    %634 = vector.shape_cast %633 : vector<1x1x32xf32> to vector<1x32xf32>
    %635 = vector.broadcast %632 : vector<32x1xf32> to vector<32x32xf32>
    %636 = vector.broadcast %634 : vector<1x32xf32> to vector<32x32xf32>
    %637 = arith.mulf %635, %636 : vector<32x32xf32>
    %638 = arith.addf %631, %637 : vector<32x32xf32>
    %639 = vector.extract_strided_slice %613 {offsets = [0, 3], sizes = [32, 1], strides = [1, 1]} : vector<32x4xf32> to vector<32x1xf32>
    %c3_350 = arith.constant 3 : index
    %c3_351 = arith.constant 3 : index
    %c0_352 = arith.constant 0 : index
    %640 = vector.load %arg3[%c3_350, %c3_351, %c0_352] : memref<4x4x32xf32, #tpu.memory_space<vmem>>, vector<1x1x32xf32>
    %641 = vector.shape_cast %640 : vector<1x1x32xf32> to vector<1x32xf32>
    %642 = vector.broadcast %639 : vector<32x1xf32> to vector<32x32xf32>
    %643 = vector.broadcast %641 : vector<1x32xf32> to vector<32x32xf32>
    %644 = arith.mulf %642, %643 : vector<32x32xf32>
    %645 = arith.addf %638, %644 : vector<32x32xf32>
    %646 = arith.mulf %645, %2 : vector<32x32xf32>
    %cst_353 = arith.constant 0.000000e+00 : f32
    %647 = vector.broadcast %cst_353 : f32 to vector<32x32xf32>
    %c0_354 = arith.constant 0 : index
    %c0_355 = arith.constant 0 : index
    %c0_356 = arith.constant 0 : index
    %648 = vector.load %arg2[%c0_354, %c0_355, %c0_356] : memref<1x160x32xbf16, #tpu.memory_space<vmem>>, vector<1x160x32xbf16>
    %649 = vector.shape_cast %648 : vector<1x160x32xbf16> to vector<160x32xbf16>
    %650 = arith.truncf %646 : vector<32x32xf32> to vector<32x32xbf16>
    %cst_357 = arith.constant dense<0.000000e+00> : vector<160x32xf32>
    %651 = tpu.matmul %649, %650, %cst_357 {dimension_numbers = #tpu.dot_dimension_numbers<[1], [0], [0], [1], [0, 0, 1, 1], [], []>} : vector<160x32xbf16>, vector<32x32xbf16>, vector<160x32xf32> -> vector<160x32xf32>
    %652 = vector.extract_strided_slice %651 {offsets = [0, 0], sizes = [32, 32], strides = [1, 1]} : vector<160x32xf32> to vector<32x32xf32>
    %653 = vector.extract_strided_slice %651 {offsets = [32, 0], sizes = [32, 32], strides = [1, 1]} : vector<160x32xf32> to vector<32x32xf32>
    %654 = vector.extract_strided_slice %651 {offsets = [64, 0], sizes = [32, 32], strides = [1, 1]} : vector<160x32xf32> to vector<32x32xf32>
    %655 = vector.extract_strided_slice %651 {offsets = [96, 0], sizes = [32, 32], strides = [1, 1]} : vector<160x32xf32> to vector<32x32xf32>
    %656 = vector.extract_strided_slice %651 {offsets = [128, 0], sizes = [32, 32], strides = [1, 1]} : vector<160x32xf32> to vector<32x32xf32>
    %657 = tpu.concatenate %652, %653, %654, %655, %656 in 1 : vector<32x32xf32>, vector<32x32xf32>, vector<32x32xf32>, vector<32x32xf32>, vector<32x32xf32> -> vector<32x160xf32>
    %c3_358 = arith.constant 3 : index
    %c0_359 = arith.constant 0 : index
    %c0_360 = arith.constant 0 : index
    %c0_361 = arith.constant 0 : index
    %658 = vector.load %arg5[%c3_358, %c0_359, %c0_360, %c0_361] : memref<4x4x160x64xbf16, #tpu.memory_space<vmem>>, vector<1x1x160x64xbf16>
    %659 = vector.shape_cast %658 : vector<1x1x160x64xbf16> to vector<160x64xbf16>
    %660 = arith.truncf %657 : vector<32x160xf32> to vector<32x160xbf16>
    %cst_362 = arith.constant dense<0.000000e+00> : vector<32x64xf32>
    %661 = tpu.matmul %660, %659, %cst_362 {dimension_numbers = #tpu.dot_dimension_numbers<[1], [0], [0], [1], [0, 0, 1, 1], [], []>} : vector<32x160xbf16>, vector<160x64xbf16>, vector<32x64xf32> -> vector<32x64xf32>
    %c3_363 = arith.constant 3 : index
    %c0_364 = arith.constant 0 : index
    %c0_365 = arith.constant 0 : index
    %c0_366 = arith.constant 0 : index
    %662 = vector.load %arg6[%c3_363, %c0_364, %c0_365, %c0_366] : memref<4x4x1x64xf32, #tpu.memory_space<vmem>>, vector<1x1x1x64xf32>
    %663 = vector.shape_cast %662 : vector<1x1x1x64xf32> to vector<1x64xf32>
    %664 = vector.broadcast %663 : vector<1x64xf32> to vector<32x64xf32>
    %665 = arith.addf %661, %664 : vector<32x64xf32>
    %666 = vector.extract_strided_slice %665 {offsets = [0, 0], sizes = [32, 32], strides = [1, 1]} : vector<32x64xf32> to vector<32x32xf32>
    %667 = math.tanh %666 : vector<32x32xf32>
    %668 = vector.extract_strided_slice %665 {offsets = [0, 32], sizes = [32, 32], strides = [1, 1]} : vector<32x64xf32> to vector<32x32xf32>
    %669 = arith.negf %668 : vector<32x32xf32>
    %670 = math.exp %669 : vector<32x32xf32>
    %cst_367 = arith.constant 1.000000e+00 : f32
    %671 = vector.broadcast %cst_367 : f32 to vector<32x32xf32>
    %672 = arith.addf %671, %670 : vector<32x32xf32>
    %673 = arith.divf %671, %672 : vector<32x32xf32>
    %674 = arith.mulf %667, %673 : vector<32x32xf32>
    %c3_368 = arith.constant 3 : index
    %c0_369 = arith.constant 0 : index
    %c0_370 = arith.constant 0 : index
    %c0_371 = arith.constant 0 : index
    %675 = vector.load %arg7[%c3_368, %c0_369, %c0_370, %c0_371] : memref<4x3x32x64xbf16, #tpu.memory_space<vmem>>, vector<1x1x32x64xbf16>
    %676 = vector.shape_cast %675 : vector<1x1x32x64xbf16> to vector<32x64xbf16>
    %677 = arith.truncf %674 : vector<32x32xf32> to vector<32x32xbf16>
    %cst_372 = arith.constant dense<0.000000e+00> : vector<32x64xf32>
    %678 = tpu.matmul %677, %676, %cst_372 {dimension_numbers = #tpu.dot_dimension_numbers<[1], [0], [0], [1], [0, 0, 1, 1], [], []>} : vector<32x32xbf16>, vector<32x64xbf16>, vector<32x64xf32> -> vector<32x64xf32>
    %c3_373 = arith.constant 3 : index
    %c0_374 = arith.constant 0 : index
    %c0_375 = arith.constant 0 : index
    %c0_376 = arith.constant 0 : index
    %679 = vector.load %arg8[%c3_373, %c0_374, %c0_375, %c0_376] : memref<4x3x1x64xf32, #tpu.memory_space<vmem>>, vector<1x1x1x64xf32>
    %680 = vector.shape_cast %679 : vector<1x1x1x64xf32> to vector<1x64xf32>
    %681 = vector.broadcast %680 : vector<1x64xf32> to vector<32x64xf32>
    %682 = arith.addf %678, %681 : vector<32x64xf32>
    %683 = vector.extract_strided_slice %682 {offsets = [0, 0], sizes = [32, 32], strides = [1, 1]} : vector<32x64xf32> to vector<32x32xf32>
    %684 = arith.addf %646, %683 : vector<32x32xf32>
    %685 = arith.mulf %684, %2 : vector<32x32xf32>
    %686 = vector.extract_strided_slice %682 {offsets = [0, 32], sizes = [32, 32], strides = [1, 1]} : vector<32x64xf32> to vector<32x32xf32>
    %687 = arith.addf %647, %686 : vector<32x32xf32>
    %c0_377 = arith.constant 0 : index
    %c0_378 = arith.constant 0 : index
    %c0_379 = arith.constant 0 : index
    %688 = vector.load %arg2[%c0_377, %c0_378, %c0_379] : memref<1x160x32xbf16, #tpu.memory_space<vmem>>, vector<1x160x32xbf16>
    %689 = vector.shape_cast %688 : vector<1x160x32xbf16> to vector<160x32xbf16>
    %690 = arith.truncf %685 : vector<32x32xf32> to vector<32x32xbf16>
    %cst_380 = arith.constant dense<0.000000e+00> : vector<160x32xf32>
    %691 = tpu.matmul %689, %690, %cst_380 {dimension_numbers = #tpu.dot_dimension_numbers<[1], [0], [0], [1], [0, 0, 1, 1], [], []>} : vector<160x32xbf16>, vector<32x32xbf16>, vector<160x32xf32> -> vector<160x32xf32>
    %692 = vector.extract_strided_slice %691 {offsets = [0, 0], sizes = [32, 32], strides = [1, 1]} : vector<160x32xf32> to vector<32x32xf32>
    %693 = vector.extract_strided_slice %691 {offsets = [32, 0], sizes = [32, 32], strides = [1, 1]} : vector<160x32xf32> to vector<32x32xf32>
    %694 = vector.extract_strided_slice %691 {offsets = [64, 0], sizes = [32, 32], strides = [1, 1]} : vector<160x32xf32> to vector<32x32xf32>
    %695 = vector.extract_strided_slice %691 {offsets = [96, 0], sizes = [32, 32], strides = [1, 1]} : vector<160x32xf32> to vector<32x32xf32>
    %696 = vector.extract_strided_slice %691 {offsets = [128, 0], sizes = [32, 32], strides = [1, 1]} : vector<160x32xf32> to vector<32x32xf32>
    %697 = tpu.concatenate %692, %693, %694, %695, %696 in 1 : vector<32x32xf32>, vector<32x32xf32>, vector<32x32xf32>, vector<32x32xf32>, vector<32x32xf32> -> vector<32x160xf32>
    %c3_381 = arith.constant 3 : index
    %c1_382 = arith.constant 1 : index
    %c0_383 = arith.constant 0 : index
    %c0_384 = arith.constant 0 : index
    %698 = vector.load %arg5[%c3_381, %c1_382, %c0_383, %c0_384] : memref<4x4x160x64xbf16, #tpu.memory_space<vmem>>, vector<1x1x160x64xbf16>
    %699 = vector.shape_cast %698 : vector<1x1x160x64xbf16> to vector<160x64xbf16>
    %700 = arith.truncf %697 : vector<32x160xf32> to vector<32x160xbf16>
    %cst_385 = arith.constant dense<0.000000e+00> : vector<32x64xf32>
    %701 = tpu.matmul %700, %699, %cst_385 {dimension_numbers = #tpu.dot_dimension_numbers<[1], [0], [0], [1], [0, 0, 1, 1], [], []>} : vector<32x160xbf16>, vector<160x64xbf16>, vector<32x64xf32> -> vector<32x64xf32>
    %c3_386 = arith.constant 3 : index
    %c1_387 = arith.constant 1 : index
    %c0_388 = arith.constant 0 : index
    %c0_389 = arith.constant 0 : index
    %702 = vector.load %arg6[%c3_386, %c1_387, %c0_388, %c0_389] : memref<4x4x1x64xf32, #tpu.memory_space<vmem>>, vector<1x1x1x64xf32>
    %703 = vector.shape_cast %702 : vector<1x1x1x64xf32> to vector<1x64xf32>
    %704 = vector.broadcast %703 : vector<1x64xf32> to vector<32x64xf32>
    %705 = arith.addf %701, %704 : vector<32x64xf32>
    %706 = vector.extract_strided_slice %705 {offsets = [0, 0], sizes = [32, 32], strides = [1, 1]} : vector<32x64xf32> to vector<32x32xf32>
    %707 = math.tanh %706 : vector<32x32xf32>
    %708 = vector.extract_strided_slice %705 {offsets = [0, 32], sizes = [32, 32], strides = [1, 1]} : vector<32x64xf32> to vector<32x32xf32>
    %709 = arith.negf %708 : vector<32x32xf32>
    %710 = math.exp %709 : vector<32x32xf32>
    %cst_390 = arith.constant 1.000000e+00 : f32
    %711 = vector.broadcast %cst_390 : f32 to vector<32x32xf32>
    %712 = arith.addf %711, %710 : vector<32x32xf32>
    %713 = arith.divf %711, %712 : vector<32x32xf32>
    %714 = arith.mulf %707, %713 : vector<32x32xf32>
    %c3_391 = arith.constant 3 : index
    %c1_392 = arith.constant 1 : index
    %c0_393 = arith.constant 0 : index
    %c0_394 = arith.constant 0 : index
    %715 = vector.load %arg7[%c3_391, %c1_392, %c0_393, %c0_394] : memref<4x3x32x64xbf16, #tpu.memory_space<vmem>>, vector<1x1x32x64xbf16>
    %716 = vector.shape_cast %715 : vector<1x1x32x64xbf16> to vector<32x64xbf16>
    %717 = arith.truncf %714 : vector<32x32xf32> to vector<32x32xbf16>
    %cst_395 = arith.constant dense<0.000000e+00> : vector<32x64xf32>
    %718 = tpu.matmul %717, %716, %cst_395 {dimension_numbers = #tpu.dot_dimension_numbers<[1], [0], [0], [1], [0, 0, 1, 1], [], []>} : vector<32x32xbf16>, vector<32x64xbf16>, vector<32x64xf32> -> vector<32x64xf32>
    %c3_396 = arith.constant 3 : index
    %c1_397 = arith.constant 1 : index
    %c0_398 = arith.constant 0 : index
    %c0_399 = arith.constant 0 : index
    %719 = vector.load %arg8[%c3_396, %c1_397, %c0_398, %c0_399] : memref<4x3x1x64xf32, #tpu.memory_space<vmem>>, vector<1x1x1x64xf32>
    %720 = vector.shape_cast %719 : vector<1x1x1x64xf32> to vector<1x64xf32>
    %721 = vector.broadcast %720 : vector<1x64xf32> to vector<32x64xf32>
    %722 = arith.addf %718, %721 : vector<32x64xf32>
    %723 = vector.extract_strided_slice %722 {offsets = [0, 0], sizes = [32, 32], strides = [1, 1]} : vector<32x64xf32> to vector<32x32xf32>
    %724 = arith.addf %685, %723 : vector<32x32xf32>
    %725 = arith.mulf %724, %2 : vector<32x32xf32>
    %726 = vector.extract_strided_slice %722 {offsets = [0, 32], sizes = [32, 32], strides = [1, 1]} : vector<32x64xf32> to vector<32x32xf32>
    %727 = arith.addf %687, %726 : vector<32x32xf32>
    %c0_400 = arith.constant 0 : index
    %c0_401 = arith.constant 0 : index
    %c0_402 = arith.constant 0 : index
    %728 = vector.load %arg2[%c0_400, %c0_401, %c0_402] : memref<1x160x32xbf16, #tpu.memory_space<vmem>>, vector<1x160x32xbf16>
    %729 = vector.shape_cast %728 : vector<1x160x32xbf16> to vector<160x32xbf16>
    %730 = arith.truncf %725 : vector<32x32xf32> to vector<32x32xbf16>
    %cst_403 = arith.constant dense<0.000000e+00> : vector<160x32xf32>
    %731 = tpu.matmul %729, %730, %cst_403 {dimension_numbers = #tpu.dot_dimension_numbers<[1], [0], [0], [1], [0, 0, 1, 1], [], []>} : vector<160x32xbf16>, vector<32x32xbf16>, vector<160x32xf32> -> vector<160x32xf32>
    %732 = vector.extract_strided_slice %731 {offsets = [0, 0], sizes = [32, 32], strides = [1, 1]} : vector<160x32xf32> to vector<32x32xf32>
    %733 = vector.extract_strided_slice %731 {offsets = [32, 0], sizes = [32, 32], strides = [1, 1]} : vector<160x32xf32> to vector<32x32xf32>
    %734 = vector.extract_strided_slice %731 {offsets = [64, 0], sizes = [32, 32], strides = [1, 1]} : vector<160x32xf32> to vector<32x32xf32>
    %735 = vector.extract_strided_slice %731 {offsets = [96, 0], sizes = [32, 32], strides = [1, 1]} : vector<160x32xf32> to vector<32x32xf32>
    %736 = vector.extract_strided_slice %731 {offsets = [128, 0], sizes = [32, 32], strides = [1, 1]} : vector<160x32xf32> to vector<32x32xf32>
    %737 = tpu.concatenate %732, %733, %734, %735, %736 in 1 : vector<32x32xf32>, vector<32x32xf32>, vector<32x32xf32>, vector<32x32xf32>, vector<32x32xf32> -> vector<32x160xf32>
    %c3_404 = arith.constant 3 : index
    %c2_405 = arith.constant 2 : index
    %c0_406 = arith.constant 0 : index
    %c0_407 = arith.constant 0 : index
    %738 = vector.load %arg5[%c3_404, %c2_405, %c0_406, %c0_407] : memref<4x4x160x64xbf16, #tpu.memory_space<vmem>>, vector<1x1x160x64xbf16>
    %739 = vector.shape_cast %738 : vector<1x1x160x64xbf16> to vector<160x64xbf16>
    %740 = arith.truncf %737 : vector<32x160xf32> to vector<32x160xbf16>
    %cst_408 = arith.constant dense<0.000000e+00> : vector<32x64xf32>
    %741 = tpu.matmul %740, %739, %cst_408 {dimension_numbers = #tpu.dot_dimension_numbers<[1], [0], [0], [1], [0, 0, 1, 1], [], []>} : vector<32x160xbf16>, vector<160x64xbf16>, vector<32x64xf32> -> vector<32x64xf32>
    %c3_409 = arith.constant 3 : index
    %c2_410 = arith.constant 2 : index
    %c0_411 = arith.constant 0 : index
    %c0_412 = arith.constant 0 : index
    %742 = vector.load %arg6[%c3_409, %c2_410, %c0_411, %c0_412] : memref<4x4x1x64xf32, #tpu.memory_space<vmem>>, vector<1x1x1x64xf32>
    %743 = vector.shape_cast %742 : vector<1x1x1x64xf32> to vector<1x64xf32>
    %744 = vector.broadcast %743 : vector<1x64xf32> to vector<32x64xf32>
    %745 = arith.addf %741, %744 : vector<32x64xf32>
    %746 = vector.extract_strided_slice %745 {offsets = [0, 0], sizes = [32, 32], strides = [1, 1]} : vector<32x64xf32> to vector<32x32xf32>
    %747 = math.tanh %746 : vector<32x32xf32>
    %748 = vector.extract_strided_slice %745 {offsets = [0, 32], sizes = [32, 32], strides = [1, 1]} : vector<32x64xf32> to vector<32x32xf32>
    %749 = arith.negf %748 : vector<32x32xf32>
    %750 = math.exp %749 : vector<32x32xf32>
    %cst_413 = arith.constant 1.000000e+00 : f32
    %751 = vector.broadcast %cst_413 : f32 to vector<32x32xf32>
    %752 = arith.addf %751, %750 : vector<32x32xf32>
    %753 = arith.divf %751, %752 : vector<32x32xf32>
    %754 = arith.mulf %747, %753 : vector<32x32xf32>
    %c3_414 = arith.constant 3 : index
    %c2_415 = arith.constant 2 : index
    %c0_416 = arith.constant 0 : index
    %c0_417 = arith.constant 0 : index
    %755 = vector.load %arg7[%c3_414, %c2_415, %c0_416, %c0_417] : memref<4x3x32x64xbf16, #tpu.memory_space<vmem>>, vector<1x1x32x64xbf16>
    %756 = vector.shape_cast %755 : vector<1x1x32x64xbf16> to vector<32x64xbf16>
    %757 = arith.truncf %754 : vector<32x32xf32> to vector<32x32xbf16>
    %cst_418 = arith.constant dense<0.000000e+00> : vector<32x64xf32>
    %758 = tpu.matmul %757, %756, %cst_418 {dimension_numbers = #tpu.dot_dimension_numbers<[1], [0], [0], [1], [0, 0, 1, 1], [], []>} : vector<32x32xbf16>, vector<32x64xbf16>, vector<32x64xf32> -> vector<32x64xf32>
    %c3_419 = arith.constant 3 : index
    %c2_420 = arith.constant 2 : index
    %c0_421 = arith.constant 0 : index
    %c0_422 = arith.constant 0 : index
    %759 = vector.load %arg8[%c3_419, %c2_420, %c0_421, %c0_422] : memref<4x3x1x64xf32, #tpu.memory_space<vmem>>, vector<1x1x1x64xf32>
    %760 = vector.shape_cast %759 : vector<1x1x1x64xf32> to vector<1x64xf32>
    %761 = vector.broadcast %760 : vector<1x64xf32> to vector<32x64xf32>
    %762 = arith.addf %758, %761 : vector<32x64xf32>
    %763 = vector.extract_strided_slice %762 {offsets = [0, 0], sizes = [32, 32], strides = [1, 1]} : vector<32x64xf32> to vector<32x32xf32>
    %764 = arith.addf %725, %763 : vector<32x32xf32>
    %765 = arith.mulf %764, %2 : vector<32x32xf32>
    %766 = vector.extract_strided_slice %762 {offsets = [0, 32], sizes = [32, 32], strides = [1, 1]} : vector<32x64xf32> to vector<32x32xf32>
    %767 = arith.addf %727, %766 : vector<32x32xf32>
    %c0_423 = arith.constant 0 : index
    %c0_424 = arith.constant 0 : index
    %c0_425 = arith.constant 0 : index
    %768 = vector.load %arg2[%c0_423, %c0_424, %c0_425] : memref<1x160x32xbf16, #tpu.memory_space<vmem>>, vector<1x160x32xbf16>
    %769 = vector.shape_cast %768 : vector<1x160x32xbf16> to vector<160x32xbf16>
    %770 = arith.truncf %765 : vector<32x32xf32> to vector<32x32xbf16>
    %cst_426 = arith.constant dense<0.000000e+00> : vector<160x32xf32>
    %771 = tpu.matmul %769, %770, %cst_426 {dimension_numbers = #tpu.dot_dimension_numbers<[1], [0], [0], [1], [0, 0, 1, 1], [], []>} : vector<160x32xbf16>, vector<32x32xbf16>, vector<160x32xf32> -> vector<160x32xf32>
    %772 = vector.extract_strided_slice %771 {offsets = [0, 0], sizes = [32, 32], strides = [1, 1]} : vector<160x32xf32> to vector<32x32xf32>
    %773 = vector.extract_strided_slice %771 {offsets = [32, 0], sizes = [32, 32], strides = [1, 1]} : vector<160x32xf32> to vector<32x32xf32>
    %774 = vector.extract_strided_slice %771 {offsets = [64, 0], sizes = [32, 32], strides = [1, 1]} : vector<160x32xf32> to vector<32x32xf32>
    %775 = vector.extract_strided_slice %771 {offsets = [96, 0], sizes = [32, 32], strides = [1, 1]} : vector<160x32xf32> to vector<32x32xf32>
    %776 = vector.extract_strided_slice %771 {offsets = [128, 0], sizes = [32, 32], strides = [1, 1]} : vector<160x32xf32> to vector<32x32xf32>
    %777 = tpu.concatenate %772, %773, %774, %775, %776 in 1 : vector<32x32xf32>, vector<32x32xf32>, vector<32x32xf32>, vector<32x32xf32>, vector<32x32xf32> -> vector<32x160xf32>
    %c3_427 = arith.constant 3 : index
    %c3_428 = arith.constant 3 : index
    %c0_429 = arith.constant 0 : index
    %c0_430 = arith.constant 0 : index
    %778 = vector.load %arg5[%c3_427, %c3_428, %c0_429, %c0_430] : memref<4x4x160x64xbf16, #tpu.memory_space<vmem>>, vector<1x1x160x64xbf16>
    %779 = vector.shape_cast %778 : vector<1x1x160x64xbf16> to vector<160x64xbf16>
    %780 = arith.truncf %777 : vector<32x160xf32> to vector<32x160xbf16>
    %cst_431 = arith.constant dense<0.000000e+00> : vector<32x64xf32>
    %781 = tpu.matmul %780, %779, %cst_431 {dimension_numbers = #tpu.dot_dimension_numbers<[1], [0], [0], [1], [0, 0, 1, 1], [], []>} : vector<32x160xbf16>, vector<160x64xbf16>, vector<32x64xf32> -> vector<32x64xf32>
    %c3_432 = arith.constant 3 : index
    %c3_433 = arith.constant 3 : index
    %c0_434 = arith.constant 0 : index
    %c0_435 = arith.constant 0 : index
    %782 = vector.load %arg6[%c3_432, %c3_433, %c0_434, %c0_435] : memref<4x4x1x64xf32, #tpu.memory_space<vmem>>, vector<1x1x1x64xf32>
    %783 = vector.shape_cast %782 : vector<1x1x1x64xf32> to vector<1x64xf32>
    %784 = vector.broadcast %783 : vector<1x64xf32> to vector<32x64xf32>
    %785 = arith.addf %781, %784 : vector<32x64xf32>
    %786 = vector.extract_strided_slice %785 {offsets = [0, 0], sizes = [32, 32], strides = [1, 1]} : vector<32x64xf32> to vector<32x32xf32>
    %787 = math.tanh %786 : vector<32x32xf32>
    %788 = vector.extract_strided_slice %785 {offsets = [0, 32], sizes = [32, 32], strides = [1, 1]} : vector<32x64xf32> to vector<32x32xf32>
    %789 = arith.negf %788 : vector<32x32xf32>
    %790 = math.exp %789 : vector<32x32xf32>
    %cst_436 = arith.constant 1.000000e+00 : f32
    %791 = vector.broadcast %cst_436 : f32 to vector<32x32xf32>
    %792 = arith.addf %791, %790 : vector<32x32xf32>
    %793 = arith.divf %791, %792 : vector<32x32xf32>
    %794 = arith.mulf %787, %793 : vector<32x32xf32>
    %c3_437 = arith.constant 3 : index
    %c0_438 = arith.constant 0 : index
    %c0_439 = arith.constant 0 : index
    %795 = vector.load %arg9[%c3_437, %c0_438, %c0_439] : memref<4x32x32xbf16, #tpu.memory_space<vmem>>, vector<1x32x32xbf16>
    %796 = vector.shape_cast %795 : vector<1x32x32xbf16> to vector<32x32xbf16>
    %797 = arith.truncf %794 : vector<32x32xf32> to vector<32x32xbf16>
    %cst_440 = arith.constant dense<0.000000e+00> : vector<32x32xf32>
    %798 = tpu.matmul %797, %796, %cst_440 {dimension_numbers = #tpu.dot_dimension_numbers<[1], [0], [0], [1], [0, 0, 1, 1], [], []>} : vector<32x32xbf16>, vector<32x32xbf16>, vector<32x32xf32> -> vector<32x32xf32>
    %799 = arith.addf %767, %798 : vector<32x32xf32>
    %c3_441 = arith.constant 3 : index
    %c0_442 = arith.constant 0 : index
    %c0_443 = arith.constant 0 : index
    %800 = vector.load %arg10[%c3_441, %c0_442, %c0_443] : memref<4x1x32xf32, #tpu.memory_space<vmem>>, vector<1x1x32xf32>
    %801 = vector.shape_cast %800 : vector<1x1x32xf32> to vector<1x32xf32>
    %802 = vector.broadcast %801 : vector<1x32xf32> to vector<32x32xf32>
    %803 = arith.addf %799, %802 : vector<32x32xf32>
    %804 = arith.mulf %803, %2 : vector<32x32xf32>
    %c3_444 = arith.constant 3 : index
    %c0_445 = arith.constant 0 : index
    %c0_446 = arith.constant 0 : index
    %805 = vector.load %arg11[%c3_444, %c0_445, %c0_446] : memref<4x32x4xbf16, #tpu.memory_space<vmem>>, vector<1x32x4xbf16>
    %806 = vector.shape_cast %805 : vector<1x32x4xbf16> to vector<32x4xbf16>
    %807 = arith.truncf %804 : vector<32x32xf32> to vector<32x32xbf16>
    %cst_447 = arith.constant dense<0.000000e+00> : vector<32x4xf32>
    %808 = tpu.matmul %807, %806, %cst_447 {dimension_numbers = #tpu.dot_dimension_numbers<[1], [0], [0], [1], [0, 0, 1, 1], [], []>} : vector<32x32xbf16>, vector<32x4xbf16>, vector<32x4xf32> -> vector<32x4xf32>
    %c3_448 = arith.constant 3 : index
    %c0_449 = arith.constant 0 : index
    %c0_450 = arith.constant 0 : index
    %809 = vector.load %arg12[%c3_448, %c0_449, %c0_450] : memref<4x1x4xf32, #tpu.memory_space<vmem>>, vector<1x1x4xf32>
    %810 = vector.shape_cast %809 : vector<1x1x4xf32> to vector<1x4xf32>
    %811 = vector.broadcast %810 : vector<1x4xf32> to vector<32x4xf32>
    %812 = arith.addf %808, %811 : vector<32x4xf32>
    %813 = arith.mulf %812, %4 : vector<32x4xf32>
    %814 = arith.mulf %411, %4 : vector<32x4xf32>
    %815 = arith.addf %813, %814 : vector<32x4xf32>
    %816 = tpu.concatenate %815, %613 in 1 : vector<32x4xf32>, vector<32x4xf32> -> vector<32x8xf32>
    %c0_451 = arith.constant 0 : index
    %c0_452 = arith.constant 0 : index
    %817 = vector.load %arg13[%c0_451, %c0_452] : memref<32x8xf32, #tpu.memory_space<vmem>>, vector<32x8xf32>
    tpu.vector_store %arg13[%c0_451, %c0_452], %816 {strides = array<i32>} : memref<32x8xf32, #tpu.memory_space<vmem>>, vector<32x8xf32>,
    return
  }
}

</mosaic_0001>

<bundles_post_ra>
// kernel: residual_coupling_block_forward.1
= control target key start
LH: loop header
LB: loop body
LE: loop exit
PB: predicated region body
PF: predicated region fallthrough
CT: control target
= control target key end

     0   :  { %v10487_v0 = vmov 1   ;;  %v10488_v1 = vmov 0   ;;  %v10489_v6 = vmov 2   ;;  %v10490_v7 = vmov 3   ;;  %s10491_s14 = smov 32   ;;  %s10492_s19 = smov 64   ;;  %s13576_s0 = inlined_call_operand.vmem [shape: f32[32,8], index: 0, kind: input, shape index: {}, may-alias: {0,13}]   ;;  %s13577_s3 = inlined_call_operand.vmem [shape: f32[4,4,32], index: 3, kind: input, shape index: {}]   ;;  %s13578_s4 = inlined_call_operand.vmem [shape: f32[4,1,32], index: 4, kind: input, shape index: {}]   ;;  %s13579_s1 = inlined_call_operand.vmem [shape: f32[32,1], index: 1, kind: input, shape index: {}]   ;;  %s13580_s2 = inlined_call_operand.vmem [shape: bf16[1,160,32], index: 2, kind: input, shape index: {}]   ;;  %s13581_s6 = inlined_call_operand.vmem [shape: f32[4,4,1,64], index: 6, kind: input, shape index: {}]   ;;  %s13582_s5 = inlined_call_operand.vmem [shape: bf16[4,4,160,64], index: 5, kind: input, shape index: {}]   ;;  %s13583_s8 = inlined_call_operand.vmem [shape: f32[4,3,1,64], index: 8, kind: input, shape index: {}]   ;;  %s13584_s7 = inlined_call_operand.vmem [shape: bf16[4,3,32,64], index: 7, kind: input, shape index: {}]   ;;  %s13585_s9 = inlined_call_operand.vmem [shape: bf16[4,32,32], index: 9, kind: input, shape index: {}]   ;;  %s13586_s10 = inlined_call_operand.vmem [shape: f32[4,1,32], index: 10, kind: input, shape index: {}]   ;;  %s13587_s11 = inlined_call_operand.vmem [shape: bf16[4,32,4], index: 11, kind: input, shape index: {}]   ;;  %s13588_s12 = inlined_call_operand.vmem [shape: f32[4,1,4], index: 12, kind: input, shape index: {}]   ;;  %s13589_s13 = inlined_call_operand.vmem [shape: f32[32,8], index: 13, kind: output, shape index: {}, may-alias: {0,13}]  }
   0x1   :  { %9447 = vset.pattern.permute.xlu1 %v10487_v0  ;;  %9446 = vset.pattern.permute.xlu0 %v10488_v1  ;;  %v71_v2 = vld [vmem:[%s13576_s0 + $0x10] sm:$0xff]  ;;  %v69_v3 = vld [vmem:[%s13576_s0] sm:$0xff]  ;;  %v72_v4 = vld [vmem:[%s13576_s0 + $0x18] sm:$0xff]  ;;  %vm261_vm0 = vcmask 261120   ;;  %s10493_s20 = smov 96   ;;  %vm403_vm1 = vcmask 523264  }
   0x2   :  { %117 = vperm.xlu1 %9447, %v71_v2   ;;  %90 = vperm.xlu0 %9446, %v71_v2   ;;  %v70_v5 = vld [vmem:[%s13576_s0 + $0x8] sm:$0xff]  ;;  %v47_v9 = vld [vmem:[%s13579_s1 + $0x10] sm:$0xff]  ;;  %v48_v10 = vld [vmem:[%s13579_s1 + $0x18] sm:$0xff]  ;;  %vm408_vm2 = vcmask 785408   ;;  %s10494_s18 = smov 124   ;;  %s10495_s17 = smov 4  }
   0x3   :  { %9448 = vset.pattern.permute.xlu2 %v10488_v1  ;;  %v46_v8 = vld [vmem:[%s13579_s1 + $0x8] sm:$0xff]  ;;  %v45_v11 = vld [vmem:[%s13579_s1] sm:$0xff] }
   0x4   :  { %80 = vperm.xlu2 %9448, %v69_v3   ;;  %v9984_v22 = vld [vmem:[%s13577_s3] ss:$0 sm:$0xff]  ;;  %v9985_v27 = vld [vmem:[%s13577_s3 + $0x1] ss:$0 sm:$0xff]  ;;  %v9987_v28 = vld [vmem:[%s13577_s3 + $0x2] ss:$0 sm:$0xff] }
   0x5   :  { %v9983_v24 = vld [vmem:[%s13578_s4] ss:$0 sm:$0xff]  ;;  %v9986_v35 = vld [vmem:[%s13577_s3 + $0x3] ss:$0 sm:$0xff] }
   0xa   :  { %121 = vperm.xlu1 %9447, %v72_v4   ;;  %95 = vperm.xlu0 %9446, %v72_v4  }
   0xc   :  { %85 = vperm.xlu2 %9448, %v70_v5  }
  0x12   :  { %9450 = vset.pattern.permute.xlu1 %v10489_v6  ;;  %9449 = vset.pattern.permute.xlu0 %v10489_v6 }
  0x13   :  { %147 = vperm.xlu1 %9450, %v72_v4   ;;  %143 = vperm.xlu0 %9449, %v71_v2  }
  0x14   :  { %9451 = vset.pattern.permute.xlu2 %v10487_v0 }
  0x15   :  { %109 = vperm.xlu2 %9451, %v69_v3  }
  0x1b   :  { %9452 = vset.pattern.permute.xlu1 %v10487_v0  ;;  %9454 = vset.pattern.permute.xlu0 %v10490_v7 }
  0x1c   :  { %173 = vperm.xlu0 %9454, %v72_v4   ;;  %113 = vperm.xlu1 %9452, %v70_v5  }
  0x1d   :  { %9453 = vset.pattern.permute.xlu2 %v10490_v7 }
  0x1e   :  { %169 = vperm.xlu2 %9453, %v71_v2  }
  0x24   :  { %9455 = vset.pattern.permute.xlu1 %v10489_v6  ;;  %161 = vperm.xlu0 %9454, %v69_v3  }
  0x25   :  { %135 = vperm.xlu1 %9455, %v69_v3  }
  0x26   :  { %9456 = vset.pattern.permute.xlu2 %v10489_v6 }
  0x27   :  { %139 = vperm.xlu2 %9456, %v70_v5  }
  0x2c   :  { %9460 = vset.pattern.permute.xlu0 %v10488_v1 }
  0x2d   :  { %9457 = vset.pattern.permute.xlu1 %v10488_v1  ;;  %56 = vperm.xlu0 %9460, %v46_v8  }
  0x2e   :  { %61 = vperm.xlu1 %9457, %v47_v9  }
  0x2f   :  { %9458 = vset.pattern.permute.xlu2 %v10488_v1 }
  0x30   :  { %66 = vperm.xlu2 %9458, %v48_v10  }
  0x36   :  { %9459 = vset.pattern.permute.xlu1 %v10490_v7 }
  0x37   :  { %165 = vperm.xlu1 %9459, %v70_v5  }
  0x38   :  { %51 = vperm.xlu2 %9458, %v45_v11  }
  0x3f   :  { %9581 = vset.pattern.permute.xlu1 %v10487_v0 }
  0x40   :  { %9584 = vset.pattern.permute.xlu2 %v10487_v0 }
  0x5e   :  { %v81_v12 = vpop.permute.xlu2 %80 }
  0x5f   :  { %v99_v45 = vmul.f32 %v9984_v22, %v81_v12 }
  0x61   :  { %v103_v49 = vadd.f32 %v9983_v24, %v99_v45 }
  0x66   :  { %v86_v14 = vpop.permute.xlu2 %85 }
  0x67   :  { %v100_v50 = vmul.f32 %v9984_v22, %v86_v14 }
  0x69   :  { %v104_v59 = vadd.f32 %v9983_v24, %v100_v50  ;;  %v9238_v50 = vld [vmem:[%s13582_s5 + $0x28] sm:$0xff] }
  0x6f   :  { %v110_v17 = vpop.permute.xlu2 %109 }
  0x70   :  { %v125_v51 = vmul.f32 %v9985_v27, %v110_v17  ;;  %v10663_v17 = vld [vmem:[%s13580_s2 + $0x10] sm:$0xff] }
  0x72   :  { %v129_v60 = vadd.f32 %v125_v51, %v103_v49  ;;  %v9239_v49 = vld [vmem:[%s13582_s5 + $0x30] sm:$0xff]  ;;  %v9237_v51 = vld [vmem:[%s13582_s5 + $0x20] sm:$0xff] }
  0x74   :  { %v118_v13 = vpop.permute.xlu1 %117  ;;  %v91_v15 = vpop.permute.xlu0 %90 }
  0x75   :  { %v101_v25 = vmul.f32 %v9984_v22, %v91_v15  ;;  %v127_v33 = vmul.f32 %v9985_v27, %v118_v13  ;;  %v10649_v15 = vld [vmem:[%s13580_s2] sm:$0xff] }
  0x77   :  { %v105_v30 = vadd.f32 %v9983_v24, %v101_v25 }
  0x78   :  { %v170_v20 = vpop.permute.xlu2 %169 }
  0x79   :  { %v131_v40 = vadd.f32 %v127_v33, %v105_v30  ;;  %v179_v42 = vmul.f32 %v9986_v35, %v170_v20  ;;  %v10684_v20 = vld [vmem:[%s13580_s2 + $0x28] sm:$0xff] }
  0x7c   :  { %v122_v16 = vpop.permute.xlu1 %121  ;;  %v96_v18 = vpop.permute.xlu0 %95 }
  0x7d   :  { %v102_v26 = vmul.f32 %v9984_v22, %v96_v18  ;;  %v128_v34 = vmul.f32 %v9985_v27, %v122_v16  ;;  %v10656_v16 = vld [vmem:[%s13580_s2 + $0x8] sm:$0xff]  ;;  %v10670_v18 = vld [vmem:[%s13580_s2 + $0x18] sm:$0xff] }
  0x7e   :  { %v10698_v22 = vld [vmem:[%s13580_s2 + $0x38] sm:$0xff] }
  0x7f   :  { %v106_v31 = vadd.f32 %v9983_v24, %v102_v26 }
  0x81   :  { %v140_v29 = vpop.permute.xlu2 %139  ;;  %v132_v39 = vadd.f32 %v128_v34, %v106_v31  ;;  %v10714_v31 = vld [vmem:[%s13580_s2 + $0x40] sm:$0xff]  ;;  %v10721_v34 = vld [vmem:[%s13580_s2 + $0x48] sm:$0xff] }
  0x82   :  { %v152_v61 = vmul.f32 %v9987_v28, %v140_v29 }
  0x85   :  { %v148_v19 = vpop.permute.xlu1 %147  ;;  %v144_v21 = vpop.permute.xlu0 %143 }
  0x86   :  { %v154_v36 = vmul.f32 %v9987_v28, %v148_v19  ;;  %v153_v37 = vmul.f32 %v9987_v28, %v144_v21  ;;  %v10677_v19 = vld [vmem:[%s13580_s2 + $0x20] sm:$0xff]  ;;  %v10691_v21 = vld [vmem:[%s13580_s2 + $0x30] sm:$0xff] }
  0x88   :  { %v158_v43 = vadd.f32 %v154_v36, %v132_v39  ;;  %v157_v44 = vadd.f32 %v153_v37, %v131_v40 }
  0x8a   :  { %v10622_v47 = vpop.permute.xlu2 %66  ;;  %v183_v48 = vadd.f32 %v179_v42, %v157_v44 }
  0x8e   :  { %v114_v23 = vpop.permute.xlu1 %113  ;;  %v174_v32 = vpop.permute.xlu0 %173 }
  0x8f   :  { %v180_v41 = vmul.f32 %v9986_v35, %v174_v32  ;;  %v126_v55 = vmul.f32 %v9985_v27, %v114_v23 }
  0x91   :  { %v184_v46 = vadd.f32 %v180_v41, %v158_v43  ;;  %v130_v62 = vadd.f32 %v126_v55, %v104_v59  ;;  %v9236_v55 = vld [vmem:[%s13582_s5 + $0x18] sm:$0xff] }
  0x92   :  { %v10634_v9 = vpop.permute.xlu2 %51 }
  0x93   :  { %v10630_v54 = vmul.f32 %v184_v46, %v10622_v47  ;;  %v156_v5 = vadd.f32 %v152_v61, %v130_v62  ;;  %v9242_v62 = vld [vmem:[%s13582_s5 + $0x48] sm:$0xff] }
  0x94   :  { %9433 = vmatpush.bf16.msra.mxu2 %v9242_v62 }
  0x96   :  { %v162_v57 = vpop.permute.xlu0 %161 }
  0x97   :  { %v136_v38 = vpop.permute.xlu1 %135  ;;  %v177_v2 = vmul.f32 %v9986_v35, %v162_v57  ;;  %v9235_v57 = vld [vmem:[%s13582_s5 + $0x10] sm:$0xff] }
  0x98   :  { %v151_v56 = vmul.f32 %v9987_v28, %v136_v38 }
  0x9a   :  { %v155_v63 = vadd.f32 %v151_v56, %v129_v60  ;;  %v9233_v60 = vld [vmem:[%s13582_s5] sm:$0xff] }
  0x9c   :  { %v181_v4 = vadd.f32 %v177_v2, %v155_v63  ;;  %v9241_v63 = vld [vmem:[%s13582_s5 + $0x40] sm:$0xff] }
  0x9d   :  { %9434 = vmatpush.bf16.msra.mxu2 %v9241_v63 }
  0x9e   :  { %v10639_v12 = vmul.f32 %v181_v4, %v10634_v9 }
  0x9f   :  { %v10636_v10 = vpop.permute.xlu0 %56 }
  0xa0   :  { %v10624_v52 = vpop.permute.xlu1 %61 }
  0xa1   :  { %v10627_v53 = vmul.f32 %v183_v48, %v10624_v52  ;;  %v9240_v48 = vld [vmem:[%s13582_s5 + $0x38] sm:$0xff] }
  0xa2   :  { %507 = vmatpush.bf16.msra.mxu1 %v9240_v48 }
  0xa3   :  { %v210_v58 = vpack.c.bf16 %v10630_v54, %v10627_v53 }
  0xa5   :  { %298 = vmatpush.bf16.msra.mxu0 %v210_v58  ;;  %v9234_v58 = vld [vmem:[%s13582_s5 + $0x8] sm:$0xff] }
  0xa6   :  { %508 = vmatpush.bf16.msra.mxu1 %v9239_v49 }
  0xa9   :  { %v166_v3 = vpop.permute.xlu1 %165 }
  0xaa   :  { %v178_v8 = vmul.f32 %v9986_v35, %v166_v3  ;;  %509 = vmatpush.bf16.msra.mxu1 %v9238_v50 }
  0xac   :  { %v182_v11 = vadd.f32 %v178_v8, %v156_v5 }
  0xae   :  { %v10642_v13 = vmul.f32 %v182_v11, %v10636_v10  ;;  %510 = vmatpush.bf16.msra.mxu1 %v9237_v51 }
  0xb0   :  { %v209_v14 = vpack.c.bf16 %v10642_v13, %v10639_v12 }
  0xb2   :  { %299 = vmatpush.bf16.msra.mxu0 %v209_v14  ;;  %511 = vmatpush.bf16.msra.mxu1 %v9236_v55 }
  0xb5   :  { %7712 = vmatmul.msk.bf16.vlgmr.msra.gmra.mxu0 %vm261_vm0, %v10649_v15 }
  0xb6   :  { %512 = vmatpush.bf16.msra.mxu1 %v9235_v57 }
  0xba   :  { %513 = vmatpush.bf16.msra.mxu1 %v9234_v58 }
  0xbe   :  { %514 = vmatpush.bf16.msra.mxu1 %v9233_v60 }
  0xc2   :  { %532 = vmatpush.bf16.msrb.mxu1 %v9242_v62 }
  0xc5   :  { %7713 = vmatmul.msk.bf16.gmra.mxu0 %vm261_vm0, %v10656_v16 }
  0xc6   :  { %533 = vmatpush.bf16.msrb.mxu1 %v9241_v63 }
  0xd5   :  { %7714 = vmatmul.msk.bf16.gmra.mxu0 %vm261_vm0, %v10663_v17 }
  0xe5   :  { %7715 = vmatmul.msk.bf16.gmra.mxu0 %vm261_vm0, %v10670_v18 }
  0xf5   :  { %7716 = vmatmul.msk.bf16.gmra.mxu0 %vm261_vm0, %v10677_v19 }
 0x105   :  { %7717 = vmatmul.msk.bf16.gmra.mxu0 %vm261_vm0, %v10684_v20 }
 0x115   :  { %7718 = vmatmul.msk.bf16.gmra.mxu0 %vm261_vm0, %v10691_v21 }
 0x125   :  { %7719 = vmatmul.msk.bf16.gmra.mxu0 %vm261_vm0, %v10698_v22 }
 0x132   :  { %v10702_v23 = vpop.f32.mrf.mxu0 }
 0x135   :  { %7720 = vmatmul.msk.bf16.gmra.mxu0 %vm261_vm0, %v10714_v31 }
 0x13a   :  { %v10704_v24 = vpop.f32.mrf.mxu0 }
 0x142   :  { %v10706_v25 = vpop.f32.mrf.mxu0 }
 0x145   :  { %7721 = vmatmul.msk.bf16.gmra.mxu0 %vm261_vm0, %v10721_v34 }
 0x14a   :  { %v10708_v26 = vpop.f32.mrf.mxu0 }
 0x152   :  { %v311_v27 = vpop.f32.mrf.mxu0 }
 0x15a   :  { %v313_v28 = vpop.f32.mrf.mxu0 }
 0x15b   :  { %v9461_v29 = vpack.i.bf16 %v313_v28, %v311_v27 }
 0x15d   :  { %9462 = vrot.lane.b32.xlu1 %v9461_v29, %s10491_s14 }
 0x162   :  { %v316_v30 = vpop.f32.mrf.mxu0 }
 0x16a   :  { %v318_v32 = vpop.f32.mrf.mxu0 }
 0x16b   :  { %v9476_v38 = vpack.i.bf16 %v318_v32, %v316_v30 }
 0x172   :  { %v321_v33 = vpop.f32.mrf.mxu0 }
 0x17a   :  { %v323_v35 = vpop.f32.mrf.mxu0 }
 0x17b   :  { %v9466_v36 = vpack.i.bf16 %v323_v35, %v321_v33 }
 0x17d   :  { %9467 = vrot.lane.b32.xlu2 %v9466_v36, %s10492_s19 }
 0x182   :  { %v326_v37 = vpop.f32.mrf.mxu0 }
 0x185   :  { %9477 = vrot.lane.b32.xlu2 %v9476_v38, %s10491_s14 }
 0x18a   :  { %v328_v39 = vpop.f32.mrf.mxu0 }
 0x18b   :  { %v9481_v40 = vpack.i.bf16 %v328_v39, %v326_v37 }
 0x18d   :  { %9482 = vrot.lane.b32.xlu0 %v9481_v40, %s10492_s19 }
 0x192   :  { %v331_v41 = vpop.f32.mrf.mxu0 }
 0x19a   :  { %v333_v42 = vpop.f32.mrf.mxu0 }
 0x19b   :  { %v9471_v43 = vpack.i.bf16 %v333_v42, %v331_v41 }
 0x19d   :  { %9472 = vrot.lane.b32.xlu1 %v9471_v43, %s10493_s20 }
 0x1a2   :  { %v336_v44 = vpop.f32.mrf.mxu0 }
 0x1aa   :  { %v338_v45 = vpop.f32.mrf.mxu0 }
 0x1ab   :  { %v9486_v46 = vpack.i.bf16 %v338_v45, %v336_v44 }
 0x1ad   :  { %9487 = vrot.lane.b32.xlu1 %v9486_v46, %s10493_s20 }
 0x1b2   :  { %v341_v56 = vpop.f32.mrf.mxu0 }
 0x1ba   :  { %v343_v59 = vpop.f32.mrf.mxu0 }
 0x1bb   :  { %v434_v60 = vpack.c.bf16 %v343_v59, %v341_v56 }
 0x1c2   :  { %v346_v61 = vpop.f32.mrf.mxu0 }
 0x1ca   :  { %v348_v2 = vpop.f32.mrf.mxu0 }
 0x1cb   :  { %v436_v3 = vpack.c.bf16 %v348_v2, %v346_v61 }
 0x1cd   :  { %7763 = vmatmul.msk.bf16.vlgmr.msra.gmra.mxu2 %vm261_vm0, %v436_v3 }
 0x1cf   :  { %v9463_v4 = vpop.permute.xlu1 %9462 }
 0x1d0   :  { %v9465_v8 = vunpack.i.h.bf16 %v9463_v4  ;;  %v9464_v11 = vunpack.i.l.bf16 %v9463_v4 }
 0x1d2   :  { %v399_v32 = vsel %vm261_vm0, %v10702_v23, %v9464_v11  ;;  %v400_v33 = vsel %vm261_vm0, %v10704_v24, %v9465_v8 }
 0x1d7   :  { %v9468_v5 = vpop.permute.xlu2 %9467 }
 0x1d8   :  { %v9470_v14 = vunpack.i.h.bf16 %v9468_v5  ;;  %v9469_v27 = vunpack.i.l.bf16 %v9468_v5 }
 0x1da   :  { %v404_v35 = vsel %vm403_vm1, %v399_v32, %v9469_v27  ;;  %v405_v36 = vsel %vm403_vm1, %v400_v33, %v9470_v14 }
 0x1df   :  { %v9478_v40 = vpop.permute.xlu2 %9477 }
 0x1e0   :  { %v9480_v42 = vunpack.i.h.bf16 %v9478_v40  ;;  %v9479_v43 = vunpack.i.l.bf16 %v9478_v40 }
 0x1e2   :  { %v401_v24 = vsel %vm261_vm0, %v10706_v25, %v9479_v43  ;;  %v402_v49 = vsel %vm261_vm0, %v10708_v26, %v9480_v42  ;;  %v9988_v25 = vld [vmem:[%s13581_s6] ss:$0 sm:$0xff] }
 0x1ff   :  { %v9483_v41 = vpop.permute.xlu0 %9482 }
 0x200   :  { %v9485_v44 = vunpack.i.h.bf16 %v9483_v41  ;;  %v9484_v45 = vunpack.i.l.bf16 %v9483_v41 }
 0x202   :  { %v406_v50 = vsel %vm403_vm1, %v401_v24, %v9484_v45  ;;  %v407_v51 = vsel %vm403_vm1, %v402_v49, %v9485_v44 }
 0x20f   :  { %v9473_v28 = vpop.permute.xlu1 %9472 }
 0x210   :  { %v9475_v29 = vunpack.i.h.bf16 %v9473_v28  ;;  %v9474_v30 = vunpack.i.l.bf16 %v9473_v28 }
 0x212   :  { %v409_v37 = vsel %vm408_vm2, %v404_v35, %v9474_v30  ;;  %v410_v38 = vsel %vm408_vm2, %v405_v36, %v9475_v29 }
 0x213   :  { %v433_v39 = vpack.c.bf16 %v410_v38, %v409_v37 }
 0x215   :  { %515 = vmatmul.bf16.vlgmr.msra.gmra.mxu1 %v433_v39 }
 0x21f   :  { %v9488_v23 = vpop.permute.xlu1 %9487 }
 0x220   :  { %v9490_v46 = vunpack.i.h.bf16 %v9488_v23  ;;  %v9489_v48 = vunpack.i.l.bf16 %v9488_v23 }
 0x222   :  { %v411_v55 = vsel %vm408_vm2, %v406_v50, %v9489_v48  ;;  %v412_v57 = vsel %vm408_vm2, %v407_v51, %v9490_v46 }
 0x223   :  { %v435_v58 = vpack.c.bf16 %v412_v57, %v411_v55 }
 0x225   :  { %520 = vmatmul.bf16.gmra.mxu1 %v435_v58 }
 0x235   :  { %7762 = vmatmul.msk.bf16.vlgmr.msrb.gmra.mxu1 %vm261_vm0, %v434_v60 }
 0x250   :  { %v540_v63 = vpop.f32.mrf.mxu2 }
 0x258   :  { %v542_v8 = vpop.f32.mrf.mxu2 }
 0x292   :  { %v516_v61 = vpop.f32.mrf.mxu1 }
 0x293   :  { %v517_v28 = vadd.f32 %v9988_v25, %v516_v61 }
 0x29a   :  { %v518_v62 = vpop.f32.mrf.mxu1 }
 0x29b   :  { %v519_v37 = vadd.f32 %v9988_v25, %v518_v62 }
 0x2a2   :  { %v521_v26 = vpop.f32.mrf.mxu1 }
 0x2a3   :  { %v522_v2 = vadd.f32 %v9988_v25, %v521_v26 }
 0x2a5   :  { %v10781_v3 = vadd.f32 %v540_v63, %v522_v2 }
 0x2a7   :  { %v7766_v4 = vmul.f32 -1.442695, %v10781_v3 }
 0x2a9   :  { %10039 = vpow2.f32 %v7766_v4 }
 0x2aa   :  { %v523_v5 = vpop.f32.mrf.mxu1 }
 0x2ab   :  { %v524_v11 = vadd.f32 %v9988_v25, %v523_v5 }
 0x2ad   :  { %v10784_v56 = vadd.f32 %v542_v8, %v524_v11 }
 0x2af   :  { %v10040_v59 = vpop.eup %10039  ;;  %v7767_v14 = vmul.f32 -1.442695, %v10784_v56 }
 0x2b0   :  { %v563_v27 = vadd.f32 1.0, %v10040_v59 }
 0x2b1   :  { %10041 = vpow2.f32 %v7767_v14 }
 0x2b2   :  { %10043 = vrcp.f32 %v563_v27  ;;  %v535_v29 = vpop.f32.mrf.mxu1  ;;  %v606_v42 = vand.u32 2147483648, %v563_v27  ;;  %v604_v23 = vand.u32 2147483647, %v563_v27  ;;  %vm600_vm4 = vweird.f32 %v563_v27 }
 0x2b3   :  { %v10787_v30 = vadd.f32 %v535_v29, %v517_v28 }
 0x2b4   :  { %v607_v24 = vor.u32 1.1754944e-38, %v606_v42  ;;  %vm605_vm6 = vcmp.eq.f32.partialorder %v604_v23, 8.507059e+37 }
 0x2b5   :  { %v7764_v32 = vmul.f32 -1.442695, %v10787_v30 }
 0x2b7   :  { %v10042_v33 = vpop.eup %10041  ;;  %10045 = vpow2.f32 %v7764_v32 }
 0x2b8   :  { %v10044_v35 = vpop.eup %10043  ;;  %v10790_v36 = vadd.f32 1.0, %v10042_v33 }
 0x2b9   :  { %v596_v38 = vmul.f32 %v10044_v35, %v563_v27  ;;  %vm601_vm3 = vweird.f32 %v10044_v35 }
 0x2ba   :  { %v537_v39 = vpop.f32.mrf.mxu1  ;;  %10047 = vrcp.f32 %v10790_v36  ;;  %vm602_vm5 = vmor %vm600_vm4, %vm601_vm3  ;;  %vm615_vm12 = vweird.f32 %v10790_v36  ;;  %v621_v33 = vand.u32 2147483648, %v10790_v36 }
 0x2bb   :  { %v10792_v40 = vadd.f32 %v537_v39, %v519_v37  ;;  %v597_v41 = vsub.f32 1.0, %v596_v38  ;;  %v619_v38 = vand.u32 2147483647, %v10790_v36 }
 0x2bd   :  { %v10046_v43 = vpop.eup %10045  ;;  %v7765_v44 = vmul.f32 -1.442695, %v10792_v40  ;;  %v598_v45 = vmul.f32 %v10044_v35, %v597_v41 }
 0x2be   :  { %v561_v46 = vadd.f32 1.0, %v10046_v43  ;;  %v622_v43 = vor.u32 1.1754944e-38, %v621_v33 }
 0x2bf   :  { %10049 = vpow2.f32 %v7765_v44  ;;  %v599_v48 = vadd.f32 %v10044_v35, %v598_v45 }
 0x2c0   :  { %10051 = vrcp.f32 %v561_v46  ;;  %v10048_v50 = vpop.eup %10047  ;;  %v576_v25 = vand.u32 2147483648, %v561_v46  ;;  %v574_v2 = vand.u32 2147483647, %v561_v46  ;;  %vm570_vm8 = vweird.f32 %v561_v46 }
 0x2c1   :  { %v603_v49 = vsel %vm602_vm5, %v10044_v35, %v599_v48  ;;  %v611_v57 = vmul.f32 %v10048_v50, %v10790_v36  ;;  %vm616_vm11 = vweird.f32 %v10048_v50  ;;  %vm620_vm5 = vcmp.eq.f32.partialorder %v619_v38, 8.507059e+37  ;;  %v9244_v36 = vld [vmem:[%s13584_s7 + $0x8] sm:$0xff]  ;;  %v9243_v48 = vld [vmem:[%s13584_s7] sm:$0xff] }
 0x2c2   :  { %v608_v51 = vsel %vm605_vm6, %v607_v24, %v603_v49  ;;  %v577_v11 = vor.u32 1.1754944e-38, %v576_v25  ;;  %vm575_vm10 = vcmp.eq.f32.partialorder %v574_v2, 8.507059e+37  ;;  %vm617_vm14 = vmor %vm615_vm12, %vm616_vm11  ;;  %679 = vmatpush.bf16.msra.mxu3 %v9244_v36 }
 0x2c3   :  { %633 = vrot.lane.b32.xlu1 %v608_v51, %s10493_s20  ;;  %v612_v63 = vsub.f32 1.0, %v611_v57 }
 0x2c5   :  { %v10050_v55 = vpop.eup %10049  ;;  %v613_v5 = vmul.f32 %v10048_v50, %v612_v63 }
 0x2c6   :  { %v10052_v58 = vpop.eup %10051  ;;  %v562_v60 = vadd.f32 1.0, %v10050_v55  ;;  %680 = vmatpush.bf16.msra.mxu3 %v9243_v48  ;;  %v9251_v48 = vld [vmem:[%s13582_s5 + $0x80] sm:$0xff] }
 0x2c7   :  { %v566_v61 = vmul.f32 %v10052_v58, %v561_v46  ;;  %vm571_vm7 = vweird.f32 %v10052_v58  ;;  %v614_v29 = vadd.f32 %v10048_v50, %v613_v5 }
 0x2c8   :  { %10053 = vrcp.f32 %v562_v60  ;;  %vm572_vm9 = vmor %vm570_vm8, %vm571_vm7  ;;  %v591_v32 = vand.u32 2147483648, %v562_v60  ;;  %v589_v37 = vand.u32 2147483647, %v562_v60  ;;  %vm585_vm15 = vweird.f32 %v562_v60 }
 0x2c9   :  { %v567_v62 = vsub.f32 1.0, %v566_v61  ;;  %v618_v41 = vsel %vm617_vm14, %v10048_v50, %v614_v29  ;;  %10055 = vtanh.f32 %v10781_v3 }
 0x2ca   :  { %v592_v42 = vor.u32 1.1754944e-38, %v591_v32  ;;  %vm590_vm4 = vcmp.eq.f32.partialorder %v589_v37, 8.507059e+37  ;;  %v623_v23 = vsel %vm620_vm5, %v622_v43, %v618_v41  ;;  %10057 = vtanh.f32 %v10784_v56 }
 0x2cb   :  { %v568_v26 = vmul.f32 %v10052_v58, %v567_v62  ;;  %10059 = vtanh.f32 %v10787_v30 }
 0x2cc   :  { %10061 = vtanh.f32 %v10792_v40 }
 0x2cd   :  { %v569_v4 = vadd.f32 %v10052_v58, %v568_v26 }
 0x2ce   :  { %v10054_v8 = vpop.eup %10053 }
 0x2cf   :  { %v573_v59 = vsel %vm572_vm9, %v10052_v58, %v569_v4  ;;  %v581_v14 = vmul.f32 %v10054_v8, %v562_v60  ;;  %vm586_vm13 = vweird.f32 %v10054_v8  ;;  %v10056_v49 = vpop.eup %10055  ;;  %v9989_v4 = vld [vmem:[%s13583_s8] ss:$0 sm:$0xff] }
 0x2d0   :  { %v578_v27 = vsel %vm575_vm10, %v577_v11, %v573_v59  ;;  %vm587_vm3 = vmor %vm585_vm15, %vm586_vm13  ;;  %v10058_v50 = vpop.eup %10057 }
 0x2d1   :  { %629 = vrot.lane.b32.xlu2 %v578_v27, %s10493_s20  ;;  %v582_v28 = vsub.f32 1.0, %v581_v14  ;;  %v10060_v60 = vpop.eup %10059 }
 0x2d2   :  { %v10062_v61 = vpop.eup %10061 }
 0x2d3   :  { %v583_v35 = vmul.f32 %v10054_v8, %v582_v28 }
 0x2d5   :  { %v584_v39 = vadd.f32 %v10054_v8, %v583_v35 }
 0x2d7   :  { %v588_v44 = vsel %vm587_vm3, %v10054_v8, %v584_v39 }
 0x2d8   :  { %v593_v45 = vsel %vm590_vm4, %v592_v42, %v588_v44 }
 0x2d9   :  { %631 = vrot.lane.b32.xlu0 %v593_v45, %s10493_s20  ;;  %635 = vrot.lane.b32.xlu2 %v623_v23, %s10493_s20 }
 0x32b   :  { %v630_v46 = vpop.permute.xlu2 %629 }
 0x32c   :  { %v641_v63 = vmul.f32 %v10060_v60, %v630_v46  ;;  %v9252_v46 = vld [vmem:[%s13582_s5 + $0x88] sm:$0xff] }
 0x333   :  { %v636_v24 = vpop.permute.xlu2 %635 }
 0x334   :  { %v644_v55 = vmul.f32 %v10058_v50, %v636_v24  ;;  %v9254_v24 = vld [vmem:[%s13582_s5 + $0x98] sm:$0xff]  ;;  %v9249_v50 = vld [vmem:[%s13582_s5 + $0x70] sm:$0xff] }
 0x335   :  { %v634_v51 = vpop.permute.xlu1 %633  ;;  %946 = vmatpush.bf16.msra.mxu1 %v9254_v24 }
 0x336   :  { %v643_v57 = vmul.f32 %v10056_v49, %v634_v51  ;;  %v9250_v49 = vld [vmem:[%s13582_s5 + $0x78] sm:$0xff] }
 0x338   :  { %v650_v58 = vpack.c.bf16 %v644_v55, %v643_v57  ;;  %v9248_v55 = vld [vmem:[%s13582_s5 + $0x68] sm:$0xff]  ;;  %v9247_v57 = vld [vmem:[%s13582_s5 + $0x60] sm:$0xff] }
 0x34b   :  { %v632_v62 = vpop.permute.xlu0 %631 }
 0x34c   :  { %v642_v25 = vmul.f32 %v10062_v61, %v632_v62  ;;  %v9246_v61 = vld [vmem:[%s13582_s5 + $0x58] sm:$0xff] }
 0x34e   :  { %v649_v26 = vpack.c.bf16 %v642_v25, %v641_v63  ;;  %v9245_v63 = vld [vmem:[%s13582_s5 + $0x50] sm:$0xff] }
 0x350   :  { %7776 = vmatmul.msk.bf16.vlgmr.msra.gmra.mxu3 %vm261_vm0, %v649_v26 }
 0x360   :  { %7777 = vmatmul.msk.bf16.gmra.mxu3 %vm261_vm0, %v650_v58  ;;  %v9253_v58 = vld [vmem:[%s13582_s5 + $0x90] sm:$0xff] }
 0x361   :  { %947 = vmatpush.bf16.msra.mxu1 %v9253_v58 }
 0x3d3   :  { %v682_v3 = vpop.f32.mrf.mxu3 }
 0x3d4   :  { %v10823_v8 = vadd.f32 %v9989_v4, %v682_v3 }
 0x3d6   :  { %v692_v28 = vadd.f32 %v10823_v8, %v10639_v12 }
 0x3db   :  { %v684_v56 = vpop.f32.mrf.mxu3 }
 0x3dc   :  { %v10821_v40 = vadd.f32 %v9989_v4, %v684_v56 }
 0x3de   :  { %v693_v14 = vadd.f32 %v10821_v40, %v10642_v13  ;;  %v10847_v13 = vmul.f32 %v692_v28, %v10634_v9 }
 0x3e0   :  { %v10844_v33 = vmul.f32 %v693_v14, %v10636_v10 }
 0x3e3   :  { %v687_v2 = vpop.f32.mrf.mxu3 }
 0x3e4   :  { %v10819_v30 = vadd.f32 %v9989_v4, %v687_v2 }
 0x3e6   :  { %v694_v11 = vadd.f32 %v10819_v30, %v10627_v53 }
 0x3e8   :  { %v10836_v29 = vmul.f32 %v694_v11, %v10624_v52 }
 0x3eb   :  { %v689_v5 = vpop.f32.mrf.mxu3 }
 0x3ec   :  { %v10827_v59 = vadd.f32 %v9989_v4, %v689_v5 }
 0x3ee   :  { %v695_v27 = vadd.f32 %v10827_v59, %v10630_v54  ;;  %v704_v54 = vpack.c.bf16 %v10844_v33, %v10847_v13 }
 0x3f0   :  { %v10839_v32 = vmul.f32 %v695_v27, %v10622_v47 }
 0x3f2   :  { %v705_v53 = vpack.c.bf16 %v10839_v32, %v10836_v29 }
 0x3f4   :  { %712 = vmatpush.bf16.msrb.mxu2 %v705_v53  ;;  %9435 = vmatpush.bf16.msrb.mxu3 %v705_v53 }
 0x3f8   :  { %713 = vmatpush.bf16.msrb.mxu2 %v704_v54  ;;  %9436 = vmatpush.bf16.msrb.mxu3 %v704_v54 }
 0x3fb   :  { %7778 = vmatmul.msk.bf16.vlgmr.msrb.gmra.mxu2 %vm261_vm0, %v10649_v15  ;;  %7785 = vmatmul.msk.bf16.vlgmr.msrb.gmra.mxu3 %vm261_vm0, %v10698_v22 }
 0x3fc   :  { %921 = vmatpush.bf16.msra.mxu3 %v9252_v46 }
 0x400   :  { %922 = vmatpush.bf16.msra.mxu3 %v9251_v48 }
 0x404   :  { %923 = vmatpush.bf16.msra.mxu3 %v9250_v49  ;;  %v9990_v49 = vld [vmem:[%s13581_s6 + $0x1] ss:$0 sm:$0xff] }
 0x408   :  { %924 = vmatpush.bf16.msra.mxu3 %v9249_v50 }
 0x40b   :  { %7779 = vmatmul.msk.bf16.gmra.mxu2 %vm261_vm0, %v10656_v16  ;;  %7786 = vmatmul.msk.bf16.gmra.mxu3 %vm261_vm0, %v10714_v31 }
 0x40c   :  { %925 = vmatpush.bf16.msra.mxu3 %v9248_v55 }
 0x410   :  { %926 = vmatpush.bf16.msra.mxu3 %v9247_v57 }
 0x414   :  { %927 = vmatpush.bf16.msra.mxu3 %v9246_v61 }
 0x418   :  { %928 = vmatpush.bf16.msra.mxu3 %v9245_v63 }
 0x41b   :  { %7780 = vmatmul.msk.bf16.gmra.mxu2 %vm261_vm0, %v10663_v17  ;;  %7787 = vmatmul.msk.bf16.gmra.mxu3 %vm261_vm0, %v10721_v34 }
 0x42b   :  { %7781 = vmatmul.msk.bf16.gmra.mxu2 %vm261_vm0, %v10670_v18 }
 0x43b   :  { %7782 = vmatmul.msk.bf16.gmra.mxu2 %vm261_vm0, %v10677_v19 }
 0x44b   :  { %7783 = vmatmul.msk.bf16.gmra.mxu2 %vm261_vm0, %v10684_v20 }
 0x45b   :  { %7784 = vmatmul.msk.bf16.gmra.mxu2 %vm261_vm0, %v10691_v21 }
 0x47e   :  { %v10871_v12 = vpop.f32.mrf.mxu2  ;;  %v750_v43 = vpop.f32.mrf.mxu3 }
 0x486   :  { %v10873_v15 = vpop.f32.mrf.mxu2  ;;  %v752_v23 = vpop.f32.mrf.mxu3 }
 0x487   :  { %v9516_v36 = vpack.i.bf16 %v752_v23, %v750_v43 }
 0x48e   :  { %v10875_v16 = vpop.f32.mrf.mxu2  ;;  %v755_v51 = vpop.f32.mrf.mxu3 }
 0x496   :  { %v10877_v17 = vpop.f32.mrf.mxu2  ;;  %v757_v60 = vpop.f32.mrf.mxu3 }
 0x497   :  { %v847_v62 = vpack.c.bf16 %v757_v60, %v755_v51 }
 0x499   :  { %7849 = vmatmul.msk.bf16.vlgmr.msra.gmra.mxu1 %vm261_vm0, %v847_v62 }
 0x49e   :  { %v725_v22 = vpop.f32.mrf.mxu2  ;;  %v760_v25 = vpop.f32.mrf.mxu3 }
 0x4a6   :  { %v727_v31 = vpop.f32.mrf.mxu2  ;;  %v762_v26 = vpop.f32.mrf.mxu3 }
 0x4a7   :  { %v9491_v18 = vpack.i.bf16 %v727_v31, %v725_v22  ;;  %v849_v3 = vpack.c.bf16 %v762_v26, %v760_v25 }
 0x4a9   :  { %9492 = vrot.lane.b32.xlu0 %v9491_v18, %s10491_s14  ;;  %7850 = vmatmul.msk.bf16.gmra.mxu1 %vm261_vm0, %v849_v3 }
 0x4ae   :  { %v730_v19 = vpop.f32.mrf.mxu2 }
 0x4b6   :  { %v732_v34 = vpop.f32.mrf.mxu2 }
 0x4b7   :  { %v9506_v35 = vpack.i.bf16 %v732_v34, %v730_v19 }
 0x4b9   :  { %9507 = vrot.lane.b32.xlu0 %v9506_v35, %s10491_s14 }
 0x4be   :  { %v735_v20 = vpop.f32.mrf.mxu2 }
 0x4c6   :  { %v737_v21 = vpop.f32.mrf.mxu2 }
 0x4c7   :  { %v9496_v37 = vpack.i.bf16 %v737_v21, %v735_v20 }
 0x4c9   :  { %9497 = vrot.lane.b32.xlu1 %v9496_v37, %s10492_s19 }
 0x4ce   :  { %v740_v38 = vpop.f32.mrf.mxu2 }
 0x4d6   :  { %v742_v39 = vpop.f32.mrf.mxu2 }
 0x4d7   :  { %v9511_v41 = vpack.i.bf16 %v742_v39, %v740_v38 }
 0x4d9   :  { %9512 = vrot.lane.b32.xlu1 %v9511_v41, %s10492_s19 }
 0x4de   :  { %v745_v42 = vpop.f32.mrf.mxu2 }
 0x4e6   :  { %v747_v44 = vpop.f32.mrf.mxu2 }
 0x4e7   :  { %v9501_v45 = vpack.i.bf16 %v747_v44, %v745_v42 }
 0x4e9   :  { %9502 = vrot.lane.b32.xlu2 %v9501_v45, %s10493_s20 }
 0x4f1   :  { %9517 = vrot.lane.b32.xlu2 %v9516_v36, %s10493_s20 }
 0x516   :  { %v949_v24 = vpop.f32.mrf.mxu1 }
 0x51b   :  { %v9493_v56 = vpop.permute.xlu0 %9492 }
 0x51c   :  { %v9495_v4 = vunpack.i.h.bf16 %v9493_v56  ;;  %v9494_v5 = vunpack.i.l.bf16 %v9493_v56 }
 0x51e   :  { %v814_v28 = vsel %vm261_vm0, %v10873_v15, %v9495_v4  ;;  %v813_v53 = vsel %vm261_vm0, %v10871_v12, %v9494_v5  ;;  %v951_v55 = vpop.f32.mrf.mxu1 }
 0x526   :  { %v954_v25 = vpop.f32.mrf.mxu1 }
 0x52b   :  { %v9508_v20 = vpop.permute.xlu0 %9507 }
 0x52c   :  { %v9510_v37 = vunpack.i.h.bf16 %v9508_v20  ;;  %v9509_v38 = vunpack.i.l.bf16 %v9508_v20 }
 0x52e   :  { %v815_v43 = vsel %vm261_vm0, %v10875_v16, %v9509_v38  ;;  %v816_v44 = vsel %vm261_vm0, %v10877_v17, %v9510_v37 }
 0x53b   :  { %v9498_v2 = vpop.permute.xlu1 %9497 }
 0x53c   :  { %v9500_v11 = vunpack.i.h.bf16 %v9498_v2  ;;  %v9499_v14 = vunpack.i.l.bf16 %v9498_v2 }
 0x53e   :  { %v818_v31 = vsel %vm403_vm1, %v814_v28, %v9500_v11  ;;  %v817_v18 = vsel %vm403_vm1, %v813_v53, %v9499_v14 }
 0x543   :  { %v9503_v27 = vpop.permute.xlu2 %9502 }
 0x544   :  { %v9505_v54 = vunpack.i.h.bf16 %v9503_v27  ;;  %v9504_v22 = vunpack.i.l.bf16 %v9503_v27 }
 0x546   :  { %v822_v19 = vsel %vm408_vm2, %v818_v31, %v9505_v54  ;;  %v821_v34 = vsel %vm408_vm2, %v817_v18, %v9504_v22  ;;  %v956_v54 = vpop.f32.mrf.mxu1 }
 0x547   :  { %v846_v35 = vpack.c.bf16 %v822_v19, %v821_v34 }
 0x549   :  { %929 = vmatmul.bf16.vlgmr.msra.gmra.mxu3 %v846_v35 }
 0x54b   :  { %v9513_v21 = vpop.permute.xlu1 %9512  ;;  %v9518_v41 = vpop.permute.xlu2 %9517 }
 0x54c   :  { %v9515_v15 = vunpack.i.h.bf16 %v9513_v21  ;;  %v9514_v39 = vunpack.i.l.bf16 %v9513_v21  ;;  %v9520_v12 = vunpack.i.h.bf16 %v9518_v41  ;;  %v9519_v42 = vunpack.i.l.bf16 %v9518_v41 }
 0x54e   :  { %v819_v45 = vsel %vm403_vm1, %v815_v43, %v9514_v39  ;;  %v820_v23 = vsel %vm403_vm1, %v816_v44, %v9515_v15 }
 0x54f   :  { %v823_v36 = vsel %vm408_vm2, %v819_v45, %v9519_v42  ;;  %v824_v46 = vsel %vm408_vm2, %v820_v23, %v9520_v12 }
 0x550   :  { %v848_v48 = vpack.c.bf16 %v824_v46, %v823_v36 }
 0x559   :  { %934 = vmatmul.bf16.gmra.mxu3 %v848_v48 }
 0x5cc   :  { %v930_v50 = vpop.f32.mrf.mxu3 }
 0x5cd   :  { %v931_v16 = vadd.f32 %v9990_v49, %v930_v50 }
 0x5cf   :  { %v10936_v51 = vadd.f32 %v949_v24, %v931_v16 }
 0x5d1   :  { %v7851_v17 = vmul.f32 -1.442695, %v10936_v51 }
 0x5d3   :  { %10063 = vpow2.f32 %v7851_v17 }
 0x5d4   :  { %v932_v57 = vpop.f32.mrf.mxu3 }
 0x5d5   :  { %v933_v58 = vadd.f32 %v9990_v49, %v932_v57 }
 0x5d7   :  { %v10939_v60 = vadd.f32 %v951_v55, %v933_v58 }
 0x5d9   :  { %v10064_v61 = vpop.eup %10063  ;;  %v7852_v62 = vmul.f32 -1.442695, %v10939_v60 }
 0x5da   :  { %v975_v63 = vadd.f32 1.0, %v10064_v61 }
 0x5db   :  { %10065 = vpow2.f32 %v7852_v62 }
 0x5dc   :  { %10067 = vrcp.f32 %v975_v63  ;;  %v935_v26 = vpop.f32.mrf.mxu3  ;;  %v990_v22 = vand.u32 2147483648, %v975_v63  ;;  %v988_v19 = vand.u32 2147483647, %v975_v63  ;;  %vm984_vm7 = vweird.f32 %v975_v63 }
 0x5dd   :  { %v936_v3 = vadd.f32 %v9990_v49, %v935_v26 }
 0x5de   :  { %v991_v38 = vor.u32 1.1754944e-38, %v990_v22  ;;  %vm989_vm9 = vcmp.eq.f32.partialorder %v988_v19, 8.507059e+37 }
 0x5df   :  { %v10942_v56 = vadd.f32 %v954_v25, %v936_v3 }
 0x5e1   :  { %v10066_v2 = vpop.eup %10065  ;;  %v7853_v4 = vmul.f32 -1.442695, %v10942_v56 }
 0x5e2   :  { %v10068_v5 = vpop.eup %10067  ;;  %v976_v11 = vadd.f32 1.0, %v10066_v2 }
 0x5e3   :  { %10069 = vpow2.f32 %v7853_v4  ;;  %v980_v14 = vmul.f32 %v10068_v5, %v975_v63  ;;  %vm985_vm6 = vweird.f32 %v10068_v5 }
 0x5e4   :  { %10071 = vrcp.f32 %v976_v11  ;;  %v937_v27 = vpop.f32.mrf.mxu3  ;;  %vm986_vm8 = vmor %vm984_vm7, %vm985_vm6  ;;  %v1005_v42 = vand.u32 2147483648, %v976_v11  ;;  %v1003_v44 = vand.u32 2147483647, %v976_v11  ;;  %vm999_vm11 = vweird.f32 %v976_v11 }
 0x5e5   :  { %v938_v28 = vadd.f32 %v9990_v49, %v937_v27  ;;  %v981_v53 = vsub.f32 1.0, %v980_v14 }
 0x5e6   :  { %v1006_v48 = vor.u32 1.1754944e-38, %v1005_v42  ;;  %vm1004_vm13 = vcmp.eq.f32.partialorder %v1003_v44, 8.507059e+37  ;;  %v9991_v44 = vld [vmem:[%s13583_s8 + $0x1] ss:$0 sm:$0xff] }
 0x5e7   :  { %v10945_v31 = vadd.f32 %v956_v54, %v938_v28  ;;  %v982_v18 = vmul.f32 %v10068_v5, %v981_v53  ;;  %v9256_v53 = vld [vmem:[%s13584_s7 + $0x18] sm:$0xff]  ;;  %v9255_v54 = vld [vmem:[%s13584_s7 + $0x10] sm:$0xff] }
 0x5e8   :  { %1095 = vmatpush.bf16.msrb.mxu3 %v9256_v53 }
 0x5e9   :  { %v10070_v34 = vpop.eup %10069  ;;  %v7854_v35 = vmul.f32 -1.442695, %v10945_v31  ;;  %v983_v20 = vadd.f32 %v10068_v5, %v982_v18 }
 0x5ea   :  { %v10072_v21 = vpop.eup %10071  ;;  %v977_v37 = vadd.f32 1.0, %v10070_v34 }
 0x5eb   :  { %10073 = vpow2.f32 %v7854_v35  ;;  %v987_v15 = vsel %vm986_vm8, %v10068_v5, %v983_v20  ;;  %v995_v39 = vmul.f32 %v10072_v21, %v976_v11  ;;  %vm1000_vm10 = vweird.f32 %v10072_v21 }
 0x5ec   :  { %10075 = vrcp.f32 %v977_v37  ;;  %v992_v41 = vsel %vm989_vm9, %v991_v38, %v987_v15  ;;  %vm1001_vm12 = vmor %vm999_vm11, %vm1000_vm10  ;;  %v1020_v17 = vand.u32 2147483648, %v977_v37  ;;  %v1018_v57 = vand.u32 2147483647, %v977_v37  ;;  %1096 = vmatpush.bf16.msrb.mxu3 %v9255_v54 }
 0x5ed   :  { %1043 = vrot.lane.b32.xlu0 %v992_v41, %s10493_s20  ;;  %v996_v12 = vsub.f32 1.0, %v995_v39  ;;  %vm1014_vm15 = vweird.f32 %v977_v37 }
 0x5ee   :  { %v1021_v62 = vor.u32 1.1754944e-38, %v1020_v17  ;;  %vm1019_vm4 = vcmp.eq.f32.partialorder %v1018_v57, 8.507059e+37  ;;  %v11016_v57 = vld [vmem:[%s13580_s2 + $0x10] sm:$0xff] }
 0x5ef   :  { %v997_v43 = vmul.f32 %v10072_v21, %v996_v12 }
 0x5f1   :  { %v10074_v45 = vpop.eup %10073  ;;  %v998_v23 = vadd.f32 %v10072_v21, %v997_v43 }
 0x5f2   :  { %v10076_v36 = vpop.eup %10075  ;;  %v978_v46 = vadd.f32 1.0, %v10074_v45 }
 0x5f3   :  { %v1002_v24 = vsel %vm1001_vm12, %v10072_v21, %v998_v23  ;;  %v1010_v49 = vmul.f32 %v10076_v36, %v977_v37  ;;  %vm1015_vm14 = vweird.f32 %v10076_v36 }
 0x5f4   :  { %10077 = vrcp.f32 %v978_v46  ;;  %v1007_v50 = vsel %vm1004_vm13, %v1006_v48, %v1002_v24  ;;  %vm1016_vm3 = vmor %vm1014_vm15, %vm1015_vm14  ;;  %v1035_v2 = vand.u32 2147483648, %v978_v46  ;;  %v1033_v5 = vand.u32 2147483647, %v978_v46 }
 0x5f5   :  { %1045 = vrot.lane.b32.xlu1 %v1007_v50, %s10493_s20  ;;  %v1011_v16 = vsub.f32 1.0, %v1010_v49  ;;  %vm1029_vm6 = vweird.f32 %v978_v46  ;;  %10079 = vtanh.f32 %v10936_v51 }
 0x5f6   :  { %v1036_v14 = vor.u32 1.1754944e-38, %v1035_v2  ;;  %vm1034_vm8 = vcmp.eq.f32.partialorder %v1033_v5, 8.507059e+37  ;;  %10081 = vtanh.f32 %v10939_v60  ;;  %v11067_v5 = vld [vmem:[%s13580_s2 + $0x48] sm:$0xff] }
 0x5f7   :  { %v1012_v55 = vmul.f32 %v10076_v36, %v1011_v16  ;;  %10083 = vtanh.f32 %v10942_v56 }
 0x5f8   :  { %10085 = vtanh.f32 %v10945_v31 }
 0x5f9   :  { %v1013_v58 = vadd.f32 %v10076_v36, %v1012_v55  ;;  %v11009_v55 = vld [vmem:[%s13580_s2 + $0x8] sm:$0xff] }
 0x5fa   :  { %v10078_v61 = vpop.eup %10077 }
 0x5fb   :  { %v1017_v63 = vsel %vm1016_vm3, %v10076_v36, %v1013_v58  ;;  %v1025_v25 = vmul.f32 %v10078_v61, %v978_v46  ;;  %vm1030_vm5 = vweird.f32 %v10078_v61  ;;  %v10080_v18 = vpop.eup %10079  ;;  %v11023_v58 = vld [vmem:[%s13580_s2 + $0x18] sm:$0xff] }
 0x5fc   :  { %v1022_v26 = vsel %vm1019_vm4, %v1021_v62, %v1017_v63  ;;  %vm1031_vm7 = vmor %vm1029_vm6, %vm1030_vm5  ;;  %v10082_v19 = vpop.eup %10081  ;;  %v11037_v62 = vld [vmem:[%s13580_s2 + $0x28] sm:$0xff]  ;;  %v11044_v63 = vld [vmem:[%s13580_s2 + $0x30] sm:$0xff] }
 0x5fd   :  { %1047 = vrot.lane.b32.xlu2 %v1022_v26, %s10493_s20  ;;  %v1026_v3 = vsub.f32 1.0, %v1025_v25  ;;  %v10084_v38 = vpop.eup %10083  ;;  %v11051_v25 = vld [vmem:[%s13580_s2 + $0x38] sm:$0xff] }
 0x5fe   :  { %v10086_v15 = vpop.eup %10085 }
 0x5ff   :  { %v1027_v4 = vmul.f32 %v10078_v61, %v1026_v3  ;;  %v11058_v3 = vld [vmem:[%s13580_s2 + $0x40] sm:$0xff] }
 0x601   :  { %v1028_v11 = vadd.f32 %v10078_v61, %v1027_v4 }
 0x603   :  { %v1032_v27 = vsel %vm1031_vm7, %v10078_v61, %v1028_v11  ;;  %v11030_v61 = vld [vmem:[%s13580_s2 + $0x20] sm:$0xff] }
 0x604   :  { %v1037_v28 = vsel %vm1034_vm8, %v1036_v14, %v1032_v27 }
 0x605   :  { %1049 = vrot.lane.b32.xlu0 %v1037_v28, %s10493_s20 }
 0x657   :  { %v1048_v37 = vpop.permute.xlu2 %1047 }
 0x658   :  { %v1057_v51 = vmul.f32 %v10084_v38, %v1048_v37 }
 0x65f   :  { %v1044_v22 = vpop.permute.xlu0 %1043 }
 0x660   :  { %v1055_v35 = vmul.f32 %v10080_v18, %v1044_v22 }
 0x667   :  { %v1046_v34 = vpop.permute.xlu1 %1045 }
 0x668   :  { %v1056_v20 = vmul.f32 %v10082_v19, %v1046_v34 }
 0x66a   :  { %v1064_v21 = vpack.c.bf16 %v1056_v20, %v1055_v35 }
 0x66c   :  { %7868 = vmatmul.msk.bf16.vlgmr.msrb.gmra.mxu3 %vm261_vm0, %v1064_v21 }
 0x677   :  { %v1050_v39 = vpop.permute.xlu0 %1049 }
 0x678   :  { %v1058_v41 = vmul.f32 %v10086_v15, %v1050_v39 }
 0x67a   :  { %v1065_v60 = vpack.c.bf16 %v1058_v41, %v1057_v51 }
 0x67c   :  { %7869 = vmatmul.msk.bf16.gmra.mxu3 %vm261_vm0, %v1065_v60  ;;  %v9264_v60 = vld [vmem:[%s13582_s5 + $0xd8] sm:$0xff] }
 0x67d   :  { %1337 = vmatpush.bf16.msra.mxu3 %v9264_v60 }
 0x6ef   :  { %v1098_v12 = vpop.f32.mrf.mxu3 }
 0x6f0   :  { %v10971_v23 = vadd.f32 %v9991_v44, %v1098_v12  ;;  %v9263_v12 = vld [vmem:[%s13582_s5 + $0xd0] sm:$0xff] }
 0x6f1   :  { %1338 = vmatpush.bf16.msra.mxu3 %v9263_v12 }
 0x6f2   :  { %v1108_v49 = vadd.f32 %v10971_v23, %v10847_v13  ;;  %v11002_v13 = vld [vmem:[%s13580_s2] sm:$0xff] }
 0x6f7   :  { %v1100_v42 = vpop.f32.mrf.mxu3 }
 0x6f8   :  { %v10969_v56 = vadd.f32 %v9991_v44, %v1100_v42  ;;  %v9262_v42 = vld [vmem:[%s13582_s5 + $0xc8] sm:$0xff] }
 0x6f9   :  { %1339 = vmatpush.bf16.msra.mxu3 %v9262_v42 }
 0x6fa   :  { %v1109_v48 = vadd.f32 %v10969_v56, %v10844_v33  ;;  %v10995_v33 = vmul.f32 %v1108_v49, %v10634_v9  ;;  %v9265_v49 = vld [vmem:[%s13582_s5 + $0xe0] sm:$0xff] }
 0x6fc   :  { %v10990_v17 = vmul.f32 %v1109_v48, %v10636_v10  ;;  %v9257_v48 = vld [vmem:[%s13582_s5 + $0xa0] sm:$0xff] }
 0x6ff   :  { %v1103_v43 = vpop.f32.mrf.mxu3 }
 0x700   :  { %v10967_v45 = vadd.f32 %v9991_v44, %v1103_v43  ;;  %v9261_v43 = vld [vmem:[%s13582_s5 + $0xc0] sm:$0xff] }
 0x701   :  { %1340 = vmatpush.bf16.msra.mxu3 %v9261_v43 }
 0x702   :  { %v1110_v36 = vadd.f32 %v10967_v45, %v10836_v29 }
 0x704   :  { %v10984_v50 = vmul.f32 %v1110_v36, %v10624_v52  ;;  %v9258_v36 = vld [vmem:[%s13582_s5 + $0xa8] sm:$0xff] }
 0x707   :  { %v1105_v31 = vpop.f32.mrf.mxu3 }
 0x708   :  { %v10975_v46 = vadd.f32 %v9991_v44, %v1105_v31  ;;  %v9260_v44 = vld [vmem:[%s13582_s5 + $0xb8] sm:$0xff]  ;;  %v9259_v31 = vld [vmem:[%s13582_s5 + $0xb0] sm:$0xff] }
 0x709   :  { %1341 = vmatpush.bf16.msra.mxu3 %v9260_v44 }
 0x70a   :  { %v1111_v24 = vadd.f32 %v10975_v46, %v10839_v32  ;;  %v1120_v32 = vpack.c.bf16 %v10990_v17, %v10995_v33 }
 0x70c   :  { %v10987_v16 = vmul.f32 %v1111_v24, %v10622_v47  ;;  %v9266_v24 = vld [vmem:[%s13582_s5 + $0xe8] sm:$0xff] }
 0x70d   :  { %1342 = vmatpush.bf16.msra.mxu3 %v9259_v31 }
 0x70e   :  { %v1121_v29 = vpack.c.bf16 %v10987_v16, %v10984_v50 }
 0x710   :  { %1128 = vmatpush.bf16.msrb.mxu1 %v1121_v29 }
 0x711   :  { %1343 = vmatpush.bf16.msra.mxu3 %v9258_v36 }
 0x714   :  { %1129 = vmatpush.bf16.msrb.mxu1 %v1120_v32 }
 0x715   :  { %1344 = vmatpush.bf16.msra.mxu3 %v9257_v48 }
 0x717   :  { %7870 = vmatmul.msk.bf16.vlgmr.msrb.gmra.mxu1 %vm261_vm0, %v11002_v13 }
 0x719   :  { %1362 = vmatpush.bf16.msrb.mxu3 %v9266_v24 }
 0x71d   :  { %1363 = vmatpush.bf16.msrb.mxu3 %v9265_v49 }
 0x727   :  { %7871 = vmatmul.msk.bf16.gmra.mxu1 %vm261_vm0, %v11009_v55 }
 0x737   :  { %7872 = vmatmul.msk.bf16.gmra.mxu1 %vm261_vm0, %v11016_v57 }
 0x747   :  { %7873 = vmatmul.msk.bf16.gmra.mxu1 %vm261_vm0, %v11023_v58 }
 0x757   :  { %7874 = vmatmul.msk.bf16.gmra.mxu1 %vm261_vm0, %v11030_v61 }
 0x767   :  { %7875 = vmatmul.msk.bf16.gmra.mxu1 %vm261_vm0, %v11037_v62 }
 0x777   :  { %7876 = vmatmul.msk.bf16.gmra.mxu1 %vm261_vm0, %v11044_v63 }
 0x787   :  { %7877 = vmatmul.msk.bf16.gmra.mxu1 %vm261_vm0, %v11051_v25 }
 0x794   :  { %v1131_v26 = vpop.f32.mrf.mxu1 }
 0x797   :  { %7878 = vmatmul.msk.bf16.gmra.mxu1 %vm261_vm0, %v11058_v3 }
 0x79c   :  { %v1133_v2 = vpop.f32.mrf.mxu1 }
 0x7a4   :  { %v11062_v4 = vpop.f32.mrf.mxu1 }
 0x7a7   :  { %7879 = vmatmul.msk.bf16.gmra.mxu1 %vm261_vm0, %v11067_v5 }
 0x7ac   :  { %v11071_v11 = vpop.f32.mrf.mxu1 }
 0x7b4   :  { %v1141_v14 = vpop.f32.mrf.mxu1 }
 0x7bc   :  { %v1143_v27 = vpop.f32.mrf.mxu1 }
 0x7bd   :  { %v9521_v28 = vpack.i.bf16 %v1143_v27, %v1141_v14 }
 0x7bf   :  { %9522 = vrot.lane.b32.xlu1 %v9521_v28, %s10491_s14 }
 0x7c4   :  { %v1146_v53 = vpop.f32.mrf.mxu1 }
 0x7cc   :  { %v1148_v54 = vpop.f32.mrf.mxu1 }
 0x7cd   :  { %v9536_v22 = vpack.i.bf16 %v1148_v54, %v1146_v53 }
 0x7cf   :  { %9537 = vrot.lane.b32.xlu1 %v9536_v22, %s10491_s14 }
 0x7d4   :  { %v1151_v18 = vpop.f32.mrf.mxu1 }
 0x7dc   :  { %v1153_v19 = vpop.f32.mrf.mxu1 }
 0x7dd   :  { %v9526_v34 = vpack.i.bf16 %v1153_v19, %v1151_v18 }
 0x7df   :  { %9527 = vrot.lane.b32.xlu2 %v9526_v34, %s10492_s19 }
 0x7e4   :  { %v1156_v35 = vpop.f32.mrf.mxu1 }
 0x7ec   :  { %v1158_v20 = vpop.f32.mrf.mxu1 }
 0x7ed   :  { %v9541_v21 = vpack.i.bf16 %v1158_v20, %v1156_v35 }
 0x7ef   :  { %9542 = vrot.lane.b32.xlu2 %v9541_v21, %s10492_s19 }
 0x7f4   :  { %v1161_v37 = vpop.f32.mrf.mxu1 }
 0x7fc   :  { %v1163_v38 = vpop.f32.mrf.mxu1 }
 0x7fd   :  { %v9531_v15 = vpack.i.bf16 %v1163_v38, %v1161_v37 }
 0x7ff   :  { %9532 = vrot.lane.b32.xlu0 %v9531_v15, %s10493_s20 }
 0x804   :  { %v1166_v39 = vpop.f32.mrf.mxu1 }
 0x80c   :  { %v1168_v51 = vpop.f32.mrf.mxu1 }
 0x80d   :  { %v9546_v41 = vpack.i.bf16 %v1168_v51, %v1166_v39 }
 0x80f   :  { %9547 = vrot.lane.b32.xlu0 %v9546_v41, %s10493_s20 }
 0x814   :  { %v1171_v48 = vpop.f32.mrf.mxu1 }
 0x831   :  { %v9523_v29 = vpop.permute.xlu1 %9522 }
 0x832   :  { %v9525_v14 = vunpack.i.h.bf16 %v9523_v29  ;;  %v9524_v27 = vunpack.i.l.bf16 %v9523_v29 }
 0x834   :  { %v1230_v22 = vsel %vm261_vm0, %v1133_v2, %v9525_v14  ;;  %v1229_v18 = vsel %vm261_vm0, %v1131_v26, %v9524_v27 }
 0x839   :  { %v9528_v32 = vpop.permute.xlu2 %9527 }
 0x83a   :  { %v9530_v28 = vunpack.i.h.bf16 %v9528_v32  ;;  %v9529_v53 = vunpack.i.l.bf16 %v9528_v32  ;;  %v1173_v32 = vpop.f32.mrf.mxu1 }
 0x83b   :  { %v1263_v14 = vpack.c.bf16 %v1173_v32, %v1171_v48 }
 0x83c   :  { %v1234_v35 = vsel %vm403_vm1, %v1230_v22, %v9530_v28  ;;  %v1233_v20 = vsel %vm403_vm1, %v1229_v18, %v9529_v53  ;;  %v9992_v18 = vld [vmem:[%s13581_s6 + $0x2] ss:$0 sm:$0xff] }
 0x841   :  { %v9538_v15 = vpop.permute.xlu1 %9537 }
 0x842   :  { %v9540_v51 = vunpack.i.h.bf16 %v9538_v15  ;;  %v9539_v41 = vunpack.i.l.bf16 %v9538_v15  ;;  %v1176_v27 = vpop.f32.mrf.mxu1 }
 0x844   :  { %v1231_v43 = vsel %vm261_vm0, %v11062_v4, %v9539_v41  ;;  %v1232_v44 = vsel %vm261_vm0, %v11071_v11, %v9540_v51 }
 0x849   :  { %v9543_v39 = vpop.permute.xlu2 %9542 }
 0x84a   :  { %v9545_v60 = vunpack.i.h.bf16 %v9543_v39  ;;  %v9544_v2 = vunpack.i.l.bf16 %v9543_v39  ;;  %v1178_v4 = vpop.f32.mrf.mxu1 }
 0x84b   :  { %v1265_v28 = vpack.c.bf16 %v1178_v4, %v1176_v27 }
 0x84c   :  { %v1235_v31 = vsel %vm403_vm1, %v1231_v43, %v9544_v2  ;;  %v1236_v36 = vsel %vm403_vm1, %v1232_v44, %v9545_v60 }
 0x871   :  { %v9533_v54 = vpop.permute.xlu0 %9532 }
 0x872   :  { %v9535_v19 = vunpack.i.h.bf16 %v9533_v54  ;;  %v9534_v34 = vunpack.i.l.bf16 %v9533_v54 }
 0x874   :  { %v1238_v21 = vsel %vm408_vm2, %v1234_v35, %v9535_v19  ;;  %v1237_v37 = vsel %vm408_vm2, %v1233_v20, %v9534_v34 }
 0x875   :  { %v1262_v38 = vpack.c.bf16 %v1238_v21, %v1237_v37 }
 0x877   :  { %1345 = vmatmul.bf16.vlgmr.msra.gmra.mxu3 %v1262_v38 }
 0x881   :  { %v9548_v12 = vpop.permute.xlu0 %9547 }
 0x882   :  { %v9550_v26 = vunpack.i.h.bf16 %v9548_v12  ;;  %v9549_v42 = vunpack.i.l.bf16 %v9548_v12 }
 0x884   :  { %v1239_v24 = vsel %vm408_vm2, %v1235_v31, %v9549_v42  ;;  %v1240_v49 = vsel %vm408_vm2, %v1236_v36, %v9550_v26 }
 0x885   :  { %v1264_v29 = vpack.c.bf16 %v1240_v49, %v1239_v24 }
 0x887   :  { %1350 = vmatmul.bf16.gmra.mxu3 %v1264_v29 }
 0x897   :  { %7941 = vmatmul.msk.bf16.vlgmr.msrb.gmra.mxu3 %vm261_vm0, %v1263_v14 }
 0x8a7   :  { %7942 = vmatmul.msk.bf16.gmra.mxu3 %vm261_vm0, %v1265_v28 }
 0x8fa   :  { %v1346_v11 = vpop.f32.mrf.mxu3 }
 0x8fb   :  { %v1347_v19 = vadd.f32 %v9992_v18, %v1346_v11 }
 0x902   :  { %v1348_v53 = vpop.f32.mrf.mxu3 }
 0x903   :  { %v1349_v21 = vadd.f32 %v9992_v18, %v1348_v53 }
 0x90a   :  { %v1351_v54 = vpop.f32.mrf.mxu3 }
 0x90b   :  { %v1352_v41 = vadd.f32 %v9992_v18, %v1351_v54 }
 0x912   :  { %v1353_v22 = vpop.f32.mrf.mxu3 }
 0x913   :  { %v1354_v31 = vadd.f32 %v9992_v18, %v1353_v22 }
 0x91a   :  { %v1365_v34 = vpop.f32.mrf.mxu3 }
 0x91b   :  { %v11128_v35 = vadd.f32 %v1365_v34, %v1347_v19 }
 0x91d   :  { %v7943_v20 = vmul.f32 -1.442695, %v11128_v35 }
 0x91f   :  { %10087 = vpow2.f32 %v7943_v20 }
 0x922   :  { %v1367_v37 = vpop.f32.mrf.mxu3 }
 0x923   :  { %v11131_v38 = vadd.f32 %v1367_v37, %v1349_v21 }
 0x925   :  { %v10088_v15 = vpop.eup %10087  ;;  %v7944_v39 = vmul.f32 -1.442695, %v11131_v38 }
 0x926   :  { %v1391_v51 = vadd.f32 1.0, %v10088_v15 }
 0x927   :  { %10089 = vpow2.f32 %v7944_v39 }
 0x928   :  { %10091 = vrcp.f32 %v1391_v51  ;;  %v1406_v24 = vand.u32 2147483648, %v1391_v51  ;;  %v1404_v32 = vand.u32 2147483647, %v1391_v51  ;;  %vm1400_vm10 = vweird.f32 %v1391_v51 }
 0x92a   :  { %v1370_v60 = vpop.f32.mrf.mxu3  ;;  %v1407_v53 = vor.u32 1.1754944e-38, %v1406_v24  ;;  %vm1405_vm12 = vcmp.eq.f32.partialorder %v1404_v32, 8.507059e+37 }
 0x92b   :  { %v11134_v2 = vadd.f32 %v1370_v60, %v1352_v41 }
 0x92d   :  { %v10090_v12 = vpop.eup %10089  ;;  %v7945_v26 = vmul.f32 -1.442695, %v11134_v2 }
 0x92e   :  { %v10092_v42 = vpop.eup %10091  ;;  %v1392_v43 = vadd.f32 1.0, %v10090_v12 }
 0x92f   :  { %10093 = vpow2.f32 %v7945_v26  ;;  %v1396_v44 = vmul.f32 %v10092_v42, %v1391_v51  ;;  %vm1401_vm9 = vweird.f32 %v10092_v42 }
 0x930   :  { %10095 = vrcp.f32 %v1392_v43  ;;  %vm1402_vm11 = vmor %vm1400_vm10, %vm1401_vm9  ;;  %v1421_v34 = vand.u32 2147483648, %v1392_v43  ;;  %v1419_v21 = vand.u32 2147483647, %v1392_v43  ;;  %vm1415_vm14 = vweird.f32 %v1392_v43 }
 0x931   :  { %v1397_v36 = vsub.f32 1.0, %v1396_v44 }
 0x932   :  { %v1372_v48 = vpop.f32.mrf.mxu3  ;;  %v1422_v41 = vor.u32 1.1754944e-38, %v1421_v34  ;;  %vm1420_vm3 = vcmp.eq.f32.partialorder %v1419_v21, 8.507059e+37  ;;  %v9267_v34 = vld [vmem:[%s13584_s7 + $0x20] sm:$0xff] }
 0x933   :  { %v11137_v49 = vadd.f32 %v1372_v48, %v1354_v31  ;;  %v1398_v29 = vmul.f32 %v10092_v42, %v1397_v36 }
 0x935   :  { %v10094_v14 = vpop.eup %10093  ;;  %v7946_v27 = vmul.f32 -1.442695, %v11137_v49  ;;  %v1399_v4 = vadd.f32 %v10092_v42, %v1398_v29 }
 0x936   :  { %v10096_v28 = vpop.eup %10095  ;;  %v1393_v11 = vadd.f32 1.0, %v10094_v14 }
 0x937   :  { %10097 = vpow2.f32 %v7946_v27  ;;  %v1403_v54 = vsel %vm1402_vm11, %v10092_v42, %v1399_v4  ;;  %v1411_v22 = vmul.f32 %v10096_v28, %v1392_v43  ;;  %vm1416_vm13 = vweird.f32 %v10096_v28 }
 0x938   :  { %10099 = vrcp.f32 %v1393_v11  ;;  %v1408_v18 = vsel %vm1405_vm12, %v1407_v53, %v1403_v54  ;;  %vm1417_vm15 = vmor %vm1415_vm14, %vm1416_vm13  ;;  %v1436_v44 = vand.u32 2147483648, %v1393_v11  ;;  %v1434_v36 = vand.u32 2147483647, %v1393_v11 }
 0x939   :  { %1459 = vrot.lane.b32.xlu1 %v1408_v18, %s10493_s20  ;;  %v1412_v19 = vsub.f32 1.0, %v1411_v22  ;;  %vm1430_vm5 = vweird.f32 %v1393_v11 }
 0x93a   :  { %v1437_v43 = vor.u32 1.1754944e-38, %v1436_v44  ;;  %vm1435_vm7 = vcmp.eq.f32.partialorder %v1434_v36, 8.507059e+37 }
 0x93b   :  { %v1413_v20 = vmul.f32 %v10096_v28, %v1412_v19  ;;  %v9268_v19 = vld [vmem:[%s13584_s7 + $0x28] sm:$0xff] }
 0x93c   :  { %1511 = vmatpush.bf16.msrb.mxu0 %v9268_v19 }
 0x93d   :  { %v10098_v37 = vpop.eup %10097  ;;  %v1414_v15 = vadd.f32 %v10096_v28, %v1413_v20 }
 0x93e   :  { %v10100_v39 = vpop.eup %10099  ;;  %v1394_v51 = vadd.f32 1.0, %v10098_v37 }
 0x93f   :  { %v1418_v60 = vsel %vm1417_vm15, %v10096_v28, %v1414_v15  ;;  %v1426_v12 = vmul.f32 %v10100_v39, %v1393_v11  ;;  %vm1431_vm4 = vweird.f32 %v10100_v39 }
 0x940   :  { %10101 = vrcp.f32 %v1394_v51  ;;  %v1423_v26 = vsel %vm1420_vm3, %v1422_v41, %v1418_v60  ;;  %vm1432_vm6 = vmor %vm1430_vm5, %vm1431_vm4  ;;  %v1451_v4 = vand.u32 2147483648, %v1394_v51  ;;  %v1449_v53 = vand.u32 2147483647, %v1394_v51  ;;  %1512 = vmatpush.bf16.msrb.mxu0 %v9267_v34 }
 0x941   :  { %1461 = vrot.lane.b32.xlu2 %v1423_v26, %s10493_s20  ;;  %v1427_v42 = vsub.f32 1.0, %v1426_v12  ;;  %vm1445_vm9 = vweird.f32 %v1394_v51  ;;  %10103 = vtanh.f32 %v11128_v35 }
 0x942   :  { %v1452_v22 = vor.u32 1.1754944e-38, %v1451_v4  ;;  %vm1450_vm11 = vcmp.eq.f32.partialorder %v1449_v53, 8.507059e+37  ;;  %10105 = vtanh.f32 %v11131_v38 }
 0x943   :  { %v1428_v31 = vmul.f32 %v10100_v39, %v1427_v42  ;;  %10107 = vtanh.f32 %v11134_v2 }
 0x944   :  { %10109 = vtanh.f32 %v11137_v49 }
 0x945   :  { %v1429_v48 = vadd.f32 %v10100_v39, %v1428_v31  ;;  %v9993_v31 = vld [vmem:[%s13583_s8 + $0x2] ss:$0 sm:$0xff] }
 0x946   :  { %v10102_v24 = vpop.eup %10101 }
 0x947   :  { %v1433_v29 = vsel %vm1432_vm6, %v10100_v39, %v1429_v48  ;;  %v1441_v32 = vmul.f32 %v10102_v24, %v1394_v51  ;;  %vm1446_vm8 = vweird.f32 %v10102_v24  ;;  %v10104_v21 = vpop.eup %10103  ;;  %v1116_v48 = vadd.f32 %v10971_v23, %v10823_v8 }
 0x948   :  { %v1438_v14 = vsel %vm1435_vm7, %v1437_v43, %v1433_v29  ;;  %vm1447_vm10 = vmor %vm1445_vm9, %vm1446_vm8  ;;  %v10106_v37 = vpop.eup %10105  ;;  %v1117_v43 = vadd.f32 %v10969_v56, %v10821_v40  ;;  %v1119_v8 = vadd.f32 %v10975_v46, %v10827_v59 }
 0x949   :  { %1463 = vrot.lane.b32.xlu0 %v1438_v14, %s10493_s20  ;;  %v1442_v27 = vsub.f32 1.0, %v1441_v32  ;;  %v10108_v12 = vpop.eup %10107 }
 0x94a   :  { %v10110_v26 = vpop.eup %10109 }
 0x94b   :  { %v1443_v28 = vmul.f32 %v10102_v24, %v1442_v27  ;;  %v1118_v27 = vadd.f32 %v10967_v45, %v10819_v30 }
 0x94d   :  { %v1444_v54 = vadd.f32 %v10102_v24, %v1443_v28 }
 0x94f   :  { %v1448_v18 = vsel %vm1447_vm10, %v10102_v24, %v1444_v54 }
 0x950   :  { %v1453_v11 = vsel %vm1450_vm11, %v1452_v22, %v1448_v18 }
 0x951   :  { %1465 = vrot.lane.b32.xlu1 %v1453_v11, %s10493_s20 }
 0x99b   :  { %v1462_v20 = vpop.permute.xlu2 %1461 }
 0x99c   :  { %v1472_v39 = vmul.f32 %v10106_v37, %v1462_v20 }
 0x9ab   :  { %v1460_v15 = vpop.permute.xlu1 %1459 }
 0x9ac   :  { %v1471_v51 = vmul.f32 %v10104_v21, %v1460_v15 }
 0x9ae   :  { %v1480_v41 = vpack.c.bf16 %v1472_v39, %v1471_v51 }
 0x9b0   :  { %7960 = vmatmul.msk.bf16.vlgmr.msrb.gmra.mxu0 %vm261_vm0, %v1480_v41 }
 0x9bb   :  { %v1464_v60 = vpop.permute.xlu0 %1463 }
 0x9bc   :  { %v1473_v35 = vmul.f32 %v10108_v12, %v1464_v60  ;;  %v9276_v12 = vld [vmem:[%s13582_s5 + $0x128] sm:$0xff] }
 0x9bd   :  { %1753 = vmatpush.bf16.msra.mxu0 %v9276_v12 }
 0x9c3   :  { %v1466_v42 = vpop.permute.xlu1 %1465 }
 0x9c4   :  { %v1474_v44 = vmul.f32 %v10110_v26, %v1466_v42  ;;  %v9278_v26 = vld [vmem:[%s13582_s5 + $0x138] sm:$0xff]  ;;  %v9275_v42 = vld [vmem:[%s13582_s5 + $0x120] sm:$0xff] }
 0x9c5   :  { %1778 = vmatpush.bf16.msra.mxu2 %v9278_v26  ;;  %1754 = vmatpush.bf16.msra.mxu0 %v9275_v42 }
 0x9c6   :  { %v1481_v38 = vpack.c.bf16 %v1474_v44, %v1473_v35  ;;  %v9277_v35 = vld [vmem:[%s13582_s5 + $0x130] sm:$0xff]  ;;  %v9274_v44 = vld [vmem:[%s13582_s5 + $0x118] sm:$0xff] }
 0x9c8   :  { %7961 = vmatmul.msk.bf16.gmra.mxu0 %vm261_vm0, %v1481_v38 }
 0x9c9   :  { %1779 = vmatpush.bf16.msra.mxu2 %v9277_v35  ;;  %1755 = vmatpush.bf16.msra.mxu0 %v9274_v44 }
 0xa2d   :  { %v1514_v36 = vpop.f32.mrf.mxu0 }
 0xa2e   :  { %v1515_v2 = vadd.f32 %v9993_v31, %v1514_v36  ;;  %v9273_v36 = vld [vmem:[%s13582_s5 + $0x110] sm:$0xff] }
 0xa2f   :  { %1756 = vmatpush.bf16.msra.mxu0 %v9273_v36 }
 0xa30   :  { %v11161_v24 = vadd.f32 %v1515_v2, %v1116_v48  ;;  %v1524_v18 = vadd.f32 %v1515_v2, %v10995_v33  ;;  %v9272_v48 = vld [vmem:[%s13582_s5 + $0x108] sm:$0xff]  ;;  %v9271_v2 = vld [vmem:[%s13582_s5 + $0x100] sm:$0xff] }
 0xa32   :  { %v1528_v59 = vmul.f32 %v1524_v18, %v10634_v9 }
 0xa33   :  { %1757 = vmatpush.bf16.msra.mxu0 %v9272_v48 }
 0xa35   :  { %v1516_v49 = vpop.f32.mrf.mxu0 }
 0xa36   :  { %v1517_v29 = vadd.f32 %v9993_v31, %v1516_v49  ;;  %v9270_v49 = vld [vmem:[%s13582_s5 + $0xf8] sm:$0xff] }
 0xa37   :  { %1758 = vmatpush.bf16.msra.mxu0 %v9271_v2 }
 0xa38   :  { %v11165_v32 = vadd.f32 %v1517_v29, %v1117_v43  ;;  %v1525_v22 = vadd.f32 %v1517_v29, %v10990_v17  ;;  %v9269_v29 = vld [vmem:[%s13582_s5 + $0xf0] sm:$0xff] }
 0xa3a   :  { %v1529_v11 = vmul.f32 %v1525_v22, %v10636_v10 }
 0xa3b   :  { %1759 = vmatpush.bf16.msra.mxu0 %v9270_v49 }
 0xa3c   :  { %v1536_v46 = vpack.c.bf16 %v1529_v11, %v1528_v59 }
 0xa3f   :  { %1760 = vmatpush.bf16.msra.mxu0 %v9269_v29 }
 0xa45   :  { %v1519_v14 = vpop.f32.mrf.mxu0 }
 0xa46   :  { %v1520_v4 = vadd.f32 %v9993_v31, %v1519_v14 }
 0xa48   :  { %v11169_v28 = vadd.f32 %v1520_v4, %v1118_v27  ;;  %v1526_v23 = vadd.f32 %v1520_v4, %v10984_v50 }
 0xa4a   :  { %v1530_v30 = vmul.f32 %v1526_v23, %v10624_v52 }
 0xa4d   :  { %v1521_v53 = vpop.f32.mrf.mxu0 }
 0xa4e   :  { %v1522_v54 = vadd.f32 %v9993_v31, %v1521_v53 }
 0xa50   :  { %v1527_v40 = vadd.f32 %v1522_v54, %v10987_v16  ;;  %v11176_v56 = vadd.f32 %v1522_v54, %v1119_v8 }
 0xa52   :  { %v1531_v45 = vmul.f32 %v1527_v40, %v10622_v47 }
 0xa54   :  { %v1537_v19 = vpack.c.bf16 %v1531_v45, %v1530_v30 }
 0xa56   :  { %1544 = vmatpush.bf16.msra.mxu3 %v1537_v19 }
 0xa5a   :  { %1545 = vmatpush.bf16.msra.mxu3 %v1536_v46 }
 0xa5d   :  { %7962 = vmatmul.msk.bf16.vlgmr.msra.gmra.mxu3 %vm261_vm0, %v11002_v13 }
 0xa6d   :  { %7963 = vmatmul.msk.bf16.gmra.mxu3 %vm261_vm0, %v11009_v55 }
 0xa7d   :  { %7964 = vmatmul.msk.bf16.gmra.mxu3 %vm261_vm0, %v11016_v57 }
 0xa8d   :  { %7965 = vmatmul.msk.bf16.gmra.mxu3 %vm261_vm0, %v11023_v58 }
 0xa9d   :  { %7966 = vmatmul.msk.bf16.gmra.mxu3 %vm261_vm0, %v11030_v61 }
 0xaad   :  { %7967 = vmatmul.msk.bf16.gmra.mxu3 %vm261_vm0, %v11037_v62 }
 0xabd   :  { %7968 = vmatmul.msk.bf16.gmra.mxu3 %vm261_vm0, %v11044_v63 }
 0xacd   :  { %7969 = vmatmul.msk.bf16.gmra.mxu3 %vm261_vm0, %v11051_v25 }
 0xadd   :  { %7970 = vmatmul.msk.bf16.gmra.mxu3 %vm261_vm0, %v11058_v3 }
 0xae0   :  { %v11201_v50 = vpop.f32.mrf.mxu3 }
 0xae8   :  { %v11203_v16 = vpop.f32.mrf.mxu3 }
 0xaed   :  { %7971 = vmatmul.msk.bf16.gmra.mxu3 %vm261_vm0, %v11067_v5 }
 0xaf0   :  { %v11207_v17 = vpop.f32.mrf.mxu3 }
 0xaf8   :  { %v11209_v33 = vpop.f32.mrf.mxu3 }
 0xb00   :  { %v1557_v13 = vpop.f32.mrf.mxu3 }
 0xb08   :  { %v1559_v55 = vpop.f32.mrf.mxu3 }
 0xb09   :  { %v9551_v57 = vpack.i.bf16 %v1559_v55, %v1557_v13 }
 0xb0b   :  { %9552 = vrot.lane.b32.xlu2 %v9551_v57, %s10491_s14 }
 0xb10   :  { %v1562_v58 = vpop.f32.mrf.mxu3 }
 0xb18   :  { %v1564_v61 = vpop.f32.mrf.mxu3 }
 0xb19   :  { %v9566_v62 = vpack.i.bf16 %v1564_v61, %v1562_v58 }
 0xb1b   :  { %9567 = vrot.lane.b32.xlu2 %v9566_v62, %s10491_s14 }
 0xb20   :  { %v1567_v63 = vpop.f32.mrf.mxu3 }
 0xb28   :  { %v1569_v25 = vpop.f32.mrf.mxu3 }
 0xb29   :  { %v9556_v3 = vpack.i.bf16 %v1569_v25, %v1567_v63 }
 0xb2b   :  { %9557 = vrot.lane.b32.xlu0 %v9556_v3, %s10492_s19 }
 0xb30   :  { %v1572_v5 = vpop.f32.mrf.mxu3 }
 0xb38   :  { %v1574_v34 = vpop.f32.mrf.mxu3 }
 0xb39   :  { %v9571_v20 = vpack.i.bf16 %v1574_v34, %v1572_v5 }
 0xb3b   :  { %9572 = vrot.lane.b32.xlu0 %v9571_v20, %s10492_s19 }
 0xb40   :  { %v1577_v21 = vpop.f32.mrf.mxu3 }
 0xb48   :  { %v1579_v37 = vpop.f32.mrf.mxu3 }
 0xb49   :  { %v9561_v15 = vpack.i.bf16 %v1579_v37, %v1577_v21 }
 0xb4b   :  { %9562 = vrot.lane.b32.xlu1 %v9561_v15, %s10493_s20 }
 0xb50   :  { %v1582_v39 = vpop.f32.mrf.mxu3 }
 0xb58   :  { %v1584_v51 = vpop.f32.mrf.mxu3 }
 0xb59   :  { %v9576_v41 = vpack.i.bf16 %v1584_v51, %v1582_v39  ;;  %v9994_v51 = vld [vmem:[%s13581_s6 + $0x3] ss:$0 sm:$0xff] }
 0xb5b   :  { %9577 = vrot.lane.b32.xlu1 %v9576_v41, %s10493_s20 }
 0xb60   :  { %v1587_v60 = vpop.f32.mrf.mxu3 }
 0xb65   :  { %v9553_v4 = vpop.permute.xlu2 %9552 }
 0xb66   :  { %v9555_v8 = vunpack.i.h.bf16 %v9553_v4  ;;  %v9554_v23 = vunpack.i.l.bf16 %v9553_v4 }
 0xb68   :  { %v1589_v38 = vpop.f32.mrf.mxu3  ;;  %v1646_v18 = vsel %vm261_vm0, %v11203_v16, %v9555_v8  ;;  %v1645_v30 = vsel %vm261_vm0, %v11201_v50, %v9554_v23 }
 0xb69   :  { %v1679_v31 = vpack.c.bf16 %v1589_v38, %v1587_v60 }
 0xb6b   :  { %8033 = vmatmul.msk.bf16.vlgmr.msra.gmra.mxu2 %vm261_vm0, %v1679_v31 }
 0xb70   :  { %v1592_v43 = vpop.f32.mrf.mxu3 }
 0xb75   :  { %v9568_v57 = vpop.permute.xlu2 %9567 }
 0xb76   :  { %v9570_v61 = vunpack.i.h.bf16 %v9568_v57  ;;  %v9569_v62 = vunpack.i.l.bf16 %v9568_v57 }
 0xb78   :  { %v1594_v14 = vpop.f32.mrf.mxu3  ;;  %v1648_v50 = vsel %vm261_vm0, %v11209_v33, %v9570_v61  ;;  %v1647_v3 = vsel %vm261_vm0, %v11207_v17, %v9569_v62 }
 0xb79   :  { %v1681_v27 = vpack.c.bf16 %v1594_v14, %v1592_v43 }
 0xb7b   :  { %8034 = vmatmul.msk.bf16.gmra.mxu2 %vm261_vm0, %v1681_v27 }
 0xb9d   :  { %v9558_v53 = vpop.permute.xlu0 %9557 }
 0xb9e   :  { %v9560_v54 = vunpack.i.h.bf16 %v9558_v53  ;;  %v9559_v22 = vunpack.i.l.bf16 %v9558_v53 }
 0xba0   :  { %v1650_v19 = vsel %vm403_vm1, %v1646_v18, %v9560_v54  ;;  %v1649_v59 = vsel %vm403_vm1, %v1645_v30, %v9559_v22 }
 0xbad   :  { %v9573_v58 = vpop.permute.xlu0 %9572 }
 0xbae   :  { %v9575_v16 = vunpack.i.h.bf16 %v9573_v58  ;;  %v9574_v63 = vunpack.i.l.bf16 %v9573_v58 }
 0xbb0   :  { %v1651_v20 = vsel %vm403_vm1, %v1647_v3, %v9574_v63  ;;  %v1652_v21 = vsel %vm403_vm1, %v1648_v50, %v9575_v16 }
 0xbbd   :  { %v9563_v40 = vpop.permute.xlu1 %9562 }
 0xbbe   :  { %v9565_v45 = vunpack.i.h.bf16 %v9563_v40  ;;  %v9564_v11 = vunpack.i.l.bf16 %v9563_v40 }
 0xbc0   :  { %v1654_v46 = vsel %vm408_vm2, %v1650_v19, %v9565_v45  ;;  %v1653_v13 = vsel %vm408_vm2, %v1649_v59, %v9564_v11 }
 0xbc1   :  { %v1678_v55 = vpack.c.bf16 %v1654_v46, %v1653_v13 }
 0xbc3   :  { %1761 = vmatmul.bf16.vlgmr.msra.gmra.mxu0 %v1678_v55 }
 0xbcd   :  { %v9578_v25 = vpop.permute.xlu1 %9577 }
 0xbce   :  { %v9580_v5 = vunpack.i.h.bf16 %v9578_v25  ;;  %v9579_v34 = vunpack.i.l.bf16 %v9578_v25 }
 0xbd0   :  { %v1655_v37 = vsel %vm408_vm2, %v1651_v20, %v9579_v34  ;;  %v1656_v15 = vsel %vm408_vm2, %v1652_v21, %v9580_v5 }
 0xbd1   :  { %v1680_v39 = vpack.c.bf16 %v1656_v15, %v1655_v37 }
 0xbd3   :  { %1766 = vmatmul.bf16.gmra.mxu0 %v1680_v39 }
 0xbee   :  { %v1781_v33 = vpop.f32.mrf.mxu2 }
 0xbf6   :  { %v1783_v26 = vpop.f32.mrf.mxu2 }
 0xbfe   :  { %v1786_v48 = vpop.f32.mrf.mxu2 }
 0xc06   :  { %v1788_v22 = vpop.f32.mrf.mxu2 }
 0xc40   :  { %v1762_v41 = vpop.f32.mrf.mxu0 }
 0xc41   :  { %v1763_v60 = vadd.f32 %v9994_v51, %v1762_v41 }
 0xc43   :  { %v11268_v17 = vadd.f32 %v1781_v33, %v1763_v60 }
 0xc45   :  { %v8035_v12 = vmul.f32 -1.442695, %v11268_v17 }
 0xc47   :  { %10111 = vpow2.f32 %v8035_v12 }
 0xc48   :  { %v1764_v42 = vpop.f32.mrf.mxu0 }
 0xc49   :  { %v1765_v35 = vadd.f32 %v9994_v51, %v1764_v42 }
 0xc4b   :  { %v11271_v44 = vadd.f32 %v1783_v26, %v1765_v35 }
 0xc4d   :  { %v10112_v38 = vpop.eup %10111  ;;  %v8036_v31 = vmul.f32 -1.442695, %v11271_v44 }
 0xc4e   :  { %v1807_v36 = vadd.f32 1.0, %v10112_v38 }
 0xc4f   :  { %10113 = vpow2.f32 %v8036_v31 }
 0xc50   :  { %10115 = vrcp.f32 %v1807_v36  ;;  %v1767_v2 = vpop.f32.mrf.mxu0  ;;  %v1822_v40 = vand.u32 2147483648, %v1807_v36  ;;  %v1820_v45 = vand.u32 2147483647, %v1807_v36  ;;  %vm1816_vm13 = vweird.f32 %v1807_v36 }
 0xc51   :  { %v1768_v49 = vadd.f32 %v9994_v51, %v1767_v2 }
 0xc52   :  { %v1823_v55 = vor.u32 1.1754944e-38, %v1822_v40  ;;  %vm1821_vm15 = vcmp.eq.f32.partialorder %v1820_v45, 8.507059e+37 }
 0xc53   :  { %v11274_v43 = vadd.f32 %v1786_v48, %v1768_v49 }
 0xc55   :  { %v10114_v29 = vpop.eup %10113  ;;  %v8037_v14 = vmul.f32 -1.442695, %v11274_v43 }
 0xc56   :  { %v10116_v27 = vpop.eup %10115  ;;  %v1808_v4 = vadd.f32 1.0, %v10114_v29 }
 0xc57   :  { %10117 = vpow2.f32 %v8037_v14  ;;  %v1812_v53 = vmul.f32 %v10116_v27, %v1807_v36  ;;  %vm1817_vm12 = vweird.f32 %v10116_v27 }
 0xc58   :  { %10119 = vrcp.f32 %v1808_v4  ;;  %v1769_v8 = vpop.f32.mrf.mxu0  ;;  %vm1818_vm14 = vmor %vm1816_vm13, %vm1817_vm12  ;;  %v1837_v16 = vand.u32 2147483648, %v1808_v4  ;;  %v1835_v25 = vand.u32 2147483647, %v1808_v4  ;;  %vm1831_vm4 = vweird.f32 %v1808_v4 }
 0xc59   :  { %v1770_v23 = vadd.f32 %v9994_v51, %v1769_v8  ;;  %v1813_v54 = vsub.f32 1.0, %v1812_v53  ;;  %v9279_v53 = vld [vmem:[%s13585_s9] sm:$0xff] }
 0xc5a   :  { %v1838_v20 = vor.u32 1.1754944e-38, %v1837_v16  ;;  %vm1836_vm6 = vcmp.eq.f32.partialorder %v1835_v25, 8.507059e+37  ;;  %v10434_v16 = vld [vmem:[%s13576_s0 + $0x8] sm:$0xff] }
 0xc5b   :  { %v11277_v18 = vadd.f32 %v1788_v22, %v1770_v23  ;;  %v1814_v30 = vmul.f32 %v10116_v27, %v1813_v54 }
 0xc5d   :  { %v10118_v11 = vpop.eup %10117  ;;  %v8038_v19 = vmul.f32 -1.442695, %v11277_v18  ;;  %v1815_v59 = vadd.f32 %v10116_v27, %v1814_v30 }
 0xc5e   :  { %v10120_v46 = vpop.eup %10119  ;;  %v1809_v13 = vadd.f32 1.0, %v10118_v11 }
 0xc5f   :  { %10121 = vpow2.f32 %v8038_v19  ;;  %v1819_v57 = vsel %vm1818_vm14, %v10116_v27, %v1815_v59  ;;  %v1827_v58 = vmul.f32 %v10120_v46, %v1808_v4  ;;  %vm1832_vm3 = vweird.f32 %v10120_v46  ;;  %v9280_v4 = vld [vmem:[%s13585_s9 + $0x8] sm:$0xff] }
 0xc60   :  { %10123 = vrcp.f32 %v1809_v13  ;;  %v1824_v61 = vsel %vm1821_vm15, %v1823_v55, %v1819_v57  ;;  %vm1833_vm5 = vmor %vm1831_vm4, %vm1832_vm3  ;;  %v1852_v51 = vand.u32 2147483648, %v1809_v13  ;;  %v1850_v41 = vand.u32 2147483647, %v1809_v13  ;;  %1921 = vmatpush.bf16.msrb.mxu0 %v9280_v4 }
 0xc61   :  { %1875 = vrot.lane.b32.xlu2 %v1824_v61, %s10493_s20  ;;  %v1828_v62 = vsub.f32 1.0, %v1827_v58  ;;  %vm1846_vm8 = vweird.f32 %v1809_v13  ;;  %v10433_v61 = vld [vmem:[%s13576_s0 + $0x10] sm:$0xff] }
 0xc62   :  { %v1853_v26 = vor.u32 1.1754944e-38, %v1852_v51  ;;  %vm1851_vm10 = vcmp.eq.f32.partialorder %v1850_v41, 8.507059e+37  ;;  %v10435_v41 = vld [vmem:[%s13576_s0 + $0x18] sm:$0xff] }
 0xc63   :  { %v1829_v63 = vmul.f32 %v10120_v46, %v1828_v62  ;;  %v11308_v62 = vmul.f32 %v10433_v61, %v10624_v52 }
 0xc64   :  { %1922 = vmatpush.bf16.msrb.mxu0 %v9279_v53 }
 0xc65   :  { %v10122_v50 = vpop.eup %10121  ;;  %v1830_v3 = vadd.f32 %v10120_v46, %v1829_v63  ;;  %v11316_v63 = vmul.f32 %v10434_v16, %v10636_v10 }
 0xc66   :  { %v10124_v5 = vpop.eup %10123  ;;  %v1810_v34 = vadd.f32 1.0, %v10122_v50 }
 0xc67   :  { %v1834_v21 = vsel %vm1833_vm5, %v10120_v46, %v1830_v3  ;;  %v1842_v37 = vmul.f32 %v10124_v5, %v1809_v13  ;;  %vm1847_vm7 = vweird.f32 %v10124_v5 }
 0xc68   :  { %10125 = vrcp.f32 %v1810_v34  ;;  %v1839_v15 = vsel %vm1836_vm6, %v1838_v20, %v1834_v21  ;;  %vm1848_vm9 = vmor %vm1846_vm8, %vm1847_vm7  ;;  %v1867_v36 = vand.u32 2147483648, %v1810_v34  ;;  %v1865_v2 = vand.u32 2147483647, %v1810_v34  ;;  %v9282_v21 = vld [vmem:[%s13587_s11 + $0x8] sm:$0xff] }
 0xc69   :  { %1877 = vrot.lane.b32.xlu0 %v1839_v15, %s10493_s20  ;;  %v1843_v39 = vsub.f32 1.0, %v1842_v37  ;;  %vm1861_vm12 = vweird.f32 %v1810_v34  ;;  %10127 = vtanh.f32 %v11268_v17  ;;  %2008 = vmatpush.bf16.msrb.mxu2 %v9282_v21  ;;  %v9281_v15 = vld [vmem:[%s13587_s11] sm:$0xff] }
 0xc6a   :  { %v1868_v29 = vor.u32 1.1754944e-38, %v1867_v36  ;;  %vm1866_vm14 = vcmp.eq.f32.partialorder %v1865_v2, 8.507059e+37  ;;  %10129 = vtanh.f32 %v11271_v44  ;;  %v10436_v36 = vld [vmem:[%s13576_s0] sm:$0xff] }
 0xc6b   :  { %v1844_v33 = vmul.f32 %v10124_v5, %v1843_v39  ;;  %10131 = vtanh.f32 %v11274_v43  ;;  %v9995_v43 = vld [vmem:[%s13586_s10] ss:$0 sm:$0xff] }
 0xc6c   :  { %10133 = vtanh.f32 %v11277_v18 }
 0xc6d   :  { %v1845_v60 = vadd.f32 %v10124_v5, %v1844_v33  ;;  %2009 = vmatpush.bf16.msrb.mxu2 %v9281_v15 }
 0xc6e   :  { %v10126_v12 = vpop.eup %10125 }
 0xc6f   :  { %v1849_v42 = vsel %vm1848_vm9, %v10124_v5, %v1845_v60  ;;  %v1857_v35 = vmul.f32 %v10126_v12, %v1810_v34  ;;  %vm1862_vm11 = vweird.f32 %v10126_v12  ;;  %v10128_v23 = vpop.eup %10127  ;;  %v11336_v60 = vmul.f32 %v10435_v41, %v10622_v47 }
 0xc70   :  { %v1854_v38 = vsel %vm1851_vm10, %v1853_v26, %v1849_v42  ;;  %vm1863_vm13 = vmor %vm1861_vm12, %vm1862_vm11  ;;  %v10130_v54 = vpop.eup %10129 }
 0xc71   :  { %1879 = vrot.lane.b32.xlu1 %v1854_v38, %s10493_s20  ;;  %v1858_v31 = vsub.f32 1.0, %v1857_v35  ;;  %v10132_v19 = vpop.eup %10131 }
 0xc72   :  { %v10134_v59 = vpop.eup %10133 }
 0xc73   :  { %v1859_v48 = vmul.f32 %v10126_v12, %v1858_v31 }
 0xc75   :  { %v1860_v49 = vadd.f32 %v10126_v12, %v1859_v48  ;;  %v11348_v48 = vmul.f32 %v10436_v36, %v10634_v9 }
 0xc77   :  { %v1864_v14 = vsel %vm1863_vm13, %v10126_v12, %v1860_v49  ;;  %v9996_v49 = vld [vmem:[%s13588_s12] ss:$0 sm:$0xff] }
 0xc78   :  { %v1869_v27 = vsel %vm1866_vm14, %v1868_v29, %v1864_v14 }
 0xc79   :  { %1881 = vrot.lane.b32.xlu2 %v1869_v27, %s10493_s20 }
 0xc81   :  { %1957 = vrot.lane.b32.xlu2 %v9995_v43, %s10491_s14 }
 0xcbb   :  { %v1876_v8 = vpop.permute.xlu2 %1875 }
 0xcbc   :  { %v1887_v40 = vmul.f32 %v10128_v23, %v1876_v8 }
 0xcd3   :  { %v1882_v11 = vpop.permute.xlu2 %1881 }
 0xcd4   :  { %v1890_v17 = vmul.f32 %v10134_v59, %v1882_v11 }
 0xcdb   :  { %v1878_v22 = vpop.permute.xlu0 %1877  ;;  %v1958_v3 = vpop.permute.xlu2 %1957 }
 0xcdc   :  { %v1888_v30 = vmul.f32 %v10130_v54, %v1878_v22 }
 0xcde   :  { %v1895_v45 = vpack.c.bf16 %v1888_v30, %v1887_v40 }
 0xce0   :  { %8047 = vmatmul.msk.bf16.vlgmr.msrb.gmra.mxu0 %vm261_vm0, %v1895_v45 }
 0xce3   :  { %v1880_v46 = vpop.permute.xlu1 %1879 }
 0xce4   :  { %v1889_v13 = vmul.f32 %v10132_v19, %v1880_v46 }
 0xce6   :  { %v1896_v44 = vpack.c.bf16 %v1890_v17, %v1889_v13 }
 0xcf0   :  { %8048 = vmatmul.msk.bf16.gmra.mxu0 %vm261_vm0, %v1896_v44 }
 0xd5d   :  { %v1924_v55 = vpop.f32.mrf.mxu0 }
 0xd5e   :  { %1938 = vrot.lane.b32.xlu0 %v1924_v55, %s10491_s14 }
 0xd65   :  { %v1926_v18 = vpop.f32.mrf.mxu0 }
 0xd66   :  { %1940 = vrot.lane.b32.xlu1 %v1926_v18, %s10491_s14 }
 0xd6d   :  { %v1929_v57 = vpop.f32.mrf.mxu0 }
 0xd6e   :  { %1942 = vrot.lane.b32.xlu0 %v1929_v57, %s10491_s14 }
 0xd75   :  { %v1931_v58 = vpop.f32.mrf.mxu0 }
 0xd76   :  { %1944 = vrot.lane.b32.xlu1 %v1931_v58, %s10491_s14 }
 0xd7e   :  { %2037 = vrot.lane.b32.xlu1 %v11308_v62, %s10494_s18 }
 0xd86   :  { %2035 = vrot.lane.b32.xlu1 %v11316_v63, %s10494_s18 }
 0xdd0   :  { %v1939_v25 = vpop.permute.xlu0 %1938 }
 0xdd1   :  { %v1950_v50 = vadd.f32 %v1939_v25, %v11161_v24 }
 0xdd3   :  { %v1960_v20 = vadd.f32 %v1958_v3, %v1950_v50 }
 0xdd5   :  { %v1964_v51 = vmul.f32 %v1960_v20, %v10634_v9 }
 0xdd8   :  { %v1941_v5 = vpop.permute.xlu1 %1940 }
 0xdd9   :  { %v1951_v34 = vadd.f32 %v1941_v5, %v11165_v32  ;;  %v9999_v5 = vld [vmem:[%s13577_s3 + $0x4] ss:$0 sm:$0xff] }
 0xddb   :  { %v1961_v37 = vadd.f32 %v1958_v3, %v1951_v34  ;;  %v9997_v34 = vld [vmem:[%s13577_s3 + $0x5] ss:$0 sm:$0xff] }
 0xddd   :  { %v1965_v39 = vmul.f32 %v1961_v37, %v10636_v10  ;;  %v9998_v37 = vld [vmem:[%s13578_s4 + $0x1] ss:$0 sm:$0xff] }
 0xddf   :  { %v1972_v24 = vpack.c.bf16 %v1965_v39, %v1964_v51 }
 0xde0   :  { %v1943_v32 = vpop.permute.xlu0 %1942 }
 0xde1   :  { %1980 = vrot.lane.b32.xlu2 %v1972_v24, %s10493_s20  ;;  %v1952_v33 = vadd.f32 %v1943_v32, %v11169_v28 }
 0xde3   :  { %v1962_v26 = vadd.f32 %v1958_v3, %v1952_v33  ;;  %v10000_v33 = vld [vmem:[%s13577_s3 + $0x6] ss:$0 sm:$0xff] }
 0xde5   :  { %v1966_v38 = vmul.f32 %v1962_v26, %v10624_v52 }
 0xde8   :  { %v1945_v12 = vpop.permute.xlu1 %1944 }
 0xde9   :  { %v1953_v42 = vadd.f32 %v1945_v12, %v11176_v56  ;;  %2039 = vrot.lane.b32.xlu2 %v11336_v60, %s10494_s18  ;;  %v10001_v12 = vld [vmem:[%s13577_s3 + $0x7] ss:$0 sm:$0xff] }
 0xdeb   :  { %v1963_v35 = vadd.f32 %v1958_v3, %v1953_v42 }
 0xded   :  { %v1967_v31 = vmul.f32 %v1963_v35, %v10622_v47 }
 0xdef   :  { %v1973_v28 = vpack.c.bf16 %v1967_v31, %v1966_v38 }
 0xdf0   :  { %v2038_v27 = vpop.permute.xlu1 %2037 }
 0xdf1   :  { %1982 = vrot.lane.b32.xlu0 %v1973_v28, %s10493_s20 }
 0xdf8   :  { %v2036_v40 = vpop.permute.xlu1 %2035 }
 0xdf9   :  { %2033 = vrot.lane.b32.xlu0 %v11348_v48, %s10494_s18 }
 0xe3b   :  { %v1981_v56 = vpop.permute.xlu2 %1980 }
 0xe3c   :  { %8057 = vmatmul.msk.bf16.vlgmr.msrb.gmra.mxu2 %vm261_vm0, %v1981_v56 }
 0xe43   :  { %v2040_v44 = vpop.permute.xlu2 %2039 }
 0xe63   :  { %v1983_v2 = vpop.permute.xlu0 %1982 }
 0xe64   :  { %8058 = vmatmul.msk.bf16.gmra.mxu2 %vm261_vm0, %v1983_v2 }
 0xe6b   :  { %v2034_v53 = vpop.permute.xlu0 %2033 }
 0xebf   :  { %v2011_v29 = vpop.f32.mrf.mxu2 }
 0xec0   :  { %v2012_v14 = vadd.f32 %v9996_v49, %v2011_v29 }
 0xec2   :  { %v2021_v4 = vmul.f32 %v2012_v14, %v10634_v9 }
 0xec4   :  { %v11358_v8 = vadd.f32 %v2034_v53, %v2021_v4 }
 0xec6   :  { %2087 = vperm.xlu1 %9581, %v11358_v8   ;;  %2058 = vperm.xlu0 %9460, %v11358_v8  }
 0xec7   :  { %v2013_v23 = vpop.f32.mrf.mxu2 }
 0xec8   :  { %v2014_v54 = vadd.f32 %v9996_v49, %v2013_v23 }
 0xeca   :  { %v2022_v22 = vmul.f32 %v2014_v54, %v10636_v10 }
 0xecc   :  { %v11363_v30 = vadd.f32 %v2036_v40, %v2022_v22 }
 0xece   :  { %9583 = vset.pattern.permute.xlu1 %v10488_v1  ;;  %9582 = vset.pattern.permute.xlu0 %v10489_v6 }
 0xecf   :  { %2091 = vperm.xlu2 %9584, %v11363_v30   ;;  %2113 = vperm.xlu0 %9582, %v11358_v8  }
 0xed0   :  { %2063 = vperm.xlu1 %9583, %v11363_v30  }
 0xed7   :  { %9585 = vset.pattern.permute.xlu2 %v10488_v1  ;;  %9590 = vset.pattern.permute.xlu0 %v10488_v1 }
 0xed8   :  { %9586 = vset.pattern.permute.xlu1 %v10487_v0 }
 0xee7   :  { %v2016_v45 = vpop.f32.mrf.mxu2 }
 0xee8   :  { %v2017_v11 = vadd.f32 %v9996_v49, %v2016_v45 }
 0xeea   :  { %v2023_v19 = vmul.f32 %v2017_v11, %v10624_v52 }
 0xeec   :  { %v11374_v59 = vadd.f32 %v2038_v27, %v2023_v19 }
 0xeee   :  { %2068 = vperm.xlu2 %9585, %v11374_v59   ;;  %2095 = vperm.xlu1 %9586, %v11374_v59  }
 0xeef   :  { %v2018_v46 = vpop.f32.mrf.mxu2 }
 0xef0   :  { %v2019_v17 = vadd.f32 %v9996_v49, %v2018_v46 }
 0xef2   :  { %v2024_v13 = vmul.f32 %v2019_v17, %v10622_v47 }
 0xef4   :  { %v11379_v43 = vadd.f32 %v2040_v44, %v2024_v13 }
 0xef6   :  { %2073 = vperm.xlu0 %9590, %v11379_v43   ;;  %9587 = vset.pattern.permute.xlu2 %v10489_v6 }
 0xef7   :  { %9588 = vset.pattern.permute.xlu1 %v10490_v7  ;;  %2121 = vperm.xlu2 %9587, %v11374_v59  }
 0xef8   :  { %2147 = vperm.xlu1 %9588, %v11374_v59  }
 0xefe   :  { %9592 = vset.pattern.permute.xlu0 %v10489_v6 }
 0xeff   :  { %2125 = vperm.xlu0 %9592, %v11379_v43   ;;  %9591 = vset.pattern.permute.xlu2 %v10487_v0 }
 0xf00   :  { %9589 = vset.pattern.permute.xlu1 %v10489_v6  ;;  %2099 = vperm.xlu2 %9591, %v11379_v43  }
 0xf01   :  { %2117 = vperm.xlu1 %9589, %v11363_v30  }
 0xf07   :  { %9594 = vset.pattern.permute.xlu0 %v10490_v7 }
 0xf08   :  { %2143 = vperm.xlu0 %9594, %v11363_v30   ;;  %9593 = vset.pattern.permute.xlu2 %v10490_v7 }
 0xf09   :  { %2151 = vperm.xlu2 %9593, %v11379_v43   ;;  %9716 = vset.pattern.permute.xlu1 %v10487_v0 }
 0xf10   :  { %9717 = vset.pattern.permute.xlu0 %v10489_v6 }
 0xf11   :  { %2139 = vperm.xlu2 %9593, %v11358_v8  }
 0xf19   :  { %9715 = vset.pattern.permute.xlu2 %v10488_v1 }
 0xf29   :  { %v2092_v55 = vpop.permute.xlu2 %2091 }
 0xf2a   :  { %v2104_v11 = vmul.f32 %v9997_v34, %v2092_v55 }
 0xf38   :  { %v2088_v57 = vpop.permute.xlu1 %2087  ;;  %v2059_v58 = vpop.permute.xlu0 %2058 }
 0xf39   :  { %v2077_v42 = vmul.f32 %v9999_v5, %v2059_v58  ;;  %v2103_v54 = vmul.f32 %v9997_v34, %v2088_v57 }
 0xf3b   :  { %v2081_v29 = vadd.f32 %v9998_v37, %v2077_v42  ;;  %v11503_v42 = vld [vmem:[%s13580_s2 + $0x48] sm:$0xff] }
 0xf3d   :  { %v2107_v19 = vadd.f32 %v2103_v54, %v2081_v29 }
 0xf41   :  { %v2114_v25 = vpop.permute.xlu0 %2113 }
 0xf42   :  { %v2064_v16 = vpop.permute.xlu1 %2063  ;;  %v2129_v22 = vmul.f32 %v10000_v33, %v2114_v25 }
 0xf43   :  { %v2078_v28 = vmul.f32 %v9999_v5, %v2064_v16 }
 0xf45   :  { %v2082_v40 = vadd.f32 %v9998_v37, %v2078_v28 }
 0xf47   :  { %v2108_v58 = vadd.f32 %v2104_v11, %v2082_v40 }
 0xf48   :  { %v2069_v18 = vpop.permute.xlu2 %2068 }
 0xf49   :  { %v2079_v20 = vmul.f32 %v9999_v5, %v2069_v18  ;;  %v2133_v18 = vadd.f32 %v2129_v22, %v2107_v19  ;;  %v9290_v19 = vld [vmem:[%s13582_s5 + $0x178] sm:$0xff] }
 0xf4a   :  { %2384 = vmatpush.bf16.msra.mxu0 %v9290_v19 }
 0xf4b   :  { %v2083_v32 = vadd.f32 %v9998_v37, %v2079_v20  ;;  %v11434_v20 = vld [vmem:[%s13580_s2] sm:$0xff] }
 0xf51   :  { %v2122_v61 = vpop.permute.xlu2 %2121 }
 0xf52   :  { %v2131_v35 = vmul.f32 %v10000_v33, %v2122_v61 }
 0xf5a   :  { %v2100_v50 = vpop.permute.xlu2 %2099 }
 0xf5b   :  { %v2106_v38 = vmul.f32 %v9997_v34, %v2100_v50 }
 0xf60   :  { %v2096_v3 = vpop.permute.xlu1 %2095 }
 0xf61   :  { %v2105_v15 = vmul.f32 %v9997_v34, %v2096_v3 }
 0xf63   :  { %v2152_v39 = vpop.permute.xlu2 %2151  ;;  %v2109_v41 = vadd.f32 %v2105_v15, %v2083_v32  ;;  %v11455_v15 = vld [vmem:[%s13580_s2 + $0x18] sm:$0xff] }
 0xf64   :  { %v2158_v14 = vmul.f32 %v10001_v12, %v2152_v39  ;;  %v11462_v39 = vld [vmem:[%s13580_s2 + $0x20] sm:$0xff]  ;;  %v11483_v32 = vld [vmem:[%s13580_s2 + $0x38] sm:$0xff] }
 0xf65   :  { %v2135_v56 = vadd.f32 %v2131_v35, %v2109_v41  ;;  %v11492_v41 = vld [vmem:[%s13580_s2 + $0x40] sm:$0xff] }
 0xf68   :  { %v2074_v21 = vpop.permute.xlu0 %2073 }
 0xf69   :  { %v2080_v51 = vmul.f32 %v9999_v5, %v2074_v21  ;;  %v11441_v21 = vld [vmem:[%s13580_s2 + $0x8] sm:$0xff] }
 0xf6a   :  { %v2148_v24 = vpop.permute.xlu1 %2147 }
 0xf6b   :  { %v2084_v26 = vadd.f32 %v9998_v37, %v2080_v51  ;;  %v2157_v31 = vmul.f32 %v10001_v12, %v2148_v24  ;;  %v2140_v4 = vpop.permute.xlu2 %2139  ;;  %v11448_v37 = vld [vmem:[%s13580_s2 + $0x10] sm:$0xff]  ;;  %v11469_v51 = vld [vmem:[%s13580_s2 + $0x28] sm:$0xff] }
 0xf6c   :  { %v2155_v46 = vmul.f32 %v10001_v12, %v2140_v4  ;;  %v11476_v24 = vld [vmem:[%s13580_s2 + $0x30] sm:$0xff] }
 0xf6d   :  { %v2110_v2 = vadd.f32 %v2106_v38, %v2084_v26  ;;  %v2161_v27 = vadd.f32 %v2157_v31, %v2135_v56 }
 0xf6e   :  { %v2159_v57 = vadd.f32 %v2155_v46, %v2133_v18  ;;  %v9289_v46 = vld [vmem:[%s13582_s5 + $0x170] sm:$0xff] }
 0xf6f   :  { %v11416_v13 = vmul.f32 %v2161_v27, %v10624_v52  ;;  %2385 = vmatpush.bf16.msra.mxu0 %v9289_v46 }
 0xf70   :  { %v11424_v3 = vmul.f32 %v2159_v57, %v10634_v9  ;;  %v9287_v57 = vld [vmem:[%s13582_s5 + $0x160] sm:$0xff] }
 0xf71   :  { %v2126_v36 = vpop.permute.xlu0 %2125 }
 0xf72   :  { %v2132_v49 = vmul.f32 %v10000_v33, %v2126_v36 }
 0xf73   :  { %v2118_v23 = vpop.permute.xlu1 %2117 }
 0xf74   :  { %v2136_v53 = vadd.f32 %v2132_v49, %v2110_v2  ;;  %v2130_v17 = vmul.f32 %v10000_v33, %v2118_v23 }
 0xf76   :  { %v2162_v45 = vadd.f32 %v2158_v14, %v2136_v53  ;;  %v2134_v25 = vadd.f32 %v2130_v17, %v2108_v58  ;;  %v9288_v17 = vld [vmem:[%s13582_s5 + $0x168] sm:$0xff] }
 0xf77   :  { %2386 = vmatpush.bf16.msra.mxu0 %v9288_v17  ;;  %v9292_v58 = vld [vmem:[%s13582_s5 + $0x188] sm:$0xff] }
 0xf78   :  { %v11419_v44 = vmul.f32 %v2162_v45, %v10622_v47  ;;  %2409 = vmatpush.bf16.msra.mxu2 %v9292_v58 }
 0xf7a   :  { %v2144_v61 = vpop.permute.xlu0 %2143  ;;  %v2168_v16 = vpack.c.bf16 %v11419_v44, %v11416_v13 }
 0xf7b   :  { %v2156_v50 = vmul.f32 %v10001_v12, %v2144_v61  ;;  %v9291_v61 = vld [vmem:[%s13582_s5 + $0x180] sm:$0xff]  ;;  %2387 = vmatpush.bf16.msra.mxu0 %v9287_v57 }
 0xf7c   :  { %2175 = vmatpush.bf16.msra.mxu1 %v2168_v16  ;;  %2410 = vmatpush.bf16.msra.mxu2 %v9291_v61 }
 0xf7d   :  { %v2160_v55 = vadd.f32 %v2156_v50, %v2134_v25  ;;  %v9286_v50 = vld [vmem:[%s13582_s5 + $0x158] sm:$0xff] }
 0xf7f   :  { %v11427_v5 = vmul.f32 %v2160_v55, %v10636_v10  ;;  %2388 = vmatpush.bf16.msra.mxu0 %v9286_v50  ;;  %v9285_v55 = vld [vmem:[%s13582_s5 + $0x150] sm:$0xff] }
 0xf81   :  { %v2167_v34 = vpack.c.bf16 %v11427_v5, %v11424_v3 }
 0xf83   :  { %2176 = vmatpush.bf16.msra.mxu1 %v2167_v34  ;;  %2389 = vmatpush.bf16.msra.mxu0 %v9285_v55  ;;  %v9284_v34 = vld [vmem:[%s13582_s5 + $0x148] sm:$0xff] }
 0xf86   :  { %8064 = vmatmul.msk.bf16.vlgmr.msra.gmra.mxu1 %vm261_vm0, %v11434_v20 }
 0xf87   :  { %2390 = vmatpush.bf16.msra.mxu0 %v9284_v34 }
 0xf96   :  { %8065 = vmatmul.msk.bf16.gmra.mxu1 %vm261_vm0, %v11441_v21 }
 0xfa6   :  { %8066 = vmatmul.msk.bf16.gmra.mxu1 %vm261_vm0, %v11448_v37 }
 0xfb6   :  { %8067 = vmatmul.msk.bf16.gmra.mxu1 %vm261_vm0, %v11455_v15 }
 0xfc6   :  { %8068 = vmatmul.msk.bf16.gmra.mxu1 %vm261_vm0, %v11462_v39 }
 0xfd6   :  { %8069 = vmatmul.msk.bf16.gmra.mxu1 %vm261_vm0, %v11469_v51 }
 0xfe6   :  { %8070 = vmatmul.msk.bf16.gmra.mxu1 %vm261_vm0, %v11476_v24 }
 0xff6   :  { %8071 = vmatmul.msk.bf16.gmra.mxu1 %vm261_vm0, %v11483_v32 }
0x1003   :  { %v11487_v33 = vpop.f32.mrf.mxu1 }
0x1006   :  { %8072 = vmatmul.msk.bf16.gmra.mxu1 %vm261_vm0, %v11492_v41 }
0x100b   :  { %v11496_v12 = vpop.f32.mrf.mxu1 }
0x1013   :  { %v11498_v26 = vpop.f32.mrf.mxu1 }
0x1016   :  { %8073 = vmatmul.msk.bf16.gmra.mxu1 %vm261_vm0, %v11503_v42 }
0x101b   :  { %v11507_v35 = vpop.f32.mrf.mxu1 }
0x1023   :  { %v2188_v38 = vpop.f32.mrf.mxu1 }
0x102b   :  { %v2190_v31 = vpop.f32.mrf.mxu1 }
0x102c   :  { %v9595_v28 = vpack.i.bf16 %v2190_v31, %v2188_v38  ;;  %v9283_v31 = vld [vmem:[%s13582_s5 + $0x140] sm:$0xff] }
0x102d   :  { %2391 = vmatpush.bf16.msra.mxu0 %v9283_v31 }
0x102e   :  { %9596 = vrot.lane.b32.xlu1 %v9595_v28, %s10491_s14 }
0x1033   :  { %v2193_v36 = vpop.f32.mrf.mxu1 }
0x103b   :  { %v2195_v56 = vpop.f32.mrf.mxu1 }
0x103c   :  { %v9610_v27 = vpack.i.bf16 %v2195_v56, %v2193_v36 }
0x1043   :  { %v2198_v2 = vpop.f32.mrf.mxu1 }
0x104b   :  { %v2200_v49 = vpop.f32.mrf.mxu1 }
0x104c   :  { %v9600_v29 = vpack.i.bf16 %v2200_v49, %v2198_v2 }
0x104e   :  { %9601 = vrot.lane.b32.xlu2 %v9600_v29, %s10492_s19 }
0x1053   :  { %v2203_v14 = vpop.f32.mrf.mxu1 }
0x1056   :  { %9611 = vrot.lane.b32.xlu2 %v9610_v27, %s10491_s14 }
0x105b   :  { %v2205_v4 = vpop.f32.mrf.mxu1 }
0x105c   :  { %v9615_v53 = vpack.i.bf16 %v2205_v4, %v2203_v14 }
0x105e   :  { %9616 = vrot.lane.b32.xlu0 %v9615_v53, %s10492_s19 }
0x1063   :  { %v2208_v23 = vpop.f32.mrf.mxu1 }
0x106b   :  { %v2210_v54 = vpop.f32.mrf.mxu1 }
0x106c   :  { %v9605_v22 = vpack.i.bf16 %v2210_v54, %v2208_v23 }
0x106e   :  { %9606 = vrot.lane.b32.xlu1 %v9605_v22, %s10493_s20 }
0x1073   :  { %v2213_v40 = vpop.f32.mrf.mxu1 }
0x107b   :  { %v2215_v45 = vpop.f32.mrf.mxu1 }
0x107c   :  { %v9620_v11 = vpack.i.bf16 %v2215_v45, %v2213_v40 }
0x107e   :  { %9621 = vrot.lane.b32.xlu1 %v9620_v11, %s10493_s20 }
0x1083   :  { %v2218_v18 = vpop.f32.mrf.mxu1 }
0x108b   :  { %v2220_v16 = vpop.f32.mrf.mxu1 }
0x108c   :  { %v2310_v25 = vpack.c.bf16 %v2220_v16, %v2218_v18 }
0x108e   :  { %8135 = vmatmul.msk.bf16.vlgmr.msra.gmra.mxu2 %vm261_vm0, %v2310_v25 }
0x1093   :  { %v2223_v38 = vpop.f32.mrf.mxu1 }
0x109b   :  { %v2225_v28 = vpop.f32.mrf.mxu1 }
0x109c   :  { %v2312_v36 = vpack.c.bf16 %v2225_v28, %v2223_v38 }
0x109e   :  { %8136 = vmatmul.msk.bf16.gmra.mxu2 %vm261_vm0, %v2312_v36 }
0x10a0   :  { %v9597_v56 = vpop.permute.xlu1 %9596 }
0x10a1   :  { %v9599_v49 = vunpack.i.h.bf16 %v9597_v56  ;;  %v9598_v29 = vunpack.i.l.bf16 %v9597_v56  ;;  %v10002_v56 = vld [vmem:[%s13581_s6 + $0x4] ss:$0 sm:$0xff] }
0x10a3   :  { %v2277_v53 = vsel %vm261_vm0, %v11496_v12, %v9599_v49  ;;  %v2276_v23 = vsel %vm261_vm0, %v11487_v33, %v9598_v29 }
0x10a8   :  { %v9602_v2 = vpop.permute.xlu2 %9601 }
0x10a9   :  { %v9604_v14 = vunpack.i.h.bf16 %v9602_v2  ;;  %v9603_v27 = vunpack.i.l.bf16 %v9602_v2 }
0x10ab   :  { %v2281_v40 = vsel %vm403_vm1, %v2277_v53, %v9604_v14  ;;  %v2280_v45 = vsel %vm403_vm1, %v2276_v23, %v9603_v27 }
0x10b0   :  { %v9612_v17 = vpop.permute.xlu2 %9611 }
0x10b1   :  { %v9614_v58 = vunpack.i.h.bf16 %v9612_v17  ;;  %v9613_v61 = vunpack.i.l.bf16 %v9612_v17 }
0x10b3   :  { %v2279_v33 = vsel %vm261_vm0, %v11507_v35, %v9614_v58  ;;  %v2278_v25 = vsel %vm261_vm0, %v11498_v26, %v9613_v61 }
0x10d0   :  { %v9617_v18 = vpop.permute.xlu0 %9616 }
0x10d1   :  { %v9619_v12 = vunpack.i.h.bf16 %v9617_v18  ;;  %v9618_v16 = vunpack.i.l.bf16 %v9617_v18 }
0x10d3   :  { %v2282_v34 = vsel %vm403_vm1, %v2278_v25, %v9618_v16  ;;  %v2283_v38 = vsel %vm403_vm1, %v2279_v33, %v9619_v12 }
0x10e0   :  { %v9607_v4 = vpop.permute.xlu1 %9606 }
0x10e1   :  { %v9609_v54 = vunpack.i.h.bf16 %v9607_v4  ;;  %v9608_v22 = vunpack.i.l.bf16 %v9607_v4 }
0x10e3   :  { %v2285_v11 = vsel %vm408_vm2, %v2281_v40, %v9609_v54  ;;  %v2284_v19 = vsel %vm408_vm2, %v2280_v45, %v9608_v22 }
0x10e4   :  { %v2309_v46 = vpack.c.bf16 %v2285_v11, %v2284_v19 }
0x10e6   :  { %2392 = vmatmul.bf16.vlgmr.msra.gmra.mxu0 %v2309_v46 }
0x10f0   :  { %v9622_v57 = vpop.permute.xlu1 %9621 }
0x10f1   :  { %v9624_v50 = vunpack.i.h.bf16 %v9622_v57  ;;  %v9623_v55 = vunpack.i.l.bf16 %v9622_v57 }
0x10f3   :  { %v2286_v31 = vsel %vm408_vm2, %v2282_v34, %v9623_v55  ;;  %v2287_v28 = vsel %vm408_vm2, %v2283_v38, %v9624_v50 }
0x10f4   :  { %v2311_v36 = vpack.c.bf16 %v2287_v28, %v2286_v31 }
0x10f6   :  { %2397 = vmatmul.bf16.gmra.mxu0 %v2311_v36 }
0x1111   :  { %v2412_v35 = vpop.f32.mrf.mxu2 }
0x1119   :  { %v2414_v27 = vpop.f32.mrf.mxu2 }
0x1121   :  { %v2417_v45 = vpop.f32.mrf.mxu2 }
0x1129   :  { %v2419_v33 = vpop.f32.mrf.mxu2 }
0x1163   :  { %v2393_v2 = vpop.f32.mrf.mxu0 }
0x1164   :  { %v2394_v49 = vadd.f32 %v10002_v56, %v2393_v2 }
0x1166   :  { %v11566_v26 = vadd.f32 %v2412_v35, %v2394_v49 }
0x1168   :  { %v8137_v29 = vmul.f32 -1.442695, %v11566_v26 }
0x116a   :  { %10135 = vpow2.f32 %v8137_v29 }
0x116b   :  { %v2395_v14 = vpop.f32.mrf.mxu0 }
0x116c   :  { %v2396_v4 = vadd.f32 %v10002_v56, %v2395_v14 }
0x116e   :  { %v11569_v53 = vadd.f32 %v2414_v27, %v2396_v4 }
0x1170   :  { %v10136_v23 = vpop.eup %10135  ;;  %v8138_v54 = vmul.f32 -1.442695, %v11569_v53 }
0x1171   :  { %v2438_v22 = vadd.f32 1.0, %v10136_v23 }
0x1172   :  { %10137 = vpow2.f32 %v8138_v54 }
0x1173   :  { %10139 = vrcp.f32 %v2438_v22  ;;  %v2398_v40 = vpop.f32.mrf.mxu0  ;;  %v2453_v25 = vand.u32 2147483648, %v2438_v22  ;;  %v2451_v34 = vand.u32 2147483647, %v2438_v22  ;;  %vm2447_vm3 = vweird.f32 %v2438_v22 }
0x1174   :  { %v2399_v11 = vadd.f32 %v10002_v56, %v2398_v40 }
0x1175   :  { %v2454_v2 = vor.u32 1.1754944e-38, %v2453_v25  ;;  %vm2452_vm5 = vcmp.eq.f32.partialorder %v2451_v34, 8.507059e+37 }
0x1176   :  { %v11572_v19 = vadd.f32 %v2417_v45, %v2399_v11 }
0x1178   :  { %v10138_v46 = vpop.eup %10137  ;;  %v8139_v17 = vmul.f32 -1.442695, %v11572_v19 }
0x1179   :  { %v10140_v18 = vpop.eup %10139  ;;  %v2439_v58 = vadd.f32 1.0, %v10138_v46 }
0x117a   :  { %10141 = vpow2.f32 %v8139_v17  ;;  %v2443_v61 = vmul.f32 %v10140_v18, %v2438_v22  ;;  %vm2448_vm15 = vweird.f32 %v10140_v18 }
0x117b   :  { %10143 = vrcp.f32 %v2439_v58  ;;  %v2400_v12 = vpop.f32.mrf.mxu0  ;;  %vm2449_vm4 = vmor %vm2447_vm3, %vm2448_vm15  ;;  %v2468_v27 = vand.u32 2147483648, %v2439_v58  ;;  %v2466_v23 = vand.u32 2147483647, %v2439_v58  ;;  %vm2462_vm7 = vweird.f32 %v2439_v58 }
0x117c   :  { %v2401_v16 = vadd.f32 %v10002_v56, %v2400_v12  ;;  %v2444_v57 = vsub.f32 1.0, %v2443_v61 }
0x117d   :  { %v2469_v11 = vor.u32 1.1754944e-38, %v2468_v27  ;;  %vm2467_vm9 = vcmp.eq.f32.partialorder %v2466_v23, 8.507059e+37  ;;  %v9293_v27 = vld [vmem:[%s13584_s7 + $0x30] sm:$0xff] }
0x117e   :  { %v11575_v50 = vadd.f32 %v2419_v33, %v2401_v16  ;;  %v2445_v55 = vmul.f32 %v10140_v18, %v2444_v57 }
0x1180   :  { %v10142_v38 = vpop.eup %10141  ;;  %v8140_v31 = vmul.f32 -1.442695, %v11575_v50  ;;  %v2446_v28 = vadd.f32 %v10140_v18, %v2445_v55 }
0x1181   :  { %v10144_v36 = vpop.eup %10143  ;;  %v2440_v35 = vadd.f32 1.0, %v10142_v38 }
0x1182   :  { %10145 = vpow2.f32 %v8140_v31  ;;  %v2450_v49 = vsel %vm2449_vm4, %v10140_v18, %v2446_v28  ;;  %v2458_v56 = vmul.f32 %v10144_v36, %v2439_v58  ;;  %vm2463_vm6 = vweird.f32 %v10144_v36 }
0x1183   :  { %10147 = vrcp.f32 %v2440_v35  ;;  %v2455_v29 = vsel %vm2452_vm5, %v2454_v2, %v2450_v49  ;;  %vm2464_vm8 = vmor %vm2462_vm7, %vm2463_vm6  ;;  %v2483_v12 = vand.u32 2147483648, %v2440_v35  ;;  %v2481_v57 = vand.u32 2147483647, %v2440_v35 }
0x1184   :  { %2506 = vrot.lane.b32.xlu2 %v2455_v29, %s10493_s20  ;;  %v2459_v14 = vsub.f32 1.0, %v2458_v56  ;;  %vm2477_vm11 = vweird.f32 %v2440_v35 }
0x1185   :  { %v2484_v58 = vor.u32 1.1754944e-38, %v2483_v12  ;;  %vm2482_vm13 = vcmp.eq.f32.partialorder %v2481_v57, 8.507059e+37 }
0x1186   :  { %v2460_v4 = vmul.f32 %v10144_v36, %v2459_v14  ;;  %v9294_v14 = vld [vmem:[%s13584_s7 + $0x38] sm:$0xff] }
0x1187   :  { %2558 = vmatpush.bf16.msrb.mxu0 %v9294_v14 }
0x1188   :  { %v10146_v54 = vpop.eup %10145  ;;  %v2461_v40 = vadd.f32 %v10144_v36, %v2460_v4 }
0x1189   :  { %v10148_v22 = vpop.eup %10147  ;;  %v2441_v45 = vadd.f32 1.0, %v10146_v54 }
0x118a   :  { %v2465_v46 = vsel %vm2464_vm8, %v10144_v36, %v2461_v40  ;;  %v2473_v17 = vmul.f32 %v10148_v22, %v2440_v35  ;;  %vm2478_vm10 = vweird.f32 %v10148_v22 }
0x118b   :  { %10149 = vrcp.f32 %v2441_v45  ;;  %v2470_v18 = vsel %vm2467_vm9, %v2469_v11, %v2465_v46  ;;  %vm2479_vm12 = vmor %vm2477_vm11, %vm2478_vm10  ;;  %v2498_v28 = vand.u32 2147483648, %v2441_v45  ;;  %v2496_v2 = vand.u32 2147483647, %v2441_v45  ;;  %2559 = vmatpush.bf16.msrb.mxu0 %v9293_v27 }
0x118c   :  { %2508 = vrot.lane.b32.xlu0 %v2470_v18, %s10493_s20  ;;  %v2474_v61 = vsub.f32 1.0, %v2473_v17  ;;  %vm2492_vm15 = vweird.f32 %v2441_v45  ;;  %10151 = vtanh.f32 %v11566_v26 }
0x118d   :  { %v2499_v56 = vor.u32 1.1754944e-38, %v2498_v28  ;;  %vm2497_vm4 = vcmp.eq.f32.partialorder %v2496_v2, 8.507059e+37  ;;  %10153 = vtanh.f32 %v11569_v53 }
0x118e   :  { %v2475_v16 = vmul.f32 %v10148_v22, %v2474_v61  ;;  %10155 = vtanh.f32 %v11572_v19  ;;  %v10003_v19 = vld [vmem:[%s13583_s8 + $0x3] ss:$0 sm:$0xff] }
0x118f   :  { %10157 = vtanh.f32 %v11575_v50 }
0x1190   :  { %v2476_v33 = vadd.f32 %v10148_v22, %v2475_v16 }
0x1191   :  { %v10150_v25 = vpop.eup %10149 }
0x1192   :  { %v2480_v55 = vsel %vm2479_vm12, %v10148_v22, %v2476_v33  ;;  %v2488_v34 = vmul.f32 %v10150_v25, %v2441_v45  ;;  %vm2493_vm14 = vweird.f32 %v10150_v25  ;;  %v10152_v23 = vpop.eup %10151 }
0x1193   :  { %v2485_v38 = vsel %vm2482_vm13, %v2484_v58, %v2480_v55  ;;  %vm2494_vm3 = vmor %vm2492_vm15, %vm2493_vm14  ;;  %v10154_v54 = vpop.eup %10153 }
0x1194   :  { %2510 = vrot.lane.b32.xlu1 %v2485_v38, %s10493_s20  ;;  %v2489_v31 = vsub.f32 1.0, %v2488_v34  ;;  %v10156_v17 = vpop.eup %10155 }
0x1195   :  { %v10158_v18 = vpop.eup %10157 }
0x1196   :  { %v2490_v36 = vmul.f32 %v10150_v25, %v2489_v31 }
0x1198   :  { %v2491_v49 = vadd.f32 %v10150_v25, %v2490_v36 }
0x119a   :  { %v2495_v29 = vsel %vm2494_vm3, %v10150_v25, %v2491_v49 }
0x119b   :  { %v2500_v35 = vsel %vm2497_vm4, %v2499_v56, %v2495_v29 }
0x119c   :  { %2512 = vrot.lane.b32.xlu2 %v2500_v35, %s10493_s20 }
0x11de   :  { %v2507_v4 = vpop.permute.xlu2 %2506 }
0x11df   :  { %v2518_v22 = vmul.f32 %v10152_v23, %v2507_v4 }
0x11f6   :  { %v2513_v46 = vpop.permute.xlu2 %2512 }
0x11f7   :  { %v2521_v26 = vmul.f32 %v10158_v18, %v2513_v46 }
0x11fe   :  { %v2509_v40 = vpop.permute.xlu0 %2508 }
0x11ff   :  { %v2519_v45 = vmul.f32 %v10154_v54, %v2509_v40 }
0x1201   :  { %v2527_v11 = vpack.c.bf16 %v2519_v45, %v2518_v22 }
0x1203   :  { %8154 = vmatmul.msk.bf16.vlgmr.msrb.gmra.mxu0 %vm261_vm0, %v2527_v11 }
0x1206   :  { %v2511_v61 = vpop.permute.xlu1 %2510 }
0x1207   :  { %v2520_v12 = vmul.f32 %v10156_v17, %v2511_v61 }
0x1209   :  { %v2528_v53 = vpack.c.bf16 %v2521_v26, %v2520_v12 }
0x1213   :  { %8155 = vmatmul.msk.bf16.gmra.mxu0 %vm261_vm0, %v2528_v53 }
0x1280   :  { %v2561_v16 = vpop.f32.mrf.mxu0 }
0x1281   :  { %v11601_v55 = vadd.f32 %v10003_v19, %v2561_v16 }
0x1283   :  { %v2571_v36 = vadd.f32 %v11601_v55, %v11424_v3 }
0x1288   :  { %v2563_v57 = vpop.f32.mrf.mxu0 }
0x1289   :  { %v11599_v25 = vadd.f32 %v10003_v19, %v2563_v57 }
0x128b   :  { %v2572_v31 = vadd.f32 %v11599_v25, %v11427_v5  ;;  %v11625_v5 = vmul.f32 %v2571_v36, %v10634_v9  ;;  %v9303_v36 = vld [vmem:[%s13582_s5 + $0x1d0] sm:$0xff] }
0x128d   :  { %v11620_v56 = vmul.f32 %v2572_v31, %v10636_v10  ;;  %v9304_v31 = vld [vmem:[%s13582_s5 + $0x1d8] sm:$0xff] }
0x128e   :  { %2825 = vmatpush.bf16.msrb.mxu3 %v9304_v31 }
0x1290   :  { %v2566_v33 = vpop.f32.mrf.mxu0 }
0x1291   :  { %v11597_v50 = vadd.f32 %v10003_v19, %v2566_v33 }
0x1292   :  { %2826 = vmatpush.bf16.msrb.mxu3 %v9303_v36 }
0x1293   :  { %v2573_v34 = vadd.f32 %v11597_v50, %v11416_v13 }
0x1295   :  { %v11614_v2 = vmul.f32 %v2573_v34, %v10624_v52  ;;  %v9301_v34 = vld [vmem:[%s13582_s5 + $0x1c0] sm:$0xff] }
0x1298   :  { %v2568_v58 = vpop.f32.mrf.mxu0 }
0x1299   :  { %v11605_v38 = vadd.f32 %v10003_v19, %v2568_v58  ;;  %v9302_v19 = vld [vmem:[%s13582_s5 + $0x1c8] sm:$0xff] }
0x129a   :  { %2800 = vmatpush.bf16.msra.mxu0 %v9302_v19 }
0x129b   :  { %v2574_v28 = vadd.f32 %v11605_v38, %v11419_v44  ;;  %v2583_v44 = vpack.c.bf16 %v11620_v56, %v11625_v5 }
0x129d   :  { %v11617_v49 = vmul.f32 %v2574_v28, %v10622_v47  ;;  %v9300_v28 = vld [vmem:[%s13582_s5 + $0x1b8] sm:$0xff] }
0x129e   :  { %2801 = vmatpush.bf16.msra.mxu0 %v9301_v34 }
0x129f   :  { %v2584_v13 = vpack.c.bf16 %v11617_v49, %v11614_v2 }
0x12a1   :  { %2591 = vmatpush.bf16.msrb.mxu2 %v2584_v13  ;;  %v9299_v13 = vld [vmem:[%s13582_s5 + $0x1b0] sm:$0xff] }
0x12a2   :  { %2802 = vmatpush.bf16.msra.mxu0 %v9300_v28 }
0x12a5   :  { %2592 = vmatpush.bf16.msrb.mxu2 %v2583_v44 }
0x12a6   :  { %2803 = vmatpush.bf16.msra.mxu0 %v9299_v13 }
0x12a8   :  { %8156 = vmatmul.msk.bf16.vlgmr.msrb.gmra.mxu2 %vm261_vm0, %v11434_v20 }
0x12b8   :  { %8157 = vmatmul.msk.bf16.gmra.mxu2 %vm261_vm0, %v11441_v21 }
0x12c8   :  { %8158 = vmatmul.msk.bf16.gmra.mxu2 %vm261_vm0, %v11448_v37 }
0x12d8   :  { %8159 = vmatmul.msk.bf16.gmra.mxu2 %vm261_vm0, %v11455_v15 }
0x12e8   :  { %8160 = vmatmul.msk.bf16.gmra.mxu2 %vm261_vm0, %v11462_v39 }
0x12f8   :  { %8161 = vmatmul.msk.bf16.gmra.mxu2 %vm261_vm0, %v11469_v51 }
0x1308   :  { %8162 = vmatmul.msk.bf16.gmra.mxu2 %vm261_vm0, %v11476_v24 }
0x1318   :  { %8163 = vmatmul.msk.bf16.gmra.mxu2 %vm261_vm0, %v11483_v32 }
0x1328   :  { %8164 = vmatmul.msk.bf16.gmra.mxu2 %vm261_vm0, %v11492_v41 }
0x132b   :  { %v11647_v3 = vpop.f32.mrf.mxu2 }
0x1333   :  { %v11649_v29 = vpop.f32.mrf.mxu2 }
0x1338   :  { %8165 = vmatmul.msk.bf16.gmra.mxu2 %vm261_vm0, %v11503_v42 }
0x133b   :  { %v11653_v35 = vpop.f32.mrf.mxu2 }
0x1343   :  { %v11655_v14 = vpop.f32.mrf.mxu2 }
0x134b   :  { %v2604_v27 = vpop.f32.mrf.mxu2 }
0x1353   :  { %v2606_v4 = vpop.f32.mrf.mxu2 }
0x1354   :  { %v9625_v23 = vpack.i.bf16 %v2606_v4, %v2604_v27  ;;  %v9298_v4 = vld [vmem:[%s13582_s5 + $0x1a8] sm:$0xff] }
0x1355   :  { %2804 = vmatpush.bf16.msra.mxu0 %v9298_v4 }
0x1356   :  { %9626 = vrot.lane.b32.xlu0 %v9625_v23, %s10491_s14 }
0x135b   :  { %v2609_v54 = vpop.f32.mrf.mxu2 }
0x1363   :  { %v2611_v40 = vpop.f32.mrf.mxu2 }
0x1364   :  { %v9640_v22 = vpack.i.bf16 %v2611_v40, %v2609_v54  ;;  %v9297_v54 = vld [vmem:[%s13582_s5 + $0x1a0] sm:$0xff]  ;;  %v9296_v40 = vld [vmem:[%s13582_s5 + $0x198] sm:$0xff] }
0x1365   :  { %2805 = vmatpush.bf16.msra.mxu0 %v9297_v54 }
0x1366   :  { %9641 = vrot.lane.b32.xlu0 %v9640_v22, %s10491_s14 }
0x1369   :  { %2806 = vmatpush.bf16.msra.mxu0 %v9296_v40 }
0x136b   :  { %v2614_v45 = vpop.f32.mrf.mxu2 }
0x1373   :  { %v2616_v11 = vpop.f32.mrf.mxu2 }
0x1374   :  { %v9630_v46 = vpack.i.bf16 %v2616_v11, %v2614_v45  ;;  %v9295_v11 = vld [vmem:[%s13582_s5 + $0x190] sm:$0xff] }
0x1375   :  { %2807 = vmatpush.bf16.msra.mxu0 %v9295_v11 }
0x1376   :  { %9631 = vrot.lane.b32.xlu1 %v9630_v46, %s10492_s19 }
0x137b   :  { %v2619_v17 = vpop.f32.mrf.mxu2 }
0x1383   :  { %v2621_v18 = vpop.f32.mrf.mxu2 }
0x1384   :  { %v9645_v61 = vpack.i.bf16 %v2621_v18, %v2619_v17 }
0x1386   :  { %9646 = vrot.lane.b32.xlu1 %v9645_v61, %s10492_s19 }
0x138b   :  { %v2624_v26 = vpop.f32.mrf.mxu2 }
0x1393   :  { %v2626_v12 = vpop.f32.mrf.mxu2 }
0x1394   :  { %v9635_v53 = vpack.i.bf16 %v2626_v12, %v2624_v26 }
0x1396   :  { %9636 = vrot.lane.b32.xlu2 %v9635_v53, %s10493_s20 }
0x139b   :  { %v2629_v16 = vpop.f32.mrf.mxu2 }
0x13a3   :  { %v2631_v57 = vpop.f32.mrf.mxu2 }
0x13a4   :  { %v9650_v33 = vpack.i.bf16 %v2631_v57, %v2629_v16 }
0x13a6   :  { %9651 = vrot.lane.b32.xlu2 %v9650_v33, %s10493_s20 }
0x13ab   :  { %v2634_v58 = vpop.f32.mrf.mxu2 }
0x13b3   :  { %v2636_v44 = vpop.f32.mrf.mxu2 }
0x13b4   :  { %v2726_v27 = vpack.c.bf16 %v2636_v44, %v2634_v58 }
0x13b6   :  { %8227 = vmatmul.msk.bf16.vlgmr.msrb.gmra.mxu3 %vm261_vm0, %v2726_v27 }
0x13bb   :  { %v2639_v23 = vpop.f32.mrf.mxu2 }
0x13c3   :  { %v2641_v22 = vpop.f32.mrf.mxu2 }
0x13c4   :  { %v2728_v45 = vpack.c.bf16 %v2641_v22, %v2639_v23 }
0x13c6   :  { %8228 = vmatmul.msk.bf16.gmra.mxu3 %vm261_vm0, %v2728_v45 }
0x13c8   :  { %v9627_v46 = vpop.permute.xlu0 %9626 }
0x13c9   :  { %v9629_v18 = vunpack.i.h.bf16 %v9627_v46  ;;  %v9628_v61 = vunpack.i.l.bf16 %v9627_v46 }
0x13cb   :  { %v2693_v16 = vsel %vm261_vm0, %v11649_v29, %v9629_v18  ;;  %v2692_v57 = vsel %vm261_vm0, %v11647_v3, %v9628_v61 }
0x13d8   :  { %v9642_v13 = vpop.permute.xlu0 %9641 }
0x13d9   :  { %v9644_v27 = vunpack.i.h.bf16 %v9642_v13  ;;  %v9643_v4 = vunpack.i.l.bf16 %v9642_v13 }
0x13db   :  { %v2695_v3 = vsel %vm261_vm0, %v11655_v14, %v9644_v27  ;;  %v2694_v40 = vsel %vm261_vm0, %v11653_v35, %v9643_v4  ;;  %v10004_v14 = vld [vmem:[%s13581_s6 + $0x5] ss:$0 sm:$0xff] }
0x13e8   :  { %v9632_v17 = vpop.permute.xlu1 %9631 }
0x13e9   :  { %v9634_v26 = vunpack.i.h.bf16 %v9632_v17  ;;  %v9633_v12 = vunpack.i.l.bf16 %v9632_v17 }
0x13eb   :  { %v2697_v58 = vsel %vm403_vm1, %v2693_v16, %v9634_v26  ;;  %v2696_v34 = vsel %vm403_vm1, %v2692_v57, %v9633_v12 }
0x13f0   :  { %v9637_v53 = vpop.permute.xlu2 %9636 }
0x13f1   :  { %v9639_v33 = vunpack.i.h.bf16 %v9637_v53  ;;  %v9638_v19 = vunpack.i.l.bf16 %v9637_v53 }
0x13f3   :  { %v2701_v31 = vsel %vm408_vm2, %v2697_v58, %v9639_v33  ;;  %v2700_v28 = vsel %vm408_vm2, %v2696_v34, %v9638_v19 }
0x13f4   :  { %v2725_v36 = vpack.c.bf16 %v2701_v31, %v2700_v28 }
0x13f6   :  { %2808 = vmatmul.bf16.vlgmr.msra.gmra.mxu0 %v2725_v36 }
0x13f8   :  { %v9647_v44 = vpop.permute.xlu1 %9646 }
0x13f9   :  { %v9649_v29 = vunpack.i.h.bf16 %v9647_v44  ;;  %v9648_v23 = vunpack.i.l.bf16 %v9647_v44 }
0x13fb   :  { %v2698_v11 = vsel %vm403_vm1, %v2694_v40, %v9648_v23  ;;  %v2699_v46 = vsel %vm403_vm1, %v2695_v3, %v9649_v29 }
0x1400   :  { %v9652_v54 = vpop.permute.xlu2 %9651 }
0x1401   :  { %v9654_v22 = vunpack.i.h.bf16 %v9652_v54  ;;  %v9653_v45 = vunpack.i.l.bf16 %v9652_v54 }
0x1403   :  { %v2702_v17 = vsel %vm408_vm2, %v2698_v11, %v9653_v45  ;;  %v2703_v18 = vsel %vm408_vm2, %v2699_v46, %v9654_v22 }
0x1404   :  { %v2727_v61 = vpack.c.bf16 %v2703_v18, %v2702_v17 }
0x1406   :  { %2813 = vmatmul.bf16.gmra.mxu0 %v2727_v61 }
0x1439   :  { %v2828_v26 = vpop.f32.mrf.mxu3 }
0x1441   :  { %v2830_v57 = vpop.f32.mrf.mxu3 }
0x1449   :  { %v2833_v13 = vpop.f32.mrf.mxu3 }
0x1451   :  { %v2835_v11 = vpop.f32.mrf.mxu3 }
0x1473   :  { %v2809_v12 = vpop.f32.mrf.mxu0 }
0x1474   :  { %v2810_v53 = vadd.f32 %v10004_v14, %v2809_v12 }
0x1476   :  { %v11714_v35 = vadd.f32 %v2828_v26, %v2810_v53 }
0x1478   :  { %v8229_v16 = vmul.f32 -1.442695, %v11714_v35 }
0x147a   :  { %10159 = vpow2.f32 %v8229_v16 }
0x147b   :  { %v2811_v33 = vpop.f32.mrf.mxu0 }
0x147c   :  { %v2812_v19 = vadd.f32 %v10004_v14, %v2811_v33 }
0x147e   :  { %v11717_v58 = vadd.f32 %v2830_v57, %v2812_v19 }
0x1480   :  { %v10160_v34 = vpop.eup %10159  ;;  %v8230_v31 = vmul.f32 -1.442695, %v11717_v58 }
0x1481   :  { %v2854_v28 = vadd.f32 1.0, %v10160_v34 }
0x1482   :  { %10161 = vpow2.f32 %v8230_v31 }
0x1483   :  { %10163 = vrcp.f32 %v2854_v28  ;;  %v2814_v36 = vpop.f32.mrf.mxu0  ;;  %v2869_v46 = vand.u32 2147483648, %v2854_v28  ;;  %v2867_v61 = vand.u32 2147483647, %v2854_v28  ;;  %vm2863_vm6 = vweird.f32 %v2854_v28 }
0x1484   :  { %v2815_v44 = vadd.f32 %v10004_v14, %v2814_v36 }
0x1485   :  { %v2870_v33 = vor.u32 1.1754944e-38, %v2869_v46  ;;  %vm2868_vm8 = vcmp.eq.f32.partialorder %v2867_v61, 8.507059e+37 }
0x1486   :  { %v11720_v27 = vadd.f32 %v2833_v13, %v2815_v44 }
0x1488   :  { %v10162_v4 = vpop.eup %10161  ;;  %v8231_v29 = vmul.f32 -1.442695, %v11720_v27 }
0x1489   :  { %v10164_v23 = vpop.eup %10163  ;;  %v2855_v54 = vadd.f32 1.0, %v10162_v4 }
0x148a   :  { %10165 = vpow2.f32 %v8231_v29  ;;  %v2859_v3 = vmul.f32 %v10164_v23, %v2854_v28  ;;  %vm2864_vm5 = vweird.f32 %v10164_v23 }
0x148b   :  { %10167 = vrcp.f32 %v2855_v54  ;;  %v2816_v40 = vpop.f32.mrf.mxu0  ;;  %vm2865_vm7 = vmor %vm2863_vm6, %vm2864_vm5  ;;  %v2884_v36 = vand.u32 2147483648, %v2855_v54  ;;  %v2882_v44 = vand.u32 2147483647, %v2855_v54  ;;  %vm2878_vm10 = vweird.f32 %v2855_v54 }
0x148c   :  { %v2817_v22 = vadd.f32 %v10004_v14, %v2816_v40  ;;  %v2860_v45 = vsub.f32 1.0, %v2859_v3 }
0x148d   :  { %v2885_v40 = vor.u32 1.1754944e-38, %v2884_v36  ;;  %vm2883_vm12 = vcmp.eq.f32.partialorder %v2882_v44, 8.507059e+37 }
0x148e   :  { %v11723_v17 = vadd.f32 %v2835_v11, %v2817_v22  ;;  %v2861_v18 = vmul.f32 %v10164_v23, %v2860_v45 }
0x1490   :  { %v10166_v26 = vpop.eup %10165  ;;  %v8232_v12 = vmul.f32 -1.442695, %v11723_v17  ;;  %v2862_v53 = vadd.f32 %v10164_v23, %v2861_v18 }
0x1491   :  { %v10168_v16 = vpop.eup %10167  ;;  %v2856_v57 = vadd.f32 1.0, %v10166_v26 }
0x1492   :  { %10169 = vpow2.f32 %v8232_v12  ;;  %v2866_v19 = vsel %vm2865_vm7, %v10164_v23, %v2862_v53  ;;  %v2874_v14 = vmul.f32 %v10168_v16, %v2855_v54  ;;  %vm2879_vm9 = vweird.f32 %v10168_v16 }
0x1493   :  { %10171 = vrcp.f32 %v2856_v57  ;;  %v2871_v34 = vsel %vm2868_vm8, %v2870_v33, %v2866_v19  ;;  %vm2880_vm11 = vmor %vm2878_vm10, %vm2879_vm9  ;;  %v2899_v46 = vand.u32 2147483648, %v2856_v57  ;;  %v2897_v61 = vand.u32 2147483647, %v2856_v57 }
0x1494   :  { %2922 = vrot.lane.b32.xlu0 %v2871_v34, %s10493_s20  ;;  %v2875_v31 = vsub.f32 1.0, %v2874_v14  ;;  %vm2893_vm14 = vweird.f32 %v2856_v57 }
0x1495   :  { %v2900_v54 = vor.u32 1.1754944e-38, %v2899_v46  ;;  %vm2898_vm3 = vcmp.eq.f32.partialorder %v2897_v61, 8.507059e+37 }
0x1496   :  { %v2876_v13 = vmul.f32 %v10168_v16, %v2875_v31 }
0x1498   :  { %v10170_v4 = vpop.eup %10169  ;;  %v2877_v29 = vadd.f32 %v10168_v16, %v2876_v13 }
0x1499   :  { %v10172_v28 = vpop.eup %10171  ;;  %v2857_v3 = vadd.f32 1.0, %v10170_v4  ;;  %v9306_v4 = vld [vmem:[%s13584_s7 + $0x48] sm:$0xff] }
0x149a   :  { %v2881_v22 = vsel %vm2880_vm11, %v10168_v16, %v2877_v29  ;;  %v2889_v23 = vmul.f32 %v10172_v28, %v2856_v57  ;;  %vm2894_vm13 = vweird.f32 %v10172_v28  ;;  %2974 = vmatpush.bf16.msrb.mxu0 %v9306_v4  ;;  %v9305_v29 = vld [vmem:[%s13584_s7 + $0x40] sm:$0xff] }
0x149b   :  { %10173 = vrcp.f32 %v2857_v3  ;;  %v2886_v45 = vsel %vm2883_vm12, %v2885_v40, %v2881_v22  ;;  %vm2895_vm15 = vmor %vm2893_vm14, %vm2894_vm13  ;;  %v2914_v14 = vand.u32 2147483648, %v2857_v3  ;;  %v2912_v31 = vand.u32 2147483647, %v2857_v3 }
0x149c   :  { %2924 = vrot.lane.b32.xlu1 %v2886_v45, %s10493_s20  ;;  %v2890_v11 = vsub.f32 1.0, %v2889_v23  ;;  %vm2908_vm5 = vweird.f32 %v2857_v3  ;;  %10175 = vtanh.f32 %v11714_v35 }
0x149d   :  { %v2915_v13 = vor.u32 1.1754944e-38, %v2914_v14  ;;  %vm2913_vm7 = vcmp.eq.f32.partialorder %v2912_v31, 8.507059e+37  ;;  %10177 = vtanh.f32 %v11717_v58 }
0x149e   :  { %v2891_v18 = vmul.f32 %v10172_v28, %v2890_v11  ;;  %2975 = vmatpush.bf16.msrb.mxu0 %v9305_v29  ;;  %10179 = vtanh.f32 %v11720_v27 }
0x149f   :  { %10181 = vtanh.f32 %v11723_v17 }
0x14a0   :  { %v2892_v26 = vadd.f32 %v10172_v28, %v2891_v18 }
0x14a1   :  { %v10174_v12 = vpop.eup %10173 }
0x14a2   :  { %v2896_v53 = vsel %vm2895_vm15, %v10172_v28, %v2892_v26  ;;  %v2904_v33 = vmul.f32 %v10174_v12, %v2857_v3  ;;  %vm2909_vm4 = vweird.f32 %v10174_v12  ;;  %v10176_v3 = vpop.eup %10175 }
0x14a3   :  { %v2901_v16 = vsel %vm2898_vm3, %v2900_v54, %v2896_v53  ;;  %vm2910_vm6 = vmor %vm2908_vm5, %vm2909_vm4  ;;  %v10178_v40 = vpop.eup %10177 }
0x14a4   :  { %2926 = vrot.lane.b32.xlu2 %v2901_v16, %s10493_s20  ;;  %v2905_v19 = vsub.f32 1.0, %v2904_v33  ;;  %v10180_v18 = vpop.eup %10179  ;;  %v10005_v16 = vld [vmem:[%s13583_s8 + $0x4] ss:$0 sm:$0xff] }
0x14a5   :  { %v10182_v61 = vpop.eup %10181 }
0x14a6   :  { %v2906_v34 = vmul.f32 %v10174_v12, %v2905_v19 }
0x14a8   :  { %v2907_v36 = vadd.f32 %v10174_v12, %v2906_v34 }
0x14aa   :  { %v2911_v44 = vsel %vm2910_vm6, %v10174_v12, %v2907_v36 }
0x14ab   :  { %v2916_v57 = vsel %vm2913_vm7, %v2915_v13, %v2911_v44 }
0x14ac   :  { %2928 = vrot.lane.b32.xlu0 %v2916_v57, %s10493_s20 }
0x14fe   :  { %v2927_v46 = vpop.permute.xlu2 %2926 }
0x14ff   :  { %v2936_v35 = vmul.f32 %v10180_v18, %v2927_v46 }
0x1506   :  { %v2923_v28 = vpop.permute.xlu0 %2922 }
0x1507   :  { %v2934_v23 = vmul.f32 %v10176_v3, %v2923_v28 }
0x150e   :  { %v2925_v22 = vpop.permute.xlu1 %2924 }
0x150f   :  { %v2935_v45 = vmul.f32 %v10178_v40, %v2925_v22 }
0x1511   :  { %v2943_v11 = vpack.c.bf16 %v2935_v45, %v2934_v23 }
0x1513   :  { %8246 = vmatmul.msk.bf16.vlgmr.msrb.gmra.mxu0 %vm261_vm0, %v2943_v11 }
0x151e   :  { %v2929_v26 = vpop.permute.xlu0 %2928 }
0x151f   :  { %v2937_v12 = vmul.f32 %v10182_v61, %v2929_v26 }
0x1521   :  { %v2944_v58 = vpack.c.bf16 %v2937_v12, %v2936_v35  ;;  %v9314_v35 = vld [vmem:[%s13582_s5 + $0x218] sm:$0xff]  ;;  %v9313_v12 = vld [vmem:[%s13582_s5 + $0x210] sm:$0xff] }
0x1522   :  { %3216 = vmatpush.bf16.msra.mxu0 %v9314_v35 }
0x1523   :  { %8247 = vmatmul.msk.bf16.gmra.mxu0 %vm261_vm0, %v2944_v58  ;;  %v9316_v58 = vld [vmem:[%s13582_s5 + $0x228] sm:$0xff] }
0x1524   :  { %3241 = vmatpush.bf16.msrb.mxu1 %v9316_v58 }
0x1526   :  { %3217 = vmatpush.bf16.msra.mxu0 %v9313_v12 }
0x1590   :  { %v2977_v54 = vpop.f32.mrf.mxu0 }
0x1591   :  { %v11749_v14 = vadd.f32 %v10005_v16, %v2977_v54  ;;  %v9312_v54 = vld [vmem:[%s13582_s5 + $0x208] sm:$0xff] }
0x1592   :  { %3218 = vmatpush.bf16.msra.mxu0 %v9312_v54 }
0x1593   :  { %v2987_v44 = vadd.f32 %v11749_v14, %v11625_v5 }
0x1598   :  { %v2979_v53 = vpop.f32.mrf.mxu0 }
0x1599   :  { %v11747_v27 = vadd.f32 %v10005_v16, %v2979_v53  ;;  %v9311_v53 = vld [vmem:[%s13582_s5 + $0x200] sm:$0xff] }
0x159a   :  { %3219 = vmatpush.bf16.msra.mxu0 %v9311_v53 }
0x159b   :  { %v2988_v36 = vadd.f32 %v11747_v27, %v11620_v56  ;;  %v11773_v56 = vmul.f32 %v2987_v44, %v10634_v9 }
0x159d   :  { %v11768_v29 = vmul.f32 %v2988_v36, %v10636_v10  ;;  %v9315_v36 = vld [vmem:[%s13582_s5 + $0x220] sm:$0xff] }
0x159e   :  { %3242 = vmatpush.bf16.msrb.mxu1 %v9315_v36 }
0x15a0   :  { %v2982_v33 = vpop.f32.mrf.mxu0 }
0x15a1   :  { %v11745_v19 = vadd.f32 %v10005_v16, %v2982_v33  ;;  %v9310_v33 = vld [vmem:[%s13582_s5 + $0x1f8] sm:$0xff] }
0x15a2   :  { %3220 = vmatpush.bf16.msra.mxu0 %v9310_v33 }
0x15a3   :  { %v2989_v34 = vadd.f32 %v11745_v19, %v11614_v2 }
0x15a5   :  { %v11762_v57 = vmul.f32 %v2989_v34, %v10624_v52  ;;  %v9308_v34 = vld [vmem:[%s13582_s5 + $0x1e8] sm:$0xff] }
0x15a8   :  { %v2984_v17 = vpop.f32.mrf.mxu0 }
0x15a9   :  { %v11753_v31 = vadd.f32 %v10005_v16, %v2984_v17  ;;  %v9309_v16 = vld [vmem:[%s13582_s5 + $0x1f0] sm:$0xff] }
0x15aa   :  { %3221 = vmatpush.bf16.msra.mxu0 %v9309_v16 }
0x15ab   :  { %v2990_v13 = vadd.f32 %v11753_v31, %v11617_v49  ;;  %v2999_v49 = vpack.c.bf16 %v11768_v29, %v11773_v56 }
0x15ad   :  { %v11765_v4 = vmul.f32 %v2990_v13, %v10622_v47 }
0x15ae   :  { %3222 = vmatpush.bf16.msra.mxu0 %v9308_v34 }
0x15af   :  { %v3000_v2 = vpack.c.bf16 %v11765_v4, %v11762_v57 }
0x15b1   :  { %3007 = vmatpush.bf16.msra.mxu3 %v3000_v2 }
0x15b5   :  { %3008 = vmatpush.bf16.msra.mxu3 %v2999_v49  ;;  %v9307_v49 = vld [vmem:[%s13582_s5 + $0x1e0] sm:$0xff] }
0x15b6   :  { %3223 = vmatpush.bf16.msra.mxu0 %v9307_v49 }
0x15b8   :  { %8248 = vmatmul.msk.bf16.vlgmr.msra.gmra.mxu3 %vm261_vm0, %v11434_v20 }
0x15c8   :  { %8249 = vmatmul.msk.bf16.gmra.mxu3 %vm261_vm0, %v11441_v21 }
0x15d8   :  { %8250 = vmatmul.msk.bf16.gmra.mxu3 %vm261_vm0, %v11448_v37 }
0x15e8   :  { %8251 = vmatmul.msk.bf16.gmra.mxu3 %vm261_vm0, %v11455_v15 }
0x15f8   :  { %8252 = vmatmul.msk.bf16.gmra.mxu3 %vm261_vm0, %v11462_v39 }
0x1608   :  { %8253 = vmatmul.msk.bf16.gmra.mxu3 %vm261_vm0, %v11469_v51 }
0x1618   :  { %8254 = vmatmul.msk.bf16.gmra.mxu3 %vm261_vm0, %v11476_v24 }
0x1628   :  { %8255 = vmatmul.msk.bf16.gmra.mxu3 %vm261_vm0, %v11483_v32 }
0x1638   :  { %8256 = vmatmul.msk.bf16.gmra.mxu3 %vm261_vm0, %v11492_v41 }
0x163b   :  { %v11795_v20 = vpop.f32.mrf.mxu3 }
0x1643   :  { %v11797_v21 = vpop.f32.mrf.mxu3 }
0x1648   :  { %8257 = vmatmul.msk.bf16.gmra.mxu3 %vm261_vm0, %v11503_v42 }
0x164b   :  { %v11801_v37 = vpop.f32.mrf.mxu3 }
0x1653   :  { %v11803_v15 = vpop.f32.mrf.mxu3 }
0x165b   :  { %v3020_v39 = vpop.f32.mrf.mxu3 }
0x1663   :  { %v3022_v51 = vpop.f32.mrf.mxu3 }
0x1664   :  { %v9655_v24 = vpack.i.bf16 %v3022_v51, %v3020_v39 }
0x1666   :  { %9656 = vrot.lane.b32.xlu1 %v9655_v24, %s10491_s14 }
0x166b   :  { %v3025_v32 = vpop.f32.mrf.mxu3 }
0x1673   :  { %v3027_v5 = vpop.f32.mrf.mxu3 }
0x1674   :  { %v9670_v28 = vpack.i.bf16 %v3027_v5, %v3025_v32 }
0x1676   :  { %9671 = vrot.lane.b32.xlu1 %v9670_v28, %s10491_s14 }
0x167b   :  { %v3030_v41 = vpop.f32.mrf.mxu3 }
0x1683   :  { %v3032_v3 = vpop.f32.mrf.mxu3 }
0x1684   :  { %v9660_v40 = vpack.i.bf16 %v3032_v3, %v3030_v41 }
0x1686   :  { %9661 = vrot.lane.b32.xlu2 %v9660_v40, %s10492_s19 }
0x168b   :  { %v3035_v42 = vpop.f32.mrf.mxu3 }
0x1693   :  { %v3037_v22 = vpop.f32.mrf.mxu3 }
0x1694   :  { %v9675_v23 = vpack.i.bf16 %v3037_v22, %v3035_v42 }
0x1696   :  { %9676 = vrot.lane.b32.xlu2 %v9675_v23, %s10492_s19 }
0x169b   :  { %v3040_v45 = vpop.f32.mrf.mxu3 }
0x16a3   :  { %v3042_v11 = vpop.f32.mrf.mxu3 }
0x16a4   :  { %v9665_v46 = vpack.i.bf16 %v3042_v11, %v3040_v45 }
0x16a6   :  { %9666 = vrot.lane.b32.xlu0 %v9665_v46, %s10493_s20 }
0x16ab   :  { %v3045_v18 = vpop.f32.mrf.mxu3 }
0x16b3   :  { %v3047_v61 = vpop.f32.mrf.mxu3 }
0x16b4   :  { %v9680_v26 = vpack.i.bf16 %v3047_v61, %v3045_v18 }
0x16b6   :  { %9681 = vrot.lane.b32.xlu0 %v9680_v26, %s10493_s20 }
0x16bb   :  { %v3050_v17 = vpop.f32.mrf.mxu3 }
0x16c3   :  { %v3052_v13 = vpop.f32.mrf.mxu3 }
0x16c4   :  { %v3142_v44 = vpack.c.bf16 %v3052_v13, %v3050_v17 }
0x16c6   :  { %8319 = vmatmul.msk.bf16.vlgmr.msrb.gmra.mxu1 %vm261_vm0, %v3142_v44 }
0x16cb   :  { %v3055_v2 = vpop.f32.mrf.mxu3 }
0x16d3   :  { %v3057_v39 = vpop.f32.mrf.mxu3 }
0x16d4   :  { %v3144_v51 = vpack.c.bf16 %v3057_v39, %v3055_v2 }
0x16d6   :  { %8320 = vmatmul.msk.bf16.gmra.mxu1 %vm261_vm0, %v3144_v51 }
0x16d8   :  { %v9657_v24 = vpop.permute.xlu1 %9656 }
0x16d9   :  { %v9659_v5 = vunpack.i.h.bf16 %v9657_v24  ;;  %v9658_v28 = vunpack.i.l.bf16 %v9657_v24 }
0x16db   :  { %v3109_v42 = vsel %vm261_vm0, %v11797_v21, %v9659_v5  ;;  %v3108_v22 = vsel %vm261_vm0, %v11795_v20, %v9658_v28 }
0x16e0   :  { %v9662_v32 = vpop.permute.xlu2 %9661 }
0x16e1   :  { %v9664_v41 = vunpack.i.h.bf16 %v9662_v32  ;;  %v9663_v3 = vunpack.i.l.bf16 %v9662_v32 }
0x16e3   :  { %v3113_v11 = vsel %vm403_vm1, %v3109_v42, %v9664_v41  ;;  %v3112_v46 = vsel %vm403_vm1, %v3108_v22, %v9663_v3 }
0x16e8   :  { %v9672_v35 = vpop.permute.xlu1 %9671 }
0x16e9   :  { %v9674_v58 = vunpack.i.h.bf16 %v9672_v35  ;;  %v9673_v54 = vunpack.i.l.bf16 %v9672_v35 }
0x16eb   :  { %v3111_v20 = vsel %vm261_vm0, %v11803_v15, %v9674_v58  ;;  %v3110_v16 = vsel %vm261_vm0, %v11801_v37, %v9673_v54  ;;  %v10006_v15 = vld [vmem:[%s13581_s6 + $0x6] ss:$0 sm:$0xff] }
0x16f0   :  { %v9677_v12 = vpop.permute.xlu2 %9676 }
0x16f1   :  { %v9679_v21 = vunpack.i.h.bf16 %v9677_v12  ;;  %v9678_v53 = vunpack.i.l.bf16 %v9677_v12 }
0x16f3   :  { %v3114_v36 = vsel %vm403_vm1, %v3110_v16, %v9678_v53  ;;  %v3115_v13 = vsel %vm403_vm1, %v3111_v20, %v9679_v21 }
0x1718   :  { %v9667_v40 = vpop.permute.xlu0 %9666 }
0x1719   :  { %v9669_v23 = vunpack.i.h.bf16 %v9667_v40  ;;  %v9668_v45 = vunpack.i.l.bf16 %v9667_v40 }
0x171b   :  { %v3117_v18 = vsel %vm408_vm2, %v3113_v11, %v9669_v23  ;;  %v3116_v61 = vsel %vm408_vm2, %v3112_v46, %v9668_v45 }
0x171c   :  { %v3141_v26 = vpack.c.bf16 %v3117_v18, %v3116_v61 }
0x171e   :  { %3224 = vmatmul.bf16.vlgmr.msra.gmra.mxu0 %v3141_v26 }
0x1728   :  { %v9682_v33 = vpop.permute.xlu0 %9681 }
0x1729   :  { %v9684_v17 = vunpack.i.h.bf16 %v9682_v33  ;;  %v9683_v34 = vunpack.i.l.bf16 %v9682_v33 }
0x172b   :  { %v3118_v44 = vsel %vm408_vm2, %v3114_v36, %v9683_v34  ;;  %v3119_v2 = vsel %vm408_vm2, %v3115_v13, %v9684_v17 }
0x172c   :  { %v3143_v49 = vpack.c.bf16 %v3119_v2, %v3118_v44 }
0x172e   :  { %3229 = vmatmul.bf16.gmra.mxu0 %v3143_v49 }
0x1743   :  { %v3244_v39 = vpop.f32.mrf.mxu1 }
0x174b   :  { %v3246_v5 = vpop.f32.mrf.mxu1 }
0x1753   :  { %v3249_v45 = vpop.f32.mrf.mxu1 }
0x175b   :  { %v3251_v53 = vpop.f32.mrf.mxu1 }
0x179b   :  { %v3225_v51 = vpop.f32.mrf.mxu0 }
0x179c   :  { %v3226_v24 = vadd.f32 %v10006_v15, %v3225_v51 }
0x179e   :  { %v11862_v37 = vadd.f32 %v3244_v39, %v3226_v24 }
0x17a0   :  { %v8321_v32 = vmul.f32 -1.442695, %v11862_v37 }
0x17a2   :  { %10183 = vpow2.f32 %v8321_v32 }
0x17a3   :  { %v3227_v28 = vpop.f32.mrf.mxu0 }
0x17a4   :  { %v3228_v41 = vadd.f32 %v10006_v15, %v3227_v28 }
0x17a6   :  { %v11865_v3 = vadd.f32 %v3246_v5, %v3228_v41 }
0x17a8   :  { %v10184_v40 = vpop.eup %10183  ;;  %v8322_v42 = vmul.f32 -1.442695, %v11865_v3 }
0x17a9   :  { %v3270_v22 = vadd.f32 1.0, %v10184_v40 }
0x17aa   :  { %10185 = vpow2.f32 %v8322_v42 }
0x17ab   :  { %10187 = vrcp.f32 %v3270_v22  ;;  %v3230_v23 = vpop.f32.mrf.mxu0  ;;  %v3285_v33 = vand.u32 2147483648, %v3270_v22  ;;  %v3283_v17 = vand.u32 2147483647, %v3270_v22  ;;  %vm3279_vm9 = vweird.f32 %v3270_v22 }
0x17ac   :  { %v3231_v11 = vadd.f32 %v10006_v15, %v3230_v23 }
0x17ad   :  { %v3286_v49 = vor.u32 1.1754944e-38, %v3285_v33  ;;  %vm3284_vm11 = vcmp.eq.f32.partialorder %v3283_v17, 8.507059e+37 }
0x17ae   :  { %v11868_v46 = vadd.f32 %v3249_v45, %v3231_v11 }
0x17b0   :  { %v10186_v18 = vpop.eup %10185  ;;  %v8323_v61 = vmul.f32 -1.442695, %v11868_v46 }
0x17b1   :  { %v10188_v26 = vpop.eup %10187  ;;  %v3271_v35 = vadd.f32 1.0, %v10186_v18 }
0x17b2   :  { %10189 = vpow2.f32 %v8323_v61  ;;  %v3275_v12 = vmul.f32 %v10188_v26, %v3270_v22  ;;  %vm3280_vm8 = vweird.f32 %v10188_v26 }
0x17b3   :  { %10191 = vrcp.f32 %v3271_v35  ;;  %v3232_v58 = vpop.f32.mrf.mxu0  ;;  %vm3281_vm10 = vmor %vm3279_vm9, %vm3280_vm8  ;;  %v3300_v32 = vand.u32 2147483648, %v3271_v35  ;;  %v3298_v28 = vand.u32 2147483647, %v3271_v35  ;;  %vm3294_vm13 = vweird.f32 %v3271_v35 }
0x17b4   :  { %v3233_v54 = vadd.f32 %v10006_v15, %v3232_v58  ;;  %v3276_v21 = vsub.f32 1.0, %v3275_v12 }
0x17b5   :  { %v3301_v23 = vor.u32 1.1754944e-38, %v3300_v32  ;;  %vm3299_vm15 = vcmp.eq.f32.partialorder %v3298_v28, 8.507059e+37 }
0x17b6   :  { %v11871_v20 = vadd.f32 %v3251_v53, %v3233_v54  ;;  %v3277_v16 = vmul.f32 %v10188_v26, %v3276_v21 }
0x17b8   :  { %v10190_v34 = vpop.eup %10189  ;;  %v8324_v36 = vmul.f32 -1.442695, %v11871_v20  ;;  %v3278_v13 = vadd.f32 %v10188_v26, %v3277_v16 }
0x17b9   :  { %v10192_v44 = vpop.eup %10191  ;;  %v3272_v2 = vadd.f32 1.0, %v10190_v34 }
0x17ba   :  { %10193 = vpow2.f32 %v8324_v36  ;;  %v3282_v39 = vsel %vm3281_vm10, %v10188_v26, %v3278_v13  ;;  %v3290_v15 = vmul.f32 %v10192_v44, %v3271_v35  ;;  %vm3295_vm12 = vweird.f32 %v10192_v44 }
0x17bb   :  { %10195 = vrcp.f32 %v3272_v2  ;;  %v3287_v51 = vsel %vm3284_vm11, %v3286_v49, %v3282_v39  ;;  %vm3296_vm14 = vmor %vm3294_vm13, %vm3295_vm12  ;;  %v3315_v26 = vand.u32 2147483648, %v3272_v2  ;;  %v3313_v58 = vand.u32 2147483647, %v3272_v2 }
0x17bc   :  { %3338 = vrot.lane.b32.xlu1 %v3287_v51, %s10493_s20  ;;  %v3291_v24 = vsub.f32 1.0, %v3290_v15  ;;  %vm3309_vm4 = vweird.f32 %v3272_v2  ;;  %v9318_v15 = vld [vmem:[%s13584_s7 + $0x58] sm:$0xff]  ;;  %v9317_v51 = vld [vmem:[%s13584_s7 + $0x50] sm:$0xff] }
0x17bd   :  { %v3316_v35 = vor.u32 1.1754944e-38, %v3315_v26  ;;  %vm3314_vm6 = vcmp.eq.f32.partialorder %v3313_v58, 8.507059e+37  ;;  %3390 = vmatpush.bf16.msrb.mxu0 %v9318_v15  ;;  %v11955_v15 = vld [vmem:[%s13580_s2 + $0x28] sm:$0xff] }
0x17be   :  { %v3292_v5 = vmul.f32 %v10192_v44, %v3291_v24 }
0x17c0   :  { %v10194_v41 = vpop.eup %10193  ;;  %v3293_v40 = vadd.f32 %v10192_v44, %v3292_v5 }
0x17c1   :  { %v10196_v42 = vpop.eup %10195  ;;  %v3273_v22 = vadd.f32 1.0, %v10194_v41  ;;  %3391 = vmatpush.bf16.msrb.mxu0 %v9317_v51  ;;  %v11962_v51 = vld [vmem:[%s13580_s2 + $0x30] sm:$0xff] }
0x17c2   :  { %v3297_v45 = vsel %vm3296_vm14, %v10192_v44, %v3293_v40  ;;  %v3305_v11 = vmul.f32 %v10196_v42, %v3272_v2  ;;  %vm3310_vm3 = vweird.f32 %v10196_v42 }
0x17c3   :  { %10197 = vrcp.f32 %v3273_v22  ;;  %v3302_v18 = vsel %vm3299_vm15, %v3301_v23, %v3297_v45  ;;  %vm3311_vm5 = vmor %vm3309_vm4, %vm3310_vm3  ;;  %v3330_v34 = vand.u32 2147483648, %v3273_v22  ;;  %v3328_v13 = vand.u32 2147483647, %v3273_v22 }
0x17c4   :  { %3340 = vrot.lane.b32.xlu2 %v3302_v18, %s10493_s20  ;;  %v3306_v61 = vsub.f32 1.0, %v3305_v11  ;;  %vm3324_vm8 = vweird.f32 %v3273_v22  ;;  %10199 = vtanh.f32 %v11862_v37 }
0x17c5   :  { %v3331_v49 = vor.u32 1.1754944e-38, %v3330_v34  ;;  %vm3329_vm10 = vcmp.eq.f32.partialorder %v3328_v13, 8.507059e+37  ;;  %10201 = vtanh.f32 %v11865_v3 }
0x17c6   :  { %v3307_v12 = vmul.f32 %v10196_v42, %v3306_v61  ;;  %10203 = vtanh.f32 %v11868_v46  ;;  %v10007_v61 = vld [vmem:[%s13583_s8 + $0x5] ss:$0 sm:$0xff] }
0x17c7   :  { %10205 = vtanh.f32 %v11871_v20 }
0x17c8   :  { %v3308_v54 = vadd.f32 %v10196_v42, %v3307_v12  ;;  %v2995_v12 = vadd.f32 %v11749_v14, %v11601_v55  ;;  %v2998_v55 = vadd.f32 %v11753_v31, %v11605_v38 }
0x17c9   :  { %v10198_v21 = vpop.eup %10197 }
0x17ca   :  { %v3312_v53 = vsel %vm3311_vm5, %v10196_v42, %v3308_v54  ;;  %v3320_v33 = vmul.f32 %v10198_v21, %v3273_v22  ;;  %vm3325_vm7 = vweird.f32 %v10198_v21  ;;  %v10200_v32 = vpop.eup %10199  ;;  %v2996_v54 = vadd.f32 %v11747_v27, %v11599_v25 }
0x17cb   :  { %v3317_v16 = vsel %vm3314_vm6, %v3316_v35, %v3312_v53  ;;  %vm3326_vm9 = vmor %vm3324_vm8, %vm3325_vm7  ;;  %v10202_v5 = vpop.eup %10201 }
0x17cc   :  { %3342 = vrot.lane.b32.xlu0 %v3317_v16, %s10493_s20  ;;  %v3321_v17 = vsub.f32 1.0, %v3320_v33  ;;  %v10204_v23 = vpop.eup %10203  ;;  %v2997_v33 = vadd.f32 %v11745_v19, %v11597_v50 }
0x17cd   :  { %v10206_v45 = vpop.eup %10205 }
0x17ce   :  { %v3322_v36 = vmul.f32 %v10198_v21, %v3321_v17 }
0x17d0   :  { %v3323_v44 = vadd.f32 %v10198_v21, %v3322_v36 }
0x17d2   :  { %v3327_v39 = vsel %vm3326_vm9, %v10198_v21, %v3323_v44 }
0x17d3   :  { %v3332_v2 = vsel %vm3329_vm10, %v3331_v49, %v3327_v39 }
0x17d4   :  { %3344 = vrot.lane.b32.xlu1 %v3332_v2, %s10493_s20  ;;  %v11948_v2 = vld [vmem:[%s13580_s2 + $0x20] sm:$0xff] }
0x181e   :  { %v3341_v24 = vpop.permute.xlu2 %3340 }
0x181f   :  { %v3351_v41 = vmul.f32 %v10202_v5, %v3341_v24  ;;  %v11969_v24 = vld [vmem:[%s13580_s2 + $0x38] sm:$0xff]  ;;  %v11978_v5 = vld [vmem:[%s13580_s2 + $0x40] sm:$0xff] }
0x182e   :  { %v3339_v28 = vpop.permute.xlu1 %3338 }
0x182f   :  { %v3350_v40 = vmul.f32 %v10200_v32, %v3339_v28 }
0x1831   :  { %v3359_v42 = vpack.c.bf16 %v3351_v41, %v3350_v40  ;;  %v11989_v40 = vld [vmem:[%s13580_s2 + $0x48] sm:$0xff] }
0x1833   :  { %8338 = vmatmul.msk.bf16.vlgmr.msrb.gmra.mxu0 %vm261_vm0, %v3359_v42 }
0x183e   :  { %v3343_v22 = vpop.permute.xlu0 %3342 }
0x183f   :  { %v3352_v37 = vmul.f32 %v10204_v23, %v3343_v22 }
0x1846   :  { %v3345_v11 = vpop.permute.xlu1 %3344 }
0x1847   :  { %v3353_v18 = vmul.f32 %v10206_v45, %v3345_v11 }
0x1849   :  { %v3360_v3 = vpack.c.bf16 %v3353_v18, %v3352_v37 }
0x184b   :  { %8339 = vmatmul.msk.bf16.gmra.mxu0 %vm261_vm0, %v3360_v3 }
0x18b0   :  { %v3393_v26 = vpop.f32.mrf.mxu0 }
0x18b1   :  { %v3394_v46 = vadd.f32 %v10007_v61, %v3393_v26 }
0x18b3   :  { %v11895_v58 = vadd.f32 %v3394_v46, %v2995_v12  ;;  %v3403_v44 = vadd.f32 %v3394_v46, %v11773_v56  ;;  %v11941_v56 = vld [vmem:[%s13580_s2 + $0x18] sm:$0xff] }
0x18b5   :  { %v3407_v38 = vmul.f32 %v3403_v44, %v10634_v9  ;;  %v9327_v44 = vld [vmem:[%s13582_s5 + $0x270] sm:$0xff] }
0x18b8   :  { %v3395_v20 = vpop.f32.mrf.mxu0 }
0x18b9   :  { %v3396_v21 = vadd.f32 %v10007_v61, %v3395_v20 }
0x18bb   :  { %v11899_v35 = vadd.f32 %v3396_v21, %v2996_v54  ;;  %v3404_v13 = vadd.f32 %v3396_v21, %v11768_v29  ;;  %v11934_v29 = vld [vmem:[%s13580_s2 + $0x10] sm:$0xff] }
0x18bd   :  { %v3408_v49 = vmul.f32 %v3404_v13, %v10636_v10  ;;  %v9324_v13 = vld [vmem:[%s13582_s5 + $0x258] sm:$0xff] }
0x18bf   :  { %v3415_v31 = vpack.c.bf16 %v3408_v49, %v3407_v38  ;;  %v9323_v49 = vld [vmem:[%s13582_s5 + $0x250] sm:$0xff]  ;;  %v9321_v38 = vld [vmem:[%s13582_s5 + $0x240] sm:$0xff] }
0x18c8   :  { %v3398_v53 = vpop.f32.mrf.mxu0 }
0x18c9   :  { %v3399_v16 = vadd.f32 %v10007_v61, %v3398_v53 }
0x18cb   :  { %v11903_v17 = vadd.f32 %v3399_v16, %v2997_v33  ;;  %v3405_v14 = vadd.f32 %v3399_v16, %v11762_v57  ;;  %v11920_v57 = vld [vmem:[%s13580_s2] sm:$0xff] }
0x18cd   :  { %v3409_v50 = vmul.f32 %v3405_v14, %v10624_v52  ;;  %v9325_v14 = vld [vmem:[%s13582_s5 + $0x260] sm:$0xff] }
0x18d0   :  { %v3400_v34 = vpop.f32.mrf.mxu0 }
0x18d1   :  { %v3401_v36 = vadd.f32 %v10007_v61, %v3400_v34 }
0x18d3   :  { %v3406_v25 = vadd.f32 %v3401_v36, %v11765_v4  ;;  %v11910_v27 = vadd.f32 %v3401_v36, %v2998_v55  ;;  %v11927_v4 = vld [vmem:[%s13580_s2 + $0x8] sm:$0xff] }
0x18d4   :  { %v9326_v55 = vld [vmem:[%s13582_s5 + $0x268] sm:$0xff] }
0x18d5   :  { %v3410_v19 = vmul.f32 %v3406_v25, %v10622_v47  ;;  %3632 = vmatpush.bf16.msra.mxu0 %v9326_v55  ;;  %v9328_v25 = vld [vmem:[%s13582_s5 + $0x278] sm:$0xff] }
0x18d6   :  { %3657 = vmatpush.bf16.msra.mxu2 %v9328_v25 }
0x18d7   :  { %v3416_v39 = vpack.c.bf16 %v3410_v19, %v3409_v50 }
0x18d9   :  { %3423 = vmatpush.bf16.msra.mxu1 %v3416_v39  ;;  %3633 = vmatpush.bf16.msra.mxu0 %v9325_v14  ;;  %v9322_v39 = vld [vmem:[%s13582_s5 + $0x248] sm:$0xff] }
0x18da   :  { %3658 = vmatpush.bf16.msra.mxu2 %v9327_v44 }
0x18dd   :  { %3424 = vmatpush.bf16.msra.mxu1 %v3415_v31  ;;  %3634 = vmatpush.bf16.msra.mxu0 %v9324_v13  ;;  %v9320_v31 = vld [vmem:[%s13582_s5 + $0x238] sm:$0xff] }
0x18e0   :  { %8340 = vmatmul.msk.bf16.vlgmr.msra.gmra.mxu1 %vm261_vm0, %v11920_v57 }
0x18e1   :  { %3635 = vmatpush.bf16.msra.mxu0 %v9323_v49 }
0x18e5   :  { %3636 = vmatpush.bf16.msra.mxu0 %v9322_v39 }
0x18e9   :  { %3637 = vmatpush.bf16.msra.mxu0 %v9321_v38 }
0x18ed   :  { %3638 = vmatpush.bf16.msra.mxu0 %v9320_v31 }
0x18f0   :  { %8341 = vmatmul.msk.bf16.gmra.mxu1 %vm261_vm0, %v11927_v4 }
0x1900   :  { %8342 = vmatmul.msk.bf16.gmra.mxu1 %vm261_vm0, %v11934_v29 }
0x1910   :  { %8343 = vmatmul.msk.bf16.gmra.mxu1 %vm261_vm0, %v11941_v56 }
0x1920   :  { %8344 = vmatmul.msk.bf16.gmra.mxu1 %vm261_vm0, %v11948_v2 }
0x1930   :  { %8345 = vmatmul.msk.bf16.gmra.mxu1 %vm261_vm0, %v11955_v15 }
0x1940   :  { %8346 = vmatmul.msk.bf16.gmra.mxu1 %vm261_vm0, %v11962_v51 }
0x1950   :  { %8347 = vmatmul.msk.bf16.gmra.mxu1 %vm261_vm0, %v11969_v24 }
0x195d   :  { %v11973_v32 = vpop.f32.mrf.mxu1 }
0x1960   :  { %8348 = vmatmul.msk.bf16.gmra.mxu1 %vm261_vm0, %v11978_v5 }
0x1965   :  { %v11982_v28 = vpop.f32.mrf.mxu1 }
0x196d   :  { %v11984_v41 = vpop.f32.mrf.mxu1 }
0x1970   :  { %8349 = vmatmul.msk.bf16.gmra.mxu1 %vm261_vm0, %v11989_v40 }
0x1975   :  { %v11993_v42 = vpop.f32.mrf.mxu1 }
0x197d   :  { %v3436_v22 = vpop.f32.mrf.mxu1 }
0x1985   :  { %v3438_v23 = vpop.f32.mrf.mxu1 }
0x1986   :  { %v9685_v45 = vpack.i.bf16 %v3438_v23, %v3436_v22  ;;  %v9319_v23 = vld [vmem:[%s13582_s5 + $0x230] sm:$0xff] }
0x1987   :  { %3639 = vmatpush.bf16.msra.mxu0 %v9319_v23 }
0x1988   :  { %9686 = vrot.lane.b32.xlu2 %v9685_v45, %s10491_s14 }
0x198d   :  { %v3441_v11 = vpop.f32.mrf.mxu1 }
0x1995   :  { %v3443_v37 = vpop.f32.mrf.mxu1 }
0x1996   :  { %v9700_v18 = vpack.i.bf16 %v3443_v37, %v3441_v11 }
0x1998   :  { %9701 = vrot.lane.b32.xlu2 %v9700_v18, %s10491_s14 }
0x199d   :  { %v3446_v3 = vpop.f32.mrf.mxu1 }
0x19a5   :  { %v3448_v61 = vpop.f32.mrf.mxu1 }
0x19a6   :  { %v9690_v26 = vpack.i.bf16 %v3448_v61, %v3446_v3 }
0x19a8   :  { %9691 = vrot.lane.b32.xlu0 %v9690_v26, %s10492_s19 }
0x19ad   :  { %v3451_v12 = vpop.f32.mrf.mxu1 }
0x19b5   :  { %v3453_v46 = vpop.f32.mrf.mxu1 }
0x19b6   :  { %v9705_v20 = vpack.i.bf16 %v3453_v46, %v3451_v12 }
0x19b8   :  { %9706 = vrot.lane.b32.xlu0 %v9705_v20, %s10492_s19 }
0x19bd   :  { %v3456_v54 = vpop.f32.mrf.mxu1 }
0x19c5   :  { %v3458_v21 = vpop.f32.mrf.mxu1 }
0x19c6   :  { %v9695_v53 = vpack.i.bf16 %v3458_v21, %v3456_v54 }
0x19c8   :  { %9696 = vrot.lane.b32.xlu1 %v9695_v53, %s10493_s20 }
0x19cd   :  { %v3461_v33 = vpop.f32.mrf.mxu1 }
0x19d5   :  { %v3463_v16 = vpop.f32.mrf.mxu1 }
0x19d6   :  { %v9710_v34 = vpack.i.bf16 %v3463_v16, %v3461_v33 }
0x19d8   :  { %9711 = vrot.lane.b32.xlu1 %v9710_v34, %s10493_s20 }
0x19dd   :  { %v3466_v36 = vpop.f32.mrf.mxu1 }
0x19e2   :  { %v9687_v37 = vpop.permute.xlu2 %9686 }
0x19e3   :  { %v9689_v3 = vunpack.i.h.bf16 %v9687_v37  ;;  %v9688_v61 = vunpack.i.l.bf16 %v9687_v37  ;;  %v10008_v37 = vld [vmem:[%s13581_s6 + $0x7] ss:$0 sm:$0xff] }
0x19e5   :  { %v3468_v50 = vpop.f32.mrf.mxu1  ;;  %v3525_v20 = vsel %vm261_vm0, %v11982_v28, %v9689_v3  ;;  %v3524_v54 = vsel %vm261_vm0, %v11973_v32, %v9688_v61 }
0x19e6   :  { %v3558_v19 = vpack.c.bf16 %v3468_v50, %v3466_v36 }
0x19e8   :  { %8411 = vmatmul.msk.bf16.vlgmr.msra.gmra.mxu2 %vm261_vm0, %v3558_v19 }
0x19ed   :  { %v3471_v22 = vpop.f32.mrf.mxu1 }
0x19f2   :  { %v9702_v36 = vpop.permute.xlu2 %9701 }
0x19f3   :  { %v9704_v25 = vunpack.i.h.bf16 %v9702_v36  ;;  %v9703_v44 = vunpack.i.l.bf16 %v9702_v36 }
0x19f5   :  { %v3473_v45 = vpop.f32.mrf.mxu1  ;;  %v3527_v32 = vsel %vm261_vm0, %v11993_v42, %v9704_v25  ;;  %v3526_v49 = vsel %vm261_vm0, %v11984_v41, %v9703_v44 }
0x19f6   :  { %v3560_v11 = vpack.c.bf16 %v3473_v45, %v3471_v22 }
0x19f8   :  { %8412 = vmatmul.msk.bf16.gmra.mxu2 %vm261_vm0, %v3560_v11 }
0x1a1a   :  { %v9692_v18 = vpop.permute.xlu0 %9691 }
0x1a1b   :  { %v9694_v26 = vunpack.i.h.bf16 %v9692_v18  ;;  %v9693_v12 = vunpack.i.l.bf16 %v9692_v18 }
0x1a1d   :  { %v3529_v33 = vsel %vm403_vm1, %v3525_v20, %v9694_v26  ;;  %v3528_v16 = vsel %vm403_vm1, %v3524_v54, %v9693_v12 }
0x1a2a   :  { %v9707_v13 = vpop.permute.xlu0 %9706 }
0x1a2b   :  { %v9709_v28 = vunpack.i.h.bf16 %v9707_v13  ;;  %v9708_v50 = vunpack.i.l.bf16 %v9707_v13 }
0x1a2d   :  { %v3531_v31 = vsel %vm403_vm1, %v3527_v32, %v9709_v28  ;;  %v3530_v22 = vsel %vm403_vm1, %v3526_v49, %v9708_v50 }
0x1a3a   :  { %v9697_v46 = vpop.permute.xlu1 %9696 }
0x1a3b   :  { %v9699_v21 = vunpack.i.h.bf16 %v9697_v46  ;;  %v9698_v53 = vunpack.i.l.bf16 %v9697_v46 }
0x1a3d   :  { %v3533_v34 = vsel %vm408_vm2, %v3529_v33, %v9699_v21  ;;  %v3532_v55 = vsel %vm408_vm2, %v3528_v16, %v9698_v53 }
0x1a3e   :  { %v3557_v14 = vpack.c.bf16 %v3533_v34, %v3532_v55 }
0x1a40   :  { %3640 = vmatmul.bf16.vlgmr.msra.gmra.mxu0 %v3557_v14 }
0x1a4a   :  { %v9712_v19 = vpop.permute.xlu1 %9711 }
0x1a4b   :  { %v9714_v39 = vunpack.i.h.bf16 %v9712_v19  ;;  %v9713_v38 = vunpack.i.l.bf16 %v9712_v19 }
0x1a4d   :  { %v3534_v23 = vsel %vm408_vm2, %v3530_v22, %v9713_v38  ;;  %v3535_v45 = vsel %vm408_vm2, %v3531_v31, %v9714_v39 }
0x1a4e   :  { %v3559_v11 = vpack.c.bf16 %v3535_v45, %v3534_v23 }
0x1a50   :  { %3645 = vmatmul.bf16.gmra.mxu0 %v3559_v11 }
0x1a6b   :  { %v3660_v42 = vpop.f32.mrf.mxu2 }
0x1a73   :  { %v3662_v12 = vpop.f32.mrf.mxu2 }
0x1a7b   :  { %v3665_v16 = vpop.f32.mrf.mxu2 }
0x1a83   :  { %v3667_v32 = vpop.f32.mrf.mxu2 }
0x1abd   :  { %v3641_v18 = vpop.f32.mrf.mxu0 }
0x1abe   :  { %v3642_v3 = vadd.f32 %v10008_v37, %v3641_v18 }
0x1ac0   :  { %v12052_v41 = vadd.f32 %v3660_v42, %v3642_v3 }
0x1ac2   :  { %v8413_v61 = vmul.f32 -1.442695, %v12052_v41 }
0x1ac4   :  { %10207 = vpow2.f32 %v8413_v61 }
0x1ac5   :  { %v3643_v26 = vpop.f32.mrf.mxu0 }
0x1ac6   :  { %v3644_v46 = vadd.f32 %v10008_v37, %v3643_v26 }
0x1ac8   :  { %v12055_v20 = vadd.f32 %v3662_v12, %v3644_v46 }
0x1aca   :  { %v10208_v54 = vpop.eup %10207  ;;  %v8414_v21 = vmul.f32 -1.442695, %v12055_v20 }
0x1acb   :  { %v3686_v53 = vadd.f32 1.0, %v10208_v54 }
0x1acc   :  { %10209 = vpow2.f32 %v8414_v21 }
0x1acd   :  { %10211 = vrcp.f32 %v3686_v53  ;;  %v3646_v33 = vpop.f32.mrf.mxu0  ;;  %v3701_v49 = vand.u32 2147483648, %v3686_v53  ;;  %v3699_v31 = vand.u32 2147483647, %v3686_v53  ;;  %vm3695_vm12 = vweird.f32 %v3686_v53 }
0x1ace   :  { %v3647_v34 = vadd.f32 %v10008_v37, %v3646_v33 }
0x1acf   :  { %v3702_v18 = vor.u32 1.1754944e-38, %v3701_v49  ;;  %vm3700_vm14 = vcmp.eq.f32.partialorder %v3699_v31, 8.507059e+37 }
0x1ad0   :  { %v12058_v55 = vadd.f32 %v3665_v16, %v3647_v34 }
0x1ad2   :  { %v10210_v14 = vpop.eup %10209  ;;  %v8415_v36 = vmul.f32 -1.442695, %v12058_v55 }
0x1ad3   :  { %v10212_v13 = vpop.eup %10211  ;;  %v3687_v25 = vadd.f32 1.0, %v10210_v14 }
0x1ad4   :  { %10213 = vpow2.f32 %v8415_v36  ;;  %v3691_v44 = vmul.f32 %v10212_v13, %v3686_v53  ;;  %vm3696_vm11 = vweird.f32 %v10212_v13 }
0x1ad5   :  { %10215 = vrcp.f32 %v3687_v25  ;;  %v3648_v28 = vpop.f32.mrf.mxu0  ;;  %vm3697_vm13 = vmor %vm3695_vm12, %vm3696_vm11  ;;  %v3716_v12 = vand.u32 2147483648, %v3687_v25  ;;  %v3714_v54 = vand.u32 2147483647, %v3687_v25  ;;  %vm3710_vm3 = vweird.f32 %v3687_v25 }
0x1ad6   :  { %v3649_v50 = vadd.f32 %v10008_v37, %v3648_v28  ;;  %v3692_v19 = vsub.f32 1.0, %v3691_v44 }
0x1ad7   :  { %v3717_v34 = vor.u32 1.1754944e-38, %v3716_v12  ;;  %vm3715_vm5 = vcmp.eq.f32.partialorder %v3714_v54, 8.507059e+37  ;;  %v9329_v12 = vld [vmem:[%s13585_s9 + $0x10] sm:$0xff] }
0x1ad8   :  { %v12061_v39 = vadd.f32 %v3667_v32, %v3649_v50  ;;  %v3693_v38 = vmul.f32 %v10212_v13, %v3692_v19 }
0x1ada   :  { %v10214_v22 = vpop.eup %10213  ;;  %v8416_v23 = vmul.f32 -1.442695, %v12061_v39  ;;  %v3694_v45 = vadd.f32 %v10212_v13, %v3693_v38 }
0x1adb   :  { %v10216_v11 = vpop.eup %10215  ;;  %v3688_v42 = vadd.f32 1.0, %v10214_v22 }
0x1adc   :  { %10217 = vpow2.f32 %v8416_v23  ;;  %v3698_v3 = vsel %vm3697_vm13, %v10212_v13, %v3694_v45  ;;  %v3706_v37 = vmul.f32 %v10216_v11, %v3687_v25  ;;  %vm3711_vm15 = vweird.f32 %v10216_v11 }
0x1add   :  { %10219 = vrcp.f32 %v3688_v42  ;;  %v3703_v61 = vsel %vm3700_vm14, %v3702_v18, %v3698_v3  ;;  %vm3712_vm4 = vmor %vm3710_vm3, %vm3711_vm15  ;;  %v3731_v28 = vand.u32 2147483648, %v3688_v42  ;;  %v3729_v19 = vand.u32 2147483647, %v3688_v42 }
0x1ade   :  { %3754 = vrot.lane.b32.xlu2 %v3703_v61, %s10493_s20  ;;  %v3707_v26 = vsub.f32 1.0, %v3706_v37  ;;  %vm3725_vm7 = vweird.f32 %v3688_v42 }
0x1adf   :  { %v3732_v25 = vor.u32 1.1754944e-38, %v3731_v28  ;;  %vm3730_vm9 = vcmp.eq.f32.partialorder %v3729_v19, 8.507059e+37 }
0x1ae0   :  { %v3708_v46 = vmul.f32 %v10216_v11, %v3707_v26  ;;  %v9330_v26 = vld [vmem:[%s13585_s9 + $0x18] sm:$0xff] }
0x1ae1   :  { %3801 = vmatpush.bf16.msrb.mxu0 %v9330_v26 }
0x1ae2   :  { %v10218_v21 = vpop.eup %10217  ;;  %v3709_v33 = vadd.f32 %v10216_v11, %v3708_v46 }
0x1ae3   :  { %v10220_v53 = vpop.eup %10219  ;;  %v3689_v16 = vadd.f32 1.0, %v10218_v21 }
0x1ae4   :  { %v3713_v14 = vsel %vm3712_vm4, %v10216_v11, %v3709_v33  ;;  %v3721_v36 = vmul.f32 %v10220_v53, %v3688_v42  ;;  %vm3726_vm6 = vweird.f32 %v10220_v53 }
0x1ae5   :  { %10221 = vrcp.f32 %v3689_v16  ;;  %v3718_v13 = vsel %vm3715_vm5, %v3717_v34, %v3713_v14  ;;  %vm3727_vm8 = vmor %vm3725_vm7, %vm3726_vm6  ;;  %v3746_v45 = vand.u32 2147483648, %v3689_v16  ;;  %v3744_v18 = vand.u32 2147483647, %v3689_v16  ;;  %3802 = vmatpush.bf16.msrb.mxu0 %v9329_v12 }
0x1ae6   :  { %3756 = vrot.lane.b32.xlu0 %v3718_v13, %s10493_s20  ;;  %v3722_v44 = vsub.f32 1.0, %v3721_v36  ;;  %vm3740_vm11 = vweird.f32 %v3689_v16  ;;  %10223 = vtanh.f32 %v12052_v41 }
0x1ae7   :  { %v3747_v37 = vor.u32 1.1754944e-38, %v3746_v45  ;;  %vm3745_vm13 = vcmp.eq.f32.partialorder %v3744_v18, 8.507059e+37  ;;  %10225 = vtanh.f32 %v12055_v20 }
0x1ae8   :  { %v3723_v50 = vmul.f32 %v10220_v53, %v3722_v44  ;;  %10227 = vtanh.f32 %v12058_v55  ;;  %v10009_v55 = vld [vmem:[%s13586_s10 + $0x1] ss:$0 sm:$0xff] }
0x1ae9   :  { %10229 = vtanh.f32 %v12061_v39 }
0x1aea   :  { %v3724_v32 = vadd.f32 %v10220_v53, %v3723_v50 }
0x1aeb   :  { %v10222_v49 = vpop.eup %10221 }
0x1aec   :  { %v3728_v38 = vsel %vm3727_vm8, %v10220_v53, %v3724_v32  ;;  %v3736_v31 = vmul.f32 %v10222_v49, %v3689_v16  ;;  %vm3741_vm10 = vweird.f32 %v10222_v49  ;;  %v10224_v54 = vpop.eup %10223 }
0x1aed   :  { %v3733_v22 = vsel %vm3730_vm9, %v3732_v25, %v3728_v38  ;;  %vm3742_vm12 = vmor %vm3740_vm11, %vm3741_vm10  ;;  %v10226_v21 = vpop.eup %10225  ;;  %v9331_v38 = vld [vmem:[%s13587_s11 + $0x10] sm:$0xff] }
0x1aee   :  { %3758 = vrot.lane.b32.xlu1 %v3733_v22, %s10493_s20  ;;  %v3737_v23 = vsub.f32 1.0, %v3736_v31  ;;  %v10228_v36 = vpop.eup %10227 }
0x1aef   :  { %v10230_v13 = vpop.eup %10229 }
0x1af0   :  { %v3738_v11 = vmul.f32 %v10222_v49, %v3737_v23 }
0x1af2   :  { %v3739_v3 = vadd.f32 %v10222_v49, %v3738_v11 }
0x1af4   :  { %v3743_v61 = vsel %vm3742_vm12, %v10222_v49, %v3739_v3  ;;  %v9332_v49 = vld [vmem:[%s13587_s11 + $0x18] sm:$0xff] }
0x1af5   :  { %v3748_v42 = vsel %vm3745_vm13, %v3747_v37, %v3743_v61  ;;  %3891 = vmatpush.bf16.msrb.mxu2 %v9332_v49 }
0x1af6   :  { %3760 = vrot.lane.b32.xlu2 %v3748_v42, %s10493_s20 }
0x1af9   :  { %3892 = vmatpush.bf16.msrb.mxu2 %v9331_v38 }
0x1afe   :  { %3838 = vrot.lane.b32.xlu2 %v10009_v55, %s10491_s14 }
0x1b38   :  { %v3755_v46 = vpop.permute.xlu2 %3754 }
0x1b39   :  { %v3766_v53 = vmul.f32 %v10224_v54, %v3755_v46 }
0x1b50   :  { %v3761_v14 = vpop.permute.xlu2 %3760 }
0x1b51   :  { %v3769_v41 = vmul.f32 %v10230_v13, %v3761_v14 }
0x1b58   :  { %v3757_v33 = vpop.permute.xlu0 %3756  ;;  %v3839_v22 = vpop.permute.xlu2 %3838 }
0x1b59   :  { %v3767_v16 = vmul.f32 %v10226_v21, %v3757_v33 }
0x1b5b   :  { %v3775_v34 = vpack.c.bf16 %v3767_v16, %v3766_v53 }
0x1b5d   :  { %8429 = vmatmul.msk.bf16.vlgmr.msrb.gmra.mxu0 %vm261_vm0, %v3775_v34 }
0x1b60   :  { %v3759_v44 = vpop.permute.xlu1 %3758 }
0x1b61   :  { %v3768_v28 = vmul.f32 %v10228_v36, %v3759_v44 }
0x1b63   :  { %v3776_v20 = vpack.c.bf16 %v3769_v41, %v3768_v28 }
0x1b6d   :  { %8430 = vmatmul.msk.bf16.gmra.mxu0 %vm261_vm0, %v3776_v20 }
0x1bda   :  { %v3804_v50 = vpop.f32.mrf.mxu0 }
0x1bdb   :  { %3818 = vrot.lane.b32.xlu0 %v3804_v50, %s10491_s14 }
0x1be2   :  { %v3806_v39 = vpop.f32.mrf.mxu0 }
0x1be3   :  { %3820 = vrot.lane.b32.xlu1 %v3806_v39, %s10491_s14 }
0x1bea   :  { %v3809_v19 = vpop.f32.mrf.mxu0 }
0x1beb   :  { %3822 = vrot.lane.b32.xlu0 %v3809_v19, %s10491_s14 }
0x1bf2   :  { %v3811_v32 = vpop.f32.mrf.mxu0 }
0x1bf3   :  { %3824 = vrot.lane.b32.xlu1 %v3811_v32, %s10491_s14 }
0x1c4d   :  { %v3819_v25 = vpop.permute.xlu0 %3818 }
0x1c4e   :  { %v3830_v31 = vadd.f32 %v3819_v25, %v11895_v58 }
0x1c50   :  { %v3841_v45 = vadd.f32 %v3839_v22, %v3830_v31 }
0x1c52   :  { %v3845_v37 = vmul.f32 %v3841_v45, %v10634_v9  ;;  %v10012_v45 = vld [vmem:[%s13577_s3 + $0x8] ss:$0 sm:$0xff] }
0x1c55   :  { %v3821_v23 = vpop.permute.xlu1 %3820 }
0x1c56   :  { %v3831_v11 = vadd.f32 %v3821_v23, %v11899_v35 }
0x1c58   :  { %v3842_v18 = vadd.f32 %v3839_v22, %v3831_v11 }
0x1c5a   :  { %v3846_v3 = vmul.f32 %v3842_v18, %v10636_v10 }
0x1c5c   :  { %v3854_v61 = vpack.c.bf16 %v3846_v3, %v3845_v37  ;;  %v10011_v37 = vld [vmem:[%s13578_s4 + $0x2] ss:$0 sm:$0xff] }
0x1c5d   :  { %v3823_v42 = vpop.permute.xlu0 %3822 }
0x1c5e   :  { %3863 = vrot.lane.b32.xlu2 %v3854_v61, %s10493_s20  ;;  %v3832_v26 = vadd.f32 %v3823_v42, %v11903_v17  ;;  %v10010_v17 = vld [vmem:[%s13588_s12 + $0x1] ss:$0 sm:$0xff]  ;;  %v10013_v61 = vld [vmem:[%s13577_s3 + $0x9] ss:$0 sm:$0xff] }
0x1c60   :  { %v3843_v46 = vadd.f32 %v3839_v22, %v3832_v26 }
0x1c62   :  { %v3847_v21 = vmul.f32 %v3843_v46, %v10624_v52 }
0x1c65   :  { %v3825_v12 = vpop.permute.xlu1 %3824 }
0x1c66   :  { %v3833_v58 = vadd.f32 %v3825_v12, %v11910_v27 }
0x1c68   :  { %v3844_v54 = vadd.f32 %v3839_v22, %v3833_v58  ;;  %v10014_v58 = vld [vmem:[%s13577_s3 + $0xa] ss:$0 sm:$0xff] }
0x1c6a   :  { %v3848_v35 = vmul.f32 %v3844_v54, %v10622_v47  ;;  %v10015_v54 = vld [vmem:[%s13577_s3 + $0xb] ss:$0 sm:$0xff] }
0x1c6c   :  { %v3855_v33 = vpack.c.bf16 %v3848_v35, %v3847_v21 }
0x1c6e   :  { %3865 = vrot.lane.b32.xlu0 %v3855_v33, %s10493_s20 }
0x1cb8   :  { %v3864_v53 = vpop.permute.xlu2 %3863 }
0x1cb9   :  { %8445 = vmatmul.msk.bf16.vlgmr.msrb.gmra.mxu2 %vm261_vm0, %v3864_v53 }
0x1ce0   :  { %v3866_v16 = vpop.permute.xlu0 %3865 }
0x1ce1   :  { %8446 = vmatmul.msk.bf16.gmra.mxu2 %vm261_vm0, %v3866_v16 }
0x1d3c   :  { %v3894_v34 = vpop.f32.mrf.mxu2 }
0x1d3d   :  { %v3895_v27 = vadd.f32 %v10010_v17, %v3894_v34 }
0x1d3f   :  { %v3904_v14 = vmul.f32 %v3895_v27, %v10634_v9 }
0x1d41   :  { %v12111_v36 = vadd.f32 %v3904_v14, %v11348_v48 }
0x1d43   :  { %3921 = vperm.xlu2 %9715, %v12111_v36   ;;  %3950 = vperm.xlu1 %9716, %v12111_v36  }
0x1d44   :  { %3976 = vperm.xlu0 %9717, %v12111_v36   ;;  %v3896_v13 = vpop.f32.mrf.mxu2 }
0x1d45   :  { %v3897_v44 = vadd.f32 %v10010_v17, %v3896_v13 }
0x1d47   :  { %v3905_v41 = vmul.f32 %v3897_v44, %v10636_v10 }
0x1d49   :  { %v12118_v28 = vadd.f32 %v3905_v41, %v11316_v63 }
0x1d4b   :  { %9719 = vset.pattern.permute.xlu2 %v10487_v0  ;;  %9718 = vset.pattern.permute.xlu1 %v10488_v1 }
0x1d4c   :  { %3954 = vperm.xlu2 %9719, %v12118_v28   ;;  %3926 = vperm.xlu1 %9718, %v12118_v28  }
0x1d4d   :  { %9720 = vset.pattern.permute.xlu0 %v10487_v0 }
0x1d54   :  { %9721 = vset.pattern.permute.xlu2 %v10489_v6 }
0x1d64   :  { %v3899_v48 = vpop.f32.mrf.mxu2 }
0x1d65   :  { %v3900_v20 = vadd.f32 %v10010_v17, %v3899_v48 }
0x1d67   :  { %v3906_v55 = vmul.f32 %v3900_v20, %v10624_v52 }
0x1d69   :  { %v12128_v50 = vadd.f32 %v3906_v55, %v11308_v62 }
0x1d6b   :  { %3984 = vperm.xlu2 %9721, %v12128_v50   ;;  %3958 = vperm.xlu0 %9720, %v12128_v50  }
0x1d6c   :  { %3931 = vperm.xlu1 %9718, %v12128_v50   ;;  %v3901_v63 = vpop.f32.mrf.mxu2 }
0x1d6d   :  { %v3902_v39 = vadd.f32 %v10010_v17, %v3901_v63 }
0x1d6f   :  { %v3907_v19 = vmul.f32 %v3902_v39, %v10622_v47 }
0x1d71   :  { %v12135_v32 = vadd.f32 %v3907_v19, %v11336_v60 }
0x1d73   :  { %9723 = vset.pattern.permute.xlu2 %v10488_v1  ;;  %9726 = vset.pattern.permute.xlu0 %v10489_v6 }
0x1d74   :  { %9722 = vset.pattern.permute.xlu1 %v10490_v7  ;;  %3936 = vperm.xlu2 %9723, %v12135_v32  }
0x1d75   :  { %3988 = vperm.xlu0 %9726, %v12135_v32   ;;  %4010 = vperm.xlu1 %9722, %v12128_v50  }
0x1d7c   :  { %9727 = vset.pattern.permute.xlu2 %v10490_v7 }
0x1d7d   :  { %9728 = vset.pattern.permute.xlu0 %v10490_v7  ;;  %9724 = vset.pattern.permute.xlu1 %v10487_v0 }
0x1d7e   :  { %4014 = vperm.xlu2 %9727, %v12135_v32   ;;  %4006 = vperm.xlu0 %9728, %v12118_v28  }
0x1d7f   :  { %3962 = vperm.xlu1 %9724, %v12135_v32  }
0x1d86   :  { %4002 = vperm.xlu2 %9727, %v12111_v36   ;;  %9851 = vset.pattern.permute.xlu0 %v10489_v6 }
0x1d87   :  { %9725 = vset.pattern.permute.xlu1 %v10489_v6 }
0x1d88   :  { %3980 = vperm.xlu1 %9725, %v12118_v28  }
0x1d8e   :  { %9849 = vset.pattern.permute.xlu2 %v10488_v1 }
0x1d90   :  { %9850 = vset.pattern.permute.xlu1 %v10487_v0 }
0x1d9d   :  { %v3922_v62 = vpop.permute.xlu2 %3921 }
0x1d9e   :  { %v3940_v33 = vmul.f32 %v10012_v45, %v3922_v62 }
0x1da0   :  { %v3944_v20 = vadd.f32 %v10011_v37, %v3940_v33 }
0x1da6   :  { %v3955_v49 = vpop.permute.xlu2 %3954 }
0x1db5   :  { %v3951_v60 = vpop.permute.xlu1 %3950 }
0x1db6   :  { %v3977_v31 = vpop.permute.xlu0 %3976  ;;  %v3966_v14 = vmul.f32 %v10013_v61, %v3951_v60 }
0x1db7   :  { %v3992_v62 = vmul.f32 %v10014_v58, %v3977_v31 }
0x1dbe   :  { %v3927_v25 = vpop.permute.xlu1 %3926 }
0x1dbf   :  { %v3941_v13 = vmul.f32 %v10012_v45, %v3927_v25 }
0x1dc5   :  { %v3985_v38 = vpop.permute.xlu2 %3984 }
0x1dc6   :  { %v3994_v16 = vmul.f32 %v10014_v58, %v3985_v38 }
0x1dce   :  { %v3937_v23 = vpop.permute.xlu2 %3936 }
0x1dcf   :  { %v3943_v12 = vmul.f32 %v10012_v45, %v3937_v23  ;;  %v3945_v23 = vadd.f32 %v10011_v37, %v3941_v13 }
0x1dd1   :  { %v3947_v17 = vadd.f32 %v10011_v37, %v3943_v12 }
0x1dd8   :  { %v4015_v42 = vpop.permute.xlu2 %4014 }
0x1dd9   :  { %v4021_v55 = vmul.f32 %v10015_v54, %v4015_v42 }
0x1ddd   :  { %v3959_v11 = vpop.permute.xlu0 %3958 }
0x1dde   :  { %v3932_v22 = vpop.permute.xlu1 %3931  ;;  %v3968_v46 = vmul.f32 %v10013_v61, %v3959_v11 }
0x1ddf   :  { %v3942_v3 = vmul.f32 %v10012_v45, %v3932_v22  ;;  %v3970_v22 = vadd.f32 %v3966_v14, %v3944_v20  ;;  %v9340_v20 = vld [vmem:[%s13582_s5 + $0x2b8] sm:$0xff] }
0x1de0   :  { %v4003_v63 = vpop.permute.xlu2 %4002  ;;  %4247 = vmatpush.bf16.msra.mxu2 %v9340_v20 }
0x1de1   :  { %v3946_v26 = vadd.f32 %v10011_v37, %v3942_v3  ;;  %v3967_v3 = vmul.f32 %v10013_v61, %v3955_v49  ;;  %v3996_v45 = vadd.f32 %v3992_v62, %v3970_v22  ;;  %v9337_v22 = vld [vmem:[%s13582_s5 + $0x2a0] sm:$0xff] }
0x1de3   :  { %v3972_v21 = vadd.f32 %v3968_v46, %v3946_v26  ;;  %v4018_v26 = vmul.f32 %v10015_v54, %v4003_v63  ;;  %v3971_v12 = vadd.f32 %v3967_v3, %v3945_v23  ;;  %v9338_v63 = vld [vmem:[%s13582_s5 + $0x2a8] sm:$0xff]  ;;  %v9336_v23 = vld [vmem:[%s13582_s5 + $0x298] sm:$0xff] }
0x1de5   :  { %v3998_v41 = vadd.f32 %v3994_v16, %v3972_v21  ;;  %v4022_v21 = vadd.f32 %v4018_v26, %v3996_v45  ;;  %v9335_v26 = vld [vmem:[%s13582_s5 + $0x290] sm:$0xff] }
0x1de7   :  { %v4011_v18 = vpop.permute.xlu1 %4010  ;;  %v3989_v35 = vpop.permute.xlu0 %3988  ;;  %v12179_v31 = vmul.f32 %v4022_v21, %v10634_v9 }
0x1de8   :  { %v4020_v34 = vmul.f32 %v10015_v54, %v4011_v18  ;;  %v3995_v44 = vmul.f32 %v10014_v58, %v3989_v35 }
0x1dea   :  { %v4024_v39 = vadd.f32 %v4020_v34, %v3998_v41 }
0x1dec   :  { %v12171_v38 = vmul.f32 %v4024_v39, %v10624_v52 }
0x1df0   :  { %v4007_v18 = vpop.permute.xlu0 %4006 }
0x1df1   :  { %v3963_v53 = vpop.permute.xlu1 %3962  ;;  %v4019_v37 = vmul.f32 %v10015_v54, %v4007_v18  ;;  %v9334_v18 = vld [vmem:[%s13582_s5 + $0x288] sm:$0xff] }
0x1df2   :  { %v3969_v27 = vmul.f32 %v10013_v61, %v3963_v53 }
0x1df4   :  { %v3973_v48 = vadd.f32 %v3969_v27, %v3947_v17 }
0x1df6   :  { %v3999_v19 = vadd.f32 %v3995_v44, %v3973_v48 }
0x1df8   :  { %v4025_v11 = vadd.f32 %v4021_v55, %v3999_v19  ;;  %v9339_v55 = vld [vmem:[%s13582_s5 + $0x2b0] sm:$0xff]  ;;  %v9342_v19 = vld [vmem:[%s13582_s5 + $0x2c8] sm:$0xff] }
0x1df9   :  { %4248 = vmatpush.bf16.msra.mxu2 %v9339_v55  ;;  %4272 = vmatpush.bf16.msrb.mxu3 %v9342_v19 }
0x1dfa   :  { %v12174_v60 = vmul.f32 %v4025_v11, %v10622_v47  ;;  %v3981_v25 = vpop.permute.xlu1 %3980  ;;  %v9341_v11 = vld [vmem:[%s13582_s5 + $0x2c0] sm:$0xff] }
0x1dfb   :  { %v3993_v42 = vmul.f32 %v10014_v58, %v3981_v25  ;;  %v9333_v25 = vld [vmem:[%s13582_s5 + $0x280] sm:$0xff] }
0x1dfc   :  { %v4031_v46 = vpack.c.bf16 %v12174_v60, %v12171_v38 }
0x1dfd   :  { %v3997_v35 = vadd.f32 %v3993_v42, %v3971_v12  ;;  %4249 = vmatpush.bf16.msra.mxu2 %v9338_v63  ;;  %4273 = vmatpush.bf16.msrb.mxu3 %v9341_v11 }
0x1dfe   :  { %4038 = vmatpush.bf16.msra.mxu0 %v4031_v46 }
0x1dff   :  { %v4023_v49 = vadd.f32 %v4019_v37, %v3997_v35 }
0x1e01   :  { %v12182_v61 = vmul.f32 %v4023_v49, %v10636_v10  ;;  %4250 = vmatpush.bf16.msra.mxu2 %v9337_v22 }
0x1e03   :  { %v4030_v33 = vpack.c.bf16 %v12182_v61, %v12179_v31 }
0x1e05   :  { %4039 = vmatpush.bf16.msra.mxu0 %v4030_v33  ;;  %4251 = vmatpush.bf16.msra.mxu2 %v9336_v23  ;;  %v10016_v23 = vld [vmem:[%s13581_s6 + $0x8] ss:$0 sm:$0xff] }
0x1e08   :  { %8452 = vmatmul.msk.bf16.vlgmr.msra.gmra.mxu0 %vm261_vm0, %v11920_v57 }
0x1e09   :  { %4252 = vmatpush.bf16.msra.mxu2 %v9335_v26 }
0x1e0d   :  { %4253 = vmatpush.bf16.msra.mxu2 %v9334_v18 }
0x1e11   :  { %4254 = vmatpush.bf16.msra.mxu2 %v9333_v25 }
0x1e18   :  { %8453 = vmatmul.msk.bf16.gmra.mxu0 %vm261_vm0, %v11927_v4 }
0x1e28   :  { %8454 = vmatmul.msk.bf16.gmra.mxu0 %vm261_vm0, %v11934_v29 }
0x1e38   :  { %8455 = vmatmul.msk.bf16.gmra.mxu0 %vm261_vm0, %v11941_v56 }
0x1e48   :  { %8456 = vmatmul.msk.bf16.gmra.mxu0 %vm261_vm0, %v11948_v2 }
0x1e58   :  { %8457 = vmatmul.msk.bf16.gmra.mxu0 %vm261_vm0, %v11955_v15 }
0x1e68   :  { %8458 = vmatmul.msk.bf16.gmra.mxu0 %vm261_vm0, %v11962_v51 }
0x1e78   :  { %8459 = vmatmul.msk.bf16.gmra.mxu0 %vm261_vm0, %v11969_v24 }
0x1e85   :  { %v12202_v57 = vpop.f32.mrf.mxu0 }
0x1e88   :  { %8460 = vmatmul.msk.bf16.gmra.mxu0 %vm261_vm0, %v11978_v5 }
0x1e8d   :  { %v12206_v4 = vpop.f32.mrf.mxu0 }
0x1e95   :  { %v12208_v29 = vpop.f32.mrf.mxu0 }
0x1e98   :  { %8461 = vmatmul.msk.bf16.gmra.mxu0 %vm261_vm0, %v11989_v40 }
0x1e9d   :  { %v12212_v56 = vpop.f32.mrf.mxu0 }
0x1ea5   :  { %v4051_v2 = vpop.f32.mrf.mxu0 }
0x1ead   :  { %v4053_v15 = vpop.f32.mrf.mxu0 }
0x1eae   :  { %v9729_v51 = vpack.i.bf16 %v4053_v15, %v4051_v2 }
0x1eb0   :  { %9730 = vrot.lane.b32.xlu1 %v9729_v51, %s10491_s14 }
0x1eb5   :  { %v4056_v24 = vpop.f32.mrf.mxu0 }
0x1ebd   :  { %v4058_v58 = vpop.f32.mrf.mxu0 }
0x1ebe   :  { %v9744_v17 = vpack.i.bf16 %v4058_v58, %v4056_v24 }
0x1ec5   :  { %v4061_v54 = vpop.f32.mrf.mxu0 }
0x1ecd   :  { %v4063_v53 = vpop.f32.mrf.mxu0 }
0x1ece   :  { %v9734_v16 = vpack.i.bf16 %v4063_v53, %v4061_v54 }
0x1ed0   :  { %9735 = vrot.lane.b32.xlu2 %v9734_v16, %s10492_s19 }
0x1ed5   :  { %v4066_v5 = vpop.f32.mrf.mxu0 }
0x1ed8   :  { %9745 = vrot.lane.b32.xlu2 %v9744_v17, %s10491_s14 }
0x1edd   :  { %v4068_v34 = vpop.f32.mrf.mxu0 }
0x1ede   :  { %v9749_v40 = vpack.i.bf16 %v4068_v34, %v4066_v5 }
0x1ee0   :  { %9750 = vrot.lane.b32.xlu0 %v9749_v40, %s10492_s19 }
0x1ee5   :  { %v4071_v27 = vpop.f32.mrf.mxu0 }
0x1eed   :  { %v4073_v14 = vpop.f32.mrf.mxu0 }
0x1eee   :  { %v9739_v13 = vpack.i.bf16 %v4073_v14, %v4071_v27 }
0x1ef0   :  { %9740 = vrot.lane.b32.xlu1 %v9739_v13, %s10493_s20 }
0x1ef5   :  { %v4076_v44 = vpop.f32.mrf.mxu0 }
0x1efd   :  { %v4078_v41 = vpop.f32.mrf.mxu0 }
0x1efe   :  { %v9754_v48 = vpack.i.bf16 %v4078_v41, %v4076_v44 }
0x1f00   :  { %9755 = vrot.lane.b32.xlu1 %v9754_v48, %s10493_s20 }
0x1f05   :  { %v4081_v39 = vpop.f32.mrf.mxu0 }
0x1f0d   :  { %v4083_v3 = vpop.f32.mrf.mxu0 }
0x1f0e   :  { %v4173_v62 = vpack.c.bf16 %v4083_v3, %v4081_v39 }
0x1f10   :  { %8523 = vmatmul.msk.bf16.vlgmr.msrb.gmra.mxu3 %vm261_vm0, %v4173_v62 }
0x1f15   :  { %v4086_v45 = vpop.f32.mrf.mxu0 }
0x1f1d   :  { %v4088_v12 = vpop.f32.mrf.mxu0 }
0x1f1e   :  { %v4175_v42 = vpack.c.bf16 %v4088_v12, %v4086_v45 }
0x1f20   :  { %8524 = vmatmul.msk.bf16.gmra.mxu3 %vm261_vm0, %v4175_v42 }
0x1f22   :  { %v9731_v46 = vpop.permute.xlu1 %9730 }
0x1f23   :  { %v9733_v37 = vunpack.i.h.bf16 %v9731_v46  ;;  %v9732_v35 = vunpack.i.l.bf16 %v9731_v46 }
0x1f25   :  { %v4140_v15 = vsel %vm261_vm0, %v12206_v4, %v9733_v37  ;;  %v4139_v51 = vsel %vm261_vm0, %v12202_v57, %v9732_v35 }
0x1f2a   :  { %v9736_v21 = vpop.permute.xlu2 %9735 }
0x1f2b   :  { %v9738_v49 = vunpack.i.h.bf16 %v9736_v21  ;;  %v9737_v33 = vunpack.i.l.bf16 %v9736_v21 }
0x1f2d   :  { %v4144_v54 = vsel %vm403_vm1, %v4140_v15, %v9738_v49  ;;  %v4143_v53 = vsel %vm403_vm1, %v4139_v51, %v9737_v33 }
0x1f32   :  { %v9746_v34 = vpop.permute.xlu2 %9745 }
0x1f33   :  { %v9748_v27 = vunpack.i.h.bf16 %v9746_v34  ;;  %v9747_v14 = vunpack.i.l.bf16 %v9746_v34 }
0x1f35   :  { %v4142_v57 = vsel %vm261_vm0, %v12212_v56, %v9748_v27  ;;  %v4141_v41 = vsel %vm261_vm0, %v12208_v29, %v9747_v14 }
0x1f52   :  { %v9751_v40 = vpop.permute.xlu0 %9750 }
0x1f53   :  { %v9753_v4 = vunpack.i.h.bf16 %v9751_v40  ;;  %v9752_v13 = vunpack.i.l.bf16 %v9751_v40 }
0x1f55   :  { %v4146_v55 = vsel %vm403_vm1, %v4142_v57, %v9753_v4  ;;  %v4145_v63 = vsel %vm403_vm1, %v4141_v41, %v9752_v13 }
0x1f62   :  { %v9741_v2 = vpop.permute.xlu1 %9740 }
0x1f63   :  { %v9743_v24 = vunpack.i.h.bf16 %v9741_v2  ;;  %v9742_v58 = vunpack.i.l.bf16 %v9741_v2 }
0x1f65   :  { %v4148_v16 = vsel %vm408_vm2, %v4144_v54, %v9743_v24  ;;  %v4147_v5 = vsel %vm408_vm2, %v4143_v53, %v9742_v58 }
0x1f66   :  { %v4172_v17 = vpack.c.bf16 %v4148_v16, %v4147_v5 }
0x1f68   :  { %4255 = vmatmul.bf16.vlgmr.msra.gmra.mxu2 %v4172_v17 }
0x1f72   :  { %v9756_v44 = vpop.permute.xlu1 %9755 }
0x1f73   :  { %v9758_v48 = vunpack.i.h.bf16 %v9756_v44  ;;  %v9757_v20 = vunpack.i.l.bf16 %v9756_v44 }
0x1f75   :  { %v4149_v39 = vsel %vm408_vm2, %v4145_v63, %v9757_v20  ;;  %v4150_v19 = vsel %vm408_vm2, %v4146_v55, %v9758_v48 }
0x1f76   :  { %v4174_v22 = vpack.c.bf16 %v4150_v19, %v4149_v39 }
0x1f78   :  { %4260 = vmatmul.bf16.gmra.mxu2 %v4174_v22 }
0x1f93   :  { %v4275_v56 = vpop.f32.mrf.mxu3 }
0x1f9b   :  { %v4277_v18 = vpop.f32.mrf.mxu3 }
0x1fa3   :  { %v4280_v37 = vpop.f32.mrf.mxu3 }
0x1fab   :  { %v4282_v16 = vpop.f32.mrf.mxu3 }
0x1feb   :  { %v4256_v11 = vpop.f32.mrf.mxu2 }
0x1fec   :  { %v4257_v3 = vadd.f32 %v10016_v23, %v4256_v11 }
0x1fee   :  { %v12271_v29 = vadd.f32 %v4275_v56, %v4257_v3 }
0x1ff0   :  { %v8525_v62 = vmul.f32 -1.442695, %v12271_v29 }
0x1ff2   :  { %10231 = vpow2.f32 %v8525_v62 }
0x1ff3   :  { %v4258_v26 = vpop.f32.mrf.mxu2 }
0x1ff4   :  { %v4259_v25 = vadd.f32 %v10016_v23, %v4258_v26 }
0x1ff6   :  { %v12274_v45 = vadd.f32 %v4277_v18, %v4259_v25 }
0x1ff8   :  { %v10232_v12 = vpop.eup %10231  ;;  %v8526_v42 = vmul.f32 -1.442695, %v12274_v45 }
0x1ff9   :  { %v4301_v46 = vadd.f32 1.0, %v10232_v12 }
0x1ffa   :  { %10233 = vpow2.f32 %v8526_v42 }
0x1ffb   :  { %10235 = vrcp.f32 %v4301_v46  ;;  %v4261_v21 = vpop.f32.mrf.mxu2  ;;  %v4316_v5 = vand.u32 2147483648, %v4301_v46  ;;  %v4314_v40 = vand.u32 2147483647, %v4301_v46  ;;  %vm4310_vm15 = vweird.f32 %v4301_v46 }
0x1ffc   :  { %v4262_v35 = vadd.f32 %v10016_v23, %v4261_v21 }
0x1ffd   :  { %v4317_v57 = vor.u32 1.1754944e-38, %v4316_v5  ;;  %vm4315_vm4 = vcmp.eq.f32.partialorder %v4314_v40, 8.507059e+37  ;;  %v9344_v40 = vld [vmem:[%s13584_s7 + $0x68] sm:$0xff] }
0x1ffe   :  { %v12277_v49 = vadd.f32 %v4280_v37, %v4262_v35  ;;  %4421 = vmatpush.bf16.msrb.mxu2 %v9344_v40 }
0x2000   :  { %v10234_v33 = vpop.eup %10233  ;;  %v8527_v2 = vmul.f32 -1.442695, %v12277_v49 }
0x2001   :  { %v10236_v15 = vpop.eup %10235  ;;  %v4302_v51 = vadd.f32 1.0, %v10234_v33 }
0x2002   :  { %10237 = vpow2.f32 %v8527_v2  ;;  %v4306_v24 = vmul.f32 %v10236_v15, %v4301_v46  ;;  %vm4311_vm14 = vweird.f32 %v10236_v15 }
0x2003   :  { %10239 = vrcp.f32 %v4302_v51  ;;  %v4263_v58 = vpop.f32.mrf.mxu2  ;;  %vm4312_vm3 = vmor %vm4310_vm15, %vm4311_vm14  ;;  %v4331_v63 = vand.u32 2147483648, %v4302_v51  ;;  %v4329_v19 = vand.u32 2147483647, %v4302_v51  ;;  %vm4325_vm6 = vweird.f32 %v4302_v51 }
0x2004   :  { %v4264_v54 = vadd.f32 %v10016_v23, %v4263_v58  ;;  %v4307_v53 = vsub.f32 1.0, %v4306_v24 }
0x2005   :  { %v4332_v3 = vor.u32 1.1754944e-38, %v4331_v63  ;;  %vm4330_vm8 = vcmp.eq.f32.partialorder %v4329_v19, 8.507059e+37 }
0x2006   :  { %v12280_v17 = vadd.f32 %v4282_v16, %v4264_v54  ;;  %v4308_v34 = vmul.f32 %v10236_v15, %v4307_v53 }
0x2008   :  { %v10238_v27 = vpop.eup %10237  ;;  %v8528_v14 = vmul.f32 -1.442695, %v12280_v17  ;;  %v4309_v4 = vadd.f32 %v10236_v15, %v4308_v34 }
0x2009   :  { %v10240_v13 = vpop.eup %10239  ;;  %v4303_v44 = vadd.f32 1.0, %v10238_v27  ;;  %v9343_v27 = vld [vmem:[%s13584_s7 + $0x60] sm:$0xff] }
0x200a   :  { %10241 = vpow2.f32 %v8528_v14  ;;  %v4313_v41 = vsel %vm4312_vm3, %v10236_v15, %v4309_v4  ;;  %v4321_v48 = vmul.f32 %v10240_v13, %v4302_v51  ;;  %vm4326_vm5 = vweird.f32 %v10240_v13  ;;  %4422 = vmatpush.bf16.msrb.mxu2 %v9343_v27 }
0x200b   :  { %10243 = vrcp.f32 %v4303_v44  ;;  %v4318_v20 = vsel %vm4315_vm4, %v4317_v57, %v4313_v41  ;;  %vm4327_vm7 = vmor %vm4325_vm6, %vm4326_vm5  ;;  %v4346_v12 = vand.u32 2147483648, %v4303_v44  ;;  %v4344_v46 = vand.u32 2147483647, %v4303_v44 }
0x200c   :  { %4369 = vrot.lane.b32.xlu2 %v4318_v20, %s10493_s20  ;;  %v4322_v55 = vsub.f32 1.0, %v4321_v48  ;;  %vm4340_vm10 = vweird.f32 %v4303_v44 }
0x200d   :  { %v4347_v35 = vor.u32 1.1754944e-38, %v4346_v12  ;;  %vm4345_vm12 = vcmp.eq.f32.partialorder %v4344_v46, 8.507059e+37 }
0x200e   :  { %v4323_v39 = vmul.f32 %v10240_v13, %v4322_v55 }
0x2010   :  { %v10242_v22 = vpop.eup %10241  ;;  %v4324_v23 = vadd.f32 %v10240_v13, %v4323_v39 }
0x2011   :  { %v10244_v56 = vpop.eup %10243  ;;  %v4304_v11 = vadd.f32 1.0, %v10242_v22 }
0x2012   :  { %v4328_v62 = vsel %vm4327_vm7, %v10240_v13, %v4324_v23  ;;  %v4336_v26 = vmul.f32 %v10244_v56, %v4303_v44  ;;  %vm4341_vm9 = vweird.f32 %v10244_v56 }
0x2013   :  { %10245 = vrcp.f32 %v4304_v11  ;;  %v4333_v18 = vsel %vm4330_vm8, %v4332_v3, %v4328_v62  ;;  %vm4342_vm11 = vmor %vm4340_vm10, %vm4341_vm9  ;;  %v4361_v24 = vand.u32 2147483648, %v4304_v11  ;;  %v4359_v54 = vand.u32 2147483647, %v4304_v11 }
0x2014   :  { %4371 = vrot.lane.b32.xlu0 %v4333_v18, %s10493_s20  ;;  %v4337_v25 = vsub.f32 1.0, %v4336_v26  ;;  %vm4355_vm14 = vweird.f32 %v4304_v11  ;;  %10247 = vtanh.f32 %v12271_v29 }
0x2015   :  { %v4362_v16 = vor.u32 1.1754944e-38, %v4361_v24  ;;  %vm4360_vm3 = vcmp.eq.f32.partialorder %v4359_v54, 8.507059e+37  ;;  %10249 = vtanh.f32 %v12274_v45  ;;  %v12379_v24 = vld [vmem:[%s13580_s2 + $0x30] sm:$0xff]  ;;  %v12393_v54 = vld [vmem:[%s13580_s2 + $0x40] sm:$0xff] }
0x2016   :  { %v4338_v42 = vmul.f32 %v10244_v56, %v4337_v25  ;;  %10251 = vtanh.f32 %v12277_v49  ;;  %v10017_v49 = vld [vmem:[%s13583_s8 + $0x6] ss:$0 sm:$0xff] }
0x2017   :  { %10253 = vtanh.f32 %v12280_v17 }
0x2018   :  { %v4339_v21 = vadd.f32 %v10244_v56, %v4338_v42 }
0x2019   :  { %v10246_v37 = vpop.eup %10245 }
0x201a   :  { %v4343_v33 = vsel %vm4342_vm11, %v10244_v56, %v4339_v21  ;;  %v4351_v2 = vmul.f32 %v10246_v37, %v4304_v11  ;;  %vm4356_vm13 = vweird.f32 %v10246_v37  ;;  %v10248_v4 = vpop.eup %10247 }
0x201b   :  { %v4348_v15 = vsel %vm4345_vm12, %v4347_v35, %v4343_v33  ;;  %vm4357_vm15 = vmor %vm4355_vm14, %vm4356_vm13  ;;  %v10250_v13 = vpop.eup %10249  ;;  %v12344_v35 = vld [vmem:[%s13580_s2 + $0x8] sm:$0xff]  ;;  %v12351_v33 = vld [vmem:[%s13580_s2 + $0x10] sm:$0xff] }
0x201c   :  { %4373 = vrot.lane.b32.xlu1 %v4348_v15, %s10493_s20  ;;  %v4352_v51 = vsub.f32 1.0, %v4351_v2  ;;  %v10252_v55 = vpop.eup %10251  ;;  %v12358_v2 = vld [vmem:[%s13580_s2 + $0x18] sm:$0xff]  ;;  %v12365_v15 = vld [vmem:[%s13580_s2 + $0x20] sm:$0xff] }
0x201d   :  { %v10254_v63 = vpop.eup %10253 }
0x201e   :  { %v4353_v58 = vmul.f32 %v10246_v37, %v4352_v51  ;;  %v12372_v51 = vld [vmem:[%s13580_s2 + $0x28] sm:$0xff] }
0x2020   :  { %v4354_v53 = vadd.f32 %v10246_v37, %v4353_v58  ;;  %v12386_v58 = vld [vmem:[%s13580_s2 + $0x38] sm:$0xff] }
0x2022   :  { %v4358_v5 = vsel %vm4357_vm15, %v10246_v37, %v4354_v53 }
0x2023   :  { %v4363_v34 = vsel %vm4360_vm3, %v4362_v16, %v4358_v5  ;;  %v12404_v5 = vld [vmem:[%s13580_s2 + $0x48] sm:$0xff] }
0x2024   :  { %4375 = vrot.lane.b32.xlu2 %v4363_v34, %s10493_s20 }
0x2066   :  { %v4370_v14 = vpop.permute.xlu2 %4369 }
0x2067   :  { %v4381_v57 = vmul.f32 %v10248_v4, %v4370_v14 }
0x207e   :  { %v4376_v20 = vpop.permute.xlu2 %4375 }
0x207f   :  { %v4384_v29 = vmul.f32 %v10254_v63, %v4376_v20 }
0x2086   :  { %v4372_v44 = vpop.permute.xlu0 %4371 }
0x2087   :  { %v4382_v41 = vmul.f32 %v10250_v13, %v4372_v44 }
0x2089   :  { %v4390_v48 = vpack.c.bf16 %v4382_v41, %v4381_v57 }
0x208b   :  { %8542 = vmatmul.msk.bf16.vlgmr.msrb.gmra.mxu2 %vm261_vm0, %v4390_v48 }
0x208e   :  { %v4374_v39 = vpop.permute.xlu1 %4373 }
0x208f   :  { %v4383_v19 = vmul.f32 %v10252_v55, %v4374_v39 }
0x2091   :  { %v4391_v45 = vpack.c.bf16 %v4384_v29, %v4383_v19 }
0x209b   :  { %8543 = vmatmul.msk.bf16.gmra.mxu2 %vm261_vm0, %v4391_v45 }
0x210e   :  { %v4424_v22 = vpop.f32.mrf.mxu2 }
0x210f   :  { %v12306_v62 = vadd.f32 %v10017_v49, %v4424_v22 }
0x2111   :  { %v4434_v42 = vadd.f32 %v12306_v62, %v12179_v31  ;;  %v12337_v31 = vld [vmem:[%s13580_s2] sm:$0xff] }
0x2116   :  { %v4426_v23 = vpop.f32.mrf.mxu2 }
0x2117   :  { %v12304_v11 = vadd.f32 %v10017_v49, %v4426_v23 }
0x2119   :  { %v4435_v25 = vadd.f32 %v12304_v11, %v12182_v61  ;;  %v12330_v61 = vmul.f32 %v4434_v42, %v10634_v9 }
0x211b   :  { %v12325_v37 = vmul.f32 %v4435_v25, %v10636_v10  ;;  %v9349_v25 = vld [vmem:[%s13582_s5 + $0x2f0] sm:$0xff] }
0x211e   :  { %v4429_v56 = vpop.f32.mrf.mxu2 }
0x211f   :  { %v12302_v17 = vadd.f32 %v10017_v49, %v4429_v56 }
0x2121   :  { %v4436_v26 = vadd.f32 %v12302_v17, %v12171_v38 }
0x2123   :  { %v12319_v46 = vmul.f32 %v4436_v26, %v10624_v52  ;;  %v9350_v26 = vld [vmem:[%s13582_s5 + $0x2f8] sm:$0xff] }
0x2126   :  { %v4431_v3 = vpop.f32.mrf.mxu2 }
0x2127   :  { %v12310_v18 = vadd.f32 %v10017_v49, %v4431_v3  ;;  %v9352_v49 = vld [vmem:[%s13582_s5 + $0x308] sm:$0xff]  ;;  %v9351_v3 = vld [vmem:[%s13582_s5 + $0x300] sm:$0xff] }
0x2128   :  { %4663 = vmatpush.bf16.msra.mxu2 %v9352_v49 }
0x2129   :  { %v4437_v12 = vadd.f32 %v12310_v18, %v12174_v60  ;;  %v4446_v60 = vpack.c.bf16 %v12325_v37, %v12330_v61 }
0x212b   :  { %v12322_v21 = vmul.f32 %v4437_v12, %v10622_v47  ;;  %v9348_v12 = vld [vmem:[%s13582_s5 + $0x2e8] sm:$0xff] }
0x212c   :  { %4664 = vmatpush.bf16.msra.mxu2 %v9351_v3 }
0x212d   :  { %v4447_v38 = vpack.c.bf16 %v12322_v21, %v12319_v46 }
0x212f   :  { %4454 = vmatpush.bf16.msra.mxu3 %v4447_v38  ;;  %v9354_v38 = vld [vmem:[%s13582_s5 + $0x318] sm:$0xff] }
0x2130   :  { %4665 = vmatpush.bf16.msra.mxu2 %v9350_v26  ;;  %4688 = vmatpush.bf16.msrb.mxu1 %v9354_v38 }
0x2133   :  { %4455 = vmatpush.bf16.msra.mxu3 %v4446_v60  ;;  %v9347_v60 = vld [vmem:[%s13582_s5 + $0x2e0] sm:$0xff] }
0x2134   :  { %4666 = vmatpush.bf16.msra.mxu2 %v9349_v25 }
0x2136   :  { %8544 = vmatmul.msk.bf16.vlgmr.msra.gmra.mxu3 %vm261_vm0, %v12337_v31 }
0x2138   :  { %4667 = vmatpush.bf16.msra.mxu2 %v9348_v12 }
0x213c   :  { %4668 = vmatpush.bf16.msra.mxu2 %v9347_v60 }
0x2146   :  { %8545 = vmatmul.msk.bf16.gmra.mxu3 %vm261_vm0, %v12344_v35 }
0x2156   :  { %8546 = vmatmul.msk.bf16.gmra.mxu3 %vm261_vm0, %v12351_v33 }
0x2166   :  { %8547 = vmatmul.msk.bf16.gmra.mxu3 %vm261_vm0, %v12358_v2 }
0x2176   :  { %8548 = vmatmul.msk.bf16.gmra.mxu3 %vm261_vm0, %v12365_v15 }
0x2186   :  { %8549 = vmatmul.msk.bf16.gmra.mxu3 %vm261_vm0, %v12372_v51 }
0x2196   :  { %8550 = vmatmul.msk.bf16.gmra.mxu3 %vm261_vm0, %v12379_v24 }
0x21a6   :  { %8551 = vmatmul.msk.bf16.gmra.mxu3 %vm261_vm0, %v12386_v58 }
0x21b6   :  { %8552 = vmatmul.msk.bf16.gmra.mxu3 %vm261_vm0, %v12393_v54 }
0x21b9   :  { %v12397_v53 = vpop.f32.mrf.mxu3 }
0x21c1   :  { %v12399_v16 = vpop.f32.mrf.mxu3 }
0x21c6   :  { %8553 = vmatmul.msk.bf16.gmra.mxu3 %vm261_vm0, %v12404_v5 }
0x21c9   :  { %v12408_v34 = vpop.f32.mrf.mxu3 }
0x21d1   :  { %v12410_v40 = vpop.f32.mrf.mxu3 }
0x21d9   :  { %v4467_v27 = vpop.f32.mrf.mxu3 }
0x21e1   :  { %v4469_v14 = vpop.f32.mrf.mxu3 }
0x21e2   :  { %v9759_v4 = vpack.i.bf16 %v4469_v14, %v4467_v27  ;;  %v9353_v27 = vld [vmem:[%s13582_s5 + $0x310] sm:$0xff]  ;;  %v9346_v14 = vld [vmem:[%s13582_s5 + $0x2d8] sm:$0xff] }
0x21e3   :  { %4689 = vmatpush.bf16.msrb.mxu1 %v9353_v27  ;;  %4669 = vmatpush.bf16.msra.mxu2 %v9346_v14 }
0x21e4   :  { %9760 = vrot.lane.b32.xlu0 %v9759_v4, %s10491_s14 }
0x21e9   :  { %v4472_v13 = vpop.f32.mrf.mxu3 }
0x21f1   :  { %v4474_v44 = vpop.f32.mrf.mxu3 }
0x21f2   :  { %v9774_v57 = vpack.i.bf16 %v4474_v44, %v4472_v13  ;;  %v9345_v44 = vld [vmem:[%s13582_s5 + $0x2d0] sm:$0xff] }
0x21f3   :  { %4670 = vmatpush.bf16.msra.mxu2 %v9345_v44 }
0x21f4   :  { %9775 = vrot.lane.b32.xlu0 %v9774_v57, %s10491_s14 }
0x21f9   :  { %v4477_v41 = vpop.f32.mrf.mxu3 }
0x2201   :  { %v4479_v48 = vpop.f32.mrf.mxu3 }
0x2202   :  { %v9764_v20 = vpack.i.bf16 %v4479_v48, %v4477_v41 }
0x2204   :  { %9765 = vrot.lane.b32.xlu1 %v9764_v20, %s10492_s19 }
0x2209   :  { %v4482_v55 = vpop.f32.mrf.mxu3 }
0x2211   :  { %v4484_v63 = vpop.f32.mrf.mxu3 }
0x2212   :  { %v9779_v39 = vpack.i.bf16 %v4484_v63, %v4482_v55 }
0x2214   :  { %9780 = vrot.lane.b32.xlu1 %v9779_v39, %s10492_s19 }
0x2219   :  { %v4487_v29 = vpop.f32.mrf.mxu3 }
0x2221   :  { %v4489_v19 = vpop.f32.mrf.mxu3 }
0x2222   :  { %v9769_v45 = vpack.i.bf16 %v4489_v19, %v4487_v29 }
0x2224   :  { %9770 = vrot.lane.b32.xlu2 %v9769_v45, %s10493_s20 }
0x2229   :  { %v4492_v22 = vpop.f32.mrf.mxu3 }
0x2231   :  { %v4494_v23 = vpop.f32.mrf.mxu3 }
0x2232   :  { %v9784_v56 = vpack.i.bf16 %v4494_v23, %v4492_v22 }
0x2234   :  { %9785 = vrot.lane.b32.xlu2 %v9784_v56, %s10493_s20 }
0x2239   :  { %v4497_v42 = vpop.f32.mrf.mxu3 }
0x2241   :  { %v4499_v4 = vpop.f32.mrf.mxu3 }
0x2242   :  { %v4589_v13 = vpack.c.bf16 %v4499_v4, %v4497_v42 }
0x2244   :  { %8615 = vmatmul.msk.bf16.vlgmr.msrb.gmra.mxu1 %vm261_vm0, %v4589_v13 }
0x2249   :  { %v4502_v57 = vpop.f32.mrf.mxu3 }
0x2251   :  { %v4504_v41 = vpop.f32.mrf.mxu3 }
0x2252   :  { %v4591_v48 = vpack.c.bf16 %v4504_v41, %v4502_v57 }
0x2254   :  { %8616 = vmatmul.msk.bf16.gmra.mxu1 %vm261_vm0, %v4591_v48 }
0x2256   :  { %v9761_v20 = vpop.permute.xlu0 %9760 }
0x2257   :  { %v9763_v63 = vunpack.i.h.bf16 %v9761_v20  ;;  %v9762_v39 = vunpack.i.l.bf16 %v9761_v20 }
0x2259   :  { %v4556_v22 = vsel %vm261_vm0, %v12399_v16, %v9763_v63  ;;  %v4555_v23 = vsel %vm261_vm0, %v12397_v53, %v9762_v39 }
0x2266   :  { %v9776_v38 = vpop.permute.xlu0 %9775 }
0x2267   :  { %v9778_v27 = vunpack.i.h.bf16 %v9776_v38  ;;  %v9777_v14 = vunpack.i.l.bf16 %v9776_v38 }
0x2269   :  { %v4558_v53 = vsel %vm261_vm0, %v12410_v40, %v9778_v27  ;;  %v4557_v44 = vsel %vm261_vm0, %v12408_v34, %v9777_v14  ;;  %v10018_v40 = vld [vmem:[%s13581_s6 + $0x9] ss:$0 sm:$0xff] }
0x2276   :  { %v9766_v55 = vpop.permute.xlu1 %9765 }
0x2277   :  { %v9768_v29 = vunpack.i.h.bf16 %v9766_v55  ;;  %v9767_v19 = vunpack.i.l.bf16 %v9766_v55 }
0x2279   :  { %v4560_v3 = vsel %vm403_vm1, %v4556_v22, %v9768_v29  ;;  %v4559_v26 = vsel %vm403_vm1, %v4555_v23, %v9767_v19 }
0x227e   :  { %v9771_v45 = vpop.permute.xlu2 %9770 }
0x227f   :  { %v9773_v56 = vunpack.i.h.bf16 %v9771_v45  ;;  %v9772_v49 = vunpack.i.l.bf16 %v9771_v45 }
0x2281   :  { %v4564_v25 = vsel %vm408_vm2, %v4560_v3, %v9773_v56  ;;  %v4563_v12 = vsel %vm408_vm2, %v4559_v26, %v9772_v49 }
0x2282   :  { %v4588_v42 = vpack.c.bf16 %v4564_v25, %v4563_v12 }
0x2284   :  { %4671 = vmatmul.bf16.vlgmr.msra.gmra.mxu2 %v4588_v42 }
0x2286   :  { %v9781_v60 = vpop.permute.xlu1 %9780 }
0x2287   :  { %v9783_v16 = vunpack.i.h.bf16 %v9781_v60  ;;  %v9782_v4 = vunpack.i.l.bf16 %v9781_v60 }
0x2289   :  { %v4562_v48 = vsel %vm403_vm1, %v4558_v53, %v9783_v16  ;;  %v4561_v20 = vsel %vm403_vm1, %v4557_v44, %v9782_v4 }
0x228e   :  { %v9786_v13 = vpop.permute.xlu2 %9785 }
0x228f   :  { %v9788_v57 = vunpack.i.h.bf16 %v9786_v13  ;;  %v9787_v41 = vunpack.i.l.bf16 %v9786_v13 }
0x2291   :  { %v4565_v55 = vsel %vm408_vm2, %v4561_v20, %v9787_v41  ;;  %v4566_v63 = vsel %vm408_vm2, %v4562_v48, %v9788_v57 }
0x2292   :  { %v4590_v39 = vpack.c.bf16 %v4566_v63, %v4565_v55 }
0x2294   :  { %4676 = vmatmul.bf16.gmra.mxu2 %v4590_v39 }
0x22c1   :  { %v4691_v29 = vpop.f32.mrf.mxu1 }
0x22c9   :  { %v4693_v23 = vpop.f32.mrf.mxu1 }
0x22d1   :  { %v4696_v38 = vpop.f32.mrf.mxu1 }
0x22d9   :  { %v4698_v48 = vpop.f32.mrf.mxu1 }
0x2307   :  { %v4672_v19 = vpop.f32.mrf.mxu2 }
0x2308   :  { %v4673_v45 = vadd.f32 %v10018_v40, %v4672_v19 }
0x230a   :  { %v12469_v34 = vadd.f32 %v4691_v29, %v4673_v45 }
0x230c   :  { %v8617_v22 = vmul.f32 -1.442695, %v12469_v34 }
0x230e   :  { %10255 = vpow2.f32 %v8617_v22 }
0x230f   :  { %v4674_v56 = vpop.f32.mrf.mxu2 }
0x2310   :  { %v4675_v49 = vadd.f32 %v10018_v40, %v4674_v56 }
0x2312   :  { %v12472_v3 = vadd.f32 %v4693_v23, %v4675_v49 }
0x2314   :  { %v10256_v26 = vpop.eup %10255  ;;  %v8618_v25 = vmul.f32 -1.442695, %v12472_v3 }
0x2315   :  { %v4717_v12 = vadd.f32 1.0, %v10256_v26 }
0x2316   :  { %10257 = vpow2.f32 %v8618_v25 }
0x2317   :  { %10259 = vrcp.f32 %v4717_v12  ;;  %v4677_v42 = vpop.f32.mrf.mxu2  ;;  %v4732_v20 = vand.u32 2147483648, %v4717_v12  ;;  %v4730_v39 = vand.u32 2147483647, %v4717_v12  ;;  %vm4726_vm5 = vweird.f32 %v4717_v12 }
0x2318   :  { %v4678_v60 = vadd.f32 %v10018_v40, %v4677_v42 }
0x2319   :  { %v4733_v56 = vor.u32 1.1754944e-38, %v4732_v20  ;;  %vm4731_vm7 = vcmp.eq.f32.partialorder %v4730_v39, 8.507059e+37 }
0x231a   :  { %v12475_v27 = vadd.f32 %v4696_v38, %v4678_v60 }
0x231c   :  { %v10258_v14 = vpop.eup %10257  ;;  %v8619_v16 = vmul.f32 -1.442695, %v12475_v27 }
0x231d   :  { %v10260_v4 = vpop.eup %10259  ;;  %v4718_v13 = vadd.f32 1.0, %v10258_v14 }
0x231e   :  { %10261 = vpow2.f32 %v8619_v16  ;;  %v4722_v53 = vmul.f32 %v10260_v4, %v4717_v12  ;;  %vm4727_vm4 = vweird.f32 %v10260_v4 }
0x231f   :  { %10263 = vrcp.f32 %v4718_v13  ;;  %v4679_v44 = vpop.f32.mrf.mxu2  ;;  %vm4728_vm6 = vmor %vm4726_vm5, %vm4727_vm4  ;;  %v4747_v42 = vand.u32 2147483648, %v4718_v13  ;;  %v4745_v60 = vand.u32 2147483647, %v4718_v13  ;;  %vm4741_vm9 = vweird.f32 %v4718_v13 }
0x2320   :  { %v4680_v57 = vadd.f32 %v10018_v40, %v4679_v44  ;;  %v4723_v41 = vsub.f32 1.0, %v4722_v53 }
0x2321   :  { %v4748_v44 = vor.u32 1.1754944e-38, %v4747_v42  ;;  %vm4746_vm11 = vcmp.eq.f32.partialorder %v4745_v60, 8.507059e+37 }
0x2322   :  { %v12478_v55 = vadd.f32 %v4698_v48, %v4680_v57  ;;  %v4724_v63 = vmul.f32 %v10260_v4, %v4723_v41 }
0x2324   :  { %v10262_v29 = vpop.eup %10261  ;;  %v8620_v19 = vmul.f32 -1.442695, %v12478_v55  ;;  %v4725_v45 = vadd.f32 %v10260_v4, %v4724_v63 }
0x2325   :  { %v10264_v22 = vpop.eup %10263  ;;  %v4719_v23 = vadd.f32 1.0, %v10262_v29 }
0x2326   :  { %10265 = vpow2.f32 %v8620_v19  ;;  %v4729_v49 = vsel %vm4728_vm6, %v10260_v4, %v4725_v45  ;;  %v4737_v40 = vmul.f32 %v10264_v22, %v4718_v13  ;;  %vm4742_vm8 = vweird.f32 %v10264_v22 }
0x2327   :  { %10267 = vrcp.f32 %v4719_v23  ;;  %v4734_v26 = vsel %vm4731_vm7, %v4733_v56, %v4729_v49  ;;  %vm4743_vm10 = vmor %vm4741_vm9, %vm4742_vm8  ;;  %v4762_v20 = vand.u32 2147483648, %v4719_v23  ;;  %v4760_v39 = vand.u32 2147483647, %v4719_v23 }
0x2328   :  { %4785 = vrot.lane.b32.xlu0 %v4734_v26, %s10493_s20  ;;  %v4738_v25 = vsub.f32 1.0, %v4737_v40  ;;  %vm4756_vm13 = vweird.f32 %v4719_v23 }
0x2329   :  { %v4763_v13 = vor.u32 1.1754944e-38, %v4762_v20  ;;  %vm4761_vm15 = vcmp.eq.f32.partialorder %v4760_v39, 8.507059e+37 }
0x232a   :  { %v4739_v38 = vmul.f32 %v10264_v22, %v4738_v25 }
0x232c   :  { %v10266_v14 = vpop.eup %10265  ;;  %v4740_v16 = vadd.f32 %v10264_v22, %v4739_v38 }
0x232d   :  { %v10268_v12 = vpop.eup %10267  ;;  %v4720_v53 = vadd.f32 1.0, %v10266_v14  ;;  %v9356_v14 = vld [vmem:[%s13584_s7 + $0x78] sm:$0xff] }
0x232e   :  { %v4744_v57 = vsel %vm4743_vm10, %v10264_v22, %v4740_v16  ;;  %v4752_v4 = vmul.f32 %v10268_v12, %v4719_v23  ;;  %vm4757_vm12 = vweird.f32 %v10268_v12  ;;  %4837 = vmatpush.bf16.msrb.mxu2 %v9356_v14  ;;  %v9355_v16 = vld [vmem:[%s13584_s7 + $0x70] sm:$0xff] }
0x232f   :  { %10269 = vrcp.f32 %v4720_v53  ;;  %v4749_v41 = vsel %vm4746_vm11, %v4748_v44, %v4744_v57  ;;  %vm4758_vm14 = vmor %vm4756_vm13, %vm4757_vm12  ;;  %v4777_v40 = vand.u32 2147483648, %v4720_v53  ;;  %v4775_v25 = vand.u32 2147483647, %v4720_v53 }
0x2330   :  { %4787 = vrot.lane.b32.xlu1 %v4749_v41, %s10493_s20  ;;  %v4753_v48 = vsub.f32 1.0, %v4752_v4  ;;  %vm4771_vm4 = vweird.f32 %v4720_v53  ;;  %10271 = vtanh.f32 %v12469_v34 }
0x2331   :  { %v4778_v38 = vor.u32 1.1754944e-38, %v4777_v40  ;;  %vm4776_vm6 = vcmp.eq.f32.partialorder %v4775_v25, 8.507059e+37  ;;  %10273 = vtanh.f32 %v12472_v3 }
0x2332   :  { %v4754_v63 = vmul.f32 %v10268_v12, %v4753_v48  ;;  %4838 = vmatpush.bf16.msrb.mxu2 %v9355_v16  ;;  %10275 = vtanh.f32 %v12475_v27 }
0x2333   :  { %10277 = vtanh.f32 %v12478_v55 }
0x2334   :  { %v4755_v29 = vadd.f32 %v10268_v12, %v4754_v63 }
0x2335   :  { %v10270_v19 = vpop.eup %10269 }
0x2336   :  { %v4759_v45 = vsel %vm4758_vm14, %v10268_v12, %v4755_v29  ;;  %v4767_v56 = vmul.f32 %v10270_v19, %v4720_v53  ;;  %vm4772_vm3 = vweird.f32 %v10270_v19  ;;  %v10272_v53 = vpop.eup %10271 }
0x2337   :  { %v4764_v22 = vsel %vm4761_vm15, %v4763_v13, %v4759_v45  ;;  %vm4773_vm5 = vmor %vm4771_vm4, %vm4772_vm3  ;;  %v10274_v44 = vpop.eup %10273 }
0x2338   :  { %4789 = vrot.lane.b32.xlu2 %v4764_v22, %s10493_s20  ;;  %v4768_v49 = vsub.f32 1.0, %v4767_v56  ;;  %v10276_v63 = vpop.eup %10275  ;;  %v10019_v22 = vld [vmem:[%s13583_s8 + $0x7] ss:$0 sm:$0xff] }
0x2339   :  { %v10278_v39 = vpop.eup %10277 }
0x233a   :  { %v4769_v26 = vmul.f32 %v10270_v19, %v4768_v49 }
0x233c   :  { %v4770_v42 = vadd.f32 %v10270_v19, %v4769_v26 }
0x233e   :  { %v4774_v60 = vsel %vm4773_vm5, %v10270_v19, %v4770_v42 }
0x233f   :  { %v4779_v23 = vsel %vm4776_vm6, %v4778_v38, %v4774_v60 }
0x2340   :  { %4791 = vrot.lane.b32.xlu0 %v4779_v23, %s10493_s20 }
0x2392   :  { %v4790_v20 = vpop.permute.xlu2 %4789 }
0x2393   :  { %v4799_v34 = vmul.f32 %v10276_v63, %v4790_v20 }
0x239a   :  { %v4786_v12 = vpop.permute.xlu0 %4785 }
0x239b   :  { %v4797_v4 = vmul.f32 %v10272_v53, %v4786_v12 }
0x23a2   :  { %v4788_v57 = vpop.permute.xlu1 %4787 }
0x23a3   :  { %v4798_v41 = vmul.f32 %v10274_v44, %v4788_v57 }
0x23a5   :  { %v4806_v48 = vpack.c.bf16 %v4798_v41, %v4797_v4 }
0x23a7   :  { %8634 = vmatmul.msk.bf16.vlgmr.msrb.gmra.mxu2 %vm261_vm0, %v4806_v48 }
0x23b2   :  { %v4792_v29 = vpop.permute.xlu0 %4791 }
0x23b3   :  { %v4800_v19 = vmul.f32 %v10278_v39, %v4792_v29 }
0x23b5   :  { %v4807_v3 = vpack.c.bf16 %v4800_v19, %v4799_v34 }
0x23b7   :  { %8635 = vmatmul.msk.bf16.gmra.mxu2 %vm261_vm0, %v4807_v3 }
0x242a   :  { %v4840_v13 = vpop.f32.mrf.mxu2 }
0x242b   :  { %v12504_v40 = vadd.f32 %v10019_v22, %v4840_v13 }
0x242d   :  { %v4850_v60 = vadd.f32 %v12504_v40, %v12330_v61 }
0x2432   :  { %v4842_v45 = vpop.f32.mrf.mxu2 }
0x2433   :  { %v12502_v27 = vadd.f32 %v10019_v22, %v4842_v45 }
0x2435   :  { %v4851_v42 = vadd.f32 %v12502_v27, %v12325_v37  ;;  %v12528_v37 = vmul.f32 %v4850_v60, %v10634_v9  ;;  %v9363_v60 = vld [vmem:[%s13582_s5 + $0x350] sm:$0xff] }
0x2437   :  { %v12523_v16 = vmul.f32 %v4851_v42, %v10636_v10 }
0x243a   :  { %v4845_v56 = vpop.f32.mrf.mxu2 }
0x243b   :  { %v12500_v49 = vadd.f32 %v10019_v22, %v4845_v56 }
0x243d   :  { %v4852_v26 = vadd.f32 %v12500_v49, %v12319_v46 }
0x243f   :  { %v12517_v23 = vmul.f32 %v4852_v26, %v10624_v52 }
0x2442   :  { %v4847_v55 = vpop.f32.mrf.mxu2 }
0x2443   :  { %v12508_v25 = vadd.f32 %v10019_v22, %v4847_v55 }
0x2445   :  { %v4853_v38 = vadd.f32 %v12508_v25, %v12322_v21  ;;  %v4862_v21 = vpack.c.bf16 %v12523_v16, %v12528_v37 }
0x2447   :  { %v12520_v14 = vmul.f32 %v4853_v38, %v10622_v47  ;;  %v9364_v38 = vld [vmem:[%s13582_s5 + $0x358] sm:$0xff] }
0x2448   :  { %5079 = vmatpush.bf16.msra.mxu2 %v9364_v38 }
0x2449   :  { %v4863_v46 = vpack.c.bf16 %v12520_v14, %v12517_v23 }
0x244b   :  { %4870 = vmatpush.bf16.msra.mxu1 %v4863_v46  ;;  %v9362_v46 = vld [vmem:[%s13582_s5 + $0x348] sm:$0xff] }
0x244c   :  { %5080 = vmatpush.bf16.msra.mxu2 %v9363_v60 }
0x244f   :  { %4871 = vmatpush.bf16.msra.mxu1 %v4862_v21  ;;  %v9361_v21 = vld [vmem:[%s13582_s5 + $0x340] sm:$0xff] }
0x2450   :  { %5081 = vmatpush.bf16.msra.mxu2 %v9362_v46 }
0x2452   :  { %8636 = vmatmul.msk.bf16.vlgmr.msra.gmra.mxu1 %vm261_vm0, %v12337_v31 }
0x2454   :  { %5082 = vmatpush.bf16.msra.mxu2 %v9361_v21 }
0x2462   :  { %8637 = vmatmul.msk.bf16.gmra.mxu1 %vm261_vm0, %v12344_v35 }
0x2472   :  { %8638 = vmatmul.msk.bf16.gmra.mxu1 %vm261_vm0, %v12351_v33 }
0x2482   :  { %8639 = vmatmul.msk.bf16.gmra.mxu1 %vm261_vm0, %v12358_v2 }
0x2492   :  { %8640 = vmatmul.msk.bf16.gmra.mxu1 %vm261_vm0, %v12365_v15 }
0x24a2   :  { %8641 = vmatmul.msk.bf16.gmra.mxu1 %vm261_vm0, %v12372_v51 }
0x24b2   :  { %8642 = vmatmul.msk.bf16.gmra.mxu1 %vm261_vm0, %v12379_v24 }
0x24c2   :  { %8643 = vmatmul.msk.bf16.gmra.mxu1 %vm261_vm0, %v12386_v58 }
0x24cf   :  { %v12548_v61 = vpop.f32.mrf.mxu1 }
0x24d2   :  { %8644 = vmatmul.msk.bf16.gmra.mxu1 %vm261_vm0, %v12393_v54 }
0x24d7   :  { %v12552_v12 = vpop.f32.mrf.mxu1 }
0x24df   :  { %v12554_v53 = vpop.f32.mrf.mxu1 }
0x24e2   :  { %8645 = vmatmul.msk.bf16.gmra.mxu1 %vm261_vm0, %v12404_v5 }
0x24e7   :  { %v12558_v44 = vpop.f32.mrf.mxu1 }
0x24ef   :  { %v4883_v57 = vpop.f32.mrf.mxu1 }
0x24f7   :  { %v4885_v4 = vpop.f32.mrf.mxu1 }
0x24f8   :  { %v9789_v41 = vpack.i.bf16 %v4885_v4, %v4883_v57  ;;  %v9360_v57 = vld [vmem:[%s13582_s5 + $0x338] sm:$0xff]  ;;  %v9359_v4 = vld [vmem:[%s13582_s5 + $0x330] sm:$0xff] }
0x24f9   :  { %5083 = vmatpush.bf16.msra.mxu2 %v9360_v57 }
0x24fa   :  { %9790 = vrot.lane.b32.xlu1 %v9789_v41, %s10491_s14  ;;  %v9358_v41 = vld [vmem:[%s13582_s5 + $0x328] sm:$0xff] }
0x24fd   :  { %5084 = vmatpush.bf16.msra.mxu2 %v9359_v4 }
0x24ff   :  { %v4888_v48 = vpop.f32.mrf.mxu1 }
0x2501   :  { %5085 = vmatpush.bf16.msra.mxu2 %v9358_v41 }
0x2507   :  { %v4890_v20 = vpop.f32.mrf.mxu1 }
0x2508   :  { %v9804_v63 = vpack.i.bf16 %v4890_v20, %v4888_v48  ;;  %v9366_v20 = vld [vmem:[%s13582_s5 + $0x368] sm:$0xff] }
0x2509   :  { %5104 = vmatpush.bf16.msrb.mxu0 %v9366_v20 }
0x250a   :  { %9805 = vrot.lane.b32.xlu1 %v9804_v63, %s10491_s14  ;;  %v9365_v63 = vld [vmem:[%s13582_s5 + $0x360] sm:$0xff] }
0x250d   :  { %5105 = vmatpush.bf16.msrb.mxu0 %v9365_v63 }
0x250f   :  { %v4893_v39 = vpop.f32.mrf.mxu1 }
0x2517   :  { %v4895_v29 = vpop.f32.mrf.mxu1 }
0x2518   :  { %v9794_v34 = vpack.i.bf16 %v4895_v29, %v4893_v39 }
0x251a   :  { %9795 = vrot.lane.b32.xlu2 %v9794_v34, %s10492_s19  ;;  %v9357_v34 = vld [vmem:[%s13582_s5 + $0x320] sm:$0xff] }
0x251b   :  { %5086 = vmatpush.bf16.msra.mxu2 %v9357_v34 }
0x251f   :  { %v4898_v19 = vpop.f32.mrf.mxu1 }
0x2527   :  { %v4900_v3 = vpop.f32.mrf.mxu1 }
0x2528   :  { %v9809_v13 = vpack.i.bf16 %v4900_v3, %v4898_v19 }
0x252a   :  { %9810 = vrot.lane.b32.xlu2 %v9809_v13, %s10492_s19 }
0x252f   :  { %v4903_v45 = vpop.f32.mrf.mxu1 }
0x2537   :  { %v4905_v56 = vpop.f32.mrf.mxu1 }
0x2538   :  { %v9799_v22 = vpack.i.bf16 %v4905_v56, %v4903_v45 }
0x253a   :  { %9800 = vrot.lane.b32.xlu0 %v9799_v22, %s10493_s20 }
0x253f   :  { %v4908_v55 = vpop.f32.mrf.mxu1 }
0x2547   :  { %v4910_v26 = vpop.f32.mrf.mxu1 }
0x2548   :  { %v9814_v42 = vpack.i.bf16 %v4910_v26, %v4908_v55 }
0x254a   :  { %9815 = vrot.lane.b32.xlu0 %v9814_v42, %s10493_s20 }
0x254f   :  { %v4913_v48 = vpop.f32.mrf.mxu1 }
0x2557   :  { %v4915_v39 = vpop.f32.mrf.mxu1 }
0x2558   :  { %v5005_v29 = vpack.c.bf16 %v4915_v39, %v4913_v48 }
0x255a   :  { %8707 = vmatmul.msk.bf16.vlgmr.msrb.gmra.mxu0 %vm261_vm0, %v5005_v29 }
0x255f   :  { %v4918_v19 = vpop.f32.mrf.mxu1 }
0x2567   :  { %v4920_v3 = vpop.f32.mrf.mxu1 }
0x2568   :  { %v5007_v13 = vpack.c.bf16 %v4920_v3, %v4918_v19 }
0x256a   :  { %8708 = vmatmul.msk.bf16.gmra.mxu0 %vm261_vm0, %v5007_v13 }
0x256c   :  { %v9791_v45 = vpop.permute.xlu1 %9790 }
0x256d   :  { %v9793_v22 = vunpack.i.h.bf16 %v9791_v45  ;;  %v9792_v55 = vunpack.i.l.bf16 %v9791_v45 }
0x256f   :  { %v4972_v60 = vsel %vm261_vm0, %v12552_v12, %v9793_v22  ;;  %v4971_v46 = vsel %vm261_vm0, %v12548_v61, %v9792_v55 }
0x2574   :  { %v9796_v56 = vpop.permute.xlu2 %9795 }
0x2575   :  { %v9798_v26 = vunpack.i.h.bf16 %v9796_v56  ;;  %v9797_v42 = vunpack.i.l.bf16 %v9796_v56 }
0x2577   :  { %v4976_v4 = vsel %vm403_vm1, %v4972_v60, %v9798_v26  ;;  %v4975_v41 = vsel %vm403_vm1, %v4971_v46, %v9797_v42 }
0x257c   :  { %v9806_v39 = vpop.permute.xlu1 %9805 }
0x257d   :  { %v9808_v34 = vunpack.i.h.bf16 %v9806_v39  ;;  %v9807_v19 = vunpack.i.l.bf16 %v9806_v39 }
0x257f   :  { %v4974_v61 = vsel %vm261_vm0, %v12558_v44, %v9808_v34  ;;  %v4973_v45 = vsel %vm261_vm0, %v12554_v53, %v9807_v19  ;;  %v10020_v44 = vld [vmem:[%s13581_s6 + $0xa] ss:$0 sm:$0xff] }
0x2584   :  { %v9811_v29 = vpop.permute.xlu2 %9810 }
0x2585   :  { %v9813_v12 = vunpack.i.h.bf16 %v9811_v29  ;;  %v9812_v3 = vunpack.i.l.bf16 %v9811_v29 }
0x2587   :  { %v4978_v55 = vsel %vm403_vm1, %v4974_v61, %v9813_v12  ;;  %v4977_v26 = vsel %vm403_vm1, %v4973_v45, %v9812_v3 }
0x25ac   :  { %v9801_v38 = vpop.permute.xlu0 %9800 }
0x25ad   :  { %v9803_v21 = vunpack.i.h.bf16 %v9801_v38  ;;  %v9802_v57 = vunpack.i.l.bf16 %v9801_v38 }
0x25af   :  { %v4980_v48 = vsel %vm408_vm2, %v4976_v4, %v9803_v21  ;;  %v4979_v20 = vsel %vm408_vm2, %v4975_v41, %v9802_v57 }
0x25b0   :  { %v5004_v63 = vpack.c.bf16 %v4980_v48, %v4979_v20 }
0x25b2   :  { %5087 = vmatmul.bf16.vlgmr.msra.gmra.mxu2 %v5004_v63 }
0x25bc   :  { %v9816_v13 = vpop.permute.xlu0 %9815 }
0x25bd   :  { %v9818_v56 = vunpack.i.h.bf16 %v9816_v13  ;;  %v9817_v22 = vunpack.i.l.bf16 %v9816_v13 }
0x25bf   :  { %v4981_v42 = vsel %vm408_vm2, %v4977_v26, %v9817_v22  ;;  %v4982_v38 = vsel %vm408_vm2, %v4978_v55, %v9818_v56 }
0x25c0   :  { %v5006_v60 = vpack.c.bf16 %v4982_v38, %v4981_v42 }
0x25c2   :  { %5092 = vmatmul.bf16.gmra.mxu2 %v5006_v60 }
0x25d7   :  { %v5107_v46 = vpop.f32.mrf.mxu0 }
0x25df   :  { %v5109_v41 = vpop.f32.mrf.mxu0 }
0x25e7   :  { %v5112_v12 = vpop.f32.mrf.mxu0 }
0x25ef   :  { %v5114_v60 = vpop.f32.mrf.mxu0 }
0x2635   :  { %v5088_v21 = vpop.f32.mrf.mxu2 }
0x2636   :  { %v5089_v57 = vadd.f32 %v10020_v44, %v5088_v21 }
0x2638   :  { %v12617_v53 = vadd.f32 %v5107_v46, %v5089_v57 }
0x263a   :  { %v8709_v4 = vmul.f32 -1.442695, %v12617_v53 }
0x263c   :  { %10279 = vpow2.f32 %v8709_v4 }
0x263d   :  { %v5090_v48 = vpop.f32.mrf.mxu2 }
0x263e   :  { %v5091_v20 = vadd.f32 %v10020_v44, %v5090_v48 }
0x2640   :  { %v12620_v63 = vadd.f32 %v5109_v41, %v5091_v20 }
0x2642   :  { %v10280_v39 = vpop.eup %10279  ;;  %v8710_v29 = vmul.f32 -1.442695, %v12620_v63 }
0x2643   :  { %v5133_v34 = vadd.f32 1.0, %v10280_v39 }
0x2644   :  { %10281 = vpow2.f32 %v8710_v29 }
0x2645   :  { %10283 = vrcp.f32 %v5133_v34  ;;  %v5093_v19 = vpop.f32.mrf.mxu2  ;;  %v5148_v46 = vand.u32 2147483648, %v5133_v34  ;;  %v5146_v4 = vand.u32 2147483647, %v5133_v34  ;;  %vm5142_vm8 = vweird.f32 %v5133_v34 }
0x2646   :  { %v5094_v3 = vadd.f32 %v10020_v44, %v5093_v19 }
0x2647   :  { %v5149_v19 = vor.u32 1.1754944e-38, %v5148_v46  ;;  %vm5147_vm10 = vcmp.eq.f32.partialorder %v5146_v4, 8.507059e+37 }
0x2648   :  { %v12623_v13 = vadd.f32 %v5112_v12, %v5094_v3 }
0x264a   :  { %v10282_v61 = vpop.eup %10281  ;;  %v8711_v45 = vmul.f32 -1.442695, %v12623_v13 }
0x264b   :  { %v10284_v56 = vpop.eup %10283  ;;  %v5134_v22 = vadd.f32 1.0, %v10282_v61 }
0x264c   :  { %10285 = vpow2.f32 %v8711_v45  ;;  %v5138_v55 = vmul.f32 %v10284_v56, %v5133_v34  ;;  %vm5143_vm7 = vweird.f32 %v10284_v56 }
0x264d   :  { %10287 = vrcp.f32 %v5134_v22  ;;  %v5095_v26 = vpop.f32.mrf.mxu2  ;;  %vm5144_vm9 = vmor %vm5142_vm8, %vm5143_vm7  ;;  %v5163_v45 = vand.u32 2147483648, %v5134_v22  ;;  %vm5157_vm12 = vweird.f32 %v5134_v22 }
0x264e   :  { %v5096_v42 = vadd.f32 %v10020_v44, %v5095_v26  ;;  %v5139_v38 = vsub.f32 1.0, %v5138_v55  ;;  %v5161_v26 = vand.u32 2147483647, %v5134_v22 }
0x264f   :  { %v5164_v46 = vor.u32 1.1754944e-38, %v5163_v45 }
0x2650   :  { %v12626_v21 = vadd.f32 %v5114_v60, %v5096_v42  ;;  %v5140_v57 = vmul.f32 %v10284_v56, %v5139_v38  ;;  %vm5162_vm14 = vcmp.eq.f32.partialorder %v5161_v26, 8.507059e+37 }
0x2652   :  { %v10286_v41 = vpop.eup %10285  ;;  %v8712_v48 = vmul.f32 -1.442695, %v12626_v21  ;;  %v5141_v20 = vadd.f32 %v10284_v56, %v5140_v57 }
0x2653   :  { %v10288_v39 = vpop.eup %10287  ;;  %v5135_v29 = vadd.f32 1.0, %v10286_v41 }
0x2654   :  { %10289 = vpow2.f32 %v8712_v48  ;;  %v5145_v12 = vsel %vm5144_vm9, %v10284_v56, %v5141_v20  ;;  %v5153_v44 = vmul.f32 %v10288_v39, %v5134_v22  ;;  %vm5158_vm11 = vweird.f32 %v10288_v39 }
0x2655   :  { %10291 = vrcp.f32 %v5135_v29  ;;  %v5150_v3 = vsel %vm5147_vm10, %v5149_v19, %v5145_v12  ;;  %vm5159_vm13 = vmor %vm5157_vm12, %vm5158_vm11  ;;  %v5178_v48 = vand.u32 2147483648, %v5135_v29  ;;  %v5176_v19 = vand.u32 2147483647, %v5135_v29 }
0x2656   :  { %5201 = vrot.lane.b32.xlu1 %v5150_v3, %s10493_s20  ;;  %v5154_v61 = vsub.f32 1.0, %v5153_v44  ;;  %vm5172_vm3 = vweird.f32 %v5135_v29 }
0x2657   :  { %v5179_v22 = vor.u32 1.1754944e-38, %v5178_v48  ;;  %vm5177_vm5 = vcmp.eq.f32.partialorder %v5176_v19, 8.507059e+37 }
0x2658   :  { %v5155_v55 = vmul.f32 %v10288_v39, %v5154_v61 }
0x265a   :  { %v10290_v42 = vpop.eup %10289  ;;  %v5156_v38 = vadd.f32 %v10288_v39, %v5155_v55 }
0x265b   :  { %v10292_v34 = vpop.eup %10291  ;;  %v5136_v60 = vadd.f32 1.0, %v10290_v42 }
0x265c   :  { %v5160_v57 = vsel %vm5159_vm13, %v10288_v39, %v5156_v38  ;;  %v5168_v56 = vmul.f32 %v10292_v34, %v5135_v29  ;;  %vm5173_vm15 = vweird.f32 %v10292_v34 }
0x265d   :  { %10293 = vrcp.f32 %v5136_v60  ;;  %v5165_v4 = vsel %vm5162_vm14, %v5164_v46, %v5160_v57  ;;  %vm5174_vm4 = vmor %vm5172_vm3, %vm5173_vm15  ;;  %v5193_v55 = vand.u32 2147483648, %v5136_v60  ;;  %v5191_v42 = vand.u32 2147483647, %v5136_v60 }
0x265e   :  { %5203 = vrot.lane.b32.xlu2 %v5165_v4, %s10493_s20  ;;  %v5169_v41 = vsub.f32 1.0, %v5168_v56  ;;  %vm5187_vm7 = vweird.f32 %v5136_v60  ;;  %v9367_v56 = vld [vmem:[%s13584_s7 + $0x80] sm:$0xff]  ;;  %10295 = vtanh.f32 %v12617_v53 }
0x265f   :  { %v5194_v46 = vor.u32 1.1754944e-38, %v5193_v55  ;;  %vm5192_vm9 = vcmp.eq.f32.partialorder %v5191_v42, 8.507059e+37  ;;  %10297 = vtanh.f32 %v12620_v63 }
0x2660   :  { %v5170_v20 = vmul.f32 %v10292_v34, %v5169_v41  ;;  %10299 = vtanh.f32 %v12623_v13 }
0x2661   :  { %10301 = vtanh.f32 %v12626_v21 }
0x2662   :  { %v5171_v12 = vadd.f32 %v10292_v34, %v5170_v20 }
0x2663   :  { %v10294_v44 = vpop.eup %10293 }
0x2664   :  { %v5175_v3 = vsel %vm5174_vm4, %v10292_v34, %v5171_v12  ;;  %v5183_v61 = vmul.f32 %v10294_v44, %v5136_v60  ;;  %vm5188_vm6 = vweird.f32 %v10294_v44  ;;  %v9368_v34 = vld [vmem:[%s13584_s7 + $0x88] sm:$0xff]  ;;  %v10296_v4 = vpop.eup %10295 }
0x2665   :  { %v5180_v39 = vsel %vm5177_vm5, %v5179_v22, %v5175_v3  ;;  %vm5189_vm8 = vmor %vm5187_vm7, %vm5188_vm6  ;;  %5253 = vmatpush.bf16.msrb.mxu2 %v9368_v34  ;;  %v10298_v41 = vpop.eup %10297  ;;  %v4860_v34 = vadd.f32 %v12500_v49, %v12302_v17 }
0x2666   :  { %5205 = vrot.lane.b32.xlu0 %v5180_v39, %s10493_s20  ;;  %v5184_v45 = vsub.f32 1.0, %v5183_v61  ;;  %v10300_v22 = vpop.eup %10299 }
0x2667   :  { %v10302_v3 = vpop.eup %10301 }
0x2668   :  { %v5185_v26 = vmul.f32 %v10294_v44, %v5184_v45  ;;  %v10021_v45 = vld [vmem:[%s13583_s8 + $0x8] ss:$0 sm:$0xff] }
0x2669   :  { %5254 = vmatpush.bf16.msrb.mxu2 %v9367_v56 }
0x266a   :  { %v5186_v38 = vadd.f32 %v10294_v44, %v5185_v26  ;;  %v4858_v26 = vadd.f32 %v12504_v40, %v12306_v62  ;;  %v4861_v62 = vadd.f32 %v12508_v25, %v12310_v18 }
0x266c   :  { %v5190_v57 = vsel %vm5189_vm8, %v10294_v44, %v5186_v38  ;;  %v4859_v38 = vadd.f32 %v12502_v27, %v12304_v11 }
0x266d   :  { %v5195_v29 = vsel %vm5192_vm9, %v5194_v46, %v5190_v57 }
0x266e   :  { %5207 = vrot.lane.b32.xlu1 %v5195_v29, %s10493_s20 }
0x26b8   :  { %v5204_v60 = vpop.permute.xlu2 %5203 }
0x26b9   :  { %v5214_v20 = vmul.f32 %v10298_v41, %v5204_v60 }
0x26c8   :  { %v5202_v48 = vpop.permute.xlu1 %5201 }
0x26c9   :  { %v5213_v19 = vmul.f32 %v10296_v4, %v5202_v48 }
0x26cb   :  { %v5222_v12 = vpack.c.bf16 %v5214_v20, %v5213_v19 }
0x26cd   :  { %8726 = vmatmul.msk.bf16.vlgmr.msrb.gmra.mxu2 %vm261_vm0, %v5222_v12 }
0x26d8   :  { %v5206_v44 = vpop.permute.xlu0 %5205 }
0x26d9   :  { %v5215_v53 = vmul.f32 %v10300_v22, %v5206_v44 }
0x26e0   :  { %v5208_v61 = vpop.permute.xlu1 %5207 }
0x26e1   :  { %v5216_v39 = vmul.f32 %v10302_v3, %v5208_v61 }
0x26e3   :  { %v5223_v63 = vpack.c.bf16 %v5216_v39, %v5215_v53 }
0x26e5   :  { %8727 = vmatmul.msk.bf16.gmra.mxu2 %vm261_vm0, %v5223_v63 }
0x2750   :  { %v5256_v55 = vpop.f32.mrf.mxu2 }
0x2751   :  { %v5257_v13 = vadd.f32 %v10021_v45, %v5256_v55  ;;  %v9376_v55 = vld [vmem:[%s13582_s5 + $0x3a8] sm:$0xff] }
0x2752   :  { %5495 = vmatpush.bf16.msra.mxu2 %v9376_v55 }
0x2753   :  { %v12650_v42 = vadd.f32 %v5257_v13, %v4858_v26  ;;  %v5266_v20 = vadd.f32 %v5257_v13, %v12528_v37  ;;  %v9375_v26 = vld [vmem:[%s13582_s5 + $0x3a0] sm:$0xff]  ;;  %v9374_v13 = vld [vmem:[%s13582_s5 + $0x398] sm:$0xff] }
0x2755   :  { %v5270_v18 = vmul.f32 %v5266_v20, %v10634_v9 }
0x2756   :  { %5496 = vmatpush.bf16.msra.mxu2 %v9375_v26 }
0x2758   :  { %v5258_v21 = vpop.f32.mrf.mxu2 }
0x2759   :  { %v5259_v46 = vadd.f32 %v10021_v45, %v5258_v21 }
0x275a   :  { %5497 = vmatpush.bf16.msra.mxu2 %v9374_v13 }
0x275b   :  { %v12654_v57 = vadd.f32 %v5259_v46, %v4859_v38  ;;  %v5267_v48 = vadd.f32 %v5259_v46, %v12523_v16  ;;  %v9378_v38 = vld [vmem:[%s13582_s5 + $0x3b8] sm:$0xff]  ;;  %v9373_v46 = vld [vmem:[%s13582_s5 + $0x390] sm:$0xff] }
0x275c   :  { %5520 = vmatpush.bf16.msrb.mxu3 %v9378_v38 }
0x275d   :  { %v5271_v19 = vmul.f32 %v5267_v48, %v10636_v10 }
0x275e   :  { %5498 = vmatpush.bf16.msra.mxu2 %v9373_v46 }
0x275f   :  { %v5278_v25 = vpack.c.bf16 %v5271_v19, %v5270_v18 }
0x2768   :  { %v5261_v29 = vpop.f32.mrf.mxu2 }
0x2769   :  { %v5262_v56 = vadd.f32 %v10021_v45, %v5261_v29  ;;  %v9372_v29 = vld [vmem:[%s13582_s5 + $0x388] sm:$0xff] }
0x276a   :  { %5499 = vmatpush.bf16.msra.mxu2 %v9372_v29  ;;  %v10022_v29 = vld [vmem:[%s13581_s6 + $0xb] ss:$0 sm:$0xff] }
0x276b   :  { %v12658_v60 = vadd.f32 %v5262_v56, %v4860_v34  ;;  %v5268_v40 = vadd.f32 %v5262_v56, %v12517_v23  ;;  %v9377_v34 = vld [vmem:[%s13582_s5 + $0x3b0] sm:$0xff] }
0x276c   :  { %5521 = vmatpush.bf16.msrb.mxu3 %v9377_v34 }
0x276d   :  { %v5272_v17 = vmul.f32 %v5268_v40, %v10624_v52  ;;  %v9370_v40 = vld [vmem:[%s13582_s5 + $0x378] sm:$0xff] }
0x2770   :  { %v5263_v4 = vpop.f32.mrf.mxu2 }
0x2771   :  { %v5264_v41 = vadd.f32 %v10021_v45, %v5263_v4 }
0x2773   :  { %v5269_v11 = vadd.f32 %v5264_v41, %v12520_v14  ;;  %v12665_v27 = vadd.f32 %v5264_v41, %v4861_v62  ;;  %v9371_v62 = vld [vmem:[%s13582_s5 + $0x380] sm:$0xff]  ;;  %v9369_v41 = vld [vmem:[%s13582_s5 + $0x370] sm:$0xff] }
0x2774   :  { %5500 = vmatpush.bf16.msra.mxu2 %v9371_v62 }
0x2775   :  { %v5273_v49 = vmul.f32 %v5269_v11, %v10622_v47 }
0x2777   :  { %v5279_v12 = vpack.c.bf16 %v5273_v49, %v5272_v17 }
0x2778   :  { %5501 = vmatpush.bf16.msra.mxu2 %v9370_v40 }
0x2779   :  { %5286 = vmatpush.bf16.msra.mxu0 %v5279_v12 }
0x277c   :  { %5502 = vmatpush.bf16.msra.mxu2 %v9369_v41 }
0x277d   :  { %5287 = vmatpush.bf16.msra.mxu0 %v5278_v25 }
0x2780   :  { %8728 = vmatmul.msk.bf16.vlgmr.msra.gmra.mxu0 %vm261_vm0, %v12337_v31 }
0x2790   :  { %8729 = vmatmul.msk.bf16.gmra.mxu0 %vm261_vm0, %v12344_v35 }
0x27a0   :  { %8730 = vmatmul.msk.bf16.gmra.mxu0 %vm261_vm0, %v12351_v33 }
0x27b0   :  { %8731 = vmatmul.msk.bf16.gmra.mxu0 %vm261_vm0, %v12358_v2 }
0x27c0   :  { %8732 = vmatmul.msk.bf16.gmra.mxu0 %vm261_vm0, %v12365_v15 }
0x27d0   :  { %8733 = vmatmul.msk.bf16.gmra.mxu0 %vm261_vm0, %v12372_v51 }
0x27e0   :  { %8734 = vmatmul.msk.bf16.gmra.mxu0 %vm261_vm0, %v12379_v24 }
0x27f0   :  { %8735 = vmatmul.msk.bf16.gmra.mxu0 %vm261_vm0, %v12386_v58 }
0x27fd   :  { %v12688_v31 = vpop.f32.mrf.mxu0 }
0x2800   :  { %8736 = vmatmul.msk.bf16.gmra.mxu0 %vm261_vm0, %v12393_v54 }
0x2805   :  { %v12692_v35 = vpop.f32.mrf.mxu0 }
0x280d   :  { %v12694_v33 = vpop.f32.mrf.mxu0 }
0x2810   :  { %8737 = vmatmul.msk.bf16.gmra.mxu0 %vm261_vm0, %v12404_v5 }
0x2815   :  { %v12698_v2 = vpop.f32.mrf.mxu0 }
0x281d   :  { %v5299_v15 = vpop.f32.mrf.mxu0 }
0x2825   :  { %v5301_v51 = vpop.f32.mrf.mxu0 }
0x2826   :  { %v9819_v24 = vpack.i.bf16 %v5301_v51, %v5299_v15 }
0x2828   :  { %9820 = vrot.lane.b32.xlu2 %v9819_v24, %s10491_s14 }
0x282d   :  { %v5304_v58 = vpop.f32.mrf.mxu0 }
0x2835   :  { %v5306_v23 = vpop.f32.mrf.mxu0 }
0x2836   :  { %v9834_v14 = vpack.i.bf16 %v5306_v23, %v5304_v58 }
0x2838   :  { %9835 = vrot.lane.b32.xlu2 %v9834_v14, %s10491_s14 }
0x283d   :  { %v5309_v54 = vpop.f32.mrf.mxu0 }
0x2845   :  { %v5311_v16 = vpop.f32.mrf.mxu0 }
0x2846   :  { %v9824_v37 = vpack.i.bf16 %v5311_v16, %v5309_v54 }
0x2848   :  { %9825 = vrot.lane.b32.xlu0 %v9824_v37, %s10492_s19 }
0x284d   :  { %v5314_v44 = vpop.f32.mrf.mxu0 }
0x2855   :  { %v5316_v22 = vpop.f32.mrf.mxu0 }
0x2856   :  { %v9839_v5 = vpack.i.bf16 %v5316_v22, %v5314_v44 }
0x2858   :  { %9840 = vrot.lane.b32.xlu0 %v9839_v5, %s10492_s19 }
0x285d   :  { %v5319_v3 = vpop.f32.mrf.mxu0 }
0x2865   :  { %v5321_v61 = vpop.f32.mrf.mxu0 }
0x2866   :  { %v9829_v53 = vpack.i.bf16 %v5321_v61, %v5319_v3 }
0x2868   :  { %9830 = vrot.lane.b32.xlu1 %v9829_v53, %s10493_s20 }
0x286d   :  { %v5324_v39 = vpop.f32.mrf.mxu0 }
0x2875   :  { %v5326_v63 = vpop.f32.mrf.mxu0 }
0x2876   :  { %v9844_v45 = vpack.i.bf16 %v5326_v63, %v5324_v39 }
0x2878   :  { %9845 = vrot.lane.b32.xlu1 %v9844_v45, %s10493_s20 }
0x287d   :  { %v5329_v21 = vpop.f32.mrf.mxu0 }
0x2882   :  { %v9821_v17 = vpop.permute.xlu2 %9820 }
0x2883   :  { %v9823_v19 = vunpack.i.h.bf16 %v9821_v17  ;;  %v9822_v12 = vunpack.i.l.bf16 %v9821_v17 }
0x2885   :  { %v5331_v56 = vpop.f32.mrf.mxu0  ;;  %v5388_v51 = vsel %vm261_vm0, %v12692_v35, %v9823_v19  ;;  %v5387_v24 = vsel %vm261_vm0, %v12688_v31, %v9822_v12 }
0x2886   :  { %v5421_v4 = vpack.c.bf16 %v5331_v56, %v5329_v21 }
0x2888   :  { %8799 = vmatmul.msk.bf16.vlgmr.msrb.gmra.mxu3 %vm261_vm0, %v5421_v4 }
0x288d   :  { %v5334_v48 = vpop.f32.mrf.mxu0 }
0x2892   :  { %v9836_v22 = vpop.permute.xlu2 %9835 }
0x2893   :  { %v9838_v3 = vunpack.i.h.bf16 %v9836_v22  ;;  %v9837_v61 = vunpack.i.l.bf16 %v9836_v22 }
0x2895   :  { %v5336_v11 = vpop.f32.mrf.mxu0  ;;  %v5390_v31 = vsel %vm261_vm0, %v12698_v2, %v9838_v3  ;;  %v5389_v63 = vsel %vm261_vm0, %v12694_v33, %v9837_v61 }
0x2896   :  { %v5423_v20 = vpack.c.bf16 %v5336_v11, %v5334_v48 }
0x2898   :  { %8800 = vmatmul.msk.bf16.gmra.mxu3 %vm261_vm0, %v5423_v20 }
0x28ba   :  { %v9826_v49 = vpop.permute.xlu0 %9825 }
0x28bb   :  { %v9828_v18 = vunpack.i.h.bf16 %v9826_v49  ;;  %v9827_v25 = vunpack.i.l.bf16 %v9826_v49 }
0x28bd   :  { %v5392_v14 = vsel %vm403_vm1, %v5388_v51, %v9828_v18  ;;  %v5391_v54 = vsel %vm403_vm1, %v5387_v24, %v9827_v25 }
0x28ca   :  { %v9841_v5 = vpop.permute.xlu0 %9840 }
0x28cb   :  { %v9843_v35 = vunpack.i.h.bf16 %v9841_v5  ;;  %v9842_v53 = vunpack.i.l.bf16 %v9841_v5 }
0x28cd   :  { %v5394_v26 = vsel %vm403_vm1, %v5390_v31, %v9843_v35  ;;  %v5393_v13 = vsel %vm403_vm1, %v5389_v63, %v9842_v53 }
0x28da   :  { %v9831_v15 = vpop.permute.xlu1 %9830 }
0x28db   :  { %v9833_v58 = vunpack.i.h.bf16 %v9831_v15  ;;  %v9832_v23 = vunpack.i.l.bf16 %v9831_v15 }
0x28dd   :  { %v5396_v16 = vsel %vm408_vm2, %v5392_v14, %v9833_v58  ;;  %v5395_v37 = vsel %vm408_vm2, %v5391_v54, %v9832_v23 }
0x28de   :  { %v5420_v44 = vpack.c.bf16 %v5396_v16, %v5395_v37 }
0x28e0   :  { %5503 = vmatmul.bf16.vlgmr.msra.gmra.mxu2 %v5420_v44 }
0x28ea   :  { %v9846_v39 = vpop.permute.xlu1 %9845 }
0x28eb   :  { %v9848_v45 = vunpack.i.h.bf16 %v9846_v39  ;;  %v9847_v55 = vunpack.i.l.bf16 %v9846_v39 }
0x28ed   :  { %v5397_v21 = vsel %vm408_vm2, %v5393_v13, %v9847_v55  ;;  %v5398_v38 = vsel %vm408_vm2, %v5394_v26, %v9848_v45 }
0x28ee   :  { %v5422_v46 = vpack.c.bf16 %v5398_v38, %v5397_v21 }
0x28f0   :  { %5508 = vmatmul.bf16.gmra.mxu2 %v5422_v46 }
0x290b   :  { %v5523_v2 = vpop.f32.mrf.mxu3 }
0x2913   :  { %v5525_v40 = vpop.f32.mrf.mxu3 }
0x291b   :  { %v5528_v19 = vpop.f32.mrf.mxu3 }
0x2923   :  { %v5530_v16 = vpop.f32.mrf.mxu3 }
0x2963   :  { %v5504_v34 = vpop.f32.mrf.mxu2 }
0x2964   :  { %v5505_v56 = vadd.f32 %v10022_v29, %v5504_v34 }
0x2966   :  { %v12757_v33 = vadd.f32 %v5523_v2, %v5505_v56 }
0x2968   :  { %v8801_v4 = vmul.f32 -1.442695, %v12757_v33 }
0x296a   :  { %10303 = vpow2.f32 %v8801_v4 }
0x296b   :  { %v5506_v62 = vpop.f32.mrf.mxu2 }
0x296c   :  { %v5507_v41 = vadd.f32 %v10022_v29, %v5506_v62 }
0x296e   :  { %v12760_v48 = vadd.f32 %v5525_v40, %v5507_v41 }
0x2970   :  { %v10304_v11 = vpop.eup %10303  ;;  %v8802_v20 = vmul.f32 -1.442695, %v12760_v48 }
0x2971   :  { %v5549_v17 = vadd.f32 1.0, %v10304_v11 }
0x2972   :  { %10305 = vpow2.f32 %v8802_v20 }
0x2973   :  { %10307 = vrcp.f32 %v5549_v17  ;;  %v5509_v49 = vpop.f32.mrf.mxu2  ;;  %v5564_v37 = vand.u32 2147483648, %v5549_v17  ;;  %v5562_v5 = vand.u32 2147483647, %v5549_v17  ;;  %vm5558_vm11 = vweird.f32 %v5549_v17 }
0x2974   :  { %v5510_v12 = vadd.f32 %v10022_v29, %v5509_v49 }
0x2975   :  { %v5565_v31 = vor.u32 1.1754944e-38, %v5564_v37  ;;  %vm5563_vm13 = vcmp.eq.f32.partialorder %v5562_v5, 8.507059e+37  ;;  %v9380_v5 = vld [vmem:[%s13585_s9 + $0x28] sm:$0xff] }
0x2976   :  { %v12763_v18 = vadd.f32 %v5528_v19, %v5510_v12  ;;  %5664 = vmatpush.bf16.msrb.mxu2 %v9380_v5  ;;  %v5771_v5 = vmul.f32 %v11358_v8, %v10634_v9 }
0x2978   :  { %v10306_v25 = vpop.eup %10305  ;;  %v8803_v15 = vmul.f32 -1.442695, %v12763_v18 }
0x2979   :  { %v10308_v51 = vpop.eup %10307  ;;  %v5550_v24 = vadd.f32 1.0, %v10306_v25 }
0x297a   :  { %10309 = vpow2.f32 %v8803_v15  ;;  %v5554_v58 = vmul.f32 %v10308_v51, %v5549_v17  ;;  %vm5559_vm10 = vweird.f32 %v10308_v51 }
0x297b   :  { %10311 = vrcp.f32 %v5550_v24  ;;  %v5511_v23 = vpop.f32.mrf.mxu2  ;;  %vm5560_vm12 = vmor %vm5558_vm11, %vm5559_vm10  ;;  %v5579_v13 = vand.u32 2147483648, %v5550_v24  ;;  %v5577_v38 = vand.u32 2147483647, %v5550_v24  ;;  %vm5573_vm15 = vweird.f32 %v5550_v24 }
0x297c   :  { %v5512_v14 = vadd.f32 %v10022_v29, %v5511_v23  ;;  %v5555_v54 = vsub.f32 1.0, %v5554_v58 }
0x297d   :  { %v5580_v56 = vor.u32 1.1754944e-38, %v5579_v13  ;;  %vm5578_vm4 = vcmp.eq.f32.partialorder %v5577_v38, 8.507059e+37 }
0x297e   :  { %v12766_v44 = vadd.f32 %v5530_v16, %v5512_v14  ;;  %v5556_v22 = vmul.f32 %v10308_v51, %v5555_v54 }
0x2980   :  { %v10310_v3 = vpop.eup %10309  ;;  %v8804_v61 = vmul.f32 -1.442695, %v12766_v44  ;;  %v5557_v35 = vadd.f32 %v10308_v51, %v5556_v22 }
0x2981   :  { %v10312_v53 = vpop.eup %10311  ;;  %v5551_v39 = vadd.f32 1.0, %v10310_v3  ;;  %v9379_v3 = vld [vmem:[%s13585_s9 + $0x20] sm:$0xff] }
0x2982   :  { %10313 = vpow2.f32 %v8804_v61  ;;  %v5561_v63 = vsel %vm5560_vm12, %v10308_v51, %v5557_v35  ;;  %v5569_v45 = vmul.f32 %v10312_v53, %v5550_v24  ;;  %vm5574_vm14 = vweird.f32 %v10312_v53  ;;  %5665 = vmatpush.bf16.msrb.mxu2 %v9379_v3 }
0x2983   :  { %10315 = vrcp.f32 %v5551_v39  ;;  %v5566_v55 = vsel %vm5563_vm13, %v5565_v31, %v5561_v63  ;;  %vm5575_vm3 = vmor %vm5573_vm15, %vm5574_vm14  ;;  %v5594_v11 = vand.u32 2147483648, %v5551_v39  ;;  %v5592_v17 = vand.u32 2147483647, %v5551_v39 }
0x2984   :  { %5617 = vrot.lane.b32.xlu2 %v5566_v55, %s10493_s20  ;;  %v5570_v26 = vsub.f32 1.0, %v5569_v45  ;;  %vm5588_vm6 = vweird.f32 %v5551_v39 }
0x2985   :  { %v5595_v12 = vor.u32 1.1754944e-38, %v5594_v11  ;;  %vm5593_vm8 = vcmp.eq.f32.partialorder %v5592_v17, 8.507059e+37 }
0x2986   :  { %v5571_v21 = vmul.f32 %v10312_v53, %v5570_v26 }
0x2988   :  { %v10314_v46 = vpop.eup %10313  ;;  %v5572_v29 = vadd.f32 %v10312_v53, %v5571_v21 }
0x2989   :  { %v10316_v2 = vpop.eup %10315  ;;  %v5552_v34 = vadd.f32 1.0, %v10314_v46 }
0x298a   :  { %v5576_v4 = vsel %vm5575_vm3, %v10312_v53, %v5572_v29  ;;  %v5584_v62 = vmul.f32 %v10316_v2, %v5551_v39  ;;  %vm5589_vm5 = vweird.f32 %v10316_v2 }
0x298b   :  { %10317 = vrcp.f32 %v5552_v34  ;;  %v5581_v40 = vsel %vm5578_vm4, %v5580_v56, %v5576_v4  ;;  %vm5590_vm7 = vmor %vm5588_vm6, %vm5589_vm5  ;;  %v5609_v58 = vand.u32 2147483648, %v5552_v34  ;;  %v5607_v14 = vand.u32 2147483647, %v5552_v34  ;;  %v9381_v4 = vld [vmem:[%s13587_s11 + $0x20] sm:$0xff] }
0x298c   :  { %5619 = vrot.lane.b32.xlu0 %v5581_v40, %s10493_s20  ;;  %v5585_v41 = vsub.f32 1.0, %v5584_v62  ;;  %vm5603_vm10 = vweird.f32 %v5552_v34  ;;  %10319 = vtanh.f32 %v12757_v33 }
0x298d   :  { %v5610_v16 = vor.u32 1.1754944e-38, %v5609_v58  ;;  %vm5608_vm12 = vcmp.eq.f32.partialorder %v5607_v14, 8.507059e+37  ;;  %10321 = vtanh.f32 %v12760_v48 }
0x298e   :  { %v5586_v20 = vmul.f32 %v10316_v2, %v5585_v41  ;;  %10323 = vtanh.f32 %v12763_v18  ;;  %v10023_v18 = vld [vmem:[%s13586_s10 + $0x2] ss:$0 sm:$0xff] }
0x298f   :  { %10325 = vtanh.f32 %v12766_v44 }
0x2990   :  { %v5587_v49 = vadd.f32 %v10316_v2, %v5586_v20 }
0x2991   :  { %v10318_v19 = vpop.eup %10317 }
0x2992   :  { %v5591_v25 = vsel %vm5590_vm7, %v10316_v2, %v5587_v49  ;;  %v5599_v15 = vmul.f32 %v10318_v19, %v5552_v34  ;;  %vm5604_vm9 = vweird.f32 %v10318_v19  ;;  %v10320_v35 = vpop.eup %10319  ;;  %v9382_v34 = vld [vmem:[%s13587_s11 + $0x28] sm:$0xff] }
0x2993   :  { %v5596_v51 = vsel %vm5593_vm8, %v5595_v12, %v5591_v25  ;;  %vm5605_vm11 = vmor %vm5603_vm10, %vm5604_vm9  ;;  %v10322_v53 = vpop.eup %10321  ;;  %5754 = vmatpush.bf16.msra.mxu3 %v9382_v34 }
0x2994   :  { %5621 = vrot.lane.b32.xlu1 %v5596_v51, %s10493_s20  ;;  %v5600_v24 = vsub.f32 1.0, %v5599_v15  ;;  %v10324_v26 = vpop.eup %10323 }
0x2995   :  { %v10326_v13 = vpop.eup %10325 }
0x2996   :  { %v5601_v23 = vmul.f32 %v10318_v19, %v5600_v24 }
0x2997   :  { %5755 = vmatpush.bf16.msra.mxu3 %v9381_v4 }
0x2998   :  { %v5602_v54 = vadd.f32 %v10318_v19, %v5601_v23 }
0x299a   :  { %v5606_v37 = vsel %vm5605_vm11, %v10318_v19, %v5602_v54 }
0x299b   :  { %v5611_v22 = vsel %vm5608_vm12, %v5610_v16, %v5606_v37 }
0x299c   :  { %5623 = vrot.lane.b32.xlu2 %v5611_v22, %s10493_s20 }
0x29a4   :  { %5701 = vrot.lane.b32.xlu2 %v10023_v18, %s10491_s14 }
0x29de   :  { %v5618_v61 = vpop.permute.xlu2 %5617 }
0x29df   :  { %v5629_v31 = vmul.f32 %v10320_v35, %v5618_v61 }
0x29f6   :  { %v5624_v55 = vpop.permute.xlu2 %5623 }
0x29f7   :  { %v5632_v33 = vmul.f32 %v10326_v13, %v5624_v55 }
0x29fe   :  { %v5620_v39 = vpop.permute.xlu0 %5619  ;;  %v5702_v40 = vpop.permute.xlu2 %5701 }
0x29ff   :  { %v5630_v63 = vmul.f32 %v10322_v53, %v5620_v39  ;;  %v5772_v39 = vmul.f32 %v11363_v30, %v10636_v10  ;;  %v5773_v30 = vmul.f32 %v11374_v59, %v10624_v52 }
0x2a01   :  { %v5638_v45 = vpack.c.bf16 %v5630_v63, %v5629_v31 }
0x2a03   :  { %8817 = vmatmul.msk.bf16.vlgmr.msrb.gmra.mxu2 %vm261_vm0, %v5638_v45 }
0x2a06   :  { %v5622_v21 = vpop.permute.xlu1 %5621 }
0x2a07   :  { %v5631_v38 = vmul.f32 %v10324_v26, %v5622_v21 }
0x2a09   :  { %v5639_v48 = vpack.c.bf16 %v5632_v33, %v5631_v38  ;;  %v5774_v33 = vmul.f32 %v11379_v43, %v10622_v47 }
0x2a13   :  { %8818 = vmatmul.msk.bf16.gmra.mxu2 %vm261_vm0, %v5639_v48 }
0x2a86   :  { %v5667_v46 = vpop.f32.mrf.mxu2 }
0x2a87   :  { %5681 = vrot.lane.b32.xlu0 %v5667_v46, %s10491_s14 }
0x2a8e   :  { %v5669_v44 = vpop.f32.mrf.mxu2 }
0x2a8f   :  { %5683 = vrot.lane.b32.xlu1 %v5669_v44, %s10491_s14  ;;  %v10026_v44 = vld [vmem:[%s13577_s3 + $0xc] ss:$0 sm:$0xff] }
0x2a96   :  { %v5672_v29 = vpop.f32.mrf.mxu2 }
0x2a97   :  { %5685 = vrot.lane.b32.xlu0 %v5672_v29, %s10491_s14 }
0x2a9e   :  { %v5674_v2 = vpop.f32.mrf.mxu2 }
0x2a9f   :  { %5687 = vrot.lane.b32.xlu1 %v5674_v2, %s10491_s14 }
0x2af9   :  { %v5682_v56 = vpop.permute.xlu0 %5681 }
0x2afa   :  { %v5693_v62 = vadd.f32 %v5682_v56, %v12650_v42  ;;  %v10027_v56 = vld [vmem:[%s13577_s3 + $0xd] ss:$0 sm:$0xff] }
0x2afc   :  { %v5704_v11 = vadd.f32 %v5702_v40, %v5693_v62 }
0x2afe   :  { %v5708_v49 = vmul.f32 %v5704_v11, %v10634_v9  ;;  %v10028_v11 = vld [vmem:[%s13577_s3 + $0xe] ss:$0 sm:$0xff] }
0x2b01   :  { %v5684_v41 = vpop.permute.xlu1 %5683 }
0x2b02   :  { %v5694_v20 = vadd.f32 %v5684_v41, %v12654_v57 }
0x2b04   :  { %v5705_v17 = vadd.f32 %v5702_v40, %v5694_v20  ;;  %v10029_v20 = vld [vmem:[%s13577_s3 + $0xf] ss:$0 sm:$0xff] }
0x2b06   :  { %v5709_v19 = vmul.f32 %v5705_v17, %v10636_v10 }
0x2b08   :  { %v5717_v12 = vpack.c.bf16 %v5709_v19, %v5708_v49 }
0x2b09   :  { %v5686_v25 = vpop.permute.xlu0 %5685 }
0x2b0a   :  { %5726 = vrot.lane.b32.xlu2 %v5717_v12, %s10493_s20  ;;  %v5695_v15 = vadd.f32 %v5686_v25, %v12658_v60  ;;  %v10024_v60 = vld [vmem:[%s13588_s12 + $0x2] ss:$0 sm:$0xff] }
0x2b0c   :  { %v5706_v24 = vadd.f32 %v5702_v40, %v5695_v15 }
0x2b0e   :  { %v5710_v23 = vmul.f32 %v5706_v24, %v10624_v52 }
0x2b11   :  { %v5688_v51 = vpop.permute.xlu1 %5687 }
0x2b12   :  { %v5696_v42 = vadd.f32 %v5688_v51, %v12665_v27 }
0x2b14   :  { %v5707_v58 = vadd.f32 %v5702_v40, %v5696_v42 }
0x2b16   :  { %v5711_v57 = vmul.f32 %v5707_v58, %v10622_v47 }
0x2b18   :  { %v5718_v14 = vpack.c.bf16 %v5711_v57, %v5710_v23 }
0x2b1a   :  { %5728 = vrot.lane.b32.xlu0 %v5718_v14, %s10493_s20 }
0x2b64   :  { %v5727_v54 = vpop.permute.xlu2 %5726 }
0x2b65   :  { %8833 = vmatmul.msk.bf16.vlgmr.msra.gmra.mxu3 %vm261_vm0, %v5727_v54 }
0x2b8c   :  { %v5729_v16 = vpop.permute.xlu0 %5728 }
0x2b8d   :  { %8834 = vmatmul.msk.bf16.gmra.mxu3 %vm261_vm0, %v5729_v16 }
0x2be8   :  { %v5757_v37 = vpop.f32.mrf.mxu3 }
0x2be9   :  { %v5758_v27 = vadd.f32 %v10024_v60, %v5757_v37 }
0x2beb   :  { %v5767_v22 = vmul.f32 %v5758_v27, %v10634_v9 }
0x2bed   :  { %v12817_v3 = vadd.f32 %v5771_v5, %v5767_v22 }
0x2bef   :  { %5788 = vperm.xlu2 %9849, %v12817_v3   ;;  %5817 = vperm.xlu1 %9850, %v12817_v3  }
0x2bf0   :  { %5843 = vperm.xlu0 %9851, %v12817_v3   ;;  %v5759_v61 = vpop.f32.mrf.mxu3 }
0x2bf1   :  { %v5760_v35 = vadd.f32 %v10024_v60, %v5759_v61 }
0x2bf3   :  { %v5768_v53 = vmul.f32 %v5760_v35, %v10636_v10 }
0x2bf5   :  { %v12825_v31 = vadd.f32 %v5772_v39, %v5768_v53 }
0x2bf7   :  { %9853 = vset.pattern.permute.xlu2 %v10487_v0  ;;  %9852 = vset.pattern.permute.xlu1 %v10488_v1 }
0x2bf8   :  { %5821 = vperm.xlu2 %9853, %v12825_v31   ;;  %5793 = vperm.xlu1 %9852, %v12825_v31  }
0x2bf9   :  { %9854 = vset.pattern.permute.xlu0 %v10487_v0 }
0x2c00   :  { %9855 = vset.pattern.permute.xlu2 %v10489_v6 }
0x2c10   :  { %v5762_v8 = vpop.f32.mrf.mxu3 }
0x2c11   :  { %v5763_v63 = vadd.f32 %v10024_v60, %v5762_v8 }
0x2c13   :  { %v5769_v45 = vmul.f32 %v5763_v63, %v10624_v52 }
0x2c15   :  { %v12836_v55 = vadd.f32 %v5773_v30, %v5769_v45 }
0x2c17   :  { %5851 = vperm.xlu2 %9855, %v12836_v55   ;;  %5825 = vperm.xlu0 %9854, %v12836_v55  }
0x2c18   :  { %5798 = vperm.xlu1 %9852, %v12836_v55   ;;  %v5764_v26 = vpop.f32.mrf.mxu3 }
0x2c19   :  { %v5765_v13 = vadd.f32 %v10024_v60, %v5764_v26 }
0x2c1b   :  { %v5770_v21 = vmul.f32 %v5765_v13, %v10622_v47 }
0x2c1d   :  { %v12844_v38 = vadd.f32 %v5774_v33, %v5770_v21 }
0x2c1f   :  { %9857 = vset.pattern.permute.xlu2 %v10488_v1  ;;  %9860 = vset.pattern.permute.xlu0 %v10489_v6 }
0x2c20   :  { %9856 = vset.pattern.permute.xlu1 %v10490_v7  ;;  %5803 = vperm.xlu2 %9857, %v12844_v38  }
0x2c21   :  { %5855 = vperm.xlu0 %9860, %v12844_v38   ;;  %5877 = vperm.xlu1 %9856, %v12836_v55  }
0x2c28   :  { %9861 = vset.pattern.permute.xlu2 %v10490_v7 }
0x2c29   :  { %9862 = vset.pattern.permute.xlu0 %v10490_v7  ;;  %9858 = vset.pattern.permute.xlu1 %v10487_v0 }
0x2c2a   :  { %5881 = vperm.xlu2 %9861, %v12844_v38   ;;  %5873 = vperm.xlu0 %9862, %v12825_v31  }
0x2c2b   :  { %5829 = vperm.xlu1 %9858, %v12844_v38  }
0x2c32   :  { %5869 = vperm.xlu2 %9861, %v12817_v3  }
0x2c33   :  { %9859 = vset.pattern.permute.xlu1 %v10489_v6  ;;  %v10025_v6 = vld [vmem:[%s13578_s4 + $0x3] ss:$0 sm:$0xff] }
0x2c34   :  { %5847 = vperm.xlu1 %9859, %v12825_v31  }
0x2c49   :  { %v5789_v1 = vpop.permute.xlu2 %5788 }
0x2c4a   :  { %v5807_v19 = vmul.f32 %v10026_v44, %v5789_v1 }
0x2c4c   :  { %v5811_v54 = vadd.f32 %v10025_v6, %v5807_v19 }
0x2c52   :  { %v5822_v43 = vpop.permute.xlu2 %5821 }
0x2c53   :  { %v5834_v35 = vmul.f32 %v10027_v56, %v5822_v43 }
0x2c61   :  { %v5818_v59 = vpop.permute.xlu1 %5817 }
0x2c62   :  { %v5844_v7 = vpop.permute.xlu0 %5843  ;;  %v5833_v42 = vmul.f32 %v10027_v56, %v5818_v59 }
0x2c63   :  { %v5859_v53 = vmul.f32 %v10028_v11, %v5844_v7 }
0x2c64   :  { %v5837_v22 = vadd.f32 %v5833_v42, %v5811_v54 }
0x2c66   :  { %v5863_v26 = vadd.f32 %v5859_v53, %v5837_v22  ;;  %v9387_v53 = vld [vmem:[%s13582_s5 + $0x3e0] sm:$0xff] }
0x2c6a   :  { %v5794_v48 = vpop.permute.xlu1 %5793 }
0x2c6b   :  { %v5808_v58 = vmul.f32 %v10026_v44, %v5794_v48 }
0x2c6d   :  { %v5812_v5 = vadd.f32 %v10025_v6, %v5808_v58 }
0x2c6f   :  { %v5838_v13 = vadd.f32 %v5834_v35, %v5812_v5  ;;  %v9390_v5 = vld [vmem:[%s13582_s5 + $0x3f8] sm:$0xff]  ;;  %v9388_v35 = vld [vmem:[%s13582_s5 + $0x3e8] sm:$0xff] }
0x2c70   :  { %6114 = vmatpush.bf16.msrb.mxu3 %v9390_v5 }
0x2c71   :  { %v5852_v18 = vpop.permute.xlu2 %5851 }
0x2c72   :  { %v5861_v25 = vmul.f32 %v10028_v11, %v5852_v18 }
0x2c7a   :  { %v5804_v0 = vpop.permute.xlu2 %5803 }
0x2c7b   :  { %v5810_v40 = vmul.f32 %v10026_v44, %v5804_v0  ;;  %v12895_v0 = vld [vmem:[%s13580_s2] sm:$0xff] }
0x2c7d   :  { %v5814_v15 = vadd.f32 %v10025_v6, %v5810_v40 }
0x2c84   :  { %v5882_v4 = vpop.permute.xlu2 %5881 }
0x2c85   :  { %v5888_v16 = vmul.f32 %v10029_v20, %v5882_v4  ;;  %v12944_v4 = vld [vmem:[%s13580_s2 + $0x38] sm:$0xff] }
0x2c89   :  { %v5826_v29 = vpop.permute.xlu0 %5825 }
0x2c8a   :  { %v5799_v46 = vpop.permute.xlu1 %5798  ;;  %v5835_v41 = vmul.f32 %v10027_v56, %v5826_v29  ;;  %v12909_v29 = vld [vmem:[%s13580_s2 + $0x10] sm:$0xff] }
0x2c8b   :  { %v5809_v34 = vmul.f32 %v10026_v44, %v5799_v46  ;;  %v12902_v44 = vld [vmem:[%s13580_s2 + $0x8] sm:$0xff] }
0x2c8c   :  { %v5870_v60 = vpop.permute.xlu2 %5869 }
0x2c8d   :  { %v5813_v62 = vadd.f32 %v10025_v6, %v5809_v34  ;;  %v5885_v39 = vmul.f32 %v10029_v20, %v5870_v60  ;;  %v12923_v34 = vld [vmem:[%s13580_s2 + $0x20] sm:$0xff]  ;;  %v12930_v6 = vld [vmem:[%s13580_s2 + $0x28] sm:$0xff] }
0x2c8f   :  { %v5839_v17 = vadd.f32 %v5835_v41, %v5813_v62  ;;  %v5889_v1 = vadd.f32 %v5885_v39, %v5863_v26  ;;  %v12951_v62 = vld [vmem:[%s13580_s2 + $0x40] sm:$0xff]  ;;  %v9386_v39 = vld [vmem:[%s13582_s5 + $0x3d8] sm:$0xff]  ;;  %v9385_v26 = vld [vmem:[%s13582_s5 + $0x3d0] sm:$0xff] }
0x2c91   :  { %v5865_v57 = vadd.f32 %v5861_v25, %v5839_v17  ;;  %v12885_v18 = vmul.f32 %v5889_v1, %v10634_v9 }
0x2c93   :  { %v5878_v2 = vpop.permute.xlu1 %5877  ;;  %v5856_v49 = vpop.permute.xlu0 %5855 }
0x2c94   :  { %v5887_v51 = vmul.f32 %v10029_v20, %v5878_v2  ;;  %v5862_v23 = vmul.f32 %v10028_v11, %v5856_v49  ;;  %v12916_v2 = vld [vmem:[%s13580_s2 + $0x18] sm:$0xff] }
0x2c96   :  { %v5891_v37 = vadd.f32 %v5887_v51, %v5865_v57 }
0x2c98   :  { %v12877_v8 = vmul.f32 %v5891_v37, %v10624_v52 }
0x2c9c   :  { %v5874_v63 = vpop.permute.xlu0 %5873 }
0x2c9d   :  { %v5830_v12 = vpop.permute.xlu1 %5829  ;;  %v5886_v59 = vmul.f32 %v10029_v20, %v5874_v63 }
0x2c9e   :  { %v5836_v24 = vmul.f32 %v10027_v56, %v5830_v12  ;;  %v12937_v56 = vld [vmem:[%s13580_s2 + $0x30] sm:$0xff] }
0x2ca0   :  { %v5840_v14 = vadd.f32 %v5836_v24, %v5814_v15 }
0x2ca2   :  { %v5866_v27 = vadd.f32 %v5862_v23, %v5840_v14 }
0x2ca4   :  { %v5892_v61 = vadd.f32 %v5888_v16, %v5866_v27 }
0x2ca6   :  { %v12880_v45 = vmul.f32 %v5892_v61, %v10622_v47  ;;  %v5848_v30 = vpop.permute.xlu1 %5847  ;;  %v9389_v61 = vld [vmem:[%s13582_s5 + $0x3f0] sm:$0xff] }
0x2ca7   :  { %v5860_v21 = vmul.f32 %v10028_v11, %v5848_v30  ;;  %v12962_v11 = vld [vmem:[%s13580_s2 + $0x48] sm:$0xff]  ;;  %6115 = vmatpush.bf16.msrb.mxu3 %v9389_v61 }
0x2ca8   :  { %v5898_v33 = vpack.c.bf16 %v12880_v45, %v12877_v8  ;;  %v9392_v30 = vld [vmem:[%s13582_s5 + $0x408] sm:$0xff] }
0x2ca9   :  { %v5864_v48 = vadd.f32 %v5860_v21, %v5838_v13  ;;  %6139 = vmatpush.bf16.msrb.mxu1 %v9392_v30  ;;  %v9391_v13 = vld [vmem:[%s13582_s5 + $0x400] sm:$0xff]  ;;  %v9384_v21 = vld [vmem:[%s13582_s5 + $0x3c8] sm:$0xff] }
0x2caa   :  { %5905 = vmatpush.bf16.msra.mxu2 %v5898_v33 }
0x2cab   :  { %v5890_v43 = vadd.f32 %v5886_v59, %v5864_v48  ;;  %6116 = vmatpush.bf16.msrb.mxu3 %v9388_v35  ;;  %v9383_v59 = vld [vmem:[%s13582_s5 + $0x3c0] sm:$0xff] }
0x2cad   :  { %v12888_v7 = vmul.f32 %v5890_v43, %v10636_v10  ;;  %6140 = vmatpush.bf16.msrb.mxu1 %v9391_v13 }
0x2caf   :  { %v5897_v46 = vpack.c.bf16 %v12888_v7, %v12885_v18  ;;  %6117 = vmatpush.bf16.msrb.mxu3 %v9387_v53 }
0x2cb1   :  { %5906 = vmatpush.bf16.msra.mxu2 %v5897_v46 }
0x2cb3   :  { %6118 = vmatpush.bf16.msrb.mxu3 %v9386_v39 }
0x2cb4   :  { %8840 = vmatmul.msk.bf16.vlgmr.msra.gmra.mxu2 %vm261_vm0, %v12895_v0 }
0x2cb7   :  { %6119 = vmatpush.bf16.msrb.mxu3 %v9385_v26 }
0x2cbb   :  { %6120 = vmatpush.bf16.msrb.mxu3 %v9384_v21 }
0x2cbf   :  { %6121 = vmatpush.bf16.msrb.mxu3 %v9383_v59  ;;  %v10030_v59 = vld [vmem:[%s13581_s6 + $0xc] ss:$0 sm:$0xff] }
0x2cc4   :  { %8841 = vmatmul.msk.bf16.gmra.mxu2 %vm261_vm0, %v12902_v44 }
0x2cd4   :  { %8842 = vmatmul.msk.bf16.gmra.mxu2 %vm261_vm0, %v12909_v29 }
0x2ce4   :  { %8843 = vmatmul.msk.bf16.gmra.mxu2 %vm261_vm0, %v12916_v2 }
0x2cf4   :  { %8844 = vmatmul.msk.bf16.gmra.mxu2 %vm261_vm0, %v12923_v34 }
0x2d04   :  { %8845 = vmatmul.msk.bf16.gmra.mxu2 %vm261_vm0, %v12930_v6 }
0x2d14   :  { %8846 = vmatmul.msk.bf16.gmra.mxu2 %vm261_vm0, %v12937_v56 }
0x2d24   :  { %8847 = vmatmul.msk.bf16.gmra.mxu2 %vm261_vm0, %v12944_v4 }
0x2d34   :  { %8848 = vmatmul.msk.bf16.gmra.mxu2 %vm261_vm0, %v12951_v62 }
0x2d37   :  { %v12955_v40 = vpop.f32.mrf.mxu2 }
0x2d3f   :  { %v12957_v41 = vpop.f32.mrf.mxu2 }
0x2d44   :  { %8849 = vmatmul.msk.bf16.gmra.mxu2 %vm261_vm0, %v12962_v11 }
0x2d47   :  { %v12966_v20 = vpop.f32.mrf.mxu2 }
0x2d4f   :  { %v12968_v17 = vpop.f32.mrf.mxu2 }
0x2d57   :  { %v5918_v49 = vpop.f32.mrf.mxu2 }
0x2d5f   :  { %v5920_v19 = vpop.f32.mrf.mxu2 }
0x2d60   :  { %v9863_v12 = vpack.i.bf16 %v5920_v19, %v5918_v49 }
0x2d62   :  { %9864 = vrot.lane.b32.xlu1 %v9863_v12, %s10491_s14 }
0x2d67   :  { %v5923_v25 = vpop.f32.mrf.mxu2 }
0x2d6f   :  { %v5925_v15 = vpop.f32.mrf.mxu2 }
0x2d70   :  { %v9878_v23 = vpack.i.bf16 %v5925_v15, %v5923_v25 }
0x2d77   :  { %v5928_v51 = vpop.f32.mrf.mxu2 }
0x2d7f   :  { %v5930_v24 = vpop.f32.mrf.mxu2 }
0x2d80   :  { %v9868_v42 = vpack.i.bf16 %v5930_v24, %v5928_v51 }
0x2d82   :  { %9869 = vrot.lane.b32.xlu2 %v9868_v42, %s10492_s19 }
0x2d87   :  { %v5933_v58 = vpop.f32.mrf.mxu2 }
0x2d8a   :  { %9879 = vrot.lane.b32.xlu2 %v9878_v23, %s10491_s14 }
0x2d8f   :  { %v5935_v57 = vpop.f32.mrf.mxu2 }
0x2d90   :  { %v9883_v14 = vpack.i.bf16 %v5935_v57, %v5933_v58 }
0x2d92   :  { %9884 = vrot.lane.b32.xlu0 %v9883_v14, %s10492_s19 }
0x2d97   :  { %v5938_v54 = vpop.f32.mrf.mxu2 }
0x2d9f   :  { %v5940_v16 = vpop.f32.mrf.mxu2 }
0x2da0   :  { %v9873_v60 = vpack.i.bf16 %v5940_v16, %v5938_v54 }
0x2da2   :  { %9874 = vrot.lane.b32.xlu1 %v9873_v60, %s10493_s20 }
0x2da7   :  { %v5943_v37 = vpop.f32.mrf.mxu2 }
0x2daf   :  { %v5945_v27 = vpop.f32.mrf.mxu2 }
0x2db0   :  { %v9888_v22 = vpack.i.bf16 %v5945_v27, %v5943_v37 }
0x2db2   :  { %9889 = vrot.lane.b32.xlu1 %v9888_v22, %s10493_s20 }
0x2db7   :  { %v5948_v63 = vpop.f32.mrf.mxu2 }
0x2dbf   :  { %v5950_v33 = vpop.f32.mrf.mxu2 }
0x2dc0   :  { %v6040_v1 = vpack.c.bf16 %v5950_v33, %v5948_v63 }
0x2dc2   :  { %8911 = vmatmul.msk.bf16.vlgmr.msrb.gmra.mxu1 %vm261_vm0, %v6040_v1 }
0x2dc7   :  { %v5953_v48 = vpop.f32.mrf.mxu2 }
0x2dcf   :  { %v5955_v43 = vpop.f32.mrf.mxu2 }
0x2dd0   :  { %v6042_v46 = vpack.c.bf16 %v5955_v43, %v5953_v48 }
0x2dd2   :  { %8912 = vmatmul.msk.bf16.gmra.mxu1 %vm261_vm0, %v6042_v46 }
0x2dd4   :  { %v9865_v49 = vpop.permute.xlu1 %9864 }
0x2dd5   :  { %v9867_v12 = vunpack.i.h.bf16 %v9865_v49  ;;  %v9866_v25 = vunpack.i.l.bf16 %v9865_v49 }
0x2dd7   :  { %v6007_v42 = vsel %vm261_vm0, %v12957_v41, %v9867_v12  ;;  %v6006_v58 = vsel %vm261_vm0, %v12955_v40, %v9866_v25 }
0x2ddc   :  { %v9870_v19 = vpop.permute.xlu2 %9869 }
0x2ddd   :  { %v9872_v15 = vunpack.i.h.bf16 %v9870_v19  ;;  %v9871_v51 = vunpack.i.l.bf16 %v9870_v19 }
0x2ddf   :  { %v6011_v14 = vsel %vm403_vm1, %v6007_v42, %v9872_v15  ;;  %v6010_v54 = vsel %vm403_vm1, %v6006_v58, %v9871_v51 }
0x2de4   :  { %v9880_v27 = vpop.permute.xlu2 %9879 }
0x2de5   :  { %v9882_v5 = vunpack.i.h.bf16 %v9880_v27  ;;  %v9881_v61 = vunpack.i.l.bf16 %v9880_v27 }
0x2de7   :  { %v6009_v40 = vsel %vm261_vm0, %v12968_v17, %v9882_v5  ;;  %v6008_v39 = vsel %vm261_vm0, %v12966_v20, %v9881_v61 }
0x2e04   :  { %v9885_v22 = vpop.permute.xlu0 %9884 }
0x2e05   :  { %v9887_v41 = vunpack.i.h.bf16 %v9885_v22  ;;  %v9886_v35 = vunpack.i.l.bf16 %v9885_v22 }
0x2e07   :  { %v6013_v26 = vsel %vm403_vm1, %v6009_v40, %v9887_v41  ;;  %v6012_v13 = vsel %vm403_vm1, %v6008_v39, %v9886_v35 }
0x2e14   :  { %v9875_v24 = vpop.permute.xlu1 %9874 }
0x2e15   :  { %v9877_v23 = vunpack.i.h.bf16 %v9875_v24  ;;  %v9876_v57 = vunpack.i.l.bf16 %v9875_v24 }
0x2e17   :  { %v6015_v16 = vsel %vm408_vm2, %v6011_v14, %v9877_v23  ;;  %v6014_v60 = vsel %vm408_vm2, %v6010_v54, %v9876_v57 }
0x2e18   :  { %v6039_v37 = vpack.c.bf16 %v6015_v16, %v6014_v60 }
0x2e1a   :  { %6122 = vmatmul.bf16.vlgmr.msrb.gmra.mxu3 %v6039_v37 }
0x2e24   :  { %v9890_v53 = vpop.permute.xlu1 %9889 }
0x2e25   :  { %v9892_v63 = vunpack.i.h.bf16 %v9890_v53  ;;  %v9891_v30 = vunpack.i.l.bf16 %v9890_v53 }
0x2e27   :  { %v6016_v21 = vsel %vm408_vm2, %v6012_v13, %v9891_v30  ;;  %v6017_v33 = vsel %vm408_vm2, %v6013_v26, %v9892_v63 }
0x2e28   :  { %v6041_v1 = vpack.c.bf16 %v6017_v33, %v6016_v21 }
0x2e2a   :  { %6127 = vmatmul.bf16.gmra.mxu3 %v6041_v1 }
0x2e3f   :  { %v6142_v17 = vpop.f32.mrf.mxu1 }
0x2e47   :  { %v6144_v19 = vpop.f32.mrf.mxu1 }
0x2e4f   :  { %v6147_v58 = vpop.f32.mrf.mxu1 }
0x2e57   :  { %v6149_v61 = vpop.f32.mrf.mxu1 }
0x2e9d   :  { %v6123_v48 = vpop.f32.mrf.mxu3 }
0x2e9e   :  { %v6124_v43 = vadd.f32 %v10030_v59, %v6123_v48 }
0x2ea0   :  { %v13027_v20 = vadd.f32 %v6142_v17, %v6124_v43 }
0x2ea2   :  { %v8913_v46 = vmul.f32 -1.442695, %v13027_v20 }
0x2ea4   :  { %10327 = vpow2.f32 %v8913_v46 }
0x2ea5   :  { %v6125_v49 = vpop.f32.mrf.mxu3 }
0x2ea6   :  { %v6126_v12 = vadd.f32 %v10030_v59, %v6125_v49 }
0x2ea8   :  { %v13030_v25 = vadd.f32 %v6144_v19, %v6126_v12 }
0x2eaa   :  { %v10328_v15 = vpop.eup %10327  ;;  %v8914_v51 = vmul.f32 -1.442695, %v13030_v25 }
0x2eab   :  { %v6168_v24 = vadd.f32 1.0, %v10328_v15 }
0x2eac   :  { %10329 = vpow2.f32 %v8914_v51 }
0x2ead   :  { %10331 = vrcp.f32 %v6168_v24  ;;  %v6128_v42 = vpop.f32.mrf.mxu3  ;;  %v6183_v41 = vand.u32 2147483648, %v6168_v24  ;;  %v6181_v40 = vand.u32 2147483647, %v6168_v24  ;;  %vm6177_vm14 = vweird.f32 %v6168_v24 }
0x2eae   :  { %v6129_v23 = vadd.f32 %v10030_v59, %v6128_v42 }
0x2eaf   :  { %v6184_v21 = vor.u32 1.1754944e-38, %v6183_v41  ;;  %vm6182_vm3 = vcmp.eq.f32.partialorder %v6181_v40, 8.507059e+37 }
0x2eb0   :  { %v13033_v57 = vadd.f32 %v6147_v58, %v6129_v23 }
0x2eb2   :  { %v10330_v14 = vpop.eup %10329  ;;  %v8915_v54 = vmul.f32 -1.442695, %v13033_v57 }
0x2eb3   :  { %v10332_v16 = vpop.eup %10331  ;;  %v6169_v60 = vadd.f32 1.0, %v10330_v14 }
0x2eb4   :  { %10333 = vpow2.f32 %v8915_v54  ;;  %v6173_v37 = vmul.f32 %v10332_v16, %v6168_v24  ;;  %vm6178_vm13 = vweird.f32 %v10332_v16 }
0x2eb5   :  { %10335 = vrcp.f32 %v6169_v60  ;;  %v6130_v27 = vpop.f32.mrf.mxu3  ;;  %vm6179_vm15 = vmor %vm6177_vm14, %vm6178_vm13  ;;  %v6198_v48 = vand.u32 2147483648, %v6169_v60  ;;  %v6196_v46 = vand.u32 2147483647, %v6169_v60  ;;  %vm6192_vm5 = vweird.f32 %v6169_v60 }
0x2eb6   :  { %v6131_v22 = vadd.f32 %v10030_v59, %v6130_v27  ;;  %v6174_v5 = vsub.f32 1.0, %v6173_v37 }
0x2eb7   :  { %v6199_v51 = vor.u32 1.1754944e-38, %v6198_v48  ;;  %vm6197_vm7 = vcmp.eq.f32.partialorder %v6196_v46, 8.507059e+37 }
0x2eb8   :  { %v13036_v35 = vadd.f32 %v6149_v61, %v6131_v22  ;;  %v6175_v53 = vmul.f32 %v10332_v16, %v6174_v5 }
0x2eba   :  { %v10334_v39 = vpop.eup %10333  ;;  %v8916_v63 = vmul.f32 -1.442695, %v13036_v35  ;;  %v6176_v30 = vadd.f32 %v10332_v16, %v6175_v53 }
0x2ebb   :  { %v10336_v26 = vpop.eup %10335  ;;  %v6170_v13 = vadd.f32 1.0, %v10334_v39 }
0x2ebc   :  { %10337 = vpow2.f32 %v8916_v63  ;;  %v6180_v33 = vsel %vm6179_vm15, %v10332_v16, %v6176_v30  ;;  %v6188_v1 = vmul.f32 %v10336_v26, %v6169_v60  ;;  %vm6193_vm4 = vweird.f32 %v10336_v26 }
0x2ebd   :  { %10339 = vrcp.f32 %v6170_v13  ;;  %v6185_v59 = vsel %vm6182_vm3, %v6184_v21, %v6180_v33  ;;  %vm6194_vm6 = vmor %vm6192_vm5, %vm6193_vm4  ;;  %v6213_v14 = vand.u32 2147483648, %v6170_v13  ;;  %v6211_v16 = vand.u32 2147483647, %v6170_v13  ;;  %v9394_v21 = vld [vmem:[%s13584_s7 + $0x98] sm:$0xff]  ;;  %v9393_v33 = vld [vmem:[%s13584_s7 + $0x90] sm:$0xff] }
0x2ebe   :  { %6236 = vrot.lane.b32.xlu2 %v6185_v59, %s10493_s20  ;;  %v6189_v17 = vsub.f32 1.0, %v6188_v1  ;;  %vm6207_vm9 = vweird.f32 %v6170_v13  ;;  %6288 = vmatpush.bf16.msra.mxu3 %v9394_v21 }
0x2ebf   :  { %v6214_v60 = vor.u32 1.1754944e-38, %v6213_v14  ;;  %vm6212_vm11 = vcmp.eq.f32.partialorder %v6211_v16, 8.507059e+37 }
0x2ec0   :  { %v6190_v43 = vmul.f32 %v10336_v26, %v6189_v17 }
0x2ec2   :  { %v10338_v49 = vpop.eup %10337  ;;  %v6191_v19 = vadd.f32 %v10336_v26, %v6190_v43  ;;  %6289 = vmatpush.bf16.msra.mxu3 %v9393_v33 }
0x2ec3   :  { %v10340_v12 = vpop.eup %10339  ;;  %v6171_v15 = vadd.f32 1.0, %v10338_v49 }
0x2ec4   :  { %v6195_v24 = vsel %vm6194_vm6, %v10336_v26, %v6191_v19  ;;  %v6203_v42 = vmul.f32 %v10340_v12, %v6170_v13  ;;  %vm6208_vm8 = vweird.f32 %v10340_v12 }
0x2ec5   :  { %10341 = vrcp.f32 %v6171_v15  ;;  %v6200_v58 = vsel %vm6197_vm7, %v6199_v51, %v6195_v24  ;;  %vm6209_vm10 = vmor %vm6207_vm9, %vm6208_vm8  ;;  %v6228_v53 = vand.u32 2147483648, %v6171_v15  ;;  %v6226_v39 = vand.u32 2147483647, %v6171_v15 }
0x2ec6   :  { %6238 = vrot.lane.b32.xlu0 %v6200_v58, %s10493_s20  ;;  %v6204_v23 = vsub.f32 1.0, %v6203_v42  ;;  %vm6222_vm13 = vweird.f32 %v6171_v15  ;;  %10343 = vtanh.f32 %v13027_v20 }
0x2ec7   :  { %v6229_v30 = vor.u32 1.1754944e-38, %v6228_v53  ;;  %vm6227_vm15 = vcmp.eq.f32.partialorder %v6226_v39, 8.507059e+37  ;;  %10345 = vtanh.f32 %v13030_v25 }
0x2ec8   :  { %v6205_v54 = vmul.f32 %v10340_v12, %v6204_v23  ;;  %10347 = vtanh.f32 %v13033_v57  ;;  %v10031_v57 = vld [vmem:[%s13583_s8 + $0x9] ss:$0 sm:$0xff] }
0x2ec9   :  { %10349 = vtanh.f32 %v13036_v35 }
0x2eca   :  { %v6206_v37 = vadd.f32 %v10340_v12, %v6205_v54 }
0x2ecb   :  { %v10342_v27 = vpop.eup %10341 }
0x2ecc   :  { %v6210_v22 = vsel %vm6209_vm10, %v10340_v12, %v6206_v37  ;;  %v6218_v5 = vmul.f32 %v10342_v27, %v6171_v15  ;;  %vm6223_vm12 = vweird.f32 %v10342_v27  ;;  %v10344_v59 = vpop.eup %10343 }
0x2ecd   :  { %v6215_v61 = vsel %vm6212_vm11, %v6214_v60, %v6210_v22  ;;  %vm6224_vm14 = vmor %vm6222_vm13, %vm6223_vm12  ;;  %v10346_v17 = vpop.eup %10345 }
0x2ece   :  { %6240 = vrot.lane.b32.xlu1 %v6215_v61, %s10493_s20  ;;  %v6219_v41 = vsub.f32 1.0, %v6218_v5  ;;  %v10348_v12 = vpop.eup %10347 }
0x2ecf   :  { %v10350_v15 = vpop.eup %10349 }
0x2ed0   :  { %v6220_v40 = vmul.f32 %v10342_v27, %v6219_v41 }
0x2ed2   :  { %v6221_v63 = vadd.f32 %v10342_v27, %v6220_v40 }
0x2ed4   :  { %v6225_v26 = vsel %vm6224_vm14, %v10342_v27, %v6221_v63 }
0x2ed5   :  { %v6230_v13 = vsel %vm6227_vm15, %v6229_v30, %v6225_v26 }
0x2ed6   :  { %6242 = vrot.lane.b32.xlu2 %v6230_v13, %s10493_s20 }
0x2f18   :  { %v6237_v1 = vpop.permute.xlu2 %6236 }
0x2f19   :  { %v6248_v43 = vmul.f32 %v10344_v59, %v6237_v1 }
0x2f30   :  { %v6243_v19 = vpop.permute.xlu2 %6242 }
0x2f31   :  { %v6251_v20 = vmul.f32 %v10350_v15, %v6243_v19 }
0x2f38   :  { %v6239_v48 = vpop.permute.xlu0 %6238 }
0x2f39   :  { %v6249_v46 = vmul.f32 %v10346_v17, %v6239_v48 }
0x2f3b   :  { %v6257_v49 = vpack.c.bf16 %v6249_v46, %v6248_v43 }
0x2f3d   :  { %8930 = vmatmul.msk.bf16.vlgmr.msra.gmra.mxu3 %vm261_vm0, %v6257_v49 }
0x2f40   :  { %v6241_v51 = vpop.permute.xlu1 %6240 }
0x2f41   :  { %v6250_v24 = vmul.f32 %v10348_v12, %v6241_v51 }
0x2f43   :  { %v6258_v25 = vpack.c.bf16 %v6251_v20, %v6250_v24 }
0x2f4d   :  { %8931 = vmatmul.msk.bf16.gmra.mxu3 %vm261_vm0, %v6258_v25  ;;  %v9402_v25 = vld [vmem:[%s13582_s5 + $0x448] sm:$0xff] }
0x2f4e   :  { %6530 = vmatpush.bf16.msrb.mxu3 %v9402_v25 }
0x2fc0   :  { %v6291_v42 = vpop.f32.mrf.mxu3 }
0x2fc1   :  { %v13062_v16 = vadd.f32 %v10031_v57, %v6291_v42  ;;  %v9401_v42 = vld [vmem:[%s13582_s5 + $0x440] sm:$0xff] }
0x2fc2   :  { %6531 = vmatpush.bf16.msrb.mxu3 %v9401_v42 }
0x2fc3   :  { %v6301_v5 = vadd.f32 %v13062_v16, %v12885_v18 }
0x2fc8   :  { %v6293_v58 = vpop.f32.mrf.mxu3 }
0x2fc9   :  { %v13060_v14 = vadd.f32 %v10031_v57, %v6293_v58  ;;  %v9400_v58 = vld [vmem:[%s13582_s5 + $0x438] sm:$0xff] }
0x2fca   :  { %6532 = vmatpush.bf16.msrb.mxu3 %v9400_v58 }
0x2fcb   :  { %v6302_v60 = vadd.f32 %v13060_v14, %v12888_v7  ;;  %v13086_v7 = vmul.f32 %v6301_v5, %v10634_v9  ;;  %v9396_v5 = vld [vmem:[%s13582_s5 + $0x418] sm:$0xff] }
0x2fcd   :  { %v13081_v53 = vmul.f32 %v6302_v60, %v10636_v10  ;;  %v9397_v60 = vld [vmem:[%s13582_s5 + $0x420] sm:$0xff] }
0x2fd0   :  { %v6296_v23 = vpop.f32.mrf.mxu3 }
0x2fd1   :  { %v13058_v35 = vadd.f32 %v10031_v57, %v6296_v23  ;;  %v9399_v23 = vld [vmem:[%s13582_s5 + $0x430] sm:$0xff] }
0x2fd2   :  { %6533 = vmatpush.bf16.msrb.mxu3 %v9399_v23 }
0x2fd3   :  { %v6303_v37 = vadd.f32 %v13058_v35, %v12877_v8 }
0x2fd5   :  { %v13075_v61 = vmul.f32 %v6303_v37, %v10624_v52  ;;  %v9404_v37 = vld [vmem:[%s13582_s5 + $0x458] sm:$0xff] }
0x2fd6   :  { %6555 = vmatpush.bf16.msrb.mxu0 %v9404_v37 }
0x2fd8   :  { %v6298_v54 = vpop.f32.mrf.mxu3 }
0x2fd9   :  { %v13066_v27 = vadd.f32 %v10031_v57, %v6298_v54  ;;  %v9398_v57 = vld [vmem:[%s13582_s5 + $0x428] sm:$0xff] }
0x2fda   :  { %6534 = vmatpush.bf16.msrb.mxu3 %v9398_v57 }
0x2fdb   :  { %v6304_v22 = vadd.f32 %v13066_v27, %v12880_v45  ;;  %v6313_v45 = vpack.c.bf16 %v13081_v53, %v13086_v7 }
0x2fdd   :  { %v13078_v41 = vmul.f32 %v6304_v22, %v10622_v47  ;;  %v9403_v22 = vld [vmem:[%s13582_s5 + $0x450] sm:$0xff] }
0x2fde   :  { %6535 = vmatpush.bf16.msrb.mxu3 %v9397_v60  ;;  %6556 = vmatpush.bf16.msrb.mxu0 %v9403_v22 }
0x2fdf   :  { %v6314_v8 = vpack.c.bf16 %v13078_v41, %v13075_v61 }
0x2fe1   :  { %6321 = vmatpush.bf16.msra.mxu1 %v6314_v8 }
0x2fe2   :  { %6536 = vmatpush.bf16.msrb.mxu3 %v9396_v5 }
0x2fe5   :  { %6322 = vmatpush.bf16.msra.mxu1 %v6313_v45 }
0x2fe8   :  { %8932 = vmatmul.msk.bf16.vlgmr.msra.gmra.mxu1 %vm261_vm0, %v12895_v0 }
0x2ff8   :  { %8933 = vmatmul.msk.bf16.gmra.mxu1 %vm261_vm0, %v12902_v44 }
0x3008   :  { %8934 = vmatmul.msk.bf16.gmra.mxu1 %vm261_vm0, %v12909_v29 }
0x3018   :  { %8935 = vmatmul.msk.bf16.gmra.mxu1 %vm261_vm0, %v12916_v2 }
0x3028   :  { %8936 = vmatmul.msk.bf16.gmra.mxu1 %vm261_vm0, %v12923_v34 }
0x3038   :  { %8937 = vmatmul.msk.bf16.gmra.mxu1 %vm261_vm0, %v12930_v6 }
0x3048   :  { %8938 = vmatmul.msk.bf16.gmra.mxu1 %vm261_vm0, %v12937_v56 }
0x3058   :  { %8939 = vmatmul.msk.bf16.gmra.mxu1 %vm261_vm0, %v12944_v4 }
0x3065   :  { %v13106_v18 = vpop.f32.mrf.mxu1 }
0x3068   :  { %8940 = vmatmul.msk.bf16.gmra.mxu1 %vm261_vm0, %v12951_v62 }
0x306d   :  { %v13110_v40 = vpop.f32.mrf.mxu1 }
0x3075   :  { %v13112_v39 = vpop.f32.mrf.mxu1 }
0x3078   :  { %8941 = vmatmul.msk.bf16.gmra.mxu1 %vm261_vm0, %v12962_v11 }
0x307d   :  { %v13116_v63 = vpop.f32.mrf.mxu1 }
0x3085   :  { %v6334_v30 = vpop.f32.mrf.mxu1 }
0x308d   :  { %v6336_v26 = vpop.f32.mrf.mxu1 }
0x308e   :  { %v9893_v13 = vpack.i.bf16 %v6336_v26, %v6334_v30  ;;  %v9395_v30 = vld [vmem:[%s13582_s5 + $0x410] sm:$0xff] }
0x308f   :  { %6537 = vmatpush.bf16.msrb.mxu3 %v9395_v30 }
0x3090   :  { %9894 = vrot.lane.b32.xlu0 %v9893_v13, %s10491_s14 }
0x3095   :  { %v6339_v21 = vpop.f32.mrf.mxu1 }
0x309d   :  { %v6341_v33 = vpop.f32.mrf.mxu1 }
0x309e   :  { %v9908_v1 = vpack.i.bf16 %v6341_v33, %v6339_v21 }
0x30a0   :  { %9909 = vrot.lane.b32.xlu0 %v9908_v1, %s10491_s14 }
0x30a5   :  { %v6344_v59 = vpop.f32.mrf.mxu1 }
0x30ad   :  { %v6346_v17 = vpop.f32.mrf.mxu1 }
0x30ae   :  { %v9898_v48 = vpack.i.bf16 %v6346_v17, %v6344_v59 }
0x30b0   :  { %9899 = vrot.lane.b32.xlu1 %v9898_v48, %s10492_s19 }
0x30b5   :  { %v6349_v43 = vpop.f32.mrf.mxu1 }
0x30bd   :  { %v6351_v46 = vpop.f32.mrf.mxu1 }
0x30be   :  { %v9913_v49 = vpack.i.bf16 %v6351_v46, %v6349_v43 }
0x30c0   :  { %9914 = vrot.lane.b32.xlu1 %v9913_v49, %s10492_s19 }
0x30c5   :  { %v6354_v19 = vpop.f32.mrf.mxu1 }
0x30cd   :  { %v6356_v12 = vpop.f32.mrf.mxu1 }
0x30ce   :  { %v9903_v15 = vpack.i.bf16 %v6356_v12, %v6354_v19 }
0x30d0   :  { %9904 = vrot.lane.b32.xlu2 %v9903_v15, %s10493_s20 }
0x30d5   :  { %v6359_v51 = vpop.f32.mrf.mxu1 }
0x30dd   :  { %v6361_v20 = vpop.f32.mrf.mxu1 }
0x30de   :  { %v9918_v24 = vpack.i.bf16 %v6361_v20, %v6359_v51 }
0x30e0   :  { %9919 = vrot.lane.b32.xlu2 %v9918_v24, %s10493_s20 }
0x30e5   :  { %v6364_v54 = vpop.f32.mrf.mxu1 }
0x30ed   :  { %v6366_v8 = vpop.f32.mrf.mxu1 }
0x30ee   :  { %v6456_v45 = vpack.c.bf16 %v6366_v8, %v6364_v54 }
0x30f0   :  { %9003 = vmatmul.msk.bf16.vlgmr.msrb.gmra.mxu0 %vm261_vm0, %v6456_v45 }
0x30f5   :  { %v6369_v26 = vpop.f32.mrf.mxu1 }
0x30fd   :  { %v6371_v13 = vpop.f32.mrf.mxu1 }
0x30fe   :  { %v6458_v21 = vpack.c.bf16 %v6371_v13, %v6369_v26 }
0x3100   :  { %9004 = vmatmul.msk.bf16.gmra.mxu0 %vm261_vm0, %v6458_v21 }
0x3102   :  { %v9895_v33 = vpop.permute.xlu0 %9894 }
0x3103   :  { %v9897_v59 = vunpack.i.h.bf16 %v9895_v33  ;;  %v9896_v17 = vunpack.i.l.bf16 %v9895_v33 }
0x3105   :  { %v6423_v49 = vsel %vm261_vm0, %v13110_v40, %v9897_v59  ;;  %v6422_v19 = vsel %vm261_vm0, %v13106_v18, %v9896_v17 }
0x3112   :  { %v9910_v58 = vpop.permute.xlu0 %9909 }
0x3113   :  { %v9912_v57 = vunpack.i.h.bf16 %v9910_v58  ;;  %v9911_v54 = vunpack.i.l.bf16 %v9910_v58 }
0x3115   :  { %v6425_v18 = vsel %vm261_vm0, %v13116_v63, %v9912_v57  ;;  %v6424_v22 = vsel %vm261_vm0, %v13112_v39, %v9911_v54  ;;  %v10032_v63 = vld [vmem:[%s13581_s6 + $0xd] ss:$0 sm:$0xff] }
0x3122   :  { %v9900_v1 = vpop.permute.xlu1 %9899 }
0x3123   :  { %v9902_v48 = vunpack.i.h.bf16 %v9900_v1  ;;  %v9901_v43 = vunpack.i.l.bf16 %v9900_v1 }
0x3125   :  { %v6427_v51 = vsel %vm403_vm1, %v6423_v49, %v9902_v48  ;;  %v6426_v20 = vsel %vm403_vm1, %v6422_v19, %v9901_v43 }
0x312a   :  { %v9905_v46 = vpop.permute.xlu2 %9904 }
0x312b   :  { %v9907_v12 = vunpack.i.h.bf16 %v9905_v46  ;;  %v9906_v15 = vunpack.i.l.bf16 %v9905_v46 }
0x312d   :  { %v6431_v24 = vsel %vm408_vm2, %v6427_v51, %v9907_v12  ;;  %v6430_v25 = vsel %vm408_vm2, %v6426_v20, %v9906_v15 }
0x312e   :  { %v6455_v42 = vpack.c.bf16 %v6431_v24, %v6430_v25 }
0x3130   :  { %6538 = vmatmul.bf16.vlgmr.msrb.gmra.mxu3 %v6455_v42 }
0x3132   :  { %v9915_v23 = vpop.permute.xlu1 %9914 }
0x3133   :  { %v9917_v40 = vunpack.i.h.bf16 %v9915_v23  ;;  %v9916_v37 = vunpack.i.l.bf16 %v9915_v23 }
0x3135   :  { %v6429_v45 = vsel %vm403_vm1, %v6425_v18, %v9917_v40  ;;  %v6428_v30 = vsel %vm403_vm1, %v6424_v22, %v9916_v37 }
0x313a   :  { %v9920_v60 = vpop.permute.xlu2 %9919 }
0x313b   :  { %v9922_v5 = vunpack.i.h.bf16 %v9920_v60  ;;  %v9921_v8 = vunpack.i.l.bf16 %v9920_v60 }
0x313d   :  { %v6432_v26 = vsel %vm408_vm2, %v6428_v30, %v9921_v8  ;;  %v6433_v13 = vsel %vm408_vm2, %v6429_v45, %v9922_v5 }
0x313e   :  { %v6457_v21 = vpack.c.bf16 %v6433_v13, %v6432_v26 }
0x3140   :  { %6543 = vmatmul.bf16.gmra.mxu3 %v6457_v21 }
0x316d   :  { %v6558_v33 = vpop.f32.mrf.mxu0 }
0x3175   :  { %v6560_v48 = vpop.f32.mrf.mxu0 }
0x317d   :  { %v6563_v20 = vpop.f32.mrf.mxu0 }
0x3185   :  { %v6565_v18 = vpop.f32.mrf.mxu0 }
0x31b3   :  { %v6539_v1 = vpop.f32.mrf.mxu3 }
0x31b4   :  { %v6540_v59 = vadd.f32 %v10032_v63, %v6539_v1 }
0x31b6   :  { %v13175_v39 = vadd.f32 %v6558_v33, %v6540_v59 }
0x31b8   :  { %v9005_v17 = vmul.f32 -1.442695, %v13175_v39 }
0x31ba   :  { %10351 = vpow2.f32 %v9005_v17 }
0x31bb   :  { %v6541_v43 = vpop.f32.mrf.mxu3 }
0x31bc   :  { %v6542_v46 = vadd.f32 %v10032_v63, %v6541_v43 }
0x31be   :  { %v13178_v49 = vadd.f32 %v6560_v48, %v6542_v46 }
0x31c0   :  { %v10352_v19 = vpop.eup %10351  ;;  %v9006_v12 = vmul.f32 -1.442695, %v13178_v49 }
0x31c1   :  { %v6584_v15 = vadd.f32 1.0, %v10352_v19 }
0x31c2   :  { %10353 = vpow2.f32 %v9006_v12 }
0x31c3   :  { %10355 = vrcp.f32 %v6584_v15  ;;  %v6544_v51 = vpop.f32.mrf.mxu3  ;;  %v6599_v22 = vand.u32 2147483648, %v6584_v15  ;;  %v6597_v45 = vand.u32 2147483647, %v6584_v15  ;;  %vm6593_vm4 = vweird.f32 %v6584_v15 }
0x31c4   :  { %v6545_v24 = vadd.f32 %v10032_v63, %v6544_v51 }
0x31c5   :  { %v6600_v1 = vor.u32 1.1754944e-38, %v6599_v22  ;;  %vm6598_vm6 = vcmp.eq.f32.partialorder %v6597_v45, 8.507059e+37 }
0x31c6   :  { %v13181_v25 = vadd.f32 %v6563_v20, %v6545_v24 }
0x31c8   :  { %v10354_v42 = vpop.eup %10353  ;;  %v9007_v58 = vmul.f32 -1.442695, %v13181_v25 }
0x31c9   :  { %v10356_v23 = vpop.eup %10355  ;;  %v6585_v57 = vadd.f32 1.0, %v10354_v42 }
0x31ca   :  { %10357 = vpow2.f32 %v9007_v58  ;;  %v6589_v54 = vmul.f32 %v10356_v23, %v6584_v15  ;;  %vm6594_vm3 = vweird.f32 %v10356_v23 }
0x31cb   :  { %10359 = vrcp.f32 %v6585_v57  ;;  %v6546_v40 = vpop.f32.mrf.mxu3  ;;  %vm6595_vm5 = vmor %vm6593_vm4, %vm6594_vm3  ;;  %v6614_v43 = vand.u32 2147483648, %v6585_v57  ;;  %v6612_v19 = vand.u32 2147483647, %v6585_v57  ;;  %vm6608_vm8 = vweird.f32 %v6585_v57 }
0x31cc   :  { %v6547_v37 = vadd.f32 %v10032_v63, %v6546_v40  ;;  %v6590_v60 = vsub.f32 1.0, %v6589_v54 }
0x31cd   :  { %v6615_v24 = vor.u32 1.1754944e-38, %v6614_v43  ;;  %vm6613_vm10 = vcmp.eq.f32.partialorder %v6612_v19, 8.507059e+37  ;;  %v9405_v43 = vld [vmem:[%s13584_s7 + $0xa0] sm:$0xff] }
0x31ce   :  { %v13184_v5 = vadd.f32 %v6565_v18, %v6547_v37  ;;  %v6591_v8 = vmul.f32 %v10356_v23, %v6590_v60 }
0x31d0   :  { %v10358_v30 = vpop.eup %10357  ;;  %v9008_v26 = vmul.f32 -1.442695, %v13184_v5  ;;  %v6592_v13 = vadd.f32 %v10356_v23, %v6591_v8 }
0x31d1   :  { %v10360_v21 = vpop.eup %10359  ;;  %v6586_v33 = vadd.f32 1.0, %v10358_v30 }
0x31d2   :  { %10361 = vpow2.f32 %v9008_v26  ;;  %v6596_v59 = vsel %vm6595_vm5, %v10356_v23, %v6592_v13  ;;  %v6604_v63 = vmul.f32 %v10360_v21, %v6585_v57  ;;  %vm6609_vm7 = vweird.f32 %v10360_v21 }
0x31d3   :  { %10363 = vrcp.f32 %v6586_v33  ;;  %v6601_v17 = vsel %vm6598_vm6, %v6600_v1, %v6596_v59  ;;  %vm6610_vm9 = vmor %vm6608_vm8, %vm6609_vm7  ;;  %v6629_v40 = vand.u32 2147483648, %v6586_v33  ;;  %v6627_v60 = vand.u32 2147483647, %v6586_v33 }
0x31d4   :  { %6652 = vrot.lane.b32.xlu0 %v6601_v17, %s10493_s20  ;;  %v6605_v48 = vsub.f32 1.0, %v6604_v63  ;;  %vm6623_vm12 = vweird.f32 %v6586_v33 }
0x31d5   :  { %v6630_v57 = vor.u32 1.1754944e-38, %v6629_v40  ;;  %vm6628_vm14 = vcmp.eq.f32.partialorder %v6627_v60, 8.507059e+37 }
0x31d6   :  { %v6606_v46 = vmul.f32 %v10360_v21, %v6605_v48  ;;  %v9406_v48 = vld [vmem:[%s13584_s7 + $0xa8] sm:$0xff] }
0x31d7   :  { %6704 = vmatpush.bf16.msra.mxu3 %v9406_v48 }
0x31d8   :  { %v10362_v12 = vpop.eup %10361  ;;  %v6607_v51 = vadd.f32 %v10360_v21, %v6606_v46 }
0x31d9   :  { %v10364_v15 = vpop.eup %10363  ;;  %v6587_v20 = vadd.f32 1.0, %v10362_v12 }
0x31da   :  { %v6611_v42 = vsel %vm6610_vm9, %v10360_v21, %v6607_v51  ;;  %v6619_v58 = vmul.f32 %v10364_v15, %v6586_v33  ;;  %vm6624_vm11 = vweird.f32 %v10364_v15 }
0x31db   :  { %10365 = vrcp.f32 %v6587_v20  ;;  %v6616_v23 = vsel %vm6613_vm10, %v6615_v24, %v6611_v42  ;;  %vm6625_vm13 = vmor %vm6623_vm12, %vm6624_vm11  ;;  %v6644_v13 = vand.u32 2147483648, %v6587_v20  ;;  %v6642_v1 = vand.u32 2147483647, %v6587_v20  ;;  %6705 = vmatpush.bf16.msra.mxu3 %v9405_v43 }
0x31dc   :  { %6654 = vrot.lane.b32.xlu1 %v6616_v23, %s10493_s20  ;;  %v6620_v54 = vsub.f32 1.0, %v6619_v58  ;;  %vm6638_vm3 = vweird.f32 %v6587_v20  ;;  %10367 = vtanh.f32 %v13175_v39 }
0x31dd   :  { %v6645_v63 = vor.u32 1.1754944e-38, %v6644_v13  ;;  %vm6643_vm5 = vcmp.eq.f32.partialorder %v6642_v1, 8.507059e+37  ;;  %10369 = vtanh.f32 %v13178_v49 }
0x31de   :  { %v6621_v37 = vmul.f32 %v10364_v15, %v6620_v54  ;;  %10371 = vtanh.f32 %v13181_v25 }
0x31df   :  { %10373 = vtanh.f32 %v13184_v5 }
0x31e0   :  { %v6622_v18 = vadd.f32 %v10364_v15, %v6621_v37 }
0x31e1   :  { %v10366_v22 = vpop.eup %10365 }
0x31e2   :  { %v6626_v8 = vsel %vm6625_vm13, %v10364_v15, %v6622_v18  ;;  %v6634_v45 = vmul.f32 %v10366_v22, %v6587_v20  ;;  %vm6639_vm15 = vweird.f32 %v10366_v22  ;;  %v10368_v19 = vpop.eup %10367 }
0x31e3   :  { %v6631_v30 = vsel %vm6628_vm14, %v6630_v57, %v6626_v8  ;;  %vm6640_vm4 = vmor %vm6638_vm3, %vm6639_vm15  ;;  %v10370_v12 = vpop.eup %10369 }
0x31e4   :  { %6656 = vrot.lane.b32.xlu2 %v6631_v30, %s10493_s20  ;;  %v6635_v26 = vsub.f32 1.0, %v6634_v45  ;;  %v10372_v58 = vpop.eup %10371 }
0x31e5   :  { %v10374_v23 = vpop.eup %10373 }
0x31e6   :  { %v6636_v21 = vmul.f32 %v10366_v22, %v6635_v26 }
0x31e8   :  { %v6637_v59 = vadd.f32 %v10366_v22, %v6636_v21 }
0x31ea   :  { %v6641_v17 = vsel %vm6640_vm4, %v10366_v22, %v6637_v59  ;;  %v10033_v22 = vld [vmem:[%s13583_s8 + $0xa] ss:$0 sm:$0xff] }
0x31eb   :  { %v6646_v33 = vsel %vm6643_vm5, %v6645_v63, %v6641_v17 }
0x31ec   :  { %6658 = vrot.lane.b32.xlu0 %v6646_v33, %s10493_s20 }
0x323e   :  { %v6657_v42 = vpop.permute.xlu2 %6656 }
0x323f   :  { %v6666_v39 = vmul.f32 %v10372_v58, %v6657_v42  ;;  %v9414_v42 = vld [vmem:[%s13582_s5 + $0x498] sm:$0xff]  ;;  %v9413_v58 = vld [vmem:[%s13582_s5 + $0x490] sm:$0xff] }
0x3240   :  { %6946 = vmatpush.bf16.msrb.mxu3 %v9414_v42 }
0x3244   :  { %6947 = vmatpush.bf16.msrb.mxu3 %v9413_v58 }
0x3246   :  { %v6653_v46 = vpop.permute.xlu0 %6652 }
0x3247   :  { %v6664_v15 = vmul.f32 %v10368_v19, %v6653_v46 }
0x324e   :  { %v6655_v51 = vpop.permute.xlu1 %6654 }
0x324f   :  { %v6665_v20 = vmul.f32 %v10370_v12, %v6655_v51 }
0x3251   :  { %v6673_v24 = vpack.c.bf16 %v6665_v20, %v6664_v15 }
0x3253   :  { %9022 = vmatmul.msk.bf16.vlgmr.msra.gmra.mxu3 %vm261_vm0, %v6673_v24 }
0x325e   :  { %v6659_v54 = vpop.permute.xlu0 %6658 }
0x325f   :  { %v6667_v40 = vmul.f32 %v10374_v23, %v6659_v54  ;;  %v9416_v23 = vld [vmem:[%s13582_s5 + $0x4a8] sm:$0xff] }
0x3260   :  { %6971 = vmatpush.bf16.msrb.mxu2 %v9416_v23  ;;  %v9412_v54 = vld [vmem:[%s13582_s5 + $0x488] sm:$0xff] }
0x3261   :  { %v6674_v49 = vpack.c.bf16 %v6667_v40, %v6666_v39  ;;  %6948 = vmatpush.bf16.msrb.mxu3 %v9412_v54  ;;  %v9411_v39 = vld [vmem:[%s13582_s5 + $0x480] sm:$0xff]  ;;  %v9410_v40 = vld [vmem:[%s13582_s5 + $0x478] sm:$0xff] }
0x3263   :  { %9023 = vmatmul.msk.bf16.gmra.mxu3 %vm261_vm0, %v6674_v49 }
0x3265   :  { %6949 = vmatpush.bf16.msrb.mxu3 %v9411_v39 }
0x3269   :  { %6950 = vmatpush.bf16.msrb.mxu3 %v9410_v40 }
0x32d6   :  { %v6707_v37 = vpop.f32.mrf.mxu3 }
0x32d7   :  { %v13210_v8 = vadd.f32 %v10033_v22, %v6707_v37  ;;  %v9409_v37 = vld [vmem:[%s13582_s5 + $0x470] sm:$0xff] }
0x32d8   :  { %6951 = vmatpush.bf16.msrb.mxu3 %v9409_v37 }
0x32d9   :  { %v6717_v21 = vadd.f32 %v13210_v8, %v13086_v7 }
0x32de   :  { %v6709_v60 = vpop.f32.mrf.mxu3 }
0x32df   :  { %v13208_v25 = vadd.f32 %v10033_v22, %v6709_v60  ;;  %v9408_v60 = vld [vmem:[%s13582_s5 + $0x468] sm:$0xff] }
0x32e0   :  { %6952 = vmatpush.bf16.msrb.mxu3 %v9408_v60 }
0x32e1   :  { %v6718_v26 = vadd.f32 %v13208_v25, %v13081_v53  ;;  %v13234_v53 = vmul.f32 %v6717_v21, %v10634_v9 }
0x32e3   :  { %v13229_v63 = vmul.f32 %v6718_v26, %v10636_v10  ;;  %v9407_v26 = vld [vmem:[%s13582_s5 + $0x460] sm:$0xff] }
0x32e4   :  { %6953 = vmatpush.bf16.msrb.mxu3 %v9407_v26 }
0x32e6   :  { %v6712_v18 = vpop.f32.mrf.mxu3 }
0x32e7   :  { %v13206_v57 = vadd.f32 %v10033_v22, %v6712_v18  ;;  %v9415_v18 = vld [vmem:[%s13582_s5 + $0x4a0] sm:$0xff] }
0x32e8   :  { %6972 = vmatpush.bf16.msrb.mxu2 %v9415_v18 }
0x32e9   :  { %v6719_v45 = vadd.f32 %v13206_v57, %v13075_v61 }
0x32eb   :  { %v13223_v1 = vmul.f32 %v6719_v45, %v10624_v52 }
0x32ee   :  { %v6714_v5 = vpop.f32.mrf.mxu3 }
0x32ef   :  { %v13214_v30 = vadd.f32 %v10033_v22, %v6714_v5 }
0x32f1   :  { %v6720_v13 = vadd.f32 %v13214_v30, %v13078_v41  ;;  %v6729_v41 = vpack.c.bf16 %v13229_v63, %v13234_v53 }
0x32f3   :  { %v13226_v59 = vmul.f32 %v6720_v13, %v10622_v47 }
0x32f5   :  { %v6730_v61 = vpack.c.bf16 %v13226_v59, %v13223_v1 }
0x32f7   :  { %6737 = vmatpush.bf16.msra.mxu0 %v6730_v61 }
0x32fb   :  { %6738 = vmatpush.bf16.msra.mxu0 %v6729_v41 }
0x32fe   :  { %9024 = vmatmul.msk.bf16.vlgmr.msra.gmra.mxu0 %vm261_vm0, %v12895_v0 }
0x330e   :  { %9025 = vmatmul.msk.bf16.gmra.mxu0 %vm261_vm0, %v12902_v44 }
0x331e   :  { %9026 = vmatmul.msk.bf16.gmra.mxu0 %vm261_vm0, %v12909_v29 }
0x332e   :  { %9027 = vmatmul.msk.bf16.gmra.mxu0 %vm261_vm0, %v12916_v2 }
0x333e   :  { %9028 = vmatmul.msk.bf16.gmra.mxu0 %vm261_vm0, %v12923_v34 }
0x334e   :  { %9029 = vmatmul.msk.bf16.gmra.mxu0 %vm261_vm0, %v12930_v6 }
0x335e   :  { %9030 = vmatmul.msk.bf16.gmra.mxu0 %vm261_vm0, %v12937_v56 }
0x336e   :  { %9031 = vmatmul.msk.bf16.gmra.mxu0 %vm261_vm0, %v12944_v4 }
0x337b   :  { %v13254_v0 = vpop.f32.mrf.mxu0 }
0x337e   :  { %9032 = vmatmul.msk.bf16.gmra.mxu0 %vm261_vm0, %v12951_v62 }
0x3383   :  { %v13258_v44 = vpop.f32.mrf.mxu0 }
0x338b   :  { %v13260_v29 = vpop.f32.mrf.mxu0 }
0x338e   :  { %9033 = vmatmul.msk.bf16.gmra.mxu0 %vm261_vm0, %v12962_v11 }
0x3393   :  { %v13264_v2 = vpop.f32.mrf.mxu0 }
0x339b   :  { %v6750_v34 = vpop.f32.mrf.mxu0 }
0x33a3   :  { %v6752_v6 = vpop.f32.mrf.mxu0 }
0x33a4   :  { %v9923_v56 = vpack.i.bf16 %v6752_v6, %v6750_v34 }
0x33a6   :  { %9924 = vrot.lane.b32.xlu1 %v9923_v56, %s10491_s14 }
0x33ab   :  { %v6755_v4 = vpop.f32.mrf.mxu0 }
0x33b3   :  { %v6757_v7 = vpop.f32.mrf.mxu0 }
0x33b4   :  { %v9938_v17 = vpack.i.bf16 %v6757_v7, %v6755_v4 }
0x33b6   :  { %9939 = vrot.lane.b32.xlu1 %v9938_v17, %s10491_s14 }
0x33bb   :  { %v6760_v62 = vpop.f32.mrf.mxu0 }
0x33c3   :  { %v6762_v33 = vpop.f32.mrf.mxu0 }
0x33c4   :  { %v9928_v48 = vpack.i.bf16 %v6762_v33, %v6760_v62 }
0x33c6   :  { %9929 = vrot.lane.b32.xlu2 %v9928_v48, %s10492_s19 }
0x33cb   :  { %v6765_v43 = vpop.f32.mrf.mxu0 }
0x33d3   :  { %v6767_v46 = vpop.f32.mrf.mxu0 }
0x33d4   :  { %v9943_v11 = vpack.i.bf16 %v6767_v46, %v6765_v43 }
0x33d6   :  { %9944 = vrot.lane.b32.xlu2 %v9943_v11, %s10492_s19 }
0x33db   :  { %v6770_v19 = vpop.f32.mrf.mxu0 }
0x33e3   :  { %v6772_v12 = vpop.f32.mrf.mxu0 }
0x33e4   :  { %v9933_v51 = vpack.i.bf16 %v6772_v12, %v6770_v19 }
0x33e6   :  { %9934 = vrot.lane.b32.xlu0 %v9933_v51, %s10493_s20 }
0x33eb   :  { %v6775_v15 = vpop.f32.mrf.mxu0 }
0x33f3   :  { %v6777_v20 = vpop.f32.mrf.mxu0 }
0x33f4   :  { %v9948_v24 = vpack.i.bf16 %v6777_v20, %v6775_v15 }
0x33f6   :  { %9949 = vrot.lane.b32.xlu0 %v9948_v24, %s10493_s20 }
0x33fb   :  { %v6780_v49 = vpop.f32.mrf.mxu0 }
0x3403   :  { %v6782_v22 = vpop.f32.mrf.mxu0 }
0x3404   :  { %v6872_v5 = vpack.c.bf16 %v6782_v22, %v6780_v49 }
0x3406   :  { %9095 = vmatmul.msk.bf16.vlgmr.msrb.gmra.mxu2 %vm261_vm0, %v6872_v5 }
0x340b   :  { %v6785_v45 = vpop.f32.mrf.mxu0 }
0x3413   :  { %v6787_v13 = vpop.f32.mrf.mxu0 }
0x3414   :  { %v6874_v21 = vpack.c.bf16 %v6787_v13, %v6785_v45 }
0x3416   :  { %9096 = vmatmul.msk.bf16.gmra.mxu2 %vm261_vm0, %v6874_v21 }
0x3418   :  { %v9925_v61 = vpop.permute.xlu1 %9924 }
0x3419   :  { %v9927_v34 = vunpack.i.h.bf16 %v9925_v61  ;;  %v9926_v6 = vunpack.i.l.bf16 %v9925_v61 }
0x341b   :  { %v6839_v17 = vsel %vm261_vm0, %v13258_v44, %v9927_v34  ;;  %v6838_v62 = vsel %vm261_vm0, %v13254_v0, %v9926_v6 }
0x3420   :  { %v9930_v41 = vpop.permute.xlu2 %9929 }
0x3421   :  { %v9932_v56 = vunpack.i.h.bf16 %v9930_v41  ;;  %v9931_v4 = vunpack.i.l.bf16 %v9930_v41 }
0x3423   :  { %v6843_v43 = vsel %vm403_vm1, %v6839_v17, %v9932_v56  ;;  %v6842_v46 = vsel %vm403_vm1, %v6838_v62, %v9931_v4 }
0x3428   :  { %v9940_v51 = vpop.permute.xlu1 %9939 }
0x3429   :  { %v9942_v20 = vunpack.i.h.bf16 %v9940_v51  ;;  %v9941_v24 = vunpack.i.l.bf16 %v9940_v51 }
0x342b   :  { %v6841_v0 = vsel %vm261_vm0, %v13264_v2, %v9942_v20  ;;  %v6840_v23 = vsel %vm261_vm0, %v13260_v29, %v9941_v24  ;;  %v10034_v2 = vld [vmem:[%s13581_s6 + $0xe] ss:$0 sm:$0xff] }
0x3430   :  { %v9945_v15 = vpop.permute.xlu2 %9944 }
0x3431   :  { %v9947_v44 = vunpack.i.h.bf16 %v9945_v15  ;;  %v9946_v42 = vunpack.i.l.bf16 %v9945_v15 }
0x3433   :  { %v6845_v40 = vsel %vm403_vm1, %v6841_v0, %v9947_v44  ;;  %v6844_v49 = vsel %vm403_vm1, %v6840_v23, %v9946_v42 }
0x3458   :  { %v9935_v7 = vpop.permute.xlu0 %9934 }
0x3459   :  { %v9937_v33 = vunpack.i.h.bf16 %v9935_v7  ;;  %v9936_v48 = vunpack.i.l.bf16 %v9935_v7 }
0x345b   :  { %v6847_v11 = vsel %vm408_vm2, %v6843_v43, %v9937_v33  ;;  %v6846_v19 = vsel %vm408_vm2, %v6842_v46, %v9936_v48 }
0x345c   :  { %v6871_v12 = vpack.c.bf16 %v6847_v11, %v6846_v19 }
0x345e   :  { %6954 = vmatmul.bf16.vlgmr.msrb.gmra.mxu3 %v6871_v12 }
0x3468   :  { %v9950_v58 = vpop.permute.xlu0 %9949 }
0x3469   :  { %v9952_v54 = vunpack.i.h.bf16 %v9950_v58  ;;  %v9951_v39 = vunpack.i.l.bf16 %v9950_v58 }
0x346b   :  { %v6848_v37 = vsel %vm408_vm2, %v6844_v49, %v9951_v39  ;;  %v6849_v60 = vsel %vm408_vm2, %v6845_v40, %v9952_v54 }
0x346c   :  { %v6873_v18 = vpack.c.bf16 %v6849_v60, %v6848_v37 }
0x346e   :  { %6959 = vmatmul.bf16.gmra.mxu3 %v6873_v18 }
0x3489   :  { %v6974_v22 = vpop.f32.mrf.mxu2 }
0x3491   :  { %v6976_v13 = vpop.f32.mrf.mxu2 }
0x3499   :  { %v6979_v7 = vpop.f32.mrf.mxu2 }
0x34a1   :  { %v6981_v15 = vpop.f32.mrf.mxu2 }
0x34e1   :  { %v6955_v5 = vpop.f32.mrf.mxu3 }
0x34e2   :  { %v6956_v45 = vadd.f32 %v10034_v2, %v6955_v5 }
0x34e4   :  { %v13323_v29 = vadd.f32 %v6974_v22, %v6956_v45 }
0x34e6   :  { %v9097_v26 = vmul.f32 -1.442695, %v13323_v29 }
0x34e8   :  { %10375 = vpow2.f32 %v9097_v26 }
0x34e9   :  { %v6957_v21 = vpop.f32.mrf.mxu3 }
0x34ea   :  { %v6958_v61 = vadd.f32 %v10034_v2, %v6957_v21 }
0x34ec   :  { %v13326_v41 = vadd.f32 %v6976_v13, %v6958_v61 }
0x34ee   :  { %v10376_v34 = vpop.eup %10375  ;;  %v9098_v6 = vmul.f32 -1.442695, %v13326_v41 }
0x34ef   :  { %v7000_v56 = vadd.f32 1.0, %v10376_v34 }
0x34f0   :  { %10377 = vpow2.f32 %v9098_v6 }
0x34f1   :  { %10379 = vrcp.f32 %v7000_v56  ;;  %v6960_v4 = vpop.f32.mrf.mxu3  ;;  %v7015_v20 = vand.u32 2147483648, %v7000_v56  ;;  %v7013_v42 = vand.u32 2147483647, %v7000_v56  ;;  %vm7009_vm7 = vweird.f32 %v7000_v56 }
0x34f2   :  { %v6961_v17 = vadd.f32 %v10034_v2, %v6960_v4 }
0x34f3   :  { %v7016_v40 = vor.u32 1.1754944e-38, %v7015_v20  ;;  %vm7014_vm9 = vcmp.eq.f32.partialorder %v7013_v42, 8.507059e+37 }
0x34f4   :  { %v13329_v62 = vadd.f32 %v6979_v7, %v6961_v17 }
0x34f6   :  { %v10378_v33 = vpop.eup %10377  ;;  %v9099_v48 = vmul.f32 -1.442695, %v13329_v62 }
0x34f7   :  { %v10380_v43 = vpop.eup %10379  ;;  %v7001_v46 = vadd.f32 1.0, %v10378_v33 }
0x34f8   :  { %10381 = vpow2.f32 %v9099_v48  ;;  %v7005_v11 = vmul.f32 %v10380_v43, %v7000_v56  ;;  %vm7010_vm6 = vweird.f32 %v10380_v43 }
0x34f9   :  { %10383 = vrcp.f32 %v7001_v46  ;;  %v6962_v19 = vpop.f32.mrf.mxu3  ;;  %vm7011_vm8 = vmor %vm7009_vm7, %vm7010_vm6  ;;  %v7030_v22 = vand.u32 2147483648, %v7001_v46  ;;  %v7028_v5 = vand.u32 2147483647, %v7001_v46  ;;  %vm7024_vm11 = vweird.f32 %v7001_v46 }
0x34fa   :  { %v6963_v12 = vadd.f32 %v10034_v2, %v6962_v19  ;;  %v7006_v51 = vsub.f32 1.0, %v7005_v11 }
0x34fb   :  { %v7031_v61 = vor.u32 1.1754944e-38, %v7030_v22  ;;  %vm7029_vm13 = vcmp.eq.f32.partialorder %v7028_v5, 8.507059e+37 }
0x34fc   :  { %v13332_v24 = vadd.f32 %v6981_v15, %v6963_v12  ;;  %v7007_v44 = vmul.f32 %v10380_v43, %v7006_v51 }
0x34fe   :  { %v10382_v58 = vpop.eup %10381  ;;  %v9100_v0 = vmul.f32 -1.442695, %v13332_v24  ;;  %v7008_v23 = vadd.f32 %v10380_v43, %v7007_v44 }
0x34ff   :  { %v10384_v54 = vpop.eup %10383  ;;  %v7002_v39 = vadd.f32 1.0, %v10382_v58 }
0x3500   :  { %10385 = vpow2.f32 %v9100_v0  ;;  %v7012_v49 = vsel %vm7011_vm8, %v10380_v43, %v7008_v23  ;;  %v7020_v37 = vmul.f32 %v10384_v54, %v7001_v46  ;;  %vm7025_vm10 = vweird.f32 %v10384_v54 }
0x3501   :  { %10387 = vrcp.f32 %v7002_v39  ;;  %v7017_v60 = vsel %vm7014_vm9, %v7016_v40, %v7012_v49  ;;  %vm7026_vm12 = vmor %vm7024_vm11, %vm7025_vm10  ;;  %v7045_v7 = vand.u32 2147483648, %v7002_v39  ;;  %v7043_v33 = vand.u32 2147483647, %v7002_v39 }
0x3502   :  { %7068 = vrot.lane.b32.xlu1 %v7017_v60, %s10493_s20  ;;  %v7021_v18 = vsub.f32 1.0, %v7020_v37  ;;  %vm7039_vm15 = vweird.f32 %v7002_v39 }
0x3503   :  { %v7046_v46 = vor.u32 1.1754944e-38, %v7045_v7  ;;  %vm7044_vm4 = vcmp.eq.f32.partialorder %v7043_v33, 8.507059e+37 }
0x3504   :  { %v7022_v2 = vmul.f32 %v10384_v54, %v7021_v18 }
0x3506   :  { %v10386_v45 = vpop.eup %10385  ;;  %v7023_v26 = vadd.f32 %v10384_v54, %v7022_v2 }
0x3507   :  { %v10388_v13 = vpop.eup %10387  ;;  %v7003_v21 = vadd.f32 1.0, %v10386_v45 }
0x3508   :  { %v7027_v34 = vsel %vm7026_vm12, %v10384_v54, %v7023_v26  ;;  %v7035_v6 = vmul.f32 %v10388_v13, %v7002_v39  ;;  %vm7040_vm14 = vweird.f32 %v10388_v13  ;;  %v9418_v54 = vld [vmem:[%s13584_s7 + $0xb8] sm:$0xff]  ;;  %v9417_v39 = vld [vmem:[%s13584_s7 + $0xb0] sm:$0xff] }
0x3509   :  { %10389 = vrcp.f32 %v7003_v21  ;;  %v7032_v56 = vsel %vm7029_vm13, %v7031_v61, %v7027_v34  ;;  %vm7041_vm3 = vmor %vm7039_vm15, %vm7040_vm14  ;;  %v7060_v15 = vand.u32 2147483648, %v7003_v21  ;;  %v7058_v44 = vand.u32 2147483647, %v7003_v21  ;;  %7120 = vmatpush.bf16.msra.mxu3 %v9418_v54  ;;  %v10035_v61 = vld [vmem:[%s13583_s8 + $0xb] ss:$0 sm:$0xff] }
0x350a   :  { %7070 = vrot.lane.b32.xlu2 %v7032_v56, %s10493_s20  ;;  %v7036_v4 = vsub.f32 1.0, %v7035_v6  ;;  %vm7054_vm6 = vweird.f32 %v7003_v21  ;;  %10391 = vtanh.f32 %v13323_v29  ;;  %v6725_v6 = vadd.f32 %v13210_v8, %v13062_v16 }
0x350b   :  { %v7061_v58 = vor.u32 1.1754944e-38, %v7060_v15  ;;  %vm7059_vm8 = vcmp.eq.f32.partialorder %v7058_v44, 8.507059e+37  ;;  %10393 = vtanh.f32 %v13326_v41  ;;  %v6728_v16 = vadd.f32 %v13214_v30, %v13066_v27  ;;  %v10481_v44 = vld [vmem:[%s13580_s2 + $0x20] sm:$0xff] }
0x350c   :  { %v7037_v17 = vmul.f32 %v10388_v13, %v7036_v4  ;;  %10395 = vtanh.f32 %v13329_v62  ;;  %v6726_v4 = vadd.f32 %v13208_v25, %v13060_v14 }
0x350d   :  { %7121 = vmatpush.bf16.msra.mxu3 %v9417_v39  ;;  %10397 = vtanh.f32 %v13332_v24 }
0x350e   :  { %v7038_v48 = vadd.f32 %v10388_v13, %v7037_v17 }
0x350f   :  { %v10390_v43 = vpop.eup %10389 }
0x3510   :  { %v7042_v11 = vsel %vm7041_vm3, %v10388_v13, %v7038_v48  ;;  %v7050_v19 = vmul.f32 %v10390_v43, %v7003_v21  ;;  %vm7055_vm5 = vweird.f32 %v10390_v43  ;;  %v10392_v49 = vpop.eup %10391  ;;  %v6727_v48 = vadd.f32 %v13206_v57, %v13058_v35 }
0x3511   :  { %v7047_v12 = vsel %vm7044_vm4, %v7046_v46, %v7042_v11  ;;  %vm7056_vm7 = vmor %vm7054_vm6, %vm7055_vm5  ;;  %v10394_v37 = vpop.eup %10393 }
0x3512   :  { %7072 = vrot.lane.b32.xlu0 %v7047_v12, %s10493_s20  ;;  %v7051_v51 = vsub.f32 1.0, %v7050_v19  ;;  %v10396_v45 = vpop.eup %10395 }
0x3513   :  { %v10398_v26 = vpop.eup %10397 }
0x3514   :  { %v7052_v20 = vmul.f32 %v10390_v43, %v7051_v51 }
0x3516   :  { %v7053_v42 = vadd.f32 %v10390_v43, %v7052_v20 }
0x3518   :  { %v7057_v0 = vsel %vm7056_vm7, %v10390_v43, %v7053_v42  ;;  %v10482_v42 = vld [vmem:[%s13580_s2 + $0x28] sm:$0xff] }
0x3519   :  { %v7062_v23 = vsel %vm7059_vm8, %v7061_v58, %v7057_v0  ;;  %v10483_v58 = vld [vmem:[%s13580_s2 + $0x30] sm:$0xff]  ;;  %v10484_v0 = vld [vmem:[%s13580_s2 + $0x38] sm:$0xff] }
0x351a   :  { %7074 = vrot.lane.b32.xlu1 %v7062_v23, %s10493_s20  ;;  %v10485_v23 = vld [vmem:[%s13580_s2 + $0x40] sm:$0xff] }
0x3564   :  { %v7071_v40 = vpop.permute.xlu2 %7070 }
0x3565   :  { %v7081_v18 = vmul.f32 %v10394_v37, %v7071_v40  ;;  %v10486_v40 = vld [vmem:[%s13580_s2 + $0x48] sm:$0xff] }
0x3574   :  { %v7069_v60 = vpop.permute.xlu1 %7068 }
0x3575   :  { %v7080_v22 = vmul.f32 %v10392_v49, %v7069_v60 }
0x3577   :  { %v7089_v2 = vpack.c.bf16 %v7081_v18, %v7080_v22 }
0x3579   :  { %9114 = vmatmul.msk.bf16.vlgmr.msra.gmra.mxu3 %vm261_vm0, %v7089_v2 }
0x3584   :  { %v7073_v5 = vpop.permute.xlu0 %7072 }
0x3585   :  { %v7082_v29 = vmul.f32 %v10396_v45, %v7073_v5 }
0x358c   :  { %v7075_v13 = vpop.permute.xlu1 %7074 }
0x358d   :  { %v7083_v21 = vmul.f32 %v10398_v26, %v7075_v13 }
0x358f   :  { %v7090_v41 = vpack.c.bf16 %v7083_v21, %v7082_v29 }
0x3591   :  { %9115 = vmatmul.msk.bf16.gmra.mxu3 %vm261_vm0, %v7090_v41 }
0x35fc   :  { %v7123_v34 = vpop.f32.mrf.mxu3 }
0x35fd   :  { %v7124_v62 = vadd.f32 %v10035_v61, %v7123_v34 }
0x35ff   :  { %v13356_v56 = vadd.f32 %v7124_v62, %v6725_v6  ;;  %v7133_v51 = vadd.f32 %v7124_v62, %v13234_v53  ;;  %v10480_v53 = vld [vmem:[%s13580_s2 + $0x18] sm:$0xff] }
0x3601   :  { %v7137_v27 = vmul.f32 %v7133_v51, %v10634_v9  ;;  %v9420_v51 = vld [vmem:[%s13582_s5 + $0x4b8] sm:$0xff] }
0x3604   :  { %v7125_v24 = vpop.f32.mrf.mxu3 }
0x3605   :  { %v7126_v7 = vadd.f32 %v10035_v61, %v7125_v24 }
0x3607   :  { %v13360_v17 = vadd.f32 %v7126_v7, %v6726_v4  ;;  %v7134_v12 = vadd.f32 %v7126_v7, %v13229_v63  ;;  %v10479_v63 = vld [vmem:[%s13580_s2 + $0x10] sm:$0xff] }
0x3609   :  { %v7138_v15 = vmul.f32 %v7134_v12, %v10636_v10  ;;  %v9421_v12 = vld [vmem:[%s13582_s5 + $0x4c0] sm:$0xff] }
0x360b   :  { %v7145_v30 = vpack.c.bf16 %v7138_v15, %v7137_v27  ;;  %v9419_v15 = vld [vmem:[%s13582_s5 + $0x4b0] sm:$0xff] }
0x3614   :  { %v7128_v33 = vpop.f32.mrf.mxu3 }
0x3615   :  { %v7129_v43 = vadd.f32 %v10035_v61, %v7128_v33  ;;  %v9426_v33 = vld [vmem:[%s13582_s5 + $0x4e8] sm:$0xff] }
0x3616   :  { %7362 = vmatpush.bf16.msrb.mxu3 %v9426_v33 }
0x3617   :  { %v13364_v46 = vadd.f32 %v7129_v43, %v6727_v48  ;;  %v7135_v8 = vadd.f32 %v7129_v43, %v13223_v1  ;;  %v10477_v1 = vld [vmem:[%s13580_s2] sm:$0xff]  ;;  %v9424_v43 = vld [vmem:[%s13582_s5 + $0x4d8] sm:$0xff] }
0x3618   :  { %v9425_v48 = vld [vmem:[%s13582_s5 + $0x4e0] sm:$0xff] }
0x3619   :  { %v7139_v35 = vmul.f32 %v7135_v8, %v10624_v52 }
0x361a   :  { %7363 = vmatpush.bf16.msrb.mxu3 %v9425_v48 }
0x361c   :  { %v7130_v11 = vpop.f32.mrf.mxu3 }
0x361d   :  { %v7131_v19 = vadd.f32 %v10035_v61, %v7130_v11  ;;  %v9423_v11 = vld [vmem:[%s13582_s5 + $0x4d0] sm:$0xff] }
0x361e   :  { %7364 = vmatpush.bf16.msrb.mxu3 %v9424_v43  ;;  %v10036_v43 = vld [vmem:[%s13581_s6 + $0xf] ss:$0 sm:$0xff] }
0x361f   :  { %v7136_v14 = vadd.f32 %v7131_v19, %v13226_v59  ;;  %v13371_v25 = vadd.f32 %v7131_v19, %v6728_v16  ;;  %v10478_v59 = vld [vmem:[%s13580_s2 + $0x8] sm:$0xff]  ;;  %v9428_v19 = vld [vmem:[%s13582_s5 + $0x4f8] sm:$0xff] }
0x3620   :  { %v9422_v16 = vld [vmem:[%s13582_s5 + $0x4c8] sm:$0xff]  ;;  %7387 = vmatpush.bf16.msrb.mxu1 %v9428_v19 }
0x3621   :  { %v7140_v57 = vmul.f32 %v7136_v14, %v10622_v47  ;;  %v9427_v14 = vld [vmem:[%s13582_s5 + $0x4f0] sm:$0xff] }
0x3622   :  { %7365 = vmatpush.bf16.msrb.mxu3 %v9423_v11 }
0x3623   :  { %v7146_v20 = vpack.c.bf16 %v7140_v57, %v7139_v35 }
0x3624   :  { %7388 = vmatpush.bf16.msrb.mxu1 %v9427_v14 }
0x3625   :  { %7153 = vmatpush.bf16.msra.mxu2 %v7146_v20 }
0x3626   :  { %7366 = vmatpush.bf16.msrb.mxu3 %v9422_v16 }
0x3629   :  { %7154 = vmatpush.bf16.msra.mxu2 %v7145_v30 }
0x362a   :  { %7367 = vmatpush.bf16.msrb.mxu3 %v9421_v12 }
0x362c   :  { %9116 = vmatmul.msk.bf16.vlgmr.msra.gmra.mxu2 %vm261_vm0, %v10477_v1 }
0x362e   :  { %7368 = vmatpush.bf16.msrb.mxu3 %v9420_v51 }
0x3632   :  { %7369 = vmatpush.bf16.msrb.mxu3 %v9419_v15 }
0x363c   :  { %9117 = vmatmul.msk.bf16.gmra.mxu2 %vm261_vm0, %v10478_v59 }
0x364c   :  { %9118 = vmatmul.msk.bf16.gmra.mxu2 %vm261_vm0, %v10479_v63 }
0x365c   :  { %9119 = vmatmul.msk.bf16.gmra.mxu2 %vm261_vm0, %v10480_v53 }
0x366c   :  { %9120 = vmatmul.msk.bf16.gmra.mxu2 %vm261_vm0, %v10481_v44 }
0x367c   :  { %9121 = vmatmul.msk.bf16.gmra.mxu2 %vm261_vm0, %v10482_v42 }
0x368c   :  { %9122 = vmatmul.msk.bf16.gmra.mxu2 %vm261_vm0, %v10483_v58 }
0x369c   :  { %9123 = vmatmul.msk.bf16.gmra.mxu2 %vm261_vm0, %v10484_v0 }
0x36ac   :  { %9124 = vmatmul.msk.bf16.gmra.mxu2 %vm261_vm0, %v10485_v23 }
0x36af   :  { %v13414_v54 = vpop.f32.mrf.mxu2 }
0x36b7   :  { %v13416_v39 = vpop.f32.mrf.mxu2 }
0x36bc   :  { %9125 = vmatmul.msk.bf16.gmra.mxu2 %vm261_vm0, %v10486_v40 }
0x36bf   :  { %v13422_v49 = vpop.f32.mrf.mxu2 }
0x36c7   :  { %v13424_v37 = vpop.f32.mrf.mxu2 }
0x36cf   :  { %v7166_v60 = vpop.f32.mrf.mxu2 }
0x36d7   :  { %v7168_v18 = vpop.f32.mrf.mxu2 }
0x36d8   :  { %v9953_v22 = vpack.i.bf16 %v7168_v18, %v7166_v60 }
0x36da   :  { %9954 = vrot.lane.b32.xlu2 %v9953_v22, %s10491_s14 }
0x36df   :  { %v7171_v2 = vpop.f32.mrf.mxu2 }
0x36e7   :  { %v7173_v5 = vpop.f32.mrf.mxu2 }
0x36e8   :  { %v9968_v45 = vpack.i.bf16 %v7173_v5, %v7171_v2 }
0x36ea   :  { %9969 = vrot.lane.b32.xlu2 %v9968_v45, %s10491_s14 }
0x36ef   :  { %v7176_v26 = vpop.f32.mrf.mxu2 }
0x36f7   :  { %v7178_v13 = vpop.f32.mrf.mxu2 }
0x36f8   :  { %v9958_v29 = vpack.i.bf16 %v7178_v13, %v7176_v26 }
0x36fa   :  { %9959 = vrot.lane.b32.xlu0 %v9958_v29, %s10492_s19 }
0x36ff   :  { %v7181_v21 = vpop.f32.mrf.mxu2 }
0x3707   :  { %v7183_v41 = vpop.f32.mrf.mxu2 }
0x3708   :  { %v9973_v61 = vpack.i.bf16 %v7183_v41, %v7181_v21 }
0x370a   :  { %9974 = vrot.lane.b32.xlu0 %v9973_v61, %s10492_s19 }
0x370f   :  { %v7186_v34 = vpop.f32.mrf.mxu2 }
0x3717   :  { %v7188_v6 = vpop.f32.mrf.mxu2 }
0x3718   :  { %v9963_v62 = vpack.i.bf16 %v7188_v6, %v7186_v34 }
0x371a   :  { %9964 = vrot.lane.b32.xlu1 %v9963_v62, %s10493_s20 }
0x371f   :  { %v7191_v24 = vpop.f32.mrf.mxu2 }
0x3727   :  { %v7193_v4 = vpop.f32.mrf.mxu2 }
0x3728   :  { %v9978_v7 = vpack.i.bf16 %v7193_v4, %v7191_v24 }
0x372a   :  { %9979 = vrot.lane.b32.xlu1 %v9978_v7, %s10493_s20 }
0x372f   :  { %v7196_v8 = vpop.f32.mrf.mxu2 }
0x3734   :  { %v9955_v1 = vpop.permute.xlu2 %9954 }
0x3735   :  { %v9957_v63 = vunpack.i.h.bf16 %v9955_v1  ;;  %v9956_v53 = vunpack.i.l.bf16 %v9955_v1 }
0x3737   :  { %v7198_v35 = vpop.f32.mrf.mxu2  ;;  %v7255_v0 = vsel %vm261_vm0, %v13416_v39, %v9957_v63  ;;  %v7254_v23 = vsel %vm261_vm0, %v13414_v54, %v9956_v53 }
0x3738   :  { %v7288_v57 = vpack.c.bf16 %v7198_v35, %v7196_v8 }
0x373a   :  { %9187 = vmatmul.msk.bf16.vlgmr.msrb.gmra.mxu1 %vm261_vm0, %v7288_v57 }
0x373f   :  { %v7201_v20 = vpop.f32.mrf.mxu2 }
0x3744   :  { %v9970_v26 = vpop.permute.xlu2 %9969 }
0x3745   :  { %v9972_v29 = vunpack.i.h.bf16 %v9970_v26  ;;  %v9971_v21 = vunpack.i.l.bf16 %v9970_v26 }
0x3747   :  { %v7203_v27 = vpop.f32.mrf.mxu2  ;;  %v7257_v54 = vsel %vm261_vm0, %v13424_v37, %v9972_v29  ;;  %v7256_v34 = vsel %vm261_vm0, %v13422_v49, %v9971_v21 }
0x3748   :  { %v7290_v30 = vpack.c.bf16 %v7203_v27, %v7201_v20 }
0x374a   :  { %9188 = vmatmul.msk.bf16.gmra.mxu1 %vm261_vm0, %v7290_v30 }
0x376c   :  { %v9960_v59 = vpop.permute.xlu0 %9959 }
0x376d   :  { %v9962_v44 = vunpack.i.h.bf16 %v9960_v59  ;;  %v9961_v42 = vunpack.i.l.bf16 %v9960_v59 }
0x376f   :  { %v7259_v18 = vsel %vm403_vm1, %v7255_v0, %v9962_v44  ;;  %v7258_v22 = vsel %vm403_vm1, %v7254_v23, %v9961_v42 }
0x377c   :  { %v9975_v13 = vpop.permute.xlu0 %9974 }
0x377d   :  { %v9977_v39 = vunpack.i.h.bf16 %v9975_v13  ;;  %v9976_v41 = vunpack.i.l.bf16 %v9975_v13 }
0x377f   :  { %v7261_v24 = vsel %vm403_vm1, %v7257_v54, %v9977_v39  ;;  %v7260_v4 = vsel %vm403_vm1, %v7256_v34, %v9976_v41 }
0x378c   :  { %v9965_v58 = vpop.permute.xlu1 %9964 }
0x378d   :  { %v9967_v40 = vunpack.i.h.bf16 %v9965_v58  ;;  %v9966_v60 = vunpack.i.l.bf16 %v9965_v58 }
0x378f   :  { %v7263_v2 = vsel %vm408_vm2, %v7259_v18, %v9967_v40  ;;  %v7262_v5 = vsel %vm408_vm2, %v7258_v22, %v9966_v60 }
0x3790   :  { %v7287_v45 = vpack.c.bf16 %v7263_v2, %v7262_v5 }
0x3792   :  { %7370 = vmatmul.bf16.vlgmr.msrb.gmra.mxu3 %v7287_v45 }
0x379c   :  { %v9980_v61 = vpop.permute.xlu1 %9979 }
0x379d   :  { %v9982_v6 = vunpack.i.h.bf16 %v9980_v61  ;;  %v9981_v62 = vunpack.i.l.bf16 %v9980_v61 }
0x379f   :  { %v7264_v7 = vsel %vm408_vm2, %v7260_v4, %v9981_v62  ;;  %v7265_v33 = vsel %vm408_vm2, %v7261_v24, %v9982_v6 }
0x37a0   :  { %v7289_v48 = vpack.c.bf16 %v7265_v33, %v7264_v7 }
0x37a2   :  { %7375 = vmatmul.bf16.gmra.mxu3 %v7289_v48 }
0x37b7   :  { %v7390_v37 = vpop.f32.mrf.mxu1 }
0x37bf   :  { %v7392_v12 = vpop.f32.mrf.mxu1 }
0x37c7   :  { %v7395_v27 = vpop.f32.mrf.mxu1 }
0x37cf   :  { %v7397_v40 = vpop.f32.mrf.mxu1 }
0x3815   :  { %v7371_v11 = vpop.f32.mrf.mxu3 }
0x3816   :  { %v7372_v16 = vadd.f32 %v10036_v43, %v7371_v11 }
0x3818   :  { %v13483_v49 = vadd.f32 %v7390_v37, %v7372_v16 }
0x381a   :  { %v9189_v8 = vmul.f32 -1.442695, %v13483_v49 }
0x381c   :  { %10399 = vpow2.f32 %v9189_v8 }
0x381d   :  { %v7373_v19 = vpop.f32.mrf.mxu3 }
0x381e   :  { %v7374_v14 = vadd.f32 %v10036_v43, %v7373_v19 }
0x3820   :  { %v13486_v51 = vadd.f32 %v7392_v12, %v7374_v14 }
0x3822   :  { %v10400_v35 = vpop.eup %10399  ;;  %v9190_v57 = vmul.f32 -1.442695, %v13486_v51 }
0x3823   :  { %v7416_v15 = vadd.f32 1.0, %v10400_v35 }
0x3824   :  { %10401 = vpow2.f32 %v9190_v57 }
0x3825   :  { %10403 = vrcp.f32 %v7416_v15  ;;  %v7376_v20 = vpop.f32.mrf.mxu3  ;;  %v7431_v60 = vand.u32 2147483648, %v7416_v15  ;;  %v7429_v2 = vand.u32 2147483647, %v7416_v15  ;;  %vm7425_vm2 = vweird.f32 %v7416_v15 }
0x3826   :  { %v7377_v30 = vadd.f32 %v10036_v43, %v7376_v20 }
0x3827   :  { %v7432_v21 = vor.u32 1.1754944e-38, %v7431_v60  ;;  %vm7430_vm10 = vcmp.eq.f32.partialorder %v7429_v2, 8.507059e+37 }
0x3828   :  { %v13489_v1 = vadd.f32 %v7395_v27, %v7377_v30 }
0x382a   :  { %v10402_v59 = vpop.eup %10401  ;;  %v9191_v63 = vmul.f32 -1.442695, %v13489_v1 }
0x382b   :  { %v10404_v53 = vpop.eup %10403  ;;  %v7417_v44 = vadd.f32 1.0, %v10402_v59 }
0x382c   :  { %10405 = vpow2.f32 %v9191_v63  ;;  %v7421_v42 = vmul.f32 %v10404_v53, %v7416_v15  ;;  %vm7426_vm1 = vweird.f32 %v10404_v53 }
0x382d   :  { %10407 = vrcp.f32 %v7417_v44  ;;  %v7378_v58 = vpop.f32.mrf.mxu3  ;;  %vm7427_vm9 = vmor %vm7425_vm2, %vm7426_vm1  ;;  %v7446_v34 = vand.u32 2147483648, %v7417_v44  ;;  %v7444_v62 = vand.u32 2147483647, %v7417_v44  ;;  %vm7440_vm12 = vweird.f32 %v7417_v44 }
0x382e   :  { %v7379_v0 = vadd.f32 %v10036_v43, %v7378_v58  ;;  %v7422_v23 = vsub.f32 1.0, %v7421_v42  ;;  %vm7658_vm2 = vcmask 31744  }
0x382f   :  { %v7447_v48 = vor.u32 1.1754944e-38, %v7446_v34  ;;  %vm7445_vm14 = vcmp.eq.f32.partialorder %v7444_v62, 8.507059e+37 }
0x3830   :  { %v13492_v18 = vadd.f32 %v7397_v40, %v7379_v0  ;;  %v7423_v22 = vmul.f32 %v10404_v53, %v7422_v23  ;;  %v9430_v23 = vld [vmem:[%s13585_s9 + $0x38] sm:$0xff]  ;;  %v9429_v40 = vld [vmem:[%s13585_s9 + $0x30] sm:$0xff] }
0x3831   :  { %7531 = vmatpush.bf16.msra.mxu3 %v9430_v23 }
0x3832   :  { %v10406_v5 = vpop.eup %10405  ;;  %v9192_v45 = vmul.f32 -1.442695, %v13492_v18  ;;  %v7424_v26 = vadd.f32 %v10404_v53, %v7423_v22 }
0x3833   :  { %v10408_v13 = vpop.eup %10407  ;;  %v7418_v29 = vadd.f32 1.0, %v10406_v5 }
0x3834   :  { %10409 = vpow2.f32 %v9192_v45  ;;  %v7428_v39 = vsel %vm7427_vm9, %v10404_v53, %v7424_v26  ;;  %v7436_v41 = vmul.f32 %v10408_v13, %v7417_v44  ;;  %vm7441_vm11 = vweird.f32 %v10408_v13 }
0x3835   :  { %10411 = vrcp.f32 %v7418_v29  ;;  %v7433_v61 = vsel %vm7430_vm10, %v7432_v21, %v7428_v39  ;;  %vm7442_vm13 = vmor %vm7440_vm12, %vm7441_vm11  ;;  %v7461_v8 = vand.u32 2147483648, %v7418_v29  ;;  %v7459_v12 = vand.u32 2147483647, %v7418_v29  ;;  %7532 = vmatpush.bf16.msra.mxu3 %v9429_v40 }
0x3836   :  { %7484 = vrot.lane.b32.xlu2 %v7433_v61, %s10493_s20  ;;  %v7437_v54 = vsub.f32 1.0, %v7436_v41  ;;  %vm7455_vm3 = vweird.f32 %v7418_v29  ;;  %vm7663_vm9 = vcmask 64512  }
0x3837   :  { %v7462_v57 = vor.u32 1.1754944e-38, %v7461_v8  ;;  %vm7460_vm5 = vcmp.eq.f32.partialorder %v7459_v12, 8.507059e+37 }
0x3838   :  { %v7438_v6 = vmul.f32 %v10408_v13, %v7437_v54 }
0x383a   :  { %v10410_v24 = vpop.eup %10409  ;;  %v7439_v4 = vadd.f32 %v10408_v13, %v7438_v6 }
0x383b   :  { %v10412_v7 = vpop.eup %10411  ;;  %v7419_v33 = vadd.f32 1.0, %v10410_v24 }
0x383c   :  { %v7443_v43 = vsel %vm7442_vm13, %v10408_v13, %v7439_v4  ;;  %v7451_v37 = vmul.f32 %v10412_v7, %v7418_v29  ;;  %vm7456_vm15 = vweird.f32 %v10412_v7 }
0x383d   :  { %10413 = vrcp.f32 %v7419_v33  ;;  %v7448_v11 = vsel %vm7445_vm14, %v7447_v48, %v7443_v43  ;;  %vm7457_vm4 = vmor %vm7455_vm3, %vm7456_vm15  ;;  %v7476_v59 = vand.u32 2147483648, %v7419_v33  ;;  %v7474_v53 = vand.u32 2147483647, %v7419_v33  ;;  %v9432_v43 = vld [vmem:[%s13587_s11 + $0x38] sm:$0xff] }
0x383e   :  { %7486 = vrot.lane.b32.xlu0 %v7448_v11, %s10493_s20  ;;  %v7452_v16 = vsub.f32 1.0, %v7451_v37  ;;  %vm7470_vm7 = vweird.f32 %v7419_v33  ;;  %10415 = vtanh.f32 %v13483_v49  ;;  %7621 = vmatpush.bf16.msra.mxu1 %v9432_v43 }
0x383f   :  { %v7477_v42 = vor.u32 1.1754944e-38, %v7476_v59  ;;  %vm7475_vm1 = vcmp.eq.f32.partialorder %v7474_v53, 8.507059e+37  ;;  %10417 = vtanh.f32 %v13486_v51  ;;  %v7638_v59 = vmul.f32 %v12111_v36, %v10634_v9 }
0x3840   :  { %v7453_v19 = vmul.f32 %v10412_v7, %v7452_v16  ;;  %10419 = vtanh.f32 %v13489_v1  ;;  %v10037_v1 = vld [vmem:[%s13586_s10 + $0x3] ss:$0 sm:$0xff] }
0x3841   :  { %10421 = vtanh.f32 %v13492_v18 }
0x3842   :  { %v7454_v14 = vadd.f32 %v10412_v7, %v7453_v19 }
0x3843   :  { %v10414_v35 = vpop.eup %10413 }
0x3844   :  { %v7458_v15 = vsel %vm7457_vm4, %v10412_v7, %v7454_v14  ;;  %v7466_v20 = vmul.f32 %v10414_v35, %v7419_v33  ;;  %vm7471_vm6 = vweird.f32 %v10414_v35  ;;  %v10416_v22 = vpop.eup %10415 }
0x3845   :  { %v7463_v27 = vsel %vm7460_vm5, %v7462_v57, %v7458_v15  ;;  %vm7472_vm8 = vmor %vm7470_vm7, %vm7471_vm6  ;;  %v10418_v2 = vpop.eup %10417 }
0x3846   :  { %7488 = vrot.lane.b32.xlu1 %v7463_v27, %s10493_s20  ;;  %v7467_v30 = vsub.f32 1.0, %v7466_v20  ;;  %v10420_v21 = vpop.eup %10419 }
0x3847   :  { %v10422_v39 = vpop.eup %10421 }
0x3848   :  { %v7468_v63 = vmul.f32 %v10414_v35, %v7467_v30 }
0x384a   :  { %v7469_v44 = vadd.f32 %v10414_v35, %v7468_v63 }
0x384c   :  { %v7473_v58 = vsel %vm7472_vm8, %v10414_v35, %v7469_v44 }
0x384d   :  { %v7478_v0 = vsel %vm7475_vm1, %v7477_v42, %v7473_v58 }
0x384e   :  { %7490 = vrot.lane.b32.xlu2 %v7478_v0, %s10493_s20  ;;  %v7639_v0 = vmul.f32 %v12118_v28, %v10636_v10 }
0x3856   :  { %7568 = vrot.lane.b32.xlu2 %v10037_v1, %s10491_s14 }
0x3890   :  { %v7485_v60 = vpop.permute.xlu2 %7484 }
0x3891   :  { %v7496_v45 = vmul.f32 %v10416_v22, %v7485_v60 }
0x38a8   :  { %v7491_v29 = vpop.permute.xlu2 %7490 }
0x38a9   :  { %v7499_v49 = vmul.f32 %v10422_v39, %v7491_v29  ;;  %v7641_v29 = vmul.f32 %v12135_v32, %v10622_v47 }
0x38b0   :  { %v7487_v5 = vpop.permute.xlu0 %7486  ;;  %v7569_v4 = vpop.permute.xlu2 %7568 }
0x38b1   :  { %v7497_v26 = vmul.f32 %v10418_v2, %v7487_v5  ;;  %v7640_v2 = vmul.f32 %v12128_v50, %v10624_v52 }
0x38b3   :  { %v7505_v13 = vpack.c.bf16 %v7497_v26, %v7496_v45 }
0x38b5   :  { %9205 = vmatmul.msk.bf16.vlgmr.msra.gmra.mxu3 %vm261_vm0, %v7505_v13 }
0x38b8   :  { %v7489_v41 = vpop.permute.xlu1 %7488 }
0x38b9   :  { %v7498_v61 = vmul.f32 %v10420_v21, %v7489_v41 }
0x38bb   :  { %v7506_v51 = vpack.c.bf16 %v7499_v49, %v7498_v61 }
0x38c5   :  { %9206 = vmatmul.msk.bf16.gmra.mxu3 %vm261_vm0, %v7506_v51 }
0x3938   :  { %v7534_v54 = vpop.f32.mrf.mxu3 }
0x3939   :  { %7548 = vrot.lane.b32.xlu0 %v7534_v54, %s10491_s14 }
0x3940   :  { %v7536_v18 = vpop.f32.mrf.mxu3 }
0x3941   :  { %7550 = vrot.lane.b32.xlu1 %v7536_v18, %s10491_s14 }
0x3948   :  { %v7539_v34 = vpop.f32.mrf.mxu3 }
0x3949   :  { %7552 = vrot.lane.b32.xlu0 %v7539_v34, %s10491_s14 }
0x3950   :  { %v7541_v6 = vpop.f32.mrf.mxu3 }
0x3951   :  { %7554 = vrot.lane.b32.xlu1 %v7541_v6, %s10491_s14 }
0x3959   :  { %7646 = vrot.lane.b32.xlu1 %v12817_v3, %s10495_s17  ;;  %v9431_v3 = vld [vmem:[%s13587_s11 + $0x30] sm:$0xff] }
0x395a   :  { %7622 = vmatpush.bf16.msra.mxu1 %v9431_v3 }
0x3961   :  { %7652 = vrot.lane.b32.xlu1 %v12844_v38, %s10495_s17 }
0x39ab   :  { %v7549_v62 = vpop.permute.xlu0 %7548 }
0x39ac   :  { %v7560_v24 = vadd.f32 %v7549_v62, %v13356_v56 }
0x39ae   :  { %v7571_v33 = vadd.f32 %v7569_v4, %v7560_v24 }
0x39b0   :  { %v7575_v38 = vmul.f32 %v7571_v33, %v10634_v9 }
0x39b3   :  { %v7551_v7 = vpop.permute.xlu1 %7550 }
0x39b4   :  { %v7561_v48 = vadd.f32 %v7551_v7, %v13360_v17 }
0x39b6   :  { %v7572_v37 = vadd.f32 %v7569_v4, %v7561_v48 }
0x39b8   :  { %v7576_v11 = vmul.f32 %v7572_v37, %v10636_v10 }
0x39ba   :  { %v7584_v56 = vpack.c.bf16 %v7576_v11, %v7575_v38 }
0x39bb   :  { %v7553_v16 = vpop.permute.xlu0 %7552 }
0x39bc   :  { %7593 = vrot.lane.b32.xlu2 %v7584_v56, %s10493_s20  ;;  %v7562_v17 = vadd.f32 %v7553_v16, %v13364_v46 }
0x39be   :  { %v7573_v19 = vadd.f32 %v7569_v4, %v7562_v17 }
0x39c0   :  { %v7577_v35 = vmul.f32 %v7573_v19, %v10624_v52 }
0x39c3   :  { %v7555_v8 = vpop.permute.xlu1 %7554 }
0x39c4   :  { %v7563_v12 = vadd.f32 %v7555_v8, %v13371_v25  ;;  %7648 = vrot.lane.b32.xlu2 %v12825_v31, %s10495_s17  ;;  %v10038_v31 = vld [vmem:[%s13588_s12 + $0x3] ss:$0 sm:$0xff] }
0x39c6   :  { %v7574_v14 = vadd.f32 %v7569_v4, %v7563_v12 }
0x39c8   :  { %v7578_v57 = vmul.f32 %v7574_v14, %v10622_v47 }
0x39ca   :  { %v7585_v15 = vpack.c.bf16 %v7578_v57, %v7577_v35 }
0x39cc   :  { %7595 = vrot.lane.b32.xlu0 %v7585_v15, %s10493_s20 }
0x39d4   :  { %7650 = vrot.lane.b32.xlu0 %v12836_v55, %s10495_s17  ;;  %v7647_v55 = vpop.permute.xlu1 %7646 }
0x39dc   :  { %v7653_v39 = vpop.permute.xlu1 %7652 }
0x3a16   :  { %v7594_v20 = vpop.permute.xlu2 %7593 }
0x3a17   :  { %9221 = vmatmul.msk.bf16.vlgmr.msra.gmra.mxu1 %vm261_vm0, %v7594_v20 }
0x3a3e   :  { %v7596_v46 = vpop.permute.xlu0 %7595 }
0x3a3f   :  { %9222 = vmatmul.msk.bf16.gmra.mxu1 %vm261_vm0, %v7596_v46 }
0x3a46   :  { %v7651_v45 = vpop.permute.xlu0 %7650 }
0x3a94   :  { %v7624_v25 = vpop.f32.mrf.mxu1 }
0x3a95   :  { %v7625_v27 = vadd.f32 %v10038_v31, %v7624_v25 }
0x3a97   :  { %v7634_v30 = vmul.f32 %v7625_v27, %v10634_v9  ;;  %v7649_v9 = vpop.permute.xlu2 %7648 }
0x3a99   :  { %v7642_v63 = vadd.f32 %v7638_v59, %v7634_v30 }
0x3a9b   :  { %v7659_v53 = vsel %vm7658_vm2, %v7642_v63, %v7647_v55 }
0x3a9c   :  { %7664 = vst.msk [vmem:[%s13589_s13] sm:$0xff] %vm7663_vm9, %v7659_v53  ;;  %v7626_v44 = vpop.f32.mrf.mxu1 }
0x3a9d   :  { %v7627_v42 = vadd.f32 %v10038_v31, %v7626_v44 }
0x3a9f   :  { %v7635_v58 = vmul.f32 %v7627_v42, %v10636_v10 }
0x3aa1   :  { %v7643_v23 = vadd.f32 %v7639_v0, %v7635_v58 }
0x3aa3   :  { %v7660_v36 = vsel %vm7658_vm2, %v7643_v23, %v7649_v9 }
0x3aa4   :  { %7665 = vst.msk [vmem:[%s13589_s13 + $0x8] sm:$0xff] %vm7663_vm9, %v7660_v36 }
0x3abc   :  { %v7629_v40 = vpop.f32.mrf.mxu1 }
0x3abd   :  { %v7630_v60 = vadd.f32 %v10038_v31, %v7629_v40 }
0x3abf   :  { %v7636_v22 = vmul.f32 %v7630_v60, %v10624_v52 }
0x3ac1   :  { %v7644_v5 = vadd.f32 %v7640_v2, %v7636_v22 }
0x3ac3   :  { %v7661_v10 = vsel %vm7658_vm2, %v7644_v5, %v7651_v45 }
0x3ac4   :  { %7666 = vst.msk [vmem:[%s13589_s13 + $0x10] sm:$0xff] %vm7663_vm9, %v7661_v10  ;;  %v7631_v28 = vpop.f32.mrf.mxu1 }
0x3ac5   :  { %v7632_v26 = vadd.f32 %v10038_v31, %v7631_v28 }
0x3ac7   :  { %v7637_v13 = vmul.f32 %v7632_v26, %v10622_v47 }
0x3ac9   :  { %v7645_v21 = vadd.f32 %v7641_v29, %v7637_v13 }
0x3acb   :  { %v7662_v52 = vsel %vm7658_vm2, %v7645_v21, %v7653_v39 }
0x3acc   :  { %7667 = vst.msk [vmem:[%s13589_s13 + $0x18] sm:$0xff] %vm7663_vm9, %v7662_v52 }

</bundles_post_ra>
